<compile_context>
chip_gen: v7x
topology: tpu7x:2x2x1
jax: 0.10.0
libtpu: 0.0.40
codegen_flags: <defaults>
</compile_context>

<pallas_src>
import functools

import jax
import jax.numpy as jnp
from jax.experimental import pallas as pl
from jax.experimental.pallas import tpu as pltpu

INODES = 2891
ONODES = 129
HIDDEN = 512

IN_PAD = 2944        # next multiple of 128 >= 2891
OUT_PAD = 256        # next multiple of 128 >= 129
HALF = OUT_PAD // 2  # 128 == pred width; valuation lives at lane 128
BIAS_ROWS = 8        # five bias rows packed into one (8, 512) f32 slab


def _round_up(n, m):
    return ((n + m - 1) // m) * m


def _max_batch_tile():
    """128-row tiles on v5 (4x128^2 MXU); 256 rows on v6e/v7x (2x256^2 MXU)."""
    try:
        kind = jax.devices()[0].device_kind.lower()
    except Exception:
        return 128
    return 128 if "v5" in kind else 256


def _mlp_kernel(x_ref, w1_ref, w2_ref, w3_ref, w4_ref, w5_ref, b_ref, out_ref):
    # Biases come in as one (8, 512) f32 slab; static row/lane-aligned slices.
    b1 = b_ref[0:1, :]
    b2 = b_ref[1:2, :]
    b3 = b_ref[2:3, :]
    b4 = b_ref[3:4, :]
    b5 = b_ref[4:5, :OUT_PAD]

    # Layer 1: (BT, IN_PAD) bf16 @ (IN_PAD, 512) bf16 -> f32 accumulate.
    h = jnp.dot(x_ref[...], w1_ref[...], preferred_element_type=jnp.float32) + b1
    h = jnp.maximum(h, 0.0).astype(jnp.bfloat16)
    h = jnp.dot(h, w2_ref[...], preferred_element_type=jnp.float32) + b2
    h = jnp.maximum(h, 0.0).astype(jnp.bfloat16)
    h = jnp.dot(h, w3_ref[...], preferred_element_type=jnp.float32) + b3
    h = jnp.maximum(h, 0.0).astype(jnp.bfloat16)
    h = jnp.dot(h, w4_ref[...], preferred_element_type=jnp.float32) + b4
    h = jnp.maximum(h, 0.0).astype(jnp.bfloat16)
    logits = jnp.dot(h, w5_ref[...], preferred_element_type=jnp.float32) + b5

    # Lanes [0,128): pred (identity).  Lanes [128,256): valuation at lane 128,
    # zero padding above -> tanh (tanh(0)=0, padding stays zero).  Two
    # lane-aligned, unmasked stores; output is bf16 to halve the writeback.
    out_ref[:, :HALF] = logits[:, :HALF].astype(out_ref.dtype)
    out_ref[:, HALF:] = jnp.tanh(logits[:, HALF:]).astype(out_ref.dtype)


def init_params(key):
    """Deterministic PyTorch-style (uniform +-1/sqrt(fan_in)) Linear init (f32)."""
    dims = [(INODES, HIDDEN), (HIDDEN, HIDDEN), (HIDDEN, HIDDEN),
            (HIDDEN, HIDDEN), (HIDDEN, ONODES)]
    params = []
    for fan_in, fan_out in dims:
        key, kw, kb = jax.random.split(key, 3)
        bound = 1.0 / (fan_in ** 0.5)
        W = jax.random.uniform(kw, (fan_in, fan_out), jnp.float32, -bound, bound)
        b = jax.random.uniform(kb, (fan_out,), jnp.float32, -bound, bound)
        params.append((W, b))
    return params


def prepare_params(params):
    """One-time param prep: pad to TPU-friendly shapes, cast weights to bf16,
    and pack all five biases into a single (8, 512) f32 slab (one DMA)."""
    (W1, b1), (W2, b2), (W3, b3), (W4, b4), (W5, b5) = params
    W1p = jnp.pad(W1, ((0, IN_PAD - INODES), (0, 0))).astype(jnp.bfloat16)
    W2p = W2.astype(jnp.bfloat16)
    W3p = W3.astype(jnp.bfloat16)
    W4p = W4.astype(jnp.bfloat16)
    W5p = jnp.pad(W5, ((0, 0), (0, OUT_PAD - ONODES))).astype(jnp.bfloat16)
    bias = jnp.zeros((BIAS_ROWS, HIDDEN), jnp.float32)
    bias = bias.at[0, :].set(b1.astype(jnp.float32))
    bias = bias.at[1, :].set(b2.astype(jnp.float32))
    bias = bias.at[2, :].set(b3.astype(jnp.float32))
    bias = bias.at[3, :].set(b4.astype(jnp.float32))
    bias = bias.at[4, :ONODES].set(b5.astype(jnp.float32))
    return (W1p, W2p, W3p, W4p, W5p, bias)


def neural_network_forward(x, prepared, single_buffer_weights=True):
    """Returns (pred, valuation) exactly like the PyTorch module.

    `prepared` is the output of prepare_params().  Batch as many states as
    possible per call: the ~4.6 MiB weight stream is DMA'd once and reused
    across every batch tile in the grid.
    """
    B = x.shape[0]
    x = x.reshape(B, -1)                               # nn.Flatten()
    assert x.shape[1] == INODES

    # Batch tiling: small batches -> a single tile rounded to the 8-sublane
    # boundary; large batches -> MXU-width tiles pipelined over a grid.
    max_bt = _max_batch_tile()
    B_pad = _round_up(B, 8)
    if B_pad <= max_bt:
        BT = B_pad
    else:
        BT = max_bt
        B_pad = _round_up(B, BT)
    num_tiles = B_pad // BT

    # TODO(synk): for a large-batch training path, store states pre-padded as
    # bf16 (B, IN_PAD) at the producer so this extra HBM pass over x vanishes.
    x_pad = jnp.pad(x.astype(jnp.bfloat16),
                    ((0, B_pad - B), (0, IN_PAD - INODES)))

    W1p, W2p, W3p, W4p, W5p, bias = prepared

    # x / out are tiled over the batch grid axis; weights & the bias slab use
    # constant index_maps (full-array blocks) so they are DMA'd once and stay
    # VMEM-resident.  Buffered(1): a second buffer for a never-changing block
    # is dead VMEM.
    x_spec = pl.BlockSpec((BT, IN_PAD), lambda i: (i, 0))
    out_spec = pl.BlockSpec((BT, OUT_PAD), lambda i: (i, 0))

    if single_buffer_weights:
        def const_spec(shape):
            return pl.BlockSpec(shape, lambda i: (0, 0),
                                pipeline_mode=pl.Buffered(1))
    else:
        def const_spec(shape):
            return pl.BlockSpec(shape, lambda i: (0, 0))

    in_specs = [
        x_spec,
        const_spec((IN_PAD, HIDDEN)),
        const_spec((HIDDEN, HIDDEN)),
        const_spec((HIDDEN, HIDDEN)),
        const_spec((HIDDEN, HIDDEN)),
        const_spec((HIDDEN, OUT_PAD)),
        const_spec((BIAS_ROWS, HIDDEN)),
    ]

    # With only a couple of tiles, "parallel" on v7x makes each TensorCore
    # stream its own copy of the weights; use "arbitrary" unless there is
    # enough batch to amortize that.
    semantics = ("parallel",) if num_tiles >= 4 else ("arbitrary",)

    weight_elems = IN_PAD * HIDDEN + 3 * HIDDEN * HIDDEN + HIDDEN * OUT_PAD
    cost = pl.CostEstimate(
        flops=2 * B_pad * weight_elems,
        transcendentals=B_pad * HALF,
        bytes_accessed=(weight_elems * 2                    # bf16 weights
                        + BIAS_ROWS * HIDDEN * 4            # f32 bias slab
                        + B_pad * IN_PAD * 2                # bf16 input
                        + B_pad * OUT_PAD * 2),             # bf16 output
    )

    out = pl.pallas_call(
        _mlp_kernel,
        out_shape=jax.ShapeDtypeStruct((B_pad, OUT_PAD), jnp.bfloat16),
        grid=(num_tiles,),
        in_specs=in_specs,
        out_specs=out_spec,
        compiler_params=pltpu.CompilerParams(
            dimension_semantics=semantics,
            vmem_limit_bytes=24 << 20,
        ),
        cost_estimate=cost,
    )(x_pad, W1p, W2p, W3p, W4p, W5p, bias)

    logits = out[:B, :ONODES].astype(jnp.float32)
    pred = logits[:, :ONODES - 1]          # (B, 128), raw
    valuation = logits[:, ONODES - 1:]     # (B, 1), already tanh'd in-kernel
    return pred, valuation


def _reference_forward(x, params):
    """Pure-JAX f32 reference of the PyTorch forward."""
    h = x.reshape(x.shape[0], -1).astype(jnp.float32)
    for i, (W, b) in enumerate(params):
        h = h @ W + b
        if i < len(params) - 1:
            h = jnp.maximum(h, 0.0)
    pred = h[:, :ONODES - 1]
    valuation = jnp.tanh(h[:, ONODES - 1:])
    return pred, valuation


if __name__ == "__main__":
    key = jax.random.PRNGKey(0)
    key, kx = jax.random.split(key)
    params = init_params(key)
    prepared = prepare_params(params)                 # one-time, off the hot path

    x = jax.random.normal(kx, (2, INODES), jnp.float32)   # batch=2 state vectors

    fwd = jax.jit(functools.partial(neural_network_forward,
                                    single_buffer_weights=True))
    try:
        pred, valuation = fwd(x, prepared)
        jax.block_until_ready((pred, valuation))
    except Exception:
        # Fallback for JAX builds that reject single-buffered pipeline_mode.
        fwd = jax.jit(functools.partial(neural_network_forward,
                                        single_buffer_weights=False))
        pred, valuation = fwd(x, prepared)
        jax.block_until_ready((pred, valuation))

    assert pred.shape == (2, ONODES - 1) and valuation.shape == (2, 1)
    ref_pred, ref_val = _reference_forward(x, params)
    # Tolerance accounts for bf16 weight/activation/output storage (f32 accum).
    assert jnp.allclose(pred, ref_pred, rtol=2e-2, atol=2e-2)
    assert jnp.allclose(valuation, ref_val, rtol=2e-2, atol=2e-2)

    # Multi-tile path: amortizes the weight DMA over many rows (the high-value
    # usage pattern flagged in the review).
    key, kx2 = jax.random.split(key)
    B2 = _max_batch_tile() + 5
    x2 = jax.random.normal(kx2, (B2, INODES), jnp.float32)
    pred2, val2 = fwd(x2, prepared)
    jax.block_until_ready((pred2, val2))
    assert pred2.shape == (B2, ONODES - 1) and val2.shape == (B2, 1)
    ref_pred2, ref_val2 = _reference_forward(x2, params)
    assert jnp.allclose(pred2, ref_pred2, rtol=2e-2, atol=2e-2)
    assert jnp.allclose(val2, ref_val2, rtol=2e-2, atol=2e-2)

    print("KERNEL_OK")
</pallas_src>

<mosaic_0001>
module attributes {stable_mosaic.version = 11 : i64} {
  func.func @_mlp_kernel(%arg0: i32, %arg1: memref<8x2944xbf16, #tpu.memory_space<vmem>>, %arg2: memref<2944x512xbf16, #tpu.memory_space<vmem>>, %arg3: memref<512x512xbf16, #tpu.memory_space<vmem>>, %arg4: memref<512x512xbf16, #tpu.memory_space<vmem>>, %arg5: memref<512x512xbf16, #tpu.memory_space<vmem>>, %arg6: memref<512x256xbf16, #tpu.memory_space<vmem>>, %arg7: memref<8x512xf32, #tpu.memory_space<vmem>>, %arg8: memref<8x256xbf16, #tpu.memory_space<vmem>>) attributes {dimension_semantics = [#tpu.dimension_semantics<arbitrary>], iteration_bounds = array<i64: 1>, scalar_prefetch = 0 : i64, scratch_operands = 0 : i64, tpu.core_type = #tpu.core_type<tc>, window_params = [{transform_indices = @transform_0, window_bounds = array<i64: 8, 2944>}, {pipeline_mode = #tpu.pipeline_mode<synchronous>, transform_indices = @transform_1, window_bounds = array<i64: 2944, 512>}, {pipeline_mode = #tpu.pipeline_mode<synchronous>, transform_indices = @transform_2, window_bounds = array<i64: 512, 512>}, {pipeline_mode = #tpu.pipeline_mode<synchronous>, transform_indices = @transform_3, window_bounds = array<i64: 512, 512>}, {pipeline_mode = #tpu.pipeline_mode<synchronous>, transform_indices = @transform_4, window_bounds = array<i64: 512, 512>}, {pipeline_mode = #tpu.pipeline_mode<synchronous>, transform_indices = @transform_5, window_bounds = array<i64: 512, 256>}, {pipeline_mode = #tpu.pipeline_mode<synchronous>, transform_indices = @transform_6, window_bounds = array<i64: 8, 512>}, {transform_indices = @transform_7, window_bounds = array<i64: 8, 256>}]} {
    %c0 = arith.constant 0 : index
    %c0_0 = arith.constant 0 : index
    %0 = vector.load %arg7[%c0, %c0_0] : memref<8x512xf32, #tpu.memory_space<vmem>>, vector<1x512xf32>
    %c1 = arith.constant 1 : index
    %c0_1 = arith.constant 0 : index
    %1 = vector.load %arg7[%c1, %c0_1] : memref<8x512xf32, #tpu.memory_space<vmem>>, vector<1x512xf32>
    %c2 = arith.constant 2 : index
    %c0_2 = arith.constant 0 : index
    %2 = vector.load %arg7[%c2, %c0_2] : memref<8x512xf32, #tpu.memory_space<vmem>>, vector<1x512xf32>
    %c3 = arith.constant 3 : index
    %c0_3 = arith.constant 0 : index
    %3 = vector.load %arg7[%c3, %c0_3] : memref<8x512xf32, #tpu.memory_space<vmem>>, vector<1x512xf32>
    %c4 = arith.constant 4 : index
    %c0_4 = arith.constant 0 : index
    %4 = vector.load %arg7[%c4, %c0_4] : memref<8x512xf32, #tpu.memory_space<vmem>>, vector<1x256xf32>
    %c0_5 = arith.constant 0 : index
    %c0_6 = arith.constant 0 : index
    %5 = vector.load %arg1[%c0_5, %c0_6] : memref<8x2944xbf16, #tpu.memory_space<vmem>>, vector<8x2944xbf16>
    %c0_7 = arith.constant 0 : index
    %c0_8 = arith.constant 0 : index
    %6 = vector.load %arg2[%c0_7, %c0_8] : memref<2944x512xbf16, #tpu.memory_space<vmem>>, vector<2944x512xbf16>
    %cst = arith.constant dense<0.000000e+00> : vector<8x512xf32>
    %7 = tpu.matmul %5, %6, %cst {dimension_numbers = #tpu.dot_dimension_numbers<[1], [0], [0], [1], [0, 0, 1, 1], [], []>} : vector<8x2944xbf16>, vector<2944x512xbf16>, vector<8x512xf32> -> vector<8x512xf32>
    %8 = vector.broadcast %0 : vector<1x512xf32> to vector<8x512xf32>
    %9 = arith.addf %7, %8 : vector<8x512xf32>
    %cst_9 = arith.constant 0.000000e+00 : f32
    %10 = vector.broadcast %cst_9 : f32 to vector<8x512xf32>
    %11 = arith.maximumf %9, %10 : vector<8x512xf32>
    %12 = arith.truncf %11 : vector<8x512xf32> to vector<8x512xbf16>
    %c0_10 = arith.constant 0 : index
    %c0_11 = arith.constant 0 : index
    %13 = vector.load %arg3[%c0_10, %c0_11] : memref<512x512xbf16, #tpu.memory_space<vmem>>, vector<512x512xbf16>
    %cst_12 = arith.constant dense<0.000000e+00> : vector<8x512xf32>
    %14 = tpu.matmul %12, %13, %cst_12 {dimension_numbers = #tpu.dot_dimension_numbers<[1], [0], [0], [1], [0, 0, 1, 1], [], []>} : vector<8x512xbf16>, vector<512x512xbf16>, vector<8x512xf32> -> vector<8x512xf32>
    %15 = vector.broadcast %1 : vector<1x512xf32> to vector<8x512xf32>
    %16 = arith.addf %14, %15 : vector<8x512xf32>
    %cst_13 = arith.constant 0.000000e+00 : f32
    %17 = vector.broadcast %cst_13 : f32 to vector<8x512xf32>
    %18 = arith.maximumf %16, %17 : vector<8x512xf32>
    %19 = arith.truncf %18 : vector<8x512xf32> to vector<8x512xbf16>
    %c0_14 = arith.constant 0 : index
    %c0_15 = arith.constant 0 : index
    %20 = vector.load %arg4[%c0_14, %c0_15] : memref<512x512xbf16, #tpu.memory_space<vmem>>, vector<512x512xbf16>
    %cst_16 = arith.constant dense<0.000000e+00> : vector<8x512xf32>
    %21 = tpu.matmul %19, %20, %cst_16 {dimension_numbers = #tpu.dot_dimension_numbers<[1], [0], [0], [1], [0, 0, 1, 1], [], []>} : vector<8x512xbf16>, vector<512x512xbf16>, vector<8x512xf32> -> vector<8x512xf32>
    %22 = vector.broadcast %2 : vector<1x512xf32> to vector<8x512xf32>
    %23 = arith.addf %21, %22 : vector<8x512xf32>
    %cst_17 = arith.constant 0.000000e+00 : f32
    %24 = vector.broadcast %cst_17 : f32 to vector<8x512xf32>
    %25 = arith.maximumf %23, %24 : vector<8x512xf32>
    %26 = arith.truncf %25 : vector<8x512xf32> to vector<8x512xbf16>
    %c0_18 = arith.constant 0 : index
    %c0_19 = arith.constant 0 : index
    %27 = vector.load %arg5[%c0_18, %c0_19] : memref<512x512xbf16, #tpu.memory_space<vmem>>, vector<512x512xbf16>
    %cst_20 = arith.constant dense<0.000000e+00> : vector<8x512xf32>
    %28 = tpu.matmul %26, %27, %cst_20 {dimension_numbers = #tpu.dot_dimension_numbers<[1], [0], [0], [1], [0, 0, 1, 1], [], []>} : vector<8x512xbf16>, vector<512x512xbf16>, vector<8x512xf32> -> vector<8x512xf32>
    %29 = vector.broadcast %3 : vector<1x512xf32> to vector<8x512xf32>
    %30 = arith.addf %28, %29 : vector<8x512xf32>
    %cst_21 = arith.constant 0.000000e+00 : f32
    %31 = vector.broadcast %cst_21 : f32 to vector<8x512xf32>
    %32 = arith.maximumf %30, %31 : vector<8x512xf32>
    %33 = arith.truncf %32 : vector<8x512xf32> to vector<8x512xbf16>
    %c0_22 = arith.constant 0 : index
    %c0_23 = arith.constant 0 : index
    %34 = vector.load %arg6[%c0_22, %c0_23] : memref<512x256xbf16, #tpu.memory_space<vmem>>, vector<512x256xbf16>
    %cst_24 = arith.constant dense<0.000000e+00> : vector<8x256xf32>
    %35 = tpu.matmul %33, %34, %cst_24 {dimension_numbers = #tpu.dot_dimension_numbers<[1], [0], [0], [1], [0, 0, 1, 1], [], []>} : vector<8x512xbf16>, vector<512x256xbf16>, vector<8x256xf32> -> vector<8x256xf32>
    %36 = vector.broadcast %4 : vector<1x256xf32> to vector<8x256xf32>
    %37 = arith.addf %35, %36 : vector<8x256xf32>
    %38 = vector.extract_strided_slice %37 {offsets = [0, 0], sizes = [8, 128], strides = [1, 1]} : vector<8x256xf32> to vector<8x128xf32>
    %39 = arith.truncf %38 : vector<8x128xf32> to vector<8x128xbf16>
    %c0_25 = arith.constant 0 : index
    %c0_26 = arith.constant 0 : index
    %40 = vector.load %arg8[%c0_25, %c0_26] : memref<8x256xbf16, #tpu.memory_space<vmem>>, vector<8x128xbf16>
    tpu.vector_store %arg8[%c0_25, %c0_26], %39 {strides = array<i32>} : memref<8x256xbf16, #tpu.memory_space<vmem>>, vector<8x128xbf16>,
    %41 = vector.extract_strided_slice %37 {offsets = [0, 128], sizes = [8, 128], strides = [1, 1]} : vector<8x256xf32> to vector<8x128xf32>
    %42 = math.tanh %41 : vector<8x128xf32>
    %43 = arith.truncf %42 : vector<8x128xf32> to vector<8x128xbf16>
    %c0_27 = arith.constant 0 : index
    %c128 = arith.constant 128 : index
    %44 = vector.load %arg8[%c0_27, %c128] : memref<8x256xbf16, #tpu.memory_space<vmem>>, vector<8x128xbf16>
    tpu.vector_store %arg8[%c0_27, %c128], %43 {strides = array<i32>} : memref<8x256xbf16, #tpu.memory_space<vmem>>, vector<8x128xbf16>,
    return
  }
  func.func @transform_0(%arg0: i32) -> (i32, i32) {
    %c0_i32 = arith.constant 0 : i32
    %c0_i32_0 = arith.constant 0 : i32
    return %arg0, %c0_i32 : i32, i32
  }
  func.func @transform_1(%arg0: i32) -> (i32, i32) {
    %c0_i32 = arith.constant 0 : i32
    %c0_i32_0 = arith.constant 0 : i32
    %c0_i32_1 = arith.constant 0 : i32
    return %c0_i32, %c0_i32_0 : i32, i32
  }
  func.func @transform_2(%arg0: i32) -> (i32, i32) {
    %c0_i32 = arith.constant 0 : i32
    %c0_i32_0 = arith.constant 0 : i32
    %c0_i32_1 = arith.constant 0 : i32
    return %c0_i32, %c0_i32_0 : i32, i32
  }
  func.func @transform_3(%arg0: i32) -> (i32, i32) {
    %c0_i32 = arith.constant 0 : i32
    %c0_i32_0 = arith.constant 0 : i32
    %c0_i32_1 = arith.constant 0 : i32
    return %c0_i32, %c0_i32_0 : i32, i32
  }
  func.func @transform_4(%arg0: i32) -> (i32, i32) {
    %c0_i32 = arith.constant 0 : i32
    %c0_i32_0 = arith.constant 0 : i32
    %c0_i32_1 = arith.constant 0 : i32
    return %c0_i32, %c0_i32_0 : i32, i32
  }
  func.func @transform_5(%arg0: i32) -> (i32, i32) {
    %c0_i32 = arith.constant 0 : i32
    %c0_i32_0 = arith.constant 0 : i32
    %c0_i32_1 = arith.constant 0 : i32
    return %c0_i32, %c0_i32_0 : i32, i32
  }
  func.func @transform_6(%arg0: i32) -> (i32, i32) {
    %c0_i32 = arith.constant 0 : i32
    %c0_i32_0 = arith.constant 0 : i32
    %c0_i32_1 = arith.constant 0 : i32
    return %c0_i32, %c0_i32_0 : i32, i32
  }
  func.func @transform_7(%arg0: i32) -> (i32, i32) {
    %c0_i32 = arith.constant 0 : i32
    %c0_i32_0 = arith.constant 0 : i32
    return %arg0, %c0_i32 : i32, i32
  }
}

module attributes {stable_mosaic.version = 11 : i64} {
  func.func @_mlp_kernel(%arg0: i32, %arg1: memref<8x2944xbf16, #tpu.memory_space<vmem>>, %arg2: memref<2944x512xbf16, #tpu.memory_space<vmem>>, %arg3: memref<512x512xbf16, #tpu.memory_space<vmem>>, %arg4: memref<512x512xbf16, #tpu.memory_space<vmem>>, %arg5: memref<512x512xbf16, #tpu.memory_space<vmem>>, %arg6: memref<512x256xbf16, #tpu.memory_space<vmem>>, %arg7: memref<8x512xf32, #tpu.memory_space<vmem>>, %arg8: memref<8x256xbf16, #tpu.memory_space<vmem>>) attributes {dimension_semantics = [#tpu.dimension_semantics<arbitrary>], iteration_bounds = array<i64: 1>, scalar_prefetch = 0 : i64, scratch_operands = 0 : i64, tpu.core_type = #tpu.core_type<tc>, window_params = [{transform_indices = @transform_0, window_bounds = array<i64: 8, 2944>}, {pipeline_mode = #tpu.pipeline_mode<synchronous>, transform_indices = @transform_1, window_bounds = array<i64: 2944, 512>}, {pipeline_mode = #tpu.pipeline_mode<synchronous>, transform_indices = @transform_2, window_bounds = array<i64: 512, 512>}, {pipeline_mode = #tpu.pipeline_mode<synchronous>, transform_indices = @transform_3, window_bounds = array<i64: 512, 512>}, {pipeline_mode = #tpu.pipeline_mode<synchronous>, transform_indices = @transform_4, window_bounds = array<i64: 512, 512>}, {pipeline_mode = #tpu.pipeline_mode<synchronous>, transform_indices = @transform_5, window_bounds = array<i64: 512, 256>}, {pipeline_mode = #tpu.pipeline_mode<synchronous>, transform_indices = @transform_6, window_bounds = array<i64: 8, 512>}, {transform_indices = @transform_7, window_bounds = array<i64: 8, 256>}]} {
    %c0 = arith.constant 0 : index
    %c0_0 = arith.constant 0 : index
    %0 = vector.load %arg7[%c0, %c0_0] : memref<8x512xf32, #tpu.memory_space<vmem>>, vector<1x512xf32>
    %c1 = arith.constant 1 : index
    %c0_1 = arith.constant 0 : index
    %1 = vector.load %arg7[%c1, %c0_1] : memref<8x512xf32, #tpu.memory_space<vmem>>, vector<1x512xf32>
    %c2 = arith.constant 2 : index
    %c0_2 = arith.constant 0 : index
    %2 = vector.load %arg7[%c2, %c0_2] : memref<8x512xf32, #tpu.memory_space<vmem>>, vector<1x512xf32>
    %c3 = arith.constant 3 : index
    %c0_3 = arith.constant 0 : index
    %3 = vector.load %arg7[%c3, %c0_3] : memref<8x512xf32, #tpu.memory_space<vmem>>, vector<1x512xf32>
    %c4 = arith.constant 4 : index
    %c0_4 = arith.constant 0 : index
    %4 = vector.load %arg7[%c4, %c0_4] : memref<8x512xf32, #tpu.memory_space<vmem>>, vector<1x256xf32>
    %c0_5 = arith.constant 0 : index
    %c0_6 = arith.constant 0 : index
    %5 = vector.load %arg1[%c0_5, %c0_6] : memref<8x2944xbf16, #tpu.memory_space<vmem>>, vector<8x2944xbf16>
    %c0_7 = arith.constant 0 : index
    %c0_8 = arith.constant 0 : index
    %6 = vector.load %arg2[%c0_7, %c0_8] : memref<2944x512xbf16, #tpu.memory_space<vmem>>, vector<2944x512xbf16>
    %cst = arith.constant dense<0.000000e+00> : vector<8x512xf32>
    %7 = tpu.matmul %5, %6, %cst {dimension_numbers = #tpu.dot_dimension_numbers<[1], [0], [0], [1], [0, 0, 1, 1], [], []>} : vector<8x2944xbf16>, vector<2944x512xbf16>, vector<8x512xf32> -> vector<8x512xf32>
    %8 = vector.broadcast %0 : vector<1x512xf32> to vector<8x512xf32>
    %9 = arith.addf %7, %8 : vector<8x512xf32>
    %cst_9 = arith.constant 0.000000e+00 : f32
    %10 = vector.broadcast %cst_9 : f32 to vector<8x512xf32>
    %11 = arith.maximumf %9, %10 : vector<8x512xf32>
    %12 = arith.truncf %11 : vector<8x512xf32> to vector<8x512xbf16>
    %c0_10 = arith.constant 0 : index
    %c0_11 = arith.constant 0 : index
    %13 = vector.load %arg3[%c0_10, %c0_11] : memref<512x512xbf16, #tpu.memory_space<vmem>>, vector<512x512xbf16>
    %cst_12 = arith.constant dense<0.000000e+00> : vector<8x512xf32>
    %14 = tpu.matmul %12, %13, %cst_12 {dimension_numbers = #tpu.dot_dimension_numbers<[1], [0], [0], [1], [0, 0, 1, 1], [], []>} : vector<8x512xbf16>, vector<512x512xbf16>, vector<8x512xf32> -> vector<8x512xf32>
    %15 = vector.broadcast %1 : vector<1x512xf32> to vector<8x512xf32>
    %16 = arith.addf %14, %15 : vector<8x512xf32>
    %cst_13 = arith.constant 0.000000e+00 : f32
    %17 = vector.broadcast %cst_13 : f32 to vector<8x512xf32>
    %18 = arith.maximumf %16, %17 : vector<8x512xf32>
    %19 = arith.truncf %18 : vector<8x512xf32> to vector<8x512xbf16>
    %c0_14 = arith.constant 0 : index
    %c0_15 = arith.constant 0 : index
    %20 = vector.load %arg4[%c0_14, %c0_15] : memref<512x512xbf16, #tpu.memory_space<vmem>>, vector<512x512xbf16>
    %cst_16 = arith.constant dense<0.000000e+00> : vector<8x512xf32>
    %21 = tpu.matmul %19, %20, %cst_16 {dimension_numbers = #tpu.dot_dimension_numbers<[1], [0], [0], [1], [0, 0, 1, 1], [], []>} : vector<8x512xbf16>, vector<512x512xbf16>, vector<8x512xf32> -> vector<8x512xf32>
    %22 = vector.broadcast %2 : vector<1x512xf32> to vector<8x512xf32>
    %23 = arith.addf %21, %22 : vector<8x512xf32>
    %cst_17 = arith.constant 0.000000e+00 : f32
    %24 = vector.broadcast %cst_17 : f32 to vector<8x512xf32>
    %25 = arith.maximumf %23, %24 : vector<8x512xf32>
    %26 = arith.truncf %25 : vector<8x512xf32> to vector<8x512xbf16>
    %c0_18 = arith.constant 0 : index
    %c0_19 = arith.constant 0 : index
    %27 = vector.load %arg5[%c0_18, %c0_19] : memref<512x512xbf16, #tpu.memory_space<vmem>>, vector<512x512xbf16>
    %cst_20 = arith.constant dense<0.000000e+00> : vector<8x512xf32>
    %28 = tpu.matmul %26, %27, %cst_20 {dimension_numbers = #tpu.dot_dimension_numbers<[1], [0], [0], [1], [0, 0, 1, 1], [], []>} : vector<8x512xbf16>, vector<512x512xbf16>, vector<8x512xf32> -> vector<8x512xf32>
    %29 = vector.broadcast %3 : vector<1x512xf32> to vector<8x512xf32>
    %30 = arith.addf %28, %29 : vector<8x512xf32>
    %cst_21 = arith.constant 0.000000e+00 : f32
    %31 = vector.broadcast %cst_21 : f32 to vector<8x512xf32>
    %32 = arith.maximumf %30, %31 : vector<8x512xf32>
    %33 = arith.truncf %32 : vector<8x512xf32> to vector<8x512xbf16>
    %c0_22 = arith.constant 0 : index
    %c0_23 = arith.constant 0 : index
    %34 = vector.load %arg6[%c0_22, %c0_23] : memref<512x256xbf16, #tpu.memory_space<vmem>>, vector<512x256xbf16>
    %cst_24 = arith.constant dense<0.000000e+00> : vector<8x256xf32>
    %35 = tpu.matmul %33, %34, %cst_24 {dimension_numbers = #tpu.dot_dimension_numbers<[1], [0], [0], [1], [0, 0, 1, 1], [], []>} : vector<8x512xbf16>, vector<512x256xbf16>, vector<8x256xf32> -> vector<8x256xf32>
    %36 = vector.broadcast %4 : vector<1x256xf32> to vector<8x256xf32>
    %37 = arith.addf %35, %36 : vector<8x256xf32>
    %38 = vector.extract_strided_slice %37 {offsets = [0, 0], sizes = [8, 128], strides = [1, 1]} : vector<8x256xf32> to vector<8x128xf32>
    %39 = arith.truncf %38 : vector<8x128xf32> to vector<8x128xbf16>
    %c0_25 = arith.constant 0 : index
    %c0_26 = arith.constant 0 : index
    %40 = vector.load %arg8[%c0_25, %c0_26] : memref<8x256xbf16, #tpu.memory_space<vmem>>, vector<8x128xbf16>
    tpu.vector_store %arg8[%c0_25, %c0_26], %39 {strides = array<i32>} : memref<8x256xbf16, #tpu.memory_space<vmem>>, vector<8x128xbf16>,
    %41 = vector.extract_strided_slice %37 {offsets = [0, 128], sizes = [8, 128], strides = [1, 1]} : vector<8x256xf32> to vector<8x128xf32>
    %42 = math.tanh %41 : vector<8x128xf32>
    %43 = arith.truncf %42 : vector<8x128xf32> to vector<8x128xbf16>
    %c0_27 = arith.constant 0 : index
    %c128 = arith.constant 128 : index
    %44 = vector.load %arg8[%c0_27, %c128] : memref<8x256xbf16, #tpu.memory_space<vmem>>, vector<8x128xbf16>
    tpu.vector_store %arg8[%c0_27, %c128], %43 {strides = array<i32>} : memref<8x256xbf16, #tpu.memory_space<vmem>>, vector<8x128xbf16>,
    return
  }
  func.func @transform_0(%arg0: i32) -> (i32, i32) {
    %c0_i32 = arith.constant 0 : i32
    %c0_i32_0 = arith.constant 0 : i32
    return %arg0, %c0_i32 : i32, i32
  }
  func.func @transform_1(%arg0: i32) -> (i32, i32) {
    %c0_i32 = arith.constant 0 : i32
    %c0_i32_0 = arith.constant 0 : i32
    %c0_i32_1 = arith.constant 0 : i32
    return %c0_i32, %c0_i32_0 : i32, i32
  }
  func.func @transform_2(%arg0: i32) -> (i32, i32) {
    %c0_i32 = arith.constant 0 : i32
    %c0_i32_0 = arith.constant 0 : i32
    %c0_i32_1 = arith.constant 0 : i32
    return %c0_i32, %c0_i32_0 : i32, i32
  }
  func.func @transform_3(%arg0: i32) -> (i32, i32) {
    %c0_i32 = arith.constant 0 : i32
    %c0_i32_0 = arith.constant 0 : i32
    %c0_i32_1 = arith.constant 0 : i32
    return %c0_i32, %c0_i32_0 : i32, i32
  }
  func.func @transform_4(%arg0: i32) -> (i32, i32) {
    %c0_i32 = arith.constant 0 : i32
    %c0_i32_0 = arith.constant 0 : i32
    %c0_i32_1 = arith.constant 0 : i32
    return %c0_i32, %c0_i32_0 : i32, i32
  }
  func.func @transform_5(%arg0: i32) -> (i32, i32) {
    %c0_i32 = arith.constant 0 : i32
    %c0_i32_0 = arith.constant 0 : i32
    %c0_i32_1 = arith.constant 0 : i32
    return %c0_i32, %c0_i32_0 : i32, i32
  }
  func.func @transform_6(%arg0: i32) -> (i32, i32) {
    %c0_i32 = arith.constant 0 : i32
    %c0_i32_0 = arith.constant 0 : i32
    %c0_i32_1 = arith.constant 0 : i32
    return %c0_i32, %c0_i32_0 : i32, i32
  }
  func.func @transform_7(%arg0: i32) -> (i32, i32) {
    %c0_i32 = arith.constant 0 : i32
    %c0_i32_0 = arith.constant 0 : i32
    return %arg0, %c0_i32 : i32, i32
  }
}

</mosaic_0001>

<bundles_post_ra>
// kernel: neural_network_forward.1
= control target key start
LH: loop header
LB: loop body
LE: loop exit
PB: predicated region body
PF: predicated region fallthrough
CT: control target
= control target key end

     0   :  { %12 = vsyncpa [#allocation3], 0  ;;  %s12714_s0 = inlined_call_operand.vmem [shape: bf16[8,2944], index: 0, kind: input, shape index: {}]   ;;  %s12715_s1 = inlined_call_operand.hbm [shape: bf16[2944,512], index: 1, kind: input, shape index: {}]   ;;  %s12716_s2 = inlined_call_operand.hbm [shape: bf16[512,512], index: 2, kind: input, shape index: {}]   ;;  %s12717_s3 = inlined_call_operand.hbm [shape: bf16[512,512], index: 3, kind: input, shape index: {}]   ;;  %s12718_s4 = inlined_call_operand.hbm [shape: bf16[512,512], index: 4, kind: input, shape index: {}]   ;;  %s12719_s5 = inlined_call_operand.hbm [shape: bf16[512,256], index: 5, kind: input, shape index: {}]   ;;  %s12720_s6 = inlined_call_operand.hbm [shape: f32[8,512], index: 6, kind: input, shape index: {}]   ;;  %s12721_s7 = inlined_call_operand.vmem [shape: bf16[8,256], index: 7, kind: output, shape index: {}]  }
   0x1   :  { %13 = vsyncpa [#allocation5], 0 }
   0x2   :  { %14 = vsyncpa [#allocation8], 0 }
   0x3   :  { %15 = vsyncpa [#allocation11], 0  ;;  %s12307_s24 = smov [#allocation4]   ;;  %s12308_s26 = smov [#allocation7]  }
   0x4   :  { %s35_s25 = sshll.u32 %s12307_s24, 4  ;;  %s59_s27 = sshll.u32 %s12308_s26, 4  ;;  %s36_s25 = int_to_ptr.vmem [resolvable:$true] %s35_s25  ;;  %s12358_s27 = int_to_ptr.vmem [resolvable:$true] %s59_s27 }
   0x5   :  { %s12167_s30 = scalar_lea.hbm %s12716_s2, 16384 }
   0x6   :  { %p12168_p0 = scmp.ne.s32.totalorder %s12716_s2, %s12167_s30  ;;  %p12171_p1 = scmp.lt.u32.totalorder %s12167_s30, %s12716_s2 }
   0x8   :  { %p12173_p2 = pnand %p12171_p1, %p12168_p0 }
   0xa   :  { %12176 = shalt.err (!%p12173_p2)
}
   0xb   :  { %s12177_s12 = scalar_lea.vmem %s36_s25, 16384  ;;  %p12182_p4 = scmp.lt.s32.totalorder %s36_s25, %s36_s25 }
   0xc   :  { %p12178_p3 = scmp.ne.s32.totalorder %s36_s25, %s12177_s12  ;;  %p12183_p5 = scmp.lt.s32.totalorder %s12177_s12, %s12177_s12 }
   0xe   :  { %p12184_p6 = por %p12183_p5, %p12182_p4 }
  0x10   :  { %p12185_p7 = pnand %p12184_p6, %p12178_p3 }
  0x12   :  { %12188 = shalt.err (!%p12185_p7)
}
  0x13   :  { %s12309_s13 = smov 256   ;;  %s12310_s14 = smov 16  }
  0x14   :  { %41 = dma.hbm_to_vmem [thread:$0]  %s12716_s2, 16384, %s36_s25, [#allocation5], %s12309_s13, %s12309_s13, %s12310_s14  }
  0x15   :  { %s12189_s19 = scalar_lea.hbm %s12718_s4, 16384 }
  0x16   :  { %p12190_p8 = scmp.ne.s32.totalorder %s12718_s4, %s12189_s19  ;;  %p12193_p9 = scmp.lt.u32.totalorder %s12189_s19, %s12718_s4 }
  0x18   :  { %p12195_p10 = pnand %p12193_p9, %p12190_p8 }
  0x1a   :  { %12198 = shalt.err (!%p12195_p10)
}
  0x1b   :  { %s12199_s24 = scalar_lea.vmem %s12358_s27, 16384  ;;  %p12204_p12 = scmp.lt.s32.totalorder %s12358_s27, %s12358_s27 }
  0x1c   :  { %p12200_p11 = scmp.ne.s32.totalorder %s12358_s27, %s12199_s24  ;;  %p12205_p13 = scmp.lt.s32.totalorder %s12199_s24, %s12199_s24 }
  0x1e   :  { %p12206_p0 = por %p12205_p13, %p12204_p12 }
  0x20   :  { %p12207_p1 = pnand %p12206_p0, %p12200_p11 }
  0x22   :  { %12210 = shalt.err (!%p12207_p1)
}
  0x23   :  { %65 = dma.hbm_to_vmem [thread:$0]  %s12718_s4, 16384, %s12358_s27, [#allocation8], %s12309_s13, %s12309_s13, %s12310_s14  }
  0x24   :  { %s12311_s26 = smov [#allocation2]   ;;  %s12312_s29 = smov [#allocation6]  }
  0x25   :  { %s23_s28 = sshll.u32 %s12311_s26, 4  ;;  %s47_s30 = sshll.u32 %s12312_s29, 4  ;;  %s24_s28 = int_to_ptr.vmem [resolvable:$true] %s23_s28  ;;  %s12395_s30 = int_to_ptr.vmem [resolvable:$true] %s47_s30 }
  0x26   :  { %s12211_s10 = scalar_lea.hbm %s12715_s1, 94208 }
  0x27   :  { %p12212_p2 = scmp.ne.s32.totalorder %s12715_s1, %s12211_s10  ;;  %p12215_p3 = scmp.lt.u32.totalorder %s12211_s10, %s12715_s1 }
  0x29   :  { %p12217_p4 = pnand %p12215_p3, %p12212_p2 }
  0x2b   :  { %12220 = shalt.err (!%p12217_p4)
}
  0x2c   :  { %s12221_s4 = scalar_lea.vmem %s24_s28, 94208  ;;  %p12226_p6 = scmp.lt.s32.totalorder %s24_s28, %s24_s28 }
  0x2d   :  { %p12222_p5 = scmp.ne.s32.totalorder %s24_s28, %s12221_s4  ;;  %p12227_p7 = scmp.lt.s32.totalorder %s12221_s4, %s12221_s4 }
  0x2f   :  { %p12228_p8 = por %p12227_p7, %p12226_p6 }
  0x31   :  { %p12229_p9 = pnand %p12228_p8, %p12222_p5 }
  0x33   :  { %12232 = shalt.err (!%p12229_p9)
}
  0x34   :  { %29 = dma.hbm_to_vmem [thread:$0]  %s12715_s1, 94208, %s24_s28, [#allocation3], %s12309_s13, %s12309_s13, %s12310_s14  }
  0x35   :  { %s12233_s20 = scalar_lea.hbm %s12717_s3, 16384 }
  0x36   :  { %p12234_p10 = scmp.ne.s32.totalorder %s12717_s3, %s12233_s20  ;;  %p12237_p11 = scmp.lt.u32.totalorder %s12233_s20, %s12717_s3 }
  0x38   :  { %p12239_p12 = pnand %p12237_p11, %p12234_p10 }
  0x3a   :  { %12242 = shalt.err (!%p12239_p12)
}
  0x3b   :  { %s12243_s2 = scalar_lea.vmem %s12395_s30, 16384  ;;  %p12248_p0 = scmp.lt.s32.totalorder %s12395_s30, %s12395_s30 }
  0x3c   :  { %p12244_p13 = scmp.ne.s32.totalorder %s12395_s30, %s12243_s2  ;;  %p12249_p1 = scmp.lt.s32.totalorder %s12243_s2, %s12243_s2 }
  0x3e   :  { %p12250_p2 = por %p12249_p1, %p12248_p0 }
  0x40   :  { %p12251_p3 = pnand %p12250_p2, %p12244_p13 }
  0x42   :  { %12254 = shalt.err (!%p12251_p3)
}
  0x43   :  { %53 = dma.hbm_to_vmem [thread:$0]  %s12717_s3, 16384, %s12395_s30, [#allocation5], %s12309_s13, %s12309_s13, %s12310_s14  }
  0x44   :  { %s12313_s26 = smov [#allocation9]   ;;  %s12255_s9 = scalar_lea.hbm %s12719_s5, 8192 }
  0x45   :  { %s71_s28 = sshll.u32 %s12313_s26, 4  ;;  %p12256_p4 = scmp.ne.s32.totalorder %s12719_s5, %s12255_s9  ;;  %s72_s28 = int_to_ptr.vmem [resolvable:$true] %s71_s28 }
  0x46   :  { %p12259_p5 = scmp.lt.u32.totalorder %s12255_s9, %s12719_s5 }
  0x48   :  { %p12261_p6 = pnand %p12259_p5, %p12256_p4 }
  0x4a   :  { %12264 = shalt.err (!%p12261_p6)
}
  0x4b   :  { %s12265_s16 = scalar_lea.vmem %s72_s28, 8192  ;;  %p12270_p8 = scmp.lt.s32.totalorder %s72_s28, %s72_s28 }
  0x4c   :  { %p12266_p7 = scmp.ne.s32.totalorder %s72_s28, %s12265_s16  ;;  %p12271_p9 = scmp.lt.s32.totalorder %s12265_s16, %s12265_s16 }
  0x4e   :  { %p12272_p10 = por %p12271_p9, %p12270_p8 }
  0x50   :  { %p12273_p11 = pnand %p12272_p10, %p12266_p7 }
  0x52   :  { %12276 = shalt.err (!%p12273_p11)
}
  0x53   :  { %s12314_s3 = smov 128   ;;  %s12315_s13 = smov 8  }
  0x54   :  { %77 = dma.hbm_to_vmem [thread:$0]  %s12719_s5, 8192, %s72_s28, [#allocation8], %s12314_s3, %s12314_s3, %s12315_s13  }
  0x55   :  { %s12316_s4 = smov [#allocation10]   ;;  %s12277_s19 = scalar_lea.hbm %s12720_s6, 512 }
  0x56   :  { %s84_s27 = sshll.u32 %s12316_s4, 4  ;;  %p12278_p12 = scmp.ne.s32.totalorder %s12720_s6, %s12277_s19  ;;  %s85_s27 = int_to_ptr.vmem [resolvable:$true] %s84_s27 }
  0x57   :  { %p12281_p13 = scmp.lt.u32.totalorder %s12277_s19, %s12720_s6 }
  0x59   :  { %p12283_p0 = pnand %p12281_p13, %p12278_p12 }
  0x5b   :  { %12286 = shalt.err (!%p12283_p0)
}
  0x5c   :  { %s12287_s24 = scalar_lea.vmem %s85_s27, 512  ;;  %p12292_p2 = scmp.lt.s32.totalorder %s85_s27, %s85_s27 }
  0x5d   :  { %p12288_p1 = scmp.ne.s32.totalorder %s85_s27, %s12287_s24  ;;  %p12293_p3 = scmp.lt.s32.totalorder %s12287_s24, %s12287_s24 }
  0x5f   :  { %p12294_p4 = por %p12293_p3, %p12292_p2 }
  0x61   :  { %p12295_p5 = pnand %p12294_p4, %p12288_p1 }
  0x63   :  { %12298 = shalt.err (!%p12295_p5)
}
  0x64   :  { %87 = dma.hbm_to_vmem [thread:$0]  %s12720_s6, 512, %s85_s27, [#allocation11]  }
  0x65   :  { %12299 = dma.done.wait [#allocation3], 94208  }
  0x66   :  { %12300 = vsyncadd [#allocation3], 4294873088 }
  0x67   :  { %12301 = dma.done.wait [#allocation5], 32768  }
  0x68   :  { %12302 = vsyncadd [#allocation5], 4294934528 }
  0x69   :  { %12303 = dma.done.wait [#allocation8], 24576  }
  0x6a   :  { %12304 = vsyncadd [#allocation8], 4294942720 }
  0x6b   :  { %12305 = dma.done.wait [#allocation11], 512  }
  0x6c   :  { %12306 = vsyncadd [#allocation11], 4294966784  ;;  %v10366_v0 = vld [vmem:[#allocation2 + $0x4] ss:$16 sps:$4 sm:$0xff]   ;;  %v10370_v2 = vld [vmem:[#allocation2] ss:$16 sps:$4 sm:$0xff]  }
  0x6d   :  { %v10368_v1 = vld [vmem:[#allocation2 + $0x204] ss:$16 sps:$4 sm:$0xff]   ;;  %4646 = vmatprep.subr.bf16.mxu1 %v10366_v0  ;;  %v10371_v3 = vld [vmem:[#allocation2 + $0x200] ss:$16 sps:$4 sm:$0xff]   ;;  %v117_v48 = vld [vmem:[%s12714_s0 + $0x8] sm:$0xff] }
  0x6e   :  { %4687 = vmatprep.subr.bf16.mxu0 %v10368_v1  ;;  %v10372_v4 = vld [vmem:[#allocation2 + $0x24] ss:$16 sps:$4 sm:$0xff]   ;;  %4647 = vmatpush1.bf16.msra.mxu1 %v10370_v2  ;;  %v10376_v6 = vld [vmem:[#allocation2 + $0x20] ss:$16 sps:$4 sm:$0xff]   ;;  %v12464_v51 = vcombine.high %v117_v48, %v117_v48 }
  0x6f   :  { %4688 = vmatpush1.bf16.msra.mxu0 %v10371_v3  ;;  %v10374_v5 = vld [vmem:[#allocation2 + $0x224] ss:$16 sps:$4 sm:$0xff]   ;;  %4648 = vmatprep.subr.bf16.mxu1 %v10372_v4  ;;  %v10377_v7 = vld [vmem:[#allocation2 + $0x220] ss:$16 sps:$4 sm:$0xff]  }
  0x70   :  { %4689 = vmatprep.subr.bf16.mxu0 %v10374_v5  ;;  %v10378_v8 = vld [vmem:[#allocation2 + $0x44] ss:$16 sps:$4 sm:$0xff]   ;;  %v10382_v10 = vld [vmem:[#allocation2 + $0x40] ss:$16 sps:$4 sm:$0xff]   ;;  %4719 = vmatprep.mubr.bf16.mxu0 %v12464_v51  ;;  %v10471_v5 = vld [vmem:[#allocation2 + $0xc] ss:$16 sps:$4 sm:$0xff]  }
  0x71   :  { %v10380_v9 = vld [vmem:[#allocation2 + $0x244] ss:$16 sps:$4 sm:$0xff]   ;;  %v10383_v11 = vld [vmem:[#allocation2 + $0x240] ss:$16 sps:$4 sm:$0xff]  }
  0x72   :  { %4649 = vmatpush1.bf16.msra.mxu1 %v10376_v6  ;;  %v10384_v12 = vld [vmem:[#allocation2 + $0x64] ss:$16 sps:$4 sm:$0xff]   ;;  %v10388_v14 = vld [vmem:[#allocation2 + $0x60] ss:$16 sps:$4 sm:$0xff]  }
  0x73   :  { %4690 = vmatpush1.bf16.msra.mxu0 %v10377_v7  ;;  %4650 = vmatprep.subr.bf16.mxu1 %v10378_v8  ;;  %v10386_v13 = vld [vmem:[#allocation2 + $0x264] ss:$16 sps:$4 sm:$0xff]   ;;  %v10389_v15 = vld [vmem:[#allocation2 + $0x260] ss:$16 sps:$4 sm:$0xff]   ;;  %v12470_v7 = vcombine.low %v117_v48, %v117_v48 }
  0x74   :  { %4691 = vmatprep.subr.bf16.mxu0 %v10380_v9  ;;  %v10390_v16 = vld [vmem:[#allocation2 + $0x84] ss:$16 sps:$4 sm:$0xff]   ;;  %v10394_v18 = vld [vmem:[#allocation2 + $0x80] ss:$16 sps:$4 sm:$0xff]   ;;  %v10469_v9 = vld [vmem:[#allocation2 + $0x8] ss:$16 sps:$4 sm:$0xff]  }
  0x75   :  { %v10392_v17 = vld [vmem:[#allocation2 + $0x284] ss:$16 sps:$4 sm:$0xff]   ;;  %v10395_v19 = vld [vmem:[#allocation2 + $0x280] ss:$16 sps:$4 sm:$0xff]  }
  0x76   :  { %4651 = vmatpush1.bf16.msra.mxu1 %v10382_v10  ;;  %v10396_v20 = vld [vmem:[#allocation2 + $0xa4] ss:$16 sps:$4 sm:$0xff]   ;;  %v10400_v22 = vld [vmem:[#allocation2 + $0xa0] ss:$16 sps:$4 sm:$0xff]  }
  0x77   :  { %4692 = vmatpush1.bf16.msra.mxu0 %v10383_v11  ;;  %4652 = vmatprep.subr.bf16.mxu1 %v10384_v12  ;;  %v10398_v21 = vld [vmem:[#allocation2 + $0x2a4] ss:$16 sps:$4 sm:$0xff]   ;;  %v10401_v23 = vld [vmem:[#allocation2 + $0x2a0] ss:$16 sps:$4 sm:$0xff]   ;;  %v10477_v11 = vld [vmem:[#allocation2 + $0x2c] ss:$16 sps:$4 sm:$0xff]  }
  0x78   :  { %4693 = vmatprep.subr.bf16.mxu0 %v10386_v13  ;;  %v10402_v24 = vld [vmem:[#allocation2 + $0xc4] ss:$16 sps:$4 sm:$0xff]   ;;  %v10406_v26 = vld [vmem:[#allocation2 + $0xc0] ss:$16 sps:$4 sm:$0xff]   ;;  %v10475_v13 = vld [vmem:[#allocation2 + $0x28] ss:$16 sps:$4 sm:$0xff]  }
  0x79   :  { %v10404_v25 = vld [vmem:[#allocation2 + $0x2c4] ss:$16 sps:$4 sm:$0xff]   ;;  %v10407_v27 = vld [vmem:[#allocation2 + $0x2c0] ss:$16 sps:$4 sm:$0xff]  }
  0x7a   :  { %4653 = vmatpush1.bf16.msra.mxu1 %v10388_v14  ;;  %v10408_v28 = vld [vmem:[#allocation2 + $0xe4] ss:$16 sps:$4 sm:$0xff]   ;;  %v10412_v30 = vld [vmem:[#allocation2 + $0xe0] ss:$16 sps:$4 sm:$0xff]  }
  0x7b   :  { %4694 = vmatpush1.bf16.msra.mxu0 %v10389_v15  ;;  %4654 = vmatprep.subr.bf16.mxu1 %v10390_v16  ;;  %v10410_v29 = vld [vmem:[#allocation2 + $0x2e4] ss:$16 sps:$4 sm:$0xff]   ;;  %v10413_v31 = vld [vmem:[#allocation2 + $0x2e0] ss:$16 sps:$4 sm:$0xff]   ;;  %v10483_v15 = vld [vmem:[#allocation2 + $0x4c] ss:$16 sps:$4 sm:$0xff]  }
  0x7c   :  { %4695 = vmatprep.subr.bf16.mxu0 %v10392_v17  ;;  %v10414_v32 = vld [vmem:[#allocation2 + $0x104] ss:$16 sps:$4 sm:$0xff]   ;;  %v10418_v34 = vld [vmem:[#allocation2 + $0x100] ss:$16 sps:$4 sm:$0xff]   ;;  %v10481_v17 = vld [vmem:[#allocation2 + $0x48] ss:$16 sps:$4 sm:$0xff]  }
  0x7d   :  { %v10416_v33 = vld [vmem:[#allocation2 + $0x304] ss:$16 sps:$4 sm:$0xff]   ;;  %v10419_v35 = vld [vmem:[#allocation2 + $0x300] ss:$16 sps:$4 sm:$0xff]  }
  0x7e   :  { %4655 = vmatpush1.bf16.msra.mxu1 %v10394_v18  ;;  %v10420_v36 = vld [vmem:[#allocation2 + $0x124] ss:$16 sps:$4 sm:$0xff]   ;;  %v10424_v38 = vld [vmem:[#allocation2 + $0x120] ss:$16 sps:$4 sm:$0xff]  }
  0x7f   :  { %4696 = vmatpush1.bf16.msra.mxu0 %v10395_v19  ;;  %4656 = vmatprep.subr.bf16.mxu1 %v10396_v20  ;;  %v10422_v37 = vld [vmem:[#allocation2 + $0x324] ss:$16 sps:$4 sm:$0xff]   ;;  %v10425_v39 = vld [vmem:[#allocation2 + $0x320] ss:$16 sps:$4 sm:$0xff]   ;;  %v10489_v19 = vld [vmem:[#allocation2 + $0x6c] ss:$16 sps:$4 sm:$0xff]  }
  0x80   :  { %4697 = vmatprep.subr.bf16.mxu0 %v10398_v21  ;;  %v10426_v40 = vld [vmem:[#allocation2 + $0x144] ss:$16 sps:$4 sm:$0xff]   ;;  %v10430_v42 = vld [vmem:[#allocation2 + $0x140] ss:$16 sps:$4 sm:$0xff]   ;;  %v10487_v21 = vld [vmem:[#allocation2 + $0x68] ss:$16 sps:$4 sm:$0xff]  }
  0x81   :  { %v10428_v41 = vld [vmem:[#allocation2 + $0x344] ss:$16 sps:$4 sm:$0xff]   ;;  %v10431_v43 = vld [vmem:[#allocation2 + $0x340] ss:$16 sps:$4 sm:$0xff]  }
  0x82   :  { %4657 = vmatpush1.bf16.msra.mxu1 %v10400_v22  ;;  %v10432_v44 = vld [vmem:[#allocation2 + $0x164] ss:$16 sps:$4 sm:$0xff]   ;;  %v10436_v49 = vld [vmem:[#allocation2 + $0x160] ss:$16 sps:$4 sm:$0xff]  }
  0x83   :  { %4698 = vmatpush1.bf16.msra.mxu0 %v10401_v23  ;;  %4658 = vmatprep.subr.bf16.mxu1 %v10402_v24  ;;  %v10434_v45 = vld [vmem:[#allocation2 + $0x364] ss:$16 sps:$4 sm:$0xff]   ;;  %v10437_v50 = vld [vmem:[#allocation2 + $0x360] ss:$16 sps:$4 sm:$0xff]   ;;  %v10495_v23 = vld [vmem:[#allocation2 + $0x8c] ss:$16 sps:$4 sm:$0xff]  }
  0x84   :  { %4699 = vmatprep.subr.bf16.mxu0 %v10404_v25  ;;  %v116_v46 = vld [vmem:[%s12714_s0] sm:$0xff]  ;;  %v10493_v25 = vld [vmem:[#allocation2 + $0x88] ss:$16 sps:$4 sm:$0xff]  }
  0x85   :  { %v12459_v47 = vcombine.high %v116_v46, %v116_v46  ;;  %v10438_v52 = vld [vmem:[#allocation2 + $0x184] ss:$16 sps:$4 sm:$0xff]   ;;  %v10442_v54 = vld [vmem:[#allocation2 + $0x180] ss:$16 sps:$4 sm:$0xff]   ;;  %v12468_v6 = vcombine.low %v116_v46, %v116_v46 }
  0x86   :  { %4659 = vmatpush1.bf16.msra.mxu1 %v10406_v26  ;;  %v10440_v53 = vld [vmem:[#allocation2 + $0x384] ss:$16 sps:$4 sm:$0xff]   ;;  %v10443_v55 = vld [vmem:[#allocation2 + $0x380] ss:$16 sps:$4 sm:$0xff]  }
  0x87   :  { %4700 = vmatpush1.bf16.msra.mxu0 %v10407_v27  ;;  %4660 = vmatprep.subr.bf16.mxu1 %v10408_v28  ;;  %v10444_v56 = vld [vmem:[#allocation2 + $0x1a4] ss:$16 sps:$4 sm:$0xff]   ;;  %v10448_v58 = vld [vmem:[#allocation2 + $0x1a0] ss:$16 sps:$4 sm:$0xff]   ;;  %v10501_v27 = vld [vmem:[#allocation2 + $0xac] ss:$16 sps:$4 sm:$0xff]  }
  0x88   :  { %4701 = vmatprep.subr.bf16.mxu0 %v10410_v29  ;;  %4678 = vmatprep.mubr.bf16.mxu1 %v12459_v47  ;;  %v10446_v57 = vld [vmem:[#allocation2 + $0x3a4] ss:$16 sps:$4 sm:$0xff]   ;;  %v10449_v59 = vld [vmem:[#allocation2 + $0x3a0] ss:$16 sps:$4 sm:$0xff]   ;;  %v10499_v29 = vld [vmem:[#allocation2 + $0xa8] ss:$16 sps:$4 sm:$0xff]  }
  0x89   :  { %v10450_v60 = vld [vmem:[#allocation2 + $0x1c4] ss:$16 sps:$4 sm:$0xff]   ;;  %v10454_v62 = vld [vmem:[#allocation2 + $0x1c0] ss:$16 sps:$4 sm:$0xff]  }
  0x8a   :  { %4661 = vmatpush1.bf16.msra.mxu1 %v10412_v30  ;;  %v10452_v61 = vld [vmem:[#allocation2 + $0x3c4] ss:$16 sps:$4 sm:$0xff]   ;;  %v10455_v63 = vld [vmem:[#allocation2 + $0x3c0] ss:$16 sps:$4 sm:$0xff]  }
  0x8b   :  { %4702 = vmatpush1.bf16.msra.mxu0 %v10413_v31  ;;  %4662 = vmatprep.subr.bf16.mxu1 %v10414_v32  ;;  %v10456_v0 = vld [vmem:[#allocation2 + $0x1e4] ss:$16 sps:$4 sm:$0xff]   ;;  %v10460_v2 = vld [vmem:[#allocation2 + $0x1e0] ss:$16 sps:$4 sm:$0xff]   ;;  %v10507_v31 = vld [vmem:[#allocation2 + $0xcc] ss:$16 sps:$4 sm:$0xff]  }
  0x8c   :  { %4703 = vmatprep.subr.bf16.mxu0 %v10416_v33  ;;  %v10458_v1 = vld [vmem:[#allocation2 + $0x3e4] ss:$16 sps:$4 sm:$0xff]   ;;  %v10461_v3 = vld [vmem:[#allocation2 + $0x3e0] ss:$16 sps:$4 sm:$0xff]  }
  0x8d   :  { %v10468_v4 = vld [vmem:[#allocation2 + $0x404] ss:$16 sps:$4 sm:$0xff]   ;;  %v10466_v8 = vld [vmem:[#allocation2 + $0x400] ss:$16 sps:$4 sm:$0xff]  }
  0x8e   :  { %4663 = vmatpush1.bf16.msra.mxu1 %v10418_v34  ;;  %v10474_v10 = vld [vmem:[#allocation2 + $0x424] ss:$16 sps:$4 sm:$0xff]   ;;  %v10472_v12 = vld [vmem:[#allocation2 + $0x420] ss:$16 sps:$4 sm:$0xff]  }
  0x8f   :  { %4704 = vmatpush1.bf16.msra.mxu0 %v10419_v35  ;;  %4664 = vmatprep.subr.bf16.mxu1 %v10420_v36  ;;  %v10480_v14 = vld [vmem:[#allocation2 + $0x444] ss:$16 sps:$4 sm:$0xff]   ;;  %v10478_v16 = vld [vmem:[#allocation2 + $0x440] ss:$16 sps:$4 sm:$0xff]   ;;  %v10505_v35 = vld [vmem:[#allocation2 + $0xc8] ss:$16 sps:$4 sm:$0xff]  }
  0x90   :  { %4705 = vmatprep.subr.bf16.mxu0 %v10422_v37  ;;  %v10486_v18 = vld [vmem:[#allocation2 + $0x464] ss:$16 sps:$4 sm:$0xff]   ;;  %v10484_v20 = vld [vmem:[#allocation2 + $0x460] ss:$16 sps:$4 sm:$0xff]   ;;  %v10513_v37 = vld [vmem:[#allocation2 + $0xec] ss:$16 sps:$4 sm:$0xff]  }
  0x91   :  { %v10492_v22 = vld [vmem:[#allocation2 + $0x484] ss:$16 sps:$4 sm:$0xff]   ;;  %v10490_v24 = vld [vmem:[#allocation2 + $0x480] ss:$16 sps:$4 sm:$0xff]  }
  0x92   :  { %4665 = vmatpush1.bf16.msra.mxu1 %v10424_v38  ;;  %v10498_v26 = vld [vmem:[#allocation2 + $0x4a4] ss:$16 sps:$4 sm:$0xff]   ;;  %v10496_v28 = vld [vmem:[#allocation2 + $0x4a0] ss:$16 sps:$4 sm:$0xff]  }
  0x93   :  { %4706 = vmatpush1.bf16.msra.mxu0 %v10425_v39  ;;  %4666 = vmatprep.subr.bf16.mxu1 %v10426_v40  ;;  %v10504_v30 = vld [vmem:[#allocation2 + $0x4c4] ss:$16 sps:$4 sm:$0xff]   ;;  %v10502_v33 = vld [vmem:[#allocation2 + $0x4c0] ss:$16 sps:$4 sm:$0xff]   ;;  %v10511_v39 = vld [vmem:[#allocation2 + $0xe8] ss:$16 sps:$4 sm:$0xff]  }
  0x94   :  { %4707 = vmatprep.subr.bf16.mxu0 %v10428_v41  ;;  %v12478_v32 = vld [vmem:[%s12714_s0 + $0x10] sm:$0xff]  ;;  %v10519_v41 = vld [vmem:[#allocation2 + $0x10c] ss:$16 sps:$4 sm:$0xff]  }
  0x95   :  { %v12482_v34 = vcombine.high %v12478_v32, %v12478_v32  ;;  %v10510_v36 = vld [vmem:[#allocation2 + $0x4e4] ss:$16 sps:$4 sm:$0xff]   ;;  %v10508_v38 = vld [vmem:[#allocation2 + $0x4e0] ss:$16 sps:$4 sm:$0xff]  }
  0x96   :  { %4667 = vmatpush1.bf16.msra.mxu1 %v10430_v42  ;;  %v10516_v40 = vld [vmem:[#allocation2 + $0x504] ss:$16 sps:$4 sm:$0xff]   ;;  %v10514_v42 = vld [vmem:[#allocation2 + $0x500] ss:$16 sps:$4 sm:$0xff]  }
  0x97   :  { %4708 = vmatpush1.bf16.msra.mxu0 %v10431_v43  ;;  %4668 = vmatprep.subr.bf16.mxu1 %v10432_v44  ;;  %v10517_v43 = vld [vmem:[#allocation2 + $0x108] ss:$16 sps:$4 sm:$0xff]   ;;  %v10522_v44 = vld [vmem:[#allocation2 + $0x524] ss:$16 sps:$4 sm:$0xff]   ;;  %v10520_v46 = vld [vmem:[#allocation2 + $0x520] ss:$16 sps:$4 sm:$0xff]  }
  0x98   :  { %4709 = vmatprep.subr.bf16.mxu0 %v10434_v45  ;;  %v10525_v45 = vld [vmem:[#allocation2 + $0x12c] ss:$16 sps:$4 sm:$0xff]   ;;  %v10528_v48 = vld [vmem:[#allocation2 + $0x544] ss:$16 sps:$4 sm:$0xff]  }
  0x9a   :  { %4669 = vmatpush1.bf16.msra.mxu1 %v10436_v49  ;;  %v10531_v49 = vld [vmem:[#allocation2 + $0x14c] ss:$16 sps:$4 sm:$0xff]  }
  0x9b   :  { %4710 = vmatpush1.bf16.msra.mxu0 %v10437_v50  ;;  %4670 = vmatprep.subr.bf16.mxu1 %v10438_v52  ;;  %v10526_v50 = vld [vmem:[#allocation2 + $0x540] ss:$16 sps:$4 sm:$0xff]   ;;  %v10529_v52 = vld [vmem:[#allocation2 + $0x148] ss:$16 sps:$4 sm:$0xff]  }
  0x9c   :  { %4711 = vmatprep.subr.bf16.mxu0 %v10440_v53  ;;  %v10534_v53 = vld [vmem:[#allocation2 + $0x564] ss:$16 sps:$4 sm:$0xff]  }
  0x9e   :  { %4671 = vmatpush1.bf16.msra.mxu1 %v10442_v54  ;;  %v10537_v54 = vld [vmem:[#allocation2 + $0x16c] ss:$16 sps:$4 sm:$0xff]  }
  0x9f   :  { %4712 = vmatpush1.bf16.msra.mxu0 %v10443_v55  ;;  %4672 = vmatprep.subr.bf16.mxu1 %v10444_v56  ;;  %v10532_v55 = vld [vmem:[#allocation2 + $0x560] ss:$16 sps:$4 sm:$0xff]   ;;  %v10535_v56 = vld [vmem:[#allocation2 + $0x168] ss:$16 sps:$4 sm:$0xff]  }
  0xa0   :  { %4713 = vmatprep.subr.bf16.mxu0 %v10446_v57  ;;  %v10540_v57 = vld [vmem:[#allocation2 + $0x584] ss:$16 sps:$4 sm:$0xff]  }
  0xa2   :  { %4673 = vmatpush1.bf16.msra.mxu1 %v10448_v58  ;;  %v10543_v58 = vld [vmem:[#allocation2 + $0x18c] ss:$16 sps:$4 sm:$0xff]  }
  0xa3   :  { %4714 = vmatpush1.bf16.msra.mxu0 %v10449_v59  ;;  %4674 = vmatprep.subr.bf16.mxu1 %v10450_v60  ;;  %v10538_v59 = vld [vmem:[#allocation2 + $0x580] ss:$16 sps:$4 sm:$0xff]   ;;  %v10541_v60 = vld [vmem:[#allocation2 + $0x188] ss:$16 sps:$4 sm:$0xff]  }
  0xa4   :  { %4715 = vmatprep.subr.bf16.mxu0 %v10452_v61  ;;  %v10546_v61 = vld [vmem:[#allocation2 + $0x5a4] ss:$16 sps:$4 sm:$0xff]  }
  0xa6   :  { %4675 = vmatpush1.bf16.msra.mxu1 %v10454_v62  ;;  %v10549_v62 = vld [vmem:[#allocation2 + $0x1ac] ss:$16 sps:$4 sm:$0xff]  }
  0xa7   :  { %4716 = vmatpush1.bf16.msra.mxu0 %v10455_v63  ;;  %4676 = vmatprep.subr.bf16.mxu1 %v10456_v0  ;;  %v10544_v63 = vld [vmem:[#allocation2 + $0x5a0] ss:$16 sps:$4 sm:$0xff]   ;;  %v10547_v0 = vld [vmem:[#allocation2 + $0x1a8] ss:$16 sps:$4 sm:$0xff]  }
  0xa8   :  { %4717 = vmatprep.subr.bf16.mxu0 %v10458_v1  ;;  %v10552_v1 = vld [vmem:[#allocation2 + $0x5c4] ss:$16 sps:$4 sm:$0xff]  }
  0xaa   :  { %4677 = vmatpush1.bf16.msra.mxu1 %v10460_v2  ;;  %v10555_v2 = vld [vmem:[#allocation2 + $0x1cc] ss:$16 sps:$4 sm:$0xff]  }
  0xab   :  { %4718 = vmatpush1.bf16.msra.mxu0 %v10461_v3  ;;  %5138 = vmatprep.subr.bf16.mxu1 %v10471_v5  ;;  %v10550_v3 = vld [vmem:[#allocation2 + $0x5c0] ss:$16 sps:$4 sm:$0xff]   ;;  %v10558_v5 = vld [vmem:[#allocation2 + $0x5e4] ss:$16 sps:$4 sm:$0xff]  }
  0xac   :  { %4728 = vmatprep.subr.bf16.mxu0 %v10468_v4  ;;  %v10553_v4 = vld [vmem:[#allocation2 + $0x1c8] ss:$16 sps:$4 sm:$0xff]  }
  0xad   :  { %4679 = vmatmul.mubr.bf16.vlgmr.msra.gmra.mrb[0].mxu1 %v12468_v6 }
  0xae   :  { %4720 = vmatmul.mubr.bf16.vlgmr.msra.gmra.mrb[0].mxu0 %v12470_v7  ;;  %5139 = vmatpush1.bf16.msra.mxu1 %v10469_v9  ;;  %v10556_v9 = vld [vmem:[#allocation2 + $0x5e0] ss:$16 sps:$4 sm:$0xff]  }
  0xaf   :  { %4729 = vmatpush1.bf16.msra.mxu0 %v10466_v8  ;;  %5140 = vmatprep.subr.bf16.mxu1 %v10477_v11  ;;  %v10561_v8 = vld [vmem:[#allocation2 + $0x1ec] ss:$16 sps:$4 sm:$0xff]   ;;  %v10566_v11 = vld [vmem:[#allocation2 + $0x604] ss:$16 sps:$4 sm:$0xff]  }
  0xb0   :  { %4730 = vmatprep.subr.bf16.mxu0 %v10474_v10  ;;  %5170 = vmatprep.mubr.bf16.mxu1 %v12459_v47  ;;  %v10523_v47 = vld [vmem:[#allocation2 + $0x128] ss:$16 sps:$4 sm:$0xff]  }
  0xb1   :  { %4760 = vmatprep.mubr.bf16.mxu0 %v12482_v34  ;;  %v10559_v10 = vld [vmem:[#allocation2 + $0x1e8] ss:$16 sps:$4 sm:$0xff]  }
  0xb2   :  { %5141 = vmatpush1.bf16.msra.mxu1 %v10475_v13  ;;  %v12487_v13 = vcombine.low %v12478_v32, %v12478_v32  ;;  %v10591_v32 = vld [vmem:[#allocation2 + $0x288] ss:$16 sps:$4 sm:$0xff]  }
  0xb3   :  { %4731 = vmatpush1.bf16.msra.mxu0 %v10472_v12  ;;  %5142 = vmatprep.subr.bf16.mxu1 %v10483_v15  ;;  %v10569_v12 = vld [vmem:[#allocation2 + $0x20c] ss:$16 sps:$4 sm:$0xff]   ;;  %v10567_v15 = vld [vmem:[#allocation2 + $0x208] ss:$16 sps:$4 sm:$0xff]  }
  0xb4   :  { %4732 = vmatprep.subr.bf16.mxu0 %v10480_v14  ;;  %v10564_v14 = vld [vmem:[#allocation2 + $0x600] ss:$16 sps:$4 sm:$0xff]  }
  0xb6   :  { %5143 = vmatpush1.bf16.msra.mxu1 %v10481_v17  ;;  %v10575_v17 = vld [vmem:[#allocation2 + $0x22c] ss:$16 sps:$4 sm:$0xff]  }
  0xb7   :  { %4733 = vmatpush1.bf16.msra.mxu0 %v10478_v16  ;;  %5144 = vmatprep.subr.bf16.mxu1 %v10489_v19  ;;  %v10572_v16 = vld [vmem:[#allocation2 + $0x624] ss:$16 sps:$4 sm:$0xff]  }
  0xb8   :  { %4734 = vmatprep.subr.bf16.mxu0 %v10486_v18  ;;  %v12492_v18 = vld [vmem:[%s12714_s0 + $0x18] sm:$0xff] }
  0xb9   :  { %v12496_v19 = vcombine.high %v12492_v18, %v12492_v18 }
  0xba   :  { %5145 = vmatpush1.bf16.msra.mxu1 %v10487_v21  ;;  %v10573_v21 = vld [vmem:[#allocation2 + $0x228] ss:$16 sps:$4 sm:$0xff]  }
  0xbb   :  { %4735 = vmatpush1.bf16.msra.mxu0 %v10484_v20  ;;  %5146 = vmatprep.subr.bf16.mxu1 %v10495_v23  ;;  %v10570_v20 = vld [vmem:[#allocation2 + $0x620] ss:$16 sps:$4 sm:$0xff]   ;;  %v10581_v23 = vld [vmem:[#allocation2 + $0x24c] ss:$16 sps:$4 sm:$0xff]  }
  0xbc   :  { %4736 = vmatprep.subr.bf16.mxu0 %v10492_v22  ;;  %v10578_v22 = vld [vmem:[#allocation2 + $0x644] ss:$16 sps:$4 sm:$0xff]  }
  0xbe   :  { %5147 = vmatpush1.bf16.msra.mxu1 %v10493_v25  ;;  %v10579_v25 = vld [vmem:[#allocation2 + $0x248] ss:$16 sps:$4 sm:$0xff]  }
  0xbf   :  { %4737 = vmatpush1.bf16.msra.mxu0 %v10490_v24  ;;  %5148 = vmatprep.subr.bf16.mxu1 %v10501_v27  ;;  %v10576_v24 = vld [vmem:[#allocation2 + $0x640] ss:$16 sps:$4 sm:$0xff]  }
  0xc0   :  { %4738 = vmatprep.subr.bf16.mxu0 %v10498_v26  ;;  %v10584_v26 = vld [vmem:[#allocation2 + $0x664] ss:$16 sps:$4 sm:$0xff]   ;;  %v10582_v27 = vld [vmem:[#allocation2 + $0x660] ss:$16 sps:$4 sm:$0xff]  }
  0xc2   :  { %5149 = vmatpush1.bf16.msra.mxu1 %v10499_v29  ;;  %v10590_v29 = vld [vmem:[#allocation2 + $0x684] ss:$16 sps:$4 sm:$0xff]  }
  0xc3   :  { %4739 = vmatpush1.bf16.msra.mxu0 %v10496_v28  ;;  %5150 = vmatprep.subr.bf16.mxu1 %v10507_v31  ;;  %v10585_v28 = vld [vmem:[#allocation2 + $0x268] ss:$16 sps:$4 sm:$0xff]   ;;  %v10588_v31 = vld [vmem:[#allocation2 + $0x680] ss:$16 sps:$4 sm:$0xff]  }
  0xc4   :  { %4740 = vmatprep.subr.bf16.mxu0 %v10504_v30  ;;  %v10593_v30 = vld [vmem:[#allocation2 + $0x28c] ss:$16 sps:$4 sm:$0xff]  }
  0xc6   :  { %5151 = vmatpush1.bf16.msra.mxu1 %v10505_v35  ;;  %v10594_v35 = vld [vmem:[#allocation2 + $0x6a0] ss:$16 sps:$4 sm:$0xff]  }
  0xc7   :  { %4741 = vmatpush1.bf16.msra.mxu0 %v10502_v33  ;;  %5152 = vmatprep.subr.bf16.mxu1 %v10513_v37  ;;  %v10599_v33 = vld [vmem:[#allocation2 + $0x2ac] ss:$16 sps:$4 sm:$0xff]   ;;  %v10602_v37 = vld [vmem:[#allocation2 + $0x6c4] ss:$16 sps:$4 sm:$0xff]  }
  0xc8   :  { %4742 = vmatprep.subr.bf16.mxu0 %v10510_v36  ;;  %v10597_v36 = vld [vmem:[#allocation2 + $0x2a8] ss:$16 sps:$4 sm:$0xff]  }
  0xca   :  { %5153 = vmatpush1.bf16.msra.mxu1 %v10511_v39  ;;  %v10600_v39 = vld [vmem:[#allocation2 + $0x6c0] ss:$16 sps:$4 sm:$0xff]  }
  0xcb   :  { %4743 = vmatpush1.bf16.msra.mxu0 %v10508_v38  ;;  %5154 = vmatprep.subr.bf16.mxu1 %v10519_v41  ;;  %v10605_v38 = vld [vmem:[#allocation2 + $0x2cc] ss:$16 sps:$4 sm:$0xff]   ;;  %v10608_v41 = vld [vmem:[#allocation2 + $0x6e4] ss:$16 sps:$4 sm:$0xff]  }
  0xcc   :  { %4744 = vmatprep.subr.bf16.mxu0 %v10516_v40  ;;  %v10603_v40 = vld [vmem:[#allocation2 + $0x2c8] ss:$16 sps:$4 sm:$0xff]  }
  0xce   :  { %5155 = vmatpush1.bf16.msra.mxu1 %v10517_v43  ;;  %v10606_v43 = vld [vmem:[#allocation2 + $0x6e0] ss:$16 sps:$4 sm:$0xff]  }
  0xcf   :  { %4745 = vmatpush1.bf16.msra.mxu0 %v10514_v42  ;;  %5156 = vmatprep.subr.bf16.mxu1 %v10525_v45  ;;  %v10611_v42 = vld [vmem:[#allocation2 + $0x2ec] ss:$16 sps:$4 sm:$0xff]   ;;  %v10614_v45 = vld [vmem:[#allocation2 + $0x704] ss:$16 sps:$4 sm:$0xff]  }
  0xd0   :  { %4746 = vmatprep.subr.bf16.mxu0 %v10522_v44  ;;  %v10609_v44 = vld [vmem:[#allocation2 + $0x2e8] ss:$16 sps:$4 sm:$0xff]  }
  0xd2   :  { %5157 = vmatpush1.bf16.msra.mxu1 %v10523_v47  ;;  %v10612_v47 = vld [vmem:[#allocation2 + $0x700] ss:$16 sps:$4 sm:$0xff]  }
  0xd3   :  { %4747 = vmatpush1.bf16.msra.mxu0 %v10520_v46  ;;  %5158 = vmatprep.subr.bf16.mxu1 %v10531_v49  ;;  %v10617_v46 = vld [vmem:[#allocation2 + $0x30c] ss:$16 sps:$4 sm:$0xff]   ;;  %v10620_v49 = vld [vmem:[#allocation2 + $0x724] ss:$16 sps:$4 sm:$0xff]  }
  0xd4   :  { %4748 = vmatprep.subr.bf16.mxu0 %v10528_v48  ;;  %v10615_v48 = vld [vmem:[#allocation2 + $0x308] ss:$16 sps:$4 sm:$0xff]  }
  0xd6   :  { %5159 = vmatpush1.bf16.msra.mxu1 %v10529_v52  ;;  %v10618_v52 = vld [vmem:[#allocation2 + $0x720] ss:$16 sps:$4 sm:$0xff]  }
  0xd7   :  { %4749 = vmatpush1.bf16.msra.mxu0 %v10526_v50  ;;  %5160 = vmatprep.subr.bf16.mxu1 %v10537_v54  ;;  %v10623_v50 = vld [vmem:[#allocation2 + $0x32c] ss:$16 sps:$4 sm:$0xff]   ;;  %v10626_v54 = vld [vmem:[#allocation2 + $0x744] ss:$16 sps:$4 sm:$0xff]  }
  0xd8   :  { %4750 = vmatprep.subr.bf16.mxu0 %v10534_v53  ;;  %v10621_v53 = vld [vmem:[#allocation2 + $0x328] ss:$16 sps:$4 sm:$0xff]  }
  0xda   :  { %5161 = vmatpush1.bf16.msra.mxu1 %v10535_v56  ;;  %v10624_v56 = vld [vmem:[#allocation2 + $0x740] ss:$16 sps:$4 sm:$0xff]  }
  0xdb   :  { %4751 = vmatpush1.bf16.msra.mxu0 %v10532_v55  ;;  %5162 = vmatprep.subr.bf16.mxu1 %v10543_v58  ;;  %v10629_v55 = vld [vmem:[#allocation2 + $0x34c] ss:$16 sps:$4 sm:$0xff]   ;;  %v10632_v58 = vld [vmem:[#allocation2 + $0x764] ss:$16 sps:$4 sm:$0xff]  }
  0xdc   :  { %4752 = vmatprep.subr.bf16.mxu0 %v10540_v57  ;;  %v10627_v57 = vld [vmem:[#allocation2 + $0x348] ss:$16 sps:$4 sm:$0xff]  }
  0xde   :  { %5163 = vmatpush1.bf16.msra.mxu1 %v10541_v60  ;;  %v10630_v60 = vld [vmem:[#allocation2 + $0x760] ss:$16 sps:$4 sm:$0xff]  }
  0xdf   :  { %4753 = vmatpush1.bf16.msra.mxu0 %v10538_v59  ;;  %5164 = vmatprep.subr.bf16.mxu1 %v10549_v62  ;;  %v10635_v59 = vld [vmem:[#allocation2 + $0x36c] ss:$16 sps:$4 sm:$0xff]   ;;  %v10638_v62 = vld [vmem:[#allocation2 + $0x784] ss:$16 sps:$4 sm:$0xff]  }
  0xe0   :  { %4754 = vmatprep.subr.bf16.mxu0 %v10546_v61  ;;  %v10633_v61 = vld [vmem:[#allocation2 + $0x368] ss:$16 sps:$4 sm:$0xff]  }
  0xe2   :  { %5165 = vmatpush1.bf16.msra.mxu1 %v10547_v0  ;;  %v10636_v0 = vld [vmem:[#allocation2 + $0x780] ss:$16 sps:$4 sm:$0xff]  }
  0xe3   :  { %4755 = vmatpush1.bf16.msra.mxu0 %v10544_v63  ;;  %5166 = vmatprep.subr.bf16.mxu1 %v10555_v2  ;;  %v10641_v63 = vld [vmem:[#allocation2 + $0x38c] ss:$16 sps:$4 sm:$0xff]   ;;  %v10644_v2 = vld [vmem:[#allocation2 + $0x7a4] ss:$16 sps:$4 sm:$0xff]  }
  0xe4   :  { %4756 = vmatprep.subr.bf16.mxu0 %v10552_v1  ;;  %v10639_v1 = vld [vmem:[#allocation2 + $0x388] ss:$16 sps:$4 sm:$0xff]  }
  0xe6   :  { %5167 = vmatpush1.bf16.msra.mxu1 %v10553_v4  ;;  %v10642_v4 = vld [vmem:[#allocation2 + $0x7a0] ss:$16 sps:$4 sm:$0xff]  }
  0xe7   :  { %4757 = vmatpush1.bf16.msra.mxu0 %v10550_v3  ;;  %5168 = vmatprep.subr.bf16.mxu1 %v10561_v8  ;;  %v10647_v3 = vld [vmem:[#allocation2 + $0x3ac] ss:$16 sps:$4 sm:$0xff]   ;;  %v10650_v8 = vld [vmem:[#allocation2 + $0x7c4] ss:$16 sps:$4 sm:$0xff]  }
  0xe8   :  { %4758 = vmatprep.subr.bf16.mxu0 %v10558_v5  ;;  %v10645_v5 = vld [vmem:[#allocation2 + $0x3a8] ss:$16 sps:$4 sm:$0xff]  }
  0xea   :  { %5169 = vmatpush1.bf16.msra.mxu1 %v10559_v10  ;;  %v10648_v10 = vld [vmem:[#allocation2 + $0x7c0] ss:$16 sps:$4 sm:$0xff]  }
  0xeb   :  { %4759 = vmatpush1.bf16.msra.mxu0 %v10556_v9  ;;  %5179 = vmatprep.subr.bf16.mxu1 %v10569_v12  ;;  %v10653_v9 = vld [vmem:[#allocation2 + $0x3cc] ss:$16 sps:$4 sm:$0xff]   ;;  %v10656_v12 = vld [vmem:[#allocation2 + $0x7e4] ss:$16 sps:$4 sm:$0xff]  }
  0xec   :  { %4769 = vmatprep.subr.bf16.mxu0 %v10566_v11  ;;  %v10651_v11 = vld [vmem:[#allocation2 + $0x3c8] ss:$16 sps:$4 sm:$0xff]  }
  0xed   :  { %5171 = vmatmul.mubr.bf16.vlgmr.msra.gmra.mrb[4].mxu1 %v12468_v6  ;;  %v10587_v6 = vld [vmem:[#allocation2 + $0x26c] ss:$16 sps:$4 sm:$0xff]  }
  0xee   :  { %4761 = vmatmul.mubr.bf16.vlgmr.msra.gmra.mrb[0].mxu0 %v12487_v13  ;;  %5180 = vmatpush1.bf16.msra.mxu1 %v10567_v15  ;;  %v10654_v15 = vld [vmem:[#allocation2 + $0x7e0] ss:$16 sps:$4 sm:$0xff]  }
  0xef   :  { %4770 = vmatpush1.bf16.msra.mxu0 %v10564_v14  ;;  %5181 = vmatprep.subr.bf16.mxu1 %v10575_v17  ;;  %v10659_v14 = vld [vmem:[#allocation2 + $0x3ec] ss:$16 sps:$4 sm:$0xff]   ;;  %v10664_v17 = vld [vmem:[#allocation2 + $0x804] ss:$16 sps:$4 sm:$0xff]  }
  0xf0   :  { %4771 = vmatprep.subr.bf16.mxu0 %v10572_v16  ;;  %4801 = vmatprep.mubr.bf16.mxu0 %v12496_v19  ;;  %v10657_v16 = vld [vmem:[#allocation2 + $0x3e8] ss:$16 sps:$4 sm:$0xff]  }
  0xf1   :  { %5211 = vmatprep.mubr.bf16.mxu1 %v12464_v51  ;;  %v10596_v51 = vld [vmem:[#allocation2 + $0x6a4] ss:$16 sps:$4 sm:$0xff]  }
  0xf2   :  { %5182 = vmatpush1.bf16.msra.mxu1 %v10573_v21  ;;  %v12504_v21 = vcombine.low %v12492_v18, %v12492_v18  ;;  %v10668_v18 = vld [vmem:[#allocation2 + $0x820] ss:$16 sps:$4 sm:$0xff]  }
  0xf3   :  { %4772 = vmatpush1.bf16.msra.mxu0 %v10570_v20  ;;  %5183 = vmatprep.subr.bf16.mxu1 %v10581_v23  ;;  %v10667_v20 = vld [vmem:[#allocation2 + $0x40c] ss:$16 sps:$4 sm:$0xff]   ;;  %v10662_v23 = vld [vmem:[#allocation2 + $0x800] ss:$16 sps:$4 sm:$0xff]  }
  0xf4   :  { %4773 = vmatprep.subr.bf16.mxu0 %v10578_v22  ;;  %v12509_v22 = vld [vmem:[%s12714_s0 + $0x20] sm:$0xff] }
  0xf6   :  { %5184 = vmatpush1.bf16.msra.mxu1 %v10579_v25  ;;  %v10670_v25 = vld [vmem:[#allocation2 + $0x824] ss:$16 sps:$4 sm:$0xff]  }
  0xf7   :  { %4774 = vmatpush1.bf16.msra.mxu0 %v10576_v24  ;;  %5185 = vmatprep.subr.bf16.mxu1 %v10587_v6  ;;  %v10665_v24 = vld [vmem:[#allocation2 + $0x408] ss:$16 sps:$4 sm:$0xff]   ;;  %v12513_v6 = vcombine.high %v12509_v22, %v12509_v22 }
  0xf8   :  { %4775 = vmatprep.subr.bf16.mxu0 %v10584_v26  ;;  %v10673_v26 = vld [vmem:[#allocation2 + $0x42c] ss:$16 sps:$4 sm:$0xff]  }
  0xfa   :  { %5186 = vmatpush1.bf16.msra.mxu1 %v10585_v28  ;;  %v10676_v28 = vld [vmem:[#allocation2 + $0x844] ss:$16 sps:$4 sm:$0xff]  }
  0xfb   :  { %4776 = vmatpush1.bf16.msra.mxu0 %v10582_v27  ;;  %5187 = vmatprep.subr.bf16.mxu1 %v10593_v30  ;;  %v10671_v27 = vld [vmem:[#allocation2 + $0x428] ss:$16 sps:$4 sm:$0xff]   ;;  %v10674_v30 = vld [vmem:[#allocation2 + $0x840] ss:$16 sps:$4 sm:$0xff]  }
  0xfc   :  { %4777 = vmatprep.subr.bf16.mxu0 %v10590_v29  ;;  %v10679_v29 = vld [vmem:[#allocation2 + $0x44c] ss:$16 sps:$4 sm:$0xff]  }
  0xfe   :  { %5188 = vmatpush1.bf16.msra.mxu1 %v10591_v32  ;;  %v10682_v32 = vld [vmem:[#allocation2 + $0x864] ss:$16 sps:$4 sm:$0xff]  }
  0xff   :  { %4778 = vmatpush1.bf16.msra.mxu0 %v10588_v31  ;;  %5189 = vmatprep.subr.bf16.mxu1 %v10599_v33  ;;  %v10677_v31 = vld [vmem:[#allocation2 + $0x448] ss:$16 sps:$4 sm:$0xff]  }
 0x100   :  { %4779 = vmatprep.subr.bf16.mxu0 %v10596_v51  ;;  %v10680_v51 = vld [vmem:[#allocation2 + $0x860] ss:$16 sps:$4 sm:$0xff]   ;;  %v10683_v33 = vld [vmem:[#allocation2 + $0x468] ss:$16 sps:$4 sm:$0xff]  }
 0x102   :  { %5190 = vmatpush1.bf16.msra.mxu1 %v10597_v36  ;;  %v10691_v36 = vld [vmem:[#allocation2 + $0x48c] ss:$16 sps:$4 sm:$0xff]  }
 0x103   :  { %4780 = vmatpush1.bf16.msra.mxu0 %v10594_v35  ;;  %5191 = vmatprep.subr.bf16.mxu1 %v10605_v38  ;;  %v10688_v35 = vld [vmem:[#allocation2 + $0x884] ss:$16 sps:$4 sm:$0xff]  }
 0x104   :  { %4781 = vmatprep.subr.bf16.mxu0 %v10602_v37  ;;  %v10686_v37 = vld [vmem:[#allocation2 + $0x880] ss:$16 sps:$4 sm:$0xff]   ;;  %v10694_v38 = vld [vmem:[#allocation2 + $0x8a4] ss:$16 sps:$4 sm:$0xff]  }
 0x106   :  { %5192 = vmatpush1.bf16.msra.mxu1 %v10603_v40  ;;  %v10692_v40 = vld [vmem:[#allocation2 + $0x8a0] ss:$16 sps:$4 sm:$0xff]  }
 0x107   :  { %4782 = vmatpush1.bf16.msra.mxu0 %v10600_v39  ;;  %5193 = vmatprep.subr.bf16.mxu1 %v10611_v42  ;;  %v10697_v39 = vld [vmem:[#allocation2 + $0x4ac] ss:$16 sps:$4 sm:$0xff]   ;;  %v10700_v42 = vld [vmem:[#allocation2 + $0x8c4] ss:$16 sps:$4 sm:$0xff]  }
 0x108   :  { %4783 = vmatprep.subr.bf16.mxu0 %v10608_v41  ;;  %v10695_v41 = vld [vmem:[#allocation2 + $0x4a8] ss:$16 sps:$4 sm:$0xff]  }
 0x10a   :  { %5194 = vmatpush1.bf16.msra.mxu1 %v10609_v44  ;;  %v10698_v44 = vld [vmem:[#allocation2 + $0x8c0] ss:$16 sps:$4 sm:$0xff]  }
 0x10b   :  { %4784 = vmatpush1.bf16.msra.mxu0 %v10606_v43  ;;  %5195 = vmatprep.subr.bf16.mxu1 %v10617_v46  ;;  %v10703_v43 = vld [vmem:[#allocation2 + $0x4cc] ss:$16 sps:$4 sm:$0xff]   ;;  %v10706_v46 = vld [vmem:[#allocation2 + $0x8e4] ss:$16 sps:$4 sm:$0xff]  }
 0x10c   :  { %4785 = vmatprep.subr.bf16.mxu0 %v10614_v45  ;;  %v10701_v45 = vld [vmem:[#allocation2 + $0x4c8] ss:$16 sps:$4 sm:$0xff]  }
 0x10e   :  { %5196 = vmatpush1.bf16.msra.mxu1 %v10615_v48  ;;  %v10704_v48 = vld [vmem:[#allocation2 + $0x8e0] ss:$16 sps:$4 sm:$0xff]  }
 0x10f   :  { %4786 = vmatpush1.bf16.msra.mxu0 %v10612_v47  ;;  %5197 = vmatprep.subr.bf16.mxu1 %v10623_v50  ;;  %v10709_v47 = vld [vmem:[#allocation2 + $0x4ec] ss:$16 sps:$4 sm:$0xff]   ;;  %v10712_v50 = vld [vmem:[#allocation2 + $0x904] ss:$16 sps:$4 sm:$0xff]  }
 0x110   :  { %4787 = vmatprep.subr.bf16.mxu0 %v10620_v49  ;;  %v10707_v49 = vld [vmem:[#allocation2 + $0x4e8] ss:$16 sps:$4 sm:$0xff]  }
 0x112   :  { %5198 = vmatpush1.bf16.msra.mxu1 %v10621_v53  ;;  %v10710_v53 = vld [vmem:[#allocation2 + $0x900] ss:$16 sps:$4 sm:$0xff]  }
 0x113   :  { %4788 = vmatpush1.bf16.msra.mxu0 %v10618_v52  ;;  %5199 = vmatprep.subr.bf16.mxu1 %v10629_v55  ;;  %v10715_v52 = vld [vmem:[#allocation2 + $0x50c] ss:$16 sps:$4 sm:$0xff]   ;;  %v10718_v55 = vld [vmem:[#allocation2 + $0x924] ss:$16 sps:$4 sm:$0xff]  }
 0x114   :  { %4789 = vmatprep.subr.bf16.mxu0 %v10626_v54  ;;  %v10713_v54 = vld [vmem:[#allocation2 + $0x508] ss:$16 sps:$4 sm:$0xff]  }
 0x116   :  { %5200 = vmatpush1.bf16.msra.mxu1 %v10627_v57  ;;  %v10716_v57 = vld [vmem:[#allocation2 + $0x920] ss:$16 sps:$4 sm:$0xff]  }
 0x117   :  { %4790 = vmatpush1.bf16.msra.mxu0 %v10624_v56  ;;  %5201 = vmatprep.subr.bf16.mxu1 %v10635_v59  ;;  %v10721_v56 = vld [vmem:[#allocation2 + $0x52c] ss:$16 sps:$4 sm:$0xff]   ;;  %v10724_v59 = vld [vmem:[#allocation2 + $0x944] ss:$16 sps:$4 sm:$0xff]  }
 0x118   :  { %4791 = vmatprep.subr.bf16.mxu0 %v10632_v58  ;;  %v10719_v58 = vld [vmem:[#allocation2 + $0x528] ss:$16 sps:$4 sm:$0xff]  }
 0x11a   :  { %5202 = vmatpush1.bf16.msra.mxu1 %v10633_v61  ;;  %v10722_v61 = vld [vmem:[#allocation2 + $0x940] ss:$16 sps:$4 sm:$0xff]  }
 0x11b   :  { %4792 = vmatpush1.bf16.msra.mxu0 %v10630_v60  ;;  %5203 = vmatprep.subr.bf16.mxu1 %v10641_v63  ;;  %v10727_v60 = vld [vmem:[#allocation2 + $0x54c] ss:$16 sps:$4 sm:$0xff]   ;;  %v10730_v63 = vld [vmem:[#allocation2 + $0x964] ss:$16 sps:$4 sm:$0xff]  }
 0x11c   :  { %4793 = vmatprep.subr.bf16.mxu0 %v10638_v62  ;;  %v10725_v62 = vld [vmem:[#allocation2 + $0x548] ss:$16 sps:$4 sm:$0xff]  }
 0x11e   :  { %5204 = vmatpush1.bf16.msra.mxu1 %v10639_v1  ;;  %v10728_v1 = vld [vmem:[#allocation2 + $0x960] ss:$16 sps:$4 sm:$0xff]  }
 0x11f   :  { %4794 = vmatpush1.bf16.msra.mxu0 %v10636_v0  ;;  %5205 = vmatprep.subr.bf16.mxu1 %v10647_v3  ;;  %v10733_v0 = vld [vmem:[#allocation2 + $0x56c] ss:$16 sps:$4 sm:$0xff]   ;;  %v10736_v3 = vld [vmem:[#allocation2 + $0x984] ss:$16 sps:$4 sm:$0xff]  }
 0x120   :  { %4795 = vmatprep.subr.bf16.mxu0 %v10644_v2  ;;  %v10731_v2 = vld [vmem:[#allocation2 + $0x568] ss:$16 sps:$4 sm:$0xff]  }
 0x122   :  { %5206 = vmatpush1.bf16.msra.mxu1 %v10645_v5  ;;  %v10734_v5 = vld [vmem:[#allocation2 + $0x980] ss:$16 sps:$4 sm:$0xff]  }
 0x123   :  { %4796 = vmatpush1.bf16.msra.mxu0 %v10642_v4  ;;  %5207 = vmatprep.subr.bf16.mxu1 %v10653_v9  ;;  %v10739_v4 = vld [vmem:[#allocation2 + $0x58c] ss:$16 sps:$4 sm:$0xff]   ;;  %v10742_v9 = vld [vmem:[#allocation2 + $0x9a4] ss:$16 sps:$4 sm:$0xff]  }
 0x124   :  { %4797 = vmatprep.subr.bf16.mxu0 %v10650_v8  ;;  %v10737_v8 = vld [vmem:[#allocation2 + $0x588] ss:$16 sps:$4 sm:$0xff]  }
 0x126   :  { %5208 = vmatpush1.bf16.msra.mxu1 %v10651_v11  ;;  %v10740_v11 = vld [vmem:[#allocation2 + $0x9a0] ss:$16 sps:$4 sm:$0xff]  }
 0x127   :  { %4798 = vmatpush1.bf16.msra.mxu0 %v10648_v10  ;;  %5209 = vmatprep.subr.bf16.mxu1 %v10659_v14  ;;  %v10745_v10 = vld [vmem:[#allocation2 + $0x5ac] ss:$16 sps:$4 sm:$0xff]   ;;  %v10748_v14 = vld [vmem:[#allocation2 + $0x9c4] ss:$16 sps:$4 sm:$0xff]  }
 0x128   :  { %4799 = vmatprep.subr.bf16.mxu0 %v10656_v12  ;;  %v10743_v12 = vld [vmem:[#allocation2 + $0x5a8] ss:$16 sps:$4 sm:$0xff]  }
 0x12a   :  { %5210 = vmatpush1.bf16.msra.mxu1 %v10657_v16  ;;  %v10746_v16 = vld [vmem:[#allocation2 + $0x9c0] ss:$16 sps:$4 sm:$0xff]  }
 0x12b   :  { %4800 = vmatpush1.bf16.msra.mxu0 %v10654_v15  ;;  %5220 = vmatprep.subr.bf16.mxu1 %v10667_v20  ;;  %v10751_v15 = vld [vmem:[#allocation2 + $0x5cc] ss:$16 sps:$4 sm:$0xff]   ;;  %v10754_v20 = vld [vmem:[#allocation2 + $0x9e4] ss:$16 sps:$4 sm:$0xff]  }
 0x12c   :  { %4810 = vmatprep.subr.bf16.mxu0 %v10664_v17  ;;  %v10749_v17 = vld [vmem:[#allocation2 + $0x5c8] ss:$16 sps:$4 sm:$0xff]  }
 0x12d   :  { %5212 = vmatmul.mubr.bf16.vlgmr.msra.gmra.mrb[4].mxu1 %v12470_v7  ;;  %v10685_v7 = vld [vmem:[#allocation2 + $0x46c] ss:$16 sps:$4 sm:$0xff]  }
 0x12e   :  { %4802 = vmatmul.mubr.bf16.vlgmr.msra.gmra.mrb[0].mxu0 %v12504_v21  ;;  %5221 = vmatpush1.bf16.msra.mxu1 %v10665_v24  ;;  %v10752_v24 = vld [vmem:[#allocation2 + $0x9e0] ss:$16 sps:$4 sm:$0xff]  }
 0x12f   :  { %4811 = vmatpush1.bf16.msra.mxu0 %v10662_v23  ;;  %5222 = vmatprep.subr.bf16.mxu1 %v10673_v26  ;;  %v10757_v23 = vld [vmem:[#allocation2 + $0x5ec] ss:$16 sps:$4 sm:$0xff]   ;;  %v10762_v26 = vld [vmem:[#allocation2 + $0xa04] ss:$16 sps:$4 sm:$0xff]  }
 0x130   :  { %4812 = vmatprep.subr.bf16.mxu0 %v10670_v25  ;;  %4842 = vmatprep.mubr.bf16.mxu0 %v12513_v6  ;;  %v10755_v25 = vld [vmem:[#allocation2 + $0x5e8] ss:$16 sps:$4 sm:$0xff]  }
 0x131   :  { %5252 = vmatprep.mubr.bf16.mxu1 %v12482_v34  ;;  %v10689_v34 = vld [vmem:[#allocation2 + $0x488] ss:$16 sps:$4 sm:$0xff]  }
 0x132   :  { %5223 = vmatpush1.bf16.msra.mxu1 %v10671_v27  ;;  %v12521_v27 = vcombine.low %v12509_v22, %v12509_v22  ;;  %v10766_v22 = vld [vmem:[#allocation2 + $0xa20] ss:$16 sps:$4 sm:$0xff]  }
 0x133   :  { %4813 = vmatpush1.bf16.msra.mxu0 %v10668_v18  ;;  %5224 = vmatprep.subr.bf16.mxu1 %v10679_v29  ;;  %v10765_v18 = vld [vmem:[#allocation2 + $0x60c] ss:$16 sps:$4 sm:$0xff]  }
 0x134   :  { %4814 = vmatprep.subr.bf16.mxu0 %v10676_v28  ;;  %v10760_v28 = vld [vmem:[#allocation2 + $0xa00] ss:$16 sps:$4 sm:$0xff]   ;;  %v12526_v29 = vld [vmem:[%s12714_s0 + $0x28] sm:$0xff] }
 0x136   :  { %5225 = vmatpush1.bf16.msra.mxu1 %v10677_v31  ;;  %v10768_v31 = vld [vmem:[#allocation2 + $0xa24] ss:$16 sps:$4 sm:$0xff]  }
 0x137   :  { %4815 = vmatpush1.bf16.msra.mxu0 %v10674_v30  ;;  %5226 = vmatprep.subr.bf16.mxu1 %v10685_v7  ;;  %v10763_v30 = vld [vmem:[#allocation2 + $0x608] ss:$16 sps:$4 sm:$0xff]   ;;  %v12530_v7 = vcombine.high %v12526_v29, %v12526_v29 }
 0x138   :  { %4816 = vmatprep.subr.bf16.mxu0 %v10682_v32  ;;  %v10771_v32 = vld [vmem:[#allocation2 + $0x62c] ss:$16 sps:$4 sm:$0xff]  }
 0x13a   :  { %5227 = vmatpush1.bf16.msra.mxu1 %v10683_v33  ;;  %v10774_v33 = vld [vmem:[#allocation2 + $0xa44] ss:$16 sps:$4 sm:$0xff]  }
 0x13b   :  { %4817 = vmatpush1.bf16.msra.mxu0 %v10680_v51  ;;  %5228 = vmatprep.subr.bf16.mxu1 %v10691_v36  ;;  %v10769_v51 = vld [vmem:[#allocation2 + $0x628] ss:$16 sps:$4 sm:$0xff]   ;;  %v10772_v36 = vld [vmem:[#allocation2 + $0xa40] ss:$16 sps:$4 sm:$0xff]  }
 0x13c   :  { %4818 = vmatprep.subr.bf16.mxu0 %v10688_v35  ;;  %v10777_v35 = vld [vmem:[#allocation2 + $0x64c] ss:$16 sps:$4 sm:$0xff]  }
 0x13e   :  { %5229 = vmatpush1.bf16.msra.mxu1 %v10689_v34  ;;  %v10780_v34 = vld [vmem:[#allocation2 + $0xa64] ss:$16 sps:$4 sm:$0xff]  }
 0x13f   :  { %4819 = vmatpush1.bf16.msra.mxu0 %v10686_v37  ;;  %5230 = vmatprep.subr.bf16.mxu1 %v10697_v39  ;;  %v10775_v37 = vld [vmem:[#allocation2 + $0x648] ss:$16 sps:$4 sm:$0xff]  }
 0x140   :  { %4820 = vmatprep.subr.bf16.mxu0 %v10694_v38  ;;  %v10778_v38 = vld [vmem:[#allocation2 + $0xa60] ss:$16 sps:$4 sm:$0xff]   ;;  %v10781_v39 = vld [vmem:[#allocation2 + $0x668] ss:$16 sps:$4 sm:$0xff]  }
 0x142   :  { %5231 = vmatpush1.bf16.msra.mxu1 %v10695_v41  ;;  %v10789_v41 = vld [vmem:[#allocation2 + $0x68c] ss:$16 sps:$4 sm:$0xff]  }
 0x143   :  { %4821 = vmatpush1.bf16.msra.mxu0 %v10692_v40  ;;  %5232 = vmatprep.subr.bf16.mxu1 %v10703_v43  ;;  %v10786_v40 = vld [vmem:[#allocation2 + $0xa84] ss:$16 sps:$4 sm:$0xff]  }
 0x144   :  { %4822 = vmatprep.subr.bf16.mxu0 %v10700_v42  ;;  %v10784_v42 = vld [vmem:[#allocation2 + $0xa80] ss:$16 sps:$4 sm:$0xff]   ;;  %v10792_v43 = vld [vmem:[#allocation2 + $0xaa4] ss:$16 sps:$4 sm:$0xff]  }
 0x146   :  { %5233 = vmatpush1.bf16.msra.mxu1 %v10701_v45  ;;  %v10790_v45 = vld [vmem:[#allocation2 + $0xaa0] ss:$16 sps:$4 sm:$0xff]  }
 0x147   :  { %4823 = vmatpush1.bf16.msra.mxu0 %v10698_v44  ;;  %5234 = vmatprep.subr.bf16.mxu1 %v10709_v47  ;;  %v10795_v44 = vld [vmem:[#allocation2 + $0x6ac] ss:$16 sps:$4 sm:$0xff]   ;;  %v10798_v47 = vld [vmem:[#allocation2 + $0xac4] ss:$16 sps:$4 sm:$0xff]  }
 0x148   :  { %4824 = vmatprep.subr.bf16.mxu0 %v10706_v46  ;;  %v10793_v46 = vld [vmem:[#allocation2 + $0x6a8] ss:$16 sps:$4 sm:$0xff]  }
 0x14a   :  { %5235 = vmatpush1.bf16.msra.mxu1 %v10707_v49 }
 0x14b   :  { %4825 = vmatpush1.bf16.msra.mxu0 %v10704_v48  ;;  %5236 = vmatprep.subr.bf16.mxu1 %v10715_v52  ;;  %v10801_v48 = vld [vmem:[#allocation2 + $0x6cc] ss:$16 sps:$4 sm:$0xff]  }
 0x14c   :  { %4826 = vmatprep.subr.bf16.mxu0 %v10712_v50 }
 0x14e   :  { %5237 = vmatpush1.bf16.msra.mxu1 %v10713_v54  ;;  %v10799_v54 = vld [vmem:[#allocation2 + $0x6c8] ss:$16 sps:$4 sm:$0xff]  }
 0x14f   :  { %4827 = vmatpush1.bf16.msra.mxu0 %v10710_v53  ;;  %5238 = vmatprep.subr.bf16.mxu1 %v10721_v56  ;;  %v10796_v53 = vld [vmem:[#allocation2 + $0xac0] ss:$16 sps:$4 sm:$0xff]   ;;  %v10804_v56 = vld [vmem:[#allocation2 + $0xae4] ss:$16 sps:$4 sm:$0xff]  }
 0x150   :  { %4828 = vmatprep.subr.bf16.mxu0 %v10718_v55 }
 0x152   :  { %5239 = vmatpush1.bf16.msra.mxu1 %v10719_v58  ;;  %v10802_v58 = vld [vmem:[#allocation2 + $0xae0] ss:$16 sps:$4 sm:$0xff]  }
 0x153   :  { %4829 = vmatpush1.bf16.msra.mxu0 %v10716_v57  ;;  %5240 = vmatprep.subr.bf16.mxu1 %v10727_v60  ;;  %v10807_v57 = vld [vmem:[#allocation2 + $0x6ec] ss:$16 sps:$4 sm:$0xff]   ;;  %v10810_v60 = vld [vmem:[#allocation2 + $0xb04] ss:$16 sps:$4 sm:$0xff]  }
 0x154   :  { %4830 = vmatprep.subr.bf16.mxu0 %v10724_v59  ;;  %v10805_v59 = vld [vmem:[#allocation2 + $0x6e8] ss:$16 sps:$4 sm:$0xff]  }
 0x156   :  { %5241 = vmatpush1.bf16.msra.mxu1 %v10725_v62  ;;  %v10808_v62 = vld [vmem:[#allocation2 + $0xb00] ss:$16 sps:$4 sm:$0xff]  }
 0x157   :  { %4831 = vmatpush1.bf16.msra.mxu0 %v10722_v61  ;;  %5242 = vmatprep.subr.bf16.mxu1 %v10733_v0  ;;  %v10813_v61 = vld [vmem:[#allocation2 + $0x70c] ss:$16 sps:$4 sm:$0xff]   ;;  %v10816_v0 = vld [vmem:[#allocation2 + $0xb24] ss:$16 sps:$4 sm:$0xff]  }
 0x158   :  { %4832 = vmatprep.subr.bf16.mxu0 %v10730_v63  ;;  %v10811_v63 = vld [vmem:[#allocation2 + $0x708] ss:$16 sps:$4 sm:$0xff]  }
 0x15a   :  { %5243 = vmatpush1.bf16.msra.mxu1 %v10731_v2  ;;  %v10814_v2 = vld [vmem:[#allocation2 + $0xb20] ss:$16 sps:$4 sm:$0xff]  }
 0x15b   :  { %4833 = vmatpush1.bf16.msra.mxu0 %v10728_v1  ;;  %5244 = vmatprep.subr.bf16.mxu1 %v10739_v4  ;;  %v10819_v1 = vld [vmem:[#allocation2 + $0x72c] ss:$16 sps:$4 sm:$0xff]   ;;  %v10822_v4 = vld [vmem:[#allocation2 + $0xb44] ss:$16 sps:$4 sm:$0xff]  }
 0x15c   :  { %4834 = vmatprep.subr.bf16.mxu0 %v10736_v3  ;;  %v10817_v3 = vld [vmem:[#allocation2 + $0x728] ss:$16 sps:$4 sm:$0xff]  }
 0x15e   :  { %5245 = vmatpush1.bf16.msra.mxu1 %v10737_v8  ;;  %v10820_v8 = vld [vmem:[#allocation2 + $0xb40] ss:$16 sps:$4 sm:$0xff]  }
 0x15f   :  { %4835 = vmatpush1.bf16.msra.mxu0 %v10734_v5  ;;  %5246 = vmatprep.subr.bf16.mxu1 %v10745_v10  ;;  %v10825_v5 = vld [vmem:[#allocation2 + $0x74c] ss:$16 sps:$4 sm:$0xff]   ;;  %v10828_v10 = vld [vmem:[#allocation2 + $0xb64] ss:$16 sps:$4 sm:$0xff]  }
 0x160   :  { %4836 = vmatprep.subr.bf16.mxu0 %v10742_v9  ;;  %v10823_v9 = vld [vmem:[#allocation2 + $0x748] ss:$16 sps:$4 sm:$0xff]  }
 0x162   :  { %5247 = vmatpush1.bf16.msra.mxu1 %v10743_v12  ;;  %v10826_v12 = vld [vmem:[#allocation2 + $0xb60] ss:$16 sps:$4 sm:$0xff]  }
 0x163   :  { %4837 = vmatpush1.bf16.msra.mxu0 %v10740_v11  ;;  %5248 = vmatprep.subr.bf16.mxu1 %v10751_v15  ;;  %v10831_v11 = vld [vmem:[#allocation2 + $0x76c] ss:$16 sps:$4 sm:$0xff]   ;;  %v10834_v15 = vld [vmem:[#allocation2 + $0xb84] ss:$16 sps:$4 sm:$0xff]  }
 0x164   :  { %4838 = vmatprep.subr.bf16.mxu0 %v10748_v14  ;;  %v10829_v14 = vld [vmem:[#allocation2 + $0x768] ss:$16 sps:$4 sm:$0xff]  }
 0x166   :  { %5249 = vmatpush1.bf16.msra.mxu1 %v10749_v17  ;;  %v10832_v17 = vld [vmem:[#allocation2 + $0xb80] ss:$16 sps:$4 sm:$0xff]  }
 0x167   :  { %4839 = vmatpush1.bf16.msra.mxu0 %v10746_v16  ;;  %5250 = vmatprep.subr.bf16.mxu1 %v10757_v23  ;;  %v10837_v16 = vld [vmem:[#allocation2 + $0x78c] ss:$16 sps:$4 sm:$0xff]   ;;  %v10840_v23 = vld [vmem:[#allocation2 + $0xba4] ss:$16 sps:$4 sm:$0xff]  }
 0x168   :  { %4840 = vmatprep.subr.bf16.mxu0 %v10754_v20  ;;  %v10835_v20 = vld [vmem:[#allocation2 + $0x788] ss:$16 sps:$4 sm:$0xff]  }
 0x16a   :  { %5251 = vmatpush1.bf16.msra.mxu1 %v10755_v25  ;;  %v10838_v25 = vld [vmem:[#allocation2 + $0xba0] ss:$16 sps:$4 sm:$0xff]  }
 0x16b   :  { %4841 = vmatpush1.bf16.msra.mxu0 %v10752_v24  ;;  %5261 = vmatprep.subr.bf16.mxu1 %v10765_v18  ;;  %v10843_v24 = vld [vmem:[#allocation2 + $0x7ac] ss:$16 sps:$4 sm:$0xff]   ;;  %v10846_v18 = vld [vmem:[#allocation2 + $0xbc4] ss:$16 sps:$4 sm:$0xff]  }
 0x16c   :  { %4851 = vmatprep.subr.bf16.mxu0 %v10762_v26  ;;  %v10841_v26 = vld [vmem:[#allocation2 + $0x7a8] ss:$16 sps:$4 sm:$0xff]  }
 0x16d   :  { %5253 = vmatmul.mubr.bf16.vlgmr.msra.gmra.mrb[4].mxu1 %v12487_v13  ;;  %v10783_v13 = vld [vmem:[#allocation2 + $0x66c] ss:$16 sps:$4 sm:$0xff]  }
 0x16e   :  { %4843 = vmatmul.mubr.bf16.vlgmr.msra.gmra.mrb[0].mxu0 %v12521_v27  ;;  %5262 = vmatpush1.bf16.msra.mxu1 %v10763_v30  ;;  %v10844_v30 = vld [vmem:[#allocation2 + $0xbc0] ss:$16 sps:$4 sm:$0xff]  }
 0x16f   :  { %4852 = vmatpush1.bf16.msra.mxu0 %v10760_v28  ;;  %5263 = vmatprep.subr.bf16.mxu1 %v10771_v32  ;;  %v10849_v28 = vld [vmem:[#allocation2 + $0x7cc] ss:$16 sps:$4 sm:$0xff]   ;;  %v10852_v32 = vld [vmem:[#allocation2 + $0xbe4] ss:$16 sps:$4 sm:$0xff]  }
 0x170   :  { %4853 = vmatprep.subr.bf16.mxu0 %v10768_v31  ;;  %4883 = vmatprep.mubr.bf16.mxu0 %v12530_v7  ;;  %v10847_v31 = vld [vmem:[#allocation2 + $0x7c8] ss:$16 sps:$4 sm:$0xff]  }
 0x171   :  { %5293 = vmatprep.mubr.bf16.mxu1 %v12496_v19  ;;  %v10787_v19 = vld [vmem:[#allocation2 + $0x688] ss:$16 sps:$4 sm:$0xff]  }
 0x172   :  { %5264 = vmatpush1.bf16.msra.mxu1 %v10769_v51  ;;  %v10850_v51 = vld [vmem:[#allocation2 + $0xbe0] ss:$16 sps:$4 sm:$0xff]  }
 0x173   :  { %4854 = vmatpush1.bf16.msra.mxu0 %v10766_v22  ;;  %5265 = vmatprep.subr.bf16.mxu1 %v10777_v35  ;;  %v10855_v22 = vld [vmem:[#allocation2 + $0x7ec] ss:$16 sps:$4 sm:$0xff]   ;;  %v10860_v35 = vld [vmem:[#allocation2 + $0xc04] ss:$16 sps:$4 sm:$0xff]  }
 0x174   :  { %4855 = vmatprep.subr.bf16.mxu0 %v10774_v33  ;;  %v10853_v33 = vld [vmem:[#allocation2 + $0x7e8] ss:$16 sps:$4 sm:$0xff]  }
 0x176   :  { %5266 = vmatpush1.bf16.msra.mxu1 %v10775_v37  ;;  %v12543_v37 = vld [vmem:[%s12714_s0 + $0x30] sm:$0xff] }
 0x177   :  { %4856 = vmatpush1.bf16.msra.mxu0 %v10772_v36  ;;  %5267 = vmatprep.subr.bf16.mxu1 %v10783_v13  ;;  %v10863_v36 = vld [vmem:[#allocation2 + $0x80c] ss:$16 sps:$4 sm:$0xff]   ;;  %v10858_v13 = vld [vmem:[#allocation2 + $0xc00] ss:$16 sps:$4 sm:$0xff]  }
 0x178   :  { %4857 = vmatprep.subr.bf16.mxu0 %v10780_v34  ;;  %v12547_v34 = vcombine.low %v12526_v29, %v12526_v29  ;;  %v10864_v29 = vld [vmem:[#allocation2 + $0xc20] ss:$16 sps:$4 sm:$0xff]  }
 0x17a   :  { %5268 = vmatpush1.bf16.msra.mxu1 %v10781_v39  ;;  %v10866_v39 = vld [vmem:[#allocation2 + $0xc24] ss:$16 sps:$4 sm:$0xff]  }
 0x17b   :  { %4858 = vmatpush1.bf16.msra.mxu0 %v10778_v38  ;;  %5269 = vmatprep.subr.bf16.mxu1 %v10789_v41  ;;  %v10861_v38 = vld [vmem:[#allocation2 + $0x808] ss:$16 sps:$4 sm:$0xff]   ;;  %v12551_v41 = vcombine.high %v12543_v37, %v12543_v37 }
 0x17c   :  { %4859 = vmatprep.subr.bf16.mxu0 %v10786_v40  ;;  %v10869_v40 = vld [vmem:[#allocation2 + $0x82c] ss:$16 sps:$4 sm:$0xff]  }
 0x17e   :  { %5270 = vmatpush1.bf16.msra.mxu1 %v10787_v19  ;;  %v10872_v19 = vld [vmem:[#allocation2 + $0xc44] ss:$16 sps:$4 sm:$0xff]  }
 0x17f   :  { %4860 = vmatpush1.bf16.msra.mxu0 %v10784_v42  ;;  %5271 = vmatprep.subr.bf16.mxu1 %v10795_v44  ;;  %v10867_v42 = vld [vmem:[#allocation2 + $0x828] ss:$16 sps:$4 sm:$0xff]   ;;  %v10870_v44 = vld [vmem:[#allocation2 + $0xc40] ss:$16 sps:$4 sm:$0xff]  }
 0x180   :  { %4861 = vmatprep.subr.bf16.mxu0 %v10792_v43  ;;  %v12536_v49 = vpop.f32.mrb[0].mxu1  ;;  %v10875_v43 = vld [vmem:[#allocation2 + $0x84c] ss:$16 sps:$4 sm:$0xff]  }
 0x181   :  { %v12538_v50 = vpop.f32.mrb[1].mxu1 }
 0x182   :  { %v4684_v52 = vpop.f32.mrb[2].mxu1  ;;  %5272 = vmatpush1.bf16.msra.mxu1 %v10793_v46  ;;  %v10878_v46 = vld [vmem:[#allocation2 + $0xc64] ss:$16 sps:$4 sm:$0xff]  }
 0x183   :  { %4862 = vmatpush1.bf16.msra.mxu0 %v10790_v45  ;;  %v4685_v55 = vpop.f32.mrb[3].mxu1  ;;  %5273 = vmatprep.subr.bf16.mxu1 %v10801_v48  ;;  %v10873_v45 = vld [vmem:[#allocation2 + $0x848] ss:$16 sps:$4 sm:$0xff]   ;;  %v10884_v52 = vld [vmem:[#allocation2 + $0xc84] ss:$16 sps:$4 sm:$0xff]  }
 0x184   :  { %4863 = vmatprep.subr.bf16.mxu0 %v10798_v47  ;;  %v10876_v47 = vld [vmem:[#allocation2 + $0xc60] ss:$16 sps:$4 sm:$0xff]   ;;  %v10879_v48 = vld [vmem:[#allocation2 + $0x868] ss:$16 sps:$4 sm:$0xff]   ;;  %v10890_v55 = vld [vmem:[#allocation2 + $0xca4] ss:$16 sps:$4 sm:$0xff]  }
 0x186   :  { %5274 = vmatpush1.bf16.msra.mxu1 %v10799_v54  ;;  %v10882_v54 = vld [vmem:[#allocation2 + $0xc80] ss:$16 sps:$4 sm:$0xff]  }
 0x187   :  { %4864 = vmatpush1.bf16.msra.mxu0 %v10796_v53  ;;  %5275 = vmatprep.subr.bf16.mxu1 %v10807_v57  ;;  %v10887_v53 = vld [vmem:[#allocation2 + $0x88c] ss:$16 sps:$4 sm:$0xff]   ;;  %v10888_v57 = vld [vmem:[#allocation2 + $0xca0] ss:$16 sps:$4 sm:$0xff]  }
 0x188   :  { %4865 = vmatprep.subr.bf16.mxu0 %v10804_v56  ;;  %v10893_v56 = vld [vmem:[#allocation2 + $0x8ac] ss:$16 sps:$4 sm:$0xff]  }
 0x18a   :  { %5276 = vmatpush1.bf16.msra.mxu1 %v10805_v59  ;;  %v10896_v59 = vld [vmem:[#allocation2 + $0xcc4] ss:$16 sps:$4 sm:$0xff]  }
 0x18b   :  { %4866 = vmatpush1.bf16.msra.mxu0 %v10802_v58  ;;  %5277 = vmatprep.subr.bf16.mxu1 %v10813_v61  ;;  %v10891_v58 = vld [vmem:[#allocation2 + $0x8a8] ss:$16 sps:$4 sm:$0xff]   ;;  %v10894_v61 = vld [vmem:[#allocation2 + $0xcc0] ss:$16 sps:$4 sm:$0xff]  }
 0x18c   :  { %4867 = vmatprep.subr.bf16.mxu0 %v10810_v60  ;;  %v10899_v60 = vld [vmem:[#allocation2 + $0x8cc] ss:$16 sps:$4 sm:$0xff]  }
 0x18e   :  { %5278 = vmatpush1.bf16.msra.mxu1 %v10811_v63  ;;  %v10902_v63 = vld [vmem:[#allocation2 + $0xce4] ss:$16 sps:$4 sm:$0xff]  }
 0x18f   :  { %4868 = vmatpush1.bf16.msra.mxu0 %v10808_v62  ;;  %5279 = vmatprep.subr.bf16.mxu1 %v10819_v1  ;;  %v10897_v62 = vld [vmem:[#allocation2 + $0x8c8] ss:$16 sps:$4 sm:$0xff]   ;;  %v10900_v1 = vld [vmem:[#allocation2 + $0xce0] ss:$16 sps:$4 sm:$0xff]  }
 0x190   :  { %4869 = vmatprep.subr.bf16.mxu0 %v10816_v0  ;;  %v10905_v0 = vld [vmem:[#allocation2 + $0x8ec] ss:$16 sps:$4 sm:$0xff]  }
 0x192   :  { %5280 = vmatpush1.bf16.msra.mxu1 %v10817_v3  ;;  %v10908_v3 = vld [vmem:[#allocation2 + $0xd04] ss:$16 sps:$4 sm:$0xff]  }
 0x193   :  { %4870 = vmatpush1.bf16.msra.mxu0 %v10814_v2  ;;  %5281 = vmatprep.subr.bf16.mxu1 %v10825_v5  ;;  %v10903_v2 = vld [vmem:[#allocation2 + $0x8e8] ss:$16 sps:$4 sm:$0xff]   ;;  %v10906_v5 = vld [vmem:[#allocation2 + $0xd00] ss:$16 sps:$4 sm:$0xff]  }
 0x194   :  { %4871 = vmatprep.subr.bf16.mxu0 %v10822_v4  ;;  %v10911_v4 = vld [vmem:[#allocation2 + $0x90c] ss:$16 sps:$4 sm:$0xff]  }
 0x196   :  { %5282 = vmatpush1.bf16.msra.mxu1 %v10823_v9  ;;  %v10914_v9 = vld [vmem:[#allocation2 + $0xd24] ss:$16 sps:$4 sm:$0xff]  }
 0x197   :  { %4872 = vmatpush1.bf16.msra.mxu0 %v10820_v8  ;;  %5283 = vmatprep.subr.bf16.mxu1 %v10831_v11  ;;  %v10909_v8 = vld [vmem:[#allocation2 + $0x908] ss:$16 sps:$4 sm:$0xff]   ;;  %v10912_v11 = vld [vmem:[#allocation2 + $0xd20] ss:$16 sps:$4 sm:$0xff]  }
 0x198   :  { %4873 = vmatprep.subr.bf16.mxu0 %v10828_v10  ;;  %v10917_v10 = vld [vmem:[#allocation2 + $0x92c] ss:$16 sps:$4 sm:$0xff]  }
 0x19a   :  { %5284 = vmatpush1.bf16.msra.mxu1 %v10829_v14  ;;  %v10920_v14 = vld [vmem:[#allocation2 + $0xd44] ss:$16 sps:$4 sm:$0xff]  }
 0x19b   :  { %4874 = vmatpush1.bf16.msra.mxu0 %v10826_v12  ;;  %5285 = vmatprep.subr.bf16.mxu1 %v10837_v16  ;;  %v10915_v12 = vld [vmem:[#allocation2 + $0x928] ss:$16 sps:$4 sm:$0xff]   ;;  %v10918_v16 = vld [vmem:[#allocation2 + $0xd40] ss:$16 sps:$4 sm:$0xff]  }
 0x19c   :  { %4875 = vmatprep.subr.bf16.mxu0 %v10834_v15  ;;  %v10923_v15 = vld [vmem:[#allocation2 + $0x94c] ss:$16 sps:$4 sm:$0xff]  }
 0x19e   :  { %5286 = vmatpush1.bf16.msra.mxu1 %v10835_v20  ;;  %v10926_v20 = vld [vmem:[#allocation2 + $0xd64] ss:$16 sps:$4 sm:$0xff]  }
 0x19f   :  { %4876 = vmatpush1.bf16.msra.mxu0 %v10832_v17  ;;  %5287 = vmatprep.subr.bf16.mxu1 %v10843_v24  ;;  %v10921_v17 = vld [vmem:[#allocation2 + $0x948] ss:$16 sps:$4 sm:$0xff]   ;;  %v10924_v24 = vld [vmem:[#allocation2 + $0xd60] ss:$16 sps:$4 sm:$0xff]  }
 0x1a0   :  { %4877 = vmatprep.subr.bf16.mxu0 %v10840_v23  ;;  %v10929_v23 = vld [vmem:[#allocation2 + $0x96c] ss:$16 sps:$4 sm:$0xff]  }
 0x1a2   :  { %5288 = vmatpush1.bf16.msra.mxu1 %v10841_v26  ;;  %v10932_v26 = vld [vmem:[#allocation2 + $0xd84] ss:$16 sps:$4 sm:$0xff]  }
 0x1a3   :  { %4878 = vmatpush1.bf16.msra.mxu0 %v10838_v25  ;;  %5289 = vmatprep.subr.bf16.mxu1 %v10849_v28  ;;  %v10927_v25 = vld [vmem:[#allocation2 + $0x968] ss:$16 sps:$4 sm:$0xff]   ;;  %v10930_v28 = vld [vmem:[#allocation2 + $0xd80] ss:$16 sps:$4 sm:$0xff]  }
 0x1a4   :  { %4879 = vmatprep.subr.bf16.mxu0 %v10846_v18  ;;  %v10935_v18 = vld [vmem:[#allocation2 + $0x98c] ss:$16 sps:$4 sm:$0xff]  }
 0x1a6   :  { %5290 = vmatpush1.bf16.msra.mxu1 %v10847_v31  ;;  %v10938_v31 = vld [vmem:[#allocation2 + $0xda4] ss:$16 sps:$4 sm:$0xff]  }
 0x1a7   :  { %4880 = vmatpush1.bf16.msra.mxu0 %v10844_v30  ;;  %5291 = vmatprep.subr.bf16.mxu1 %v10855_v22  ;;  %v10933_v30 = vld [vmem:[#allocation2 + $0x988] ss:$16 sps:$4 sm:$0xff]   ;;  %v10936_v22 = vld [vmem:[#allocation2 + $0xda0] ss:$16 sps:$4 sm:$0xff]  }
 0x1a8   :  { %4881 = vmatprep.subr.bf16.mxu0 %v10852_v32  ;;  %v10941_v32 = vld [vmem:[#allocation2 + $0x9ac] ss:$16 sps:$4 sm:$0xff]  }
 0x1aa   :  { %5292 = vmatpush1.bf16.msra.mxu1 %v10853_v33  ;;  %v10944_v33 = vld [vmem:[#allocation2 + $0xdc4] ss:$16 sps:$4 sm:$0xff]  }
 0x1ab   :  { %4882 = vmatpush1.bf16.msra.mxu0 %v10850_v51  ;;  %5302 = vmatprep.subr.bf16.mxu1 %v10863_v36  ;;  %v10939_v51 = vld [vmem:[#allocation2 + $0x9a8] ss:$16 sps:$4 sm:$0xff]   ;;  %v10942_v36 = vld [vmem:[#allocation2 + $0xdc0] ss:$16 sps:$4 sm:$0xff]  }
 0x1ac   :  { %4892 = vmatprep.subr.bf16.mxu0 %v10860_v35  ;;  %v10947_v35 = vld [vmem:[#allocation2 + $0x9cc] ss:$16 sps:$4 sm:$0xff]  }
 0x1ad   :  { %5294 = vmatmul.mubr.bf16.vlgmr.msra.gmra.mrb[4].mxu1 %v12504_v21  ;;  %v10881_v21 = vld [vmem:[#allocation2 + $0x86c] ss:$16 sps:$4 sm:$0xff]  }
 0x1ae   :  { %4884 = vmatmul.mubr.bf16.vlgmr.msra.gmra.mrb[0].mxu0 %v12547_v34  ;;  %5303 = vmatpush1.bf16.msra.mxu1 %v10861_v38  ;;  %v10950_v38 = vld [vmem:[#allocation2 + $0xde4] ss:$16 sps:$4 sm:$0xff]  }
 0x1af   :  { %4893 = vmatpush1.bf16.msra.mxu0 %v10858_v13  ;;  %5304 = vmatprep.subr.bf16.mxu1 %v10869_v40  ;;  %v10945_v13 = vld [vmem:[#allocation2 + $0x9c8] ss:$16 sps:$4 sm:$0xff]   ;;  %v10948_v40 = vld [vmem:[#allocation2 + $0xde0] ss:$16 sps:$4 sm:$0xff]  }
 0x1b0   :  { %4894 = vmatprep.subr.bf16.mxu0 %v10866_v39  ;;  %4924 = vmatprep.mubr.bf16.mxu0 %v12551_v41  ;;  %v10953_v39 = vld [vmem:[#allocation2 + $0x9ec] ss:$16 sps:$4 sm:$0xff]  }
 0x1b1   :  { %5334 = vmatprep.mubr.bf16.mxu1 %v12513_v6  ;;  %v10885_v6 = vld [vmem:[#allocation2 + $0x888] ss:$16 sps:$4 sm:$0xff]  }
 0x1b2   :  { %5305 = vmatpush1.bf16.msra.mxu1 %v10867_v42  ;;  %v10958_v42 = vld [vmem:[#allocation2 + $0xe04] ss:$16 sps:$4 sm:$0xff]  }
 0x1b3   :  { %4895 = vmatpush1.bf16.msra.mxu0 %v10864_v29  ;;  %5306 = vmatprep.subr.bf16.mxu1 %v10875_v43  ;;  %v10951_v29 = vld [vmem:[#allocation2 + $0x9e8] ss:$16 sps:$4 sm:$0xff]  }
 0x1b4   :  { %4896 = vmatprep.subr.bf16.mxu0 %v10872_v19  ;;  %v10961_v19 = vld [vmem:[#allocation2 + $0xa0c] ss:$16 sps:$4 sm:$0xff]  }
 0x1b5   :  { %v12560_v43 = vld [vmem:[%s12714_s0 + $0x38] sm:$0xff] }
 0x1b6   :  { %5307 = vmatpush1.bf16.msra.mxu1 %v10873_v45  ;;  %v10956_v45 = vld [vmem:[#allocation2 + $0xe00] ss:$16 sps:$4 sm:$0xff]  }
 0x1b7   :  { %4897 = vmatpush1.bf16.msra.mxu0 %v10870_v44  ;;  %5308 = vmatprep.subr.bf16.mxu1 %v10881_v21  ;;  %v12564_v44 = vcombine.low %v12543_v37, %v12543_v37  ;;  %v10964_v21 = vld [vmem:[#allocation2 + $0xe24] ss:$16 sps:$4 sm:$0xff]   ;;  %v10962_v37 = vld [vmem:[#allocation2 + $0xe20] ss:$16 sps:$4 sm:$0xff]  }
 0x1b8   :  { %4898 = vmatprep.subr.bf16.mxu0 %v10878_v46  ;;  %v10959_v46 = vld [vmem:[#allocation2 + $0xa08] ss:$16 sps:$4 sm:$0xff]  }
 0x1ba   :  { %5309 = vmatpush1.bf16.msra.mxu1 %v10879_v48  ;;  %v12568_v48 = vcombine.high %v12560_v43, %v12560_v43 }
 0x1bb   :  { %4899 = vmatpush1.bf16.msra.mxu0 %v10876_v47  ;;  %5310 = vmatprep.subr.bf16.mxu1 %v10887_v53  ;;  %v10967_v47 = vld [vmem:[#allocation2 + $0xa2c] ss:$16 sps:$4 sm:$0xff]   ;;  %v10970_v53 = vld [vmem:[#allocation2 + $0xe44] ss:$16 sps:$4 sm:$0xff]  }
 0x1bc   :  { %4900 = vmatprep.subr.bf16.mxu0 %v10884_v52  ;;  %v10965_v52 = vld [vmem:[#allocation2 + $0xa28] ss:$16 sps:$4 sm:$0xff]  }
 0x1be   :  { %5311 = vmatpush1.bf16.msra.mxu1 %v10885_v6  ;;  %v10968_v6 = vld [vmem:[#allocation2 + $0xe40] ss:$16 sps:$4 sm:$0xff]  }
 0x1bf   :  { %4901 = vmatpush1.bf16.msra.mxu0 %v10882_v54  ;;  %5312 = vmatprep.subr.bf16.mxu1 %v10893_v56  ;;  %v10973_v54 = vld [vmem:[#allocation2 + $0xa4c] ss:$16 sps:$4 sm:$0xff]   ;;  %v10976_v56 = vld [vmem:[#allocation2 + $0xe64] ss:$16 sps:$4 sm:$0xff]  }
 0x1c0   :  { %4902 = vmatprep.subr.bf16.mxu0 %v10890_v55  ;;  %v10971_v55 = vld [vmem:[#allocation2 + $0xa48] ss:$16 sps:$4 sm:$0xff]  }
 0x1c2   :  { %5313 = vmatpush1.bf16.msra.mxu1 %v10891_v58  ;;  %v10977_v58 = vld [vmem:[#allocation2 + $0xa68] ss:$16 sps:$4 sm:$0xff]  }
 0x1c3   :  { %4903 = vmatpush1.bf16.msra.mxu0 %v10888_v57  ;;  %5314 = vmatprep.subr.bf16.mxu1 %v10899_v60  ;;  %v10974_v57 = vld [vmem:[#allocation2 + $0xe60] ss:$16 sps:$4 sm:$0xff]   ;;  %v10985_v60 = vld [vmem:[#allocation2 + $0xa8c] ss:$16 sps:$4 sm:$0xff]  }
 0x1c4   :  { %4904 = vmatprep.subr.bf16.mxu0 %v10896_v59  ;;  %v10982_v59 = vld [vmem:[#allocation2 + $0xe84] ss:$16 sps:$4 sm:$0xff]  }
 0x1c6   :  { %5315 = vmatpush1.bf16.msra.mxu1 %v10897_v62  ;;  %v10988_v62 = vld [vmem:[#allocation2 + $0xea4] ss:$16 sps:$4 sm:$0xff]  }
 0x1c7   :  { %4905 = vmatpush1.bf16.msra.mxu0 %v10894_v61  ;;  %5316 = vmatprep.subr.bf16.mxu1 %v10905_v0  ;;  %v10980_v61 = vld [vmem:[#allocation2 + $0xe80] ss:$16 sps:$4 sm:$0xff]  }
 0x1c8   :  { %4906 = vmatprep.subr.bf16.mxu0 %v10902_v63  ;;  %v10991_v63 = vld [vmem:[#allocation2 + $0xaac] ss:$16 sps:$4 sm:$0xff]   ;;  %v10986_v0 = vld [vmem:[#allocation2 + $0xea0] ss:$16 sps:$4 sm:$0xff]  }
 0x1ca   :  { %5317 = vmatpush1.bf16.msra.mxu1 %v10903_v2  ;;  %v10994_v2 = vld [vmem:[#allocation2 + $0xec4] ss:$16 sps:$4 sm:$0xff]  }
 0x1cb   :  { %4907 = vmatpush1.bf16.msra.mxu0 %v10900_v1  ;;  %5318 = vmatprep.subr.bf16.mxu1 %v10911_v4  ;;  %v10989_v1 = vld [vmem:[#allocation2 + $0xaa8] ss:$16 sps:$4 sm:$0xff]   ;;  %v10992_v4 = vld [vmem:[#allocation2 + $0xec0] ss:$16 sps:$4 sm:$0xff]  }
 0x1cc   :  { %4908 = vmatprep.subr.bf16.mxu0 %v10908_v3  ;;  %v10997_v3 = vld [vmem:[#allocation2 + $0xacc] ss:$16 sps:$4 sm:$0xff]  }
 0x1ce   :  { %5319 = vmatpush1.bf16.msra.mxu1 %v10909_v8  ;;  %v11000_v8 = vld [vmem:[#allocation2 + $0xee4] ss:$16 sps:$4 sm:$0xff]  }
 0x1cf   :  { %4909 = vmatpush1.bf16.msra.mxu0 %v10906_v5  ;;  %5320 = vmatprep.subr.bf16.mxu1 %v10917_v10  ;;  %v10995_v5 = vld [vmem:[#allocation2 + $0xac8] ss:$16 sps:$4 sm:$0xff]   ;;  %v10998_v10 = vld [vmem:[#allocation2 + $0xee0] ss:$16 sps:$4 sm:$0xff]  }
 0x1d0   :  { %4910 = vmatprep.subr.bf16.mxu0 %v10914_v9  ;;  %v11003_v9 = vld [vmem:[#allocation2 + $0xaec] ss:$16 sps:$4 sm:$0xff]  }
 0x1d2   :  { %5321 = vmatpush1.bf16.msra.mxu1 %v10915_v12  ;;  %v11006_v12 = vld [vmem:[#allocation2 + $0xf04] ss:$16 sps:$4 sm:$0xff]  }
 0x1d3   :  { %4911 = vmatpush1.bf16.msra.mxu0 %v10912_v11  ;;  %5322 = vmatprep.subr.bf16.mxu1 %v10923_v15  ;;  %v11001_v11 = vld [vmem:[#allocation2 + $0xae8] ss:$16 sps:$4 sm:$0xff]   ;;  %v11004_v15 = vld [vmem:[#allocation2 + $0xf00] ss:$16 sps:$4 sm:$0xff]  }
 0x1d4   :  { %4912 = vmatprep.subr.bf16.mxu0 %v10920_v14  ;;  %v11009_v14 = vld [vmem:[#allocation2 + $0xb0c] ss:$16 sps:$4 sm:$0xff]  }
 0x1d6   :  { %5323 = vmatpush1.bf16.msra.mxu1 %v10921_v17  ;;  %v11012_v17 = vld [vmem:[#allocation2 + $0xf24] ss:$16 sps:$4 sm:$0xff]  }
 0x1d7   :  { %4913 = vmatpush1.bf16.msra.mxu0 %v10918_v16  ;;  %5324 = vmatprep.subr.bf16.mxu1 %v10929_v23  ;;  %v11007_v16 = vld [vmem:[#allocation2 + $0xb08] ss:$16 sps:$4 sm:$0xff]   ;;  %v11010_v23 = vld [vmem:[#allocation2 + $0xf20] ss:$16 sps:$4 sm:$0xff]  }
 0x1d8   :  { %4914 = vmatprep.subr.bf16.mxu0 %v10926_v20  ;;  %v11015_v20 = vld [vmem:[#allocation2 + $0xb2c] ss:$16 sps:$4 sm:$0xff]  }
 0x1da   :  { %5325 = vmatpush1.bf16.msra.mxu1 %v10927_v25  ;;  %v11018_v25 = vld [vmem:[#allocation2 + $0xf44] ss:$16 sps:$4 sm:$0xff]  }
 0x1db   :  { %4915 = vmatpush1.bf16.msra.mxu0 %v10924_v24  ;;  %5326 = vmatprep.subr.bf16.mxu1 %v10935_v18  ;;  %v11013_v24 = vld [vmem:[#allocation2 + $0xb28] ss:$16 sps:$4 sm:$0xff]   ;;  %v11016_v18 = vld [vmem:[#allocation2 + $0xf40] ss:$16 sps:$4 sm:$0xff]  }
 0x1dc   :  { %4916 = vmatprep.subr.bf16.mxu0 %v10932_v26  ;;  %v11021_v26 = vld [vmem:[#allocation2 + $0xb4c] ss:$16 sps:$4 sm:$0xff]  }
 0x1de   :  { %5327 = vmatpush1.bf16.msra.mxu1 %v10933_v30  ;;  %v11024_v30 = vld [vmem:[#allocation2 + $0xf64] ss:$16 sps:$4 sm:$0xff]  }
 0x1df   :  { %4917 = vmatpush1.bf16.msra.mxu0 %v10930_v28  ;;  %5328 = vmatprep.subr.bf16.mxu1 %v10941_v32  ;;  %v11019_v28 = vld [vmem:[#allocation2 + $0xb48] ss:$16 sps:$4 sm:$0xff]   ;;  %v11022_v32 = vld [vmem:[#allocation2 + $0xf60] ss:$16 sps:$4 sm:$0xff]  }
 0x1e0   :  { %4918 = vmatprep.subr.bf16.mxu0 %v10938_v31  ;;  %v11027_v31 = vld [vmem:[#allocation2 + $0xb6c] ss:$16 sps:$4 sm:$0xff]  }
 0x1e2   :  { %5329 = vmatpush1.bf16.msra.mxu1 %v10939_v51  ;;  %v11030_v51 = vld [vmem:[#allocation2 + $0xf84] ss:$16 sps:$4 sm:$0xff]  }
 0x1e3   :  { %4919 = vmatpush1.bf16.msra.mxu0 %v10936_v22  ;;  %5330 = vmatprep.subr.bf16.mxu1 %v10947_v35  ;;  %v11025_v22 = vld [vmem:[#allocation2 + $0xb68] ss:$16 sps:$4 sm:$0xff]   ;;  %v11028_v35 = vld [vmem:[#allocation2 + $0xf80] ss:$16 sps:$4 sm:$0xff]  }
 0x1e4   :  { %4920 = vmatprep.subr.bf16.mxu0 %v10944_v33  ;;  %v11033_v33 = vld [vmem:[#allocation2 + $0xb8c] ss:$16 sps:$4 sm:$0xff]  }
 0x1e6   :  { %5331 = vmatpush1.bf16.msra.mxu1 %v10945_v13  ;;  %v11036_v13 = vld [vmem:[#allocation2 + $0xfa4] ss:$16 sps:$4 sm:$0xff]  }
 0x1e7   :  { %4921 = vmatpush1.bf16.msra.mxu0 %v10942_v36  ;;  %5332 = vmatprep.subr.bf16.mxu1 %v10953_v39  ;;  %v11031_v36 = vld [vmem:[#allocation2 + $0xb88] ss:$16 sps:$4 sm:$0xff]   ;;  %v11034_v39 = vld [vmem:[#allocation2 + $0xfa0] ss:$16 sps:$4 sm:$0xff]  }
 0x1e8   :  { %4922 = vmatprep.subr.bf16.mxu0 %v10950_v38  ;;  %v11039_v38 = vld [vmem:[#allocation2 + $0xbac] ss:$16 sps:$4 sm:$0xff]  }
 0x1ea   :  { %5333 = vmatpush1.bf16.msra.mxu1 %v10951_v29  ;;  %v11042_v29 = vld [vmem:[#allocation2 + $0xfc4] ss:$16 sps:$4 sm:$0xff]  }
 0x1eb   :  { %4923 = vmatpush1.bf16.msra.mxu0 %v10948_v40  ;;  %5343 = vmatprep.subr.bf16.mxu1 %v10961_v19  ;;  %v11037_v40 = vld [vmem:[#allocation2 + $0xba8] ss:$16 sps:$4 sm:$0xff]   ;;  %v11040_v19 = vld [vmem:[#allocation2 + $0xfc0] ss:$16 sps:$4 sm:$0xff]  }
 0x1ec   :  { %4933 = vmatprep.subr.bf16.mxu0 %v10958_v42  ;;  %v11045_v42 = vld [vmem:[#allocation2 + $0xbcc] ss:$16 sps:$4 sm:$0xff]  }
 0x1ed   :  { %5335 = vmatmul.mubr.bf16.vlgmr.msra.gmra.mrb[4].mxu1 %v12521_v27  ;;  %v10979_v27 = vld [vmem:[#allocation2 + $0xa6c] ss:$16 sps:$4 sm:$0xff]  }
 0x1ee   :  { %4925 = vmatmul.mubr.bf16.vlgmr.msra.gmra.mrb[0].mxu0 %v12564_v44  ;;  %5344 = vmatpush1.bf16.msra.mxu1 %v10959_v46  ;;  %v11048_v46 = vld [vmem:[#allocation2 + $0xfe4] ss:$16 sps:$4 sm:$0xff]  }
 0x1ef   :  { %4934 = vmatpush1.bf16.msra.mxu0 %v10956_v45  ;;  %5345 = vmatprep.subr.bf16.mxu1 %v10967_v47  ;;  %v11043_v45 = vld [vmem:[#allocation2 + $0xbc8] ss:$16 sps:$4 sm:$0xff]   ;;  %v11046_v47 = vld [vmem:[#allocation2 + $0xfe0] ss:$16 sps:$4 sm:$0xff]  }
 0x1f0   :  { %4935 = vmatprep.subr.bf16.mxu0 %v10964_v21  ;;  %4965 = vmatprep.mubr.bf16.mxu0 %v12568_v48  ;;  %v11051_v21 = vld [vmem:[#allocation2 + $0xbec] ss:$16 sps:$4 sm:$0xff]  }
 0x1f1   :  { %5375 = vmatprep.mubr.bf16.mxu1 %v12530_v7  ;;  %v10983_v7 = vld [vmem:[#allocation2 + $0xa88] ss:$16 sps:$4 sm:$0xff]  }
 0x1f2   :  { %5346 = vmatpush1.bf16.msra.mxu1 %v10965_v52  ;;  %v11056_v52 = vld [vmem:[#allocation2 + $0x1004] ss:$16 sps:$4 sm:$0xff]  }
 0x1f3   :  { %4936 = vmatpush1.bf16.msra.mxu0 %v10962_v37  ;;  %5347 = vmatprep.subr.bf16.mxu1 %v10973_v54  ;;  %v11049_v37 = vld [vmem:[#allocation2 + $0xbe8] ss:$16 sps:$4 sm:$0xff]   ;;  %v12577_v54 = vld [vmem:[%s12714_s0 + $0x40] sm:$0xff] }
 0x1f4   :  { %4937 = vmatprep.subr.bf16.mxu0 %v10970_v53  ;;  %v11059_v53 = vld [vmem:[#allocation2 + $0xc0c] ss:$16 sps:$4 sm:$0xff]  }
 0x1f6   :  { %5348 = vmatpush1.bf16.msra.mxu1 %v10971_v55  ;;  %v11054_v55 = vld [vmem:[#allocation2 + $0x1000] ss:$16 sps:$4 sm:$0xff]  }
 0x1f7   :  { %4938 = vmatpush1.bf16.msra.mxu0 %v10968_v6  ;;  %5349 = vmatprep.subr.bf16.mxu1 %v10979_v27  ;;  %v12581_v6 = vcombine.low %v12560_v43, %v12560_v43  ;;  %v11062_v27 = vld [vmem:[#allocation2 + $0x1024] ss:$16 sps:$4 sm:$0xff]   ;;  %v11060_v43 = vld [vmem:[#allocation2 + $0x1020] ss:$16 sps:$4 sm:$0xff]  }
 0x1f8   :  { %4939 = vmatprep.subr.bf16.mxu0 %v10976_v56  ;;  %v11057_v56 = vld [vmem:[#allocation2 + $0xc08] ss:$16 sps:$4 sm:$0xff]  }
 0x1fa   :  { %5350 = vmatpush1.bf16.msra.mxu1 %v10977_v58  ;;  %v12585_v58 = vcombine.high %v12577_v54, %v12577_v54 }
 0x1fb   :  { %4940 = vmatpush1.bf16.msra.mxu0 %v10974_v57  ;;  %5351 = vmatprep.subr.bf16.mxu1 %v10985_v60  ;;  %v11065_v57 = vld [vmem:[#allocation2 + $0xc2c] ss:$16 sps:$4 sm:$0xff]   ;;  %v11068_v60 = vld [vmem:[#allocation2 + $0x1044] ss:$16 sps:$4 sm:$0xff]  }
 0x1fc   :  { %4941 = vmatprep.subr.bf16.mxu0 %v10982_v59  ;;  %v11063_v59 = vld [vmem:[#allocation2 + $0xc28] ss:$16 sps:$4 sm:$0xff]  }
 0x1fe   :  { %5352 = vmatpush1.bf16.msra.mxu1 %v10983_v7  ;;  %v11066_v7 = vld [vmem:[#allocation2 + $0x1040] ss:$16 sps:$4 sm:$0xff]  }
 0x1ff   :  { %4942 = vmatpush1.bf16.msra.mxu0 %v10980_v61  ;;  %5353 = vmatprep.subr.bf16.mxu1 %v10991_v63  ;;  %v11071_v61 = vld [vmem:[#allocation2 + $0xc4c] ss:$16 sps:$4 sm:$0xff]   ;;  %v11074_v63 = vld [vmem:[#allocation2 + $0x1064] ss:$16 sps:$4 sm:$0xff]  }
 0x200   :  { %4943 = vmatprep.subr.bf16.mxu0 %v10988_v62  ;;  %v11069_v62 = vld [vmem:[#allocation2 + $0xc48] ss:$16 sps:$4 sm:$0xff]  }
 0x202   :  { %5354 = vmatpush1.bf16.msra.mxu1 %v10989_v1  ;;  %v11075_v1 = vld [vmem:[#allocation2 + $0xc68] ss:$16 sps:$4 sm:$0xff]  }
 0x203   :  { %4944 = vmatpush1.bf16.msra.mxu0 %v10986_v0  ;;  %5355 = vmatprep.subr.bf16.mxu1 %v10997_v3  ;;  %v11072_v0 = vld [vmem:[#allocation2 + $0x1060] ss:$16 sps:$4 sm:$0xff]   ;;  %v11083_v3 = vld [vmem:[#allocation2 + $0xc8c] ss:$16 sps:$4 sm:$0xff]  }
 0x204   :  { %4945 = vmatprep.subr.bf16.mxu0 %v10994_v2  ;;  %v11080_v2 = vld [vmem:[#allocation2 + $0x1084] ss:$16 sps:$4 sm:$0xff]  }
 0x206   :  { %5356 = vmatpush1.bf16.msra.mxu1 %v10995_v5  ;;  %v11086_v5 = vld [vmem:[#allocation2 + $0x10a4] ss:$16 sps:$4 sm:$0xff]  }
 0x207   :  { %4946 = vmatpush1.bf16.msra.mxu0 %v10992_v4  ;;  %5357 = vmatprep.subr.bf16.mxu1 %v11003_v9  ;;  %v11078_v4 = vld [vmem:[#allocation2 + $0x1080] ss:$16 sps:$4 sm:$0xff]  }
 0x208   :  { %4947 = vmatprep.subr.bf16.mxu0 %v11000_v8  ;;  %v11089_v8 = vld [vmem:[#allocation2 + $0xcac] ss:$16 sps:$4 sm:$0xff]   ;;  %v11084_v9 = vld [vmem:[#allocation2 + $0x10a0] ss:$16 sps:$4 sm:$0xff]  }
 0x20a   :  { %5358 = vmatpush1.bf16.msra.mxu1 %v11001_v11  ;;  %v11092_v11 = vld [vmem:[#allocation2 + $0x10c4] ss:$16 sps:$4 sm:$0xff]  }
 0x20b   :  { %4948 = vmatpush1.bf16.msra.mxu0 %v10998_v10  ;;  %5359 = vmatprep.subr.bf16.mxu1 %v11009_v14  ;;  %v11087_v10 = vld [vmem:[#allocation2 + $0xca8] ss:$16 sps:$4 sm:$0xff]   ;;  %v11090_v14 = vld [vmem:[#allocation2 + $0x10c0] ss:$16 sps:$4 sm:$0xff]  }
 0x20c   :  { %4949 = vmatprep.subr.bf16.mxu0 %v11006_v12  ;;  %v11095_v12 = vld [vmem:[#allocation2 + $0xccc] ss:$16 sps:$4 sm:$0xff]  }
 0x20e   :  { %5360 = vmatpush1.bf16.msra.mxu1 %v11007_v16  ;;  %v11098_v16 = vld [vmem:[#allocation2 + $0x10e4] ss:$16 sps:$4 sm:$0xff]  }
 0x20f   :  { %4950 = vmatpush1.bf16.msra.mxu0 %v11004_v15  ;;  %5361 = vmatprep.subr.bf16.mxu1 %v11015_v20  ;;  %v11093_v15 = vld [vmem:[#allocation2 + $0xcc8] ss:$16 sps:$4 sm:$0xff]   ;;  %v11096_v20 = vld [vmem:[#allocation2 + $0x10e0] ss:$16 sps:$4 sm:$0xff]  }
 0x210   :  { %4951 = vmatprep.subr.bf16.mxu0 %v11012_v17  ;;  %v11101_v17 = vld [vmem:[#allocation2 + $0xcec] ss:$16 sps:$4 sm:$0xff]  }
 0x212   :  { %5362 = vmatpush1.bf16.msra.mxu1 %v11013_v24  ;;  %v11104_v24 = vld [vmem:[#allocation2 + $0x1104] ss:$16 sps:$4 sm:$0xff]  }
 0x213   :  { %4952 = vmatpush1.bf16.msra.mxu0 %v11010_v23  ;;  %5363 = vmatprep.subr.bf16.mxu1 %v11021_v26  ;;  %v11099_v23 = vld [vmem:[#allocation2 + $0xce8] ss:$16 sps:$4 sm:$0xff]   ;;  %v11102_v26 = vld [vmem:[#allocation2 + $0x1100] ss:$16 sps:$4 sm:$0xff]  }
 0x214   :  { %4953 = vmatprep.subr.bf16.mxu0 %v11018_v25  ;;  %v11107_v25 = vld [vmem:[#allocation2 + $0xd0c] ss:$16 sps:$4 sm:$0xff]  }
 0x216   :  { %5364 = vmatpush1.bf16.msra.mxu1 %v11019_v28  ;;  %v11110_v28 = vld [vmem:[#allocation2 + $0x1124] ss:$16 sps:$4 sm:$0xff]  }
 0x217   :  { %4954 = vmatpush1.bf16.msra.mxu0 %v11016_v18  ;;  %5365 = vmatprep.subr.bf16.mxu1 %v11027_v31  ;;  %v11105_v18 = vld [vmem:[#allocation2 + $0xd08] ss:$16 sps:$4 sm:$0xff]   ;;  %v11108_v31 = vld [vmem:[#allocation2 + $0x1120] ss:$16 sps:$4 sm:$0xff]  }
 0x218   :  { %4955 = vmatprep.subr.bf16.mxu0 %v11024_v30  ;;  %v11113_v30 = vld [vmem:[#allocation2 + $0xd2c] ss:$16 sps:$4 sm:$0xff]  }
 0x21a   :  { %5366 = vmatpush1.bf16.msra.mxu1 %v11025_v22  ;;  %v11116_v22 = vld [vmem:[#allocation2 + $0x1144] ss:$16 sps:$4 sm:$0xff]  }
 0x21b   :  { %4956 = vmatpush1.bf16.msra.mxu0 %v11022_v32  ;;  %5367 = vmatprep.subr.bf16.mxu1 %v11033_v33  ;;  %v11111_v32 = vld [vmem:[#allocation2 + $0xd28] ss:$16 sps:$4 sm:$0xff]   ;;  %v11114_v33 = vld [vmem:[#allocation2 + $0x1140] ss:$16 sps:$4 sm:$0xff]  }
 0x21c   :  { %4957 = vmatprep.subr.bf16.mxu0 %v11030_v51  ;;  %v11119_v51 = vld [vmem:[#allocation2 + $0xd4c] ss:$16 sps:$4 sm:$0xff]  }
 0x21e   :  { %5368 = vmatpush1.bf16.msra.mxu1 %v11031_v36  ;;  %v11122_v36 = vld [vmem:[#allocation2 + $0x1164] ss:$16 sps:$4 sm:$0xff]  }
 0x21f   :  { %4958 = vmatpush1.bf16.msra.mxu0 %v11028_v35  ;;  %5369 = vmatprep.subr.bf16.mxu1 %v11039_v38  ;;  %v11117_v35 = vld [vmem:[#allocation2 + $0xd48] ss:$16 sps:$4 sm:$0xff]   ;;  %v11120_v38 = vld [vmem:[#allocation2 + $0x1160] ss:$16 sps:$4 sm:$0xff]  }
 0x220   :  { %4959 = vmatprep.subr.bf16.mxu0 %v11036_v13  ;;  %v11125_v13 = vld [vmem:[#allocation2 + $0xd6c] ss:$16 sps:$4 sm:$0xff]  }
 0x222   :  { %5370 = vmatpush1.bf16.msra.mxu1 %v11037_v40  ;;  %v11128_v40 = vld [vmem:[#allocation2 + $0x1184] ss:$16 sps:$4 sm:$0xff]  }
 0x223   :  { %4960 = vmatpush1.bf16.msra.mxu0 %v11034_v39  ;;  %5371 = vmatprep.subr.bf16.mxu1 %v11045_v42  ;;  %v11123_v39 = vld [vmem:[#allocation2 + $0xd68] ss:$16 sps:$4 sm:$0xff]   ;;  %v11126_v42 = vld [vmem:[#allocation2 + $0x1180] ss:$16 sps:$4 sm:$0xff]  }
 0x224   :  { %4961 = vmatprep.subr.bf16.mxu0 %v11042_v29  ;;  %v11131_v29 = vld [vmem:[#allocation2 + $0xd8c] ss:$16 sps:$4 sm:$0xff]  }
 0x226   :  { %5372 = vmatpush1.bf16.msra.mxu1 %v11043_v45  ;;  %v11134_v45 = vld [vmem:[#allocation2 + $0x11a4] ss:$16 sps:$4 sm:$0xff]  }
 0x227   :  { %4962 = vmatpush1.bf16.msra.mxu0 %v11040_v19  ;;  %5373 = vmatprep.subr.bf16.mxu1 %v11051_v21  ;;  %v11129_v19 = vld [vmem:[#allocation2 + $0xd88] ss:$16 sps:$4 sm:$0xff]   ;;  %v11132_v21 = vld [vmem:[#allocation2 + $0x11a0] ss:$16 sps:$4 sm:$0xff]  }
 0x228   :  { %4963 = vmatprep.subr.bf16.mxu0 %v11048_v46  ;;  %v11137_v46 = vld [vmem:[#allocation2 + $0xdac] ss:$16 sps:$4 sm:$0xff]  }
 0x22a   :  { %5374 = vmatpush1.bf16.msra.mxu1 %v11049_v37  ;;  %v11140_v37 = vld [vmem:[#allocation2 + $0x11c4] ss:$16 sps:$4 sm:$0xff]  }
 0x22b   :  { %4964 = vmatpush1.bf16.msra.mxu0 %v11046_v47  ;;  %5384 = vmatprep.subr.bf16.mxu1 %v11059_v53  ;;  %v11135_v47 = vld [vmem:[#allocation2 + $0xda8] ss:$16 sps:$4 sm:$0xff]   ;;  %v11138_v53 = vld [vmem:[#allocation2 + $0x11c0] ss:$16 sps:$4 sm:$0xff]  }
 0x22c   :  { %4974 = vmatprep.subr.bf16.mxu0 %v11056_v52  ;;  %v11143_v52 = vld [vmem:[#allocation2 + $0xdcc] ss:$16 sps:$4 sm:$0xff]  }
 0x22d   :  { %5376 = vmatmul.mubr.bf16.vlgmr.msra.gmra.mrb[4].mxu1 %v12547_v34  ;;  %v11077_v34 = vld [vmem:[#allocation2 + $0xc6c] ss:$16 sps:$4 sm:$0xff]  }
 0x22e   :  { %4966 = vmatmul.mubr.bf16.vlgmr.msra.gmra.mrb[0].mxu0 %v12581_v6  ;;  %5385 = vmatpush1.bf16.msra.mxu1 %v11057_v56  ;;  %v11146_v56 = vld [vmem:[#allocation2 + $0x11e4] ss:$16 sps:$4 sm:$0xff]  }
 0x22f   :  { %4975 = vmatpush1.bf16.msra.mxu0 %v11054_v55  ;;  %5386 = vmatprep.subr.bf16.mxu1 %v11065_v57  ;;  %v11141_v55 = vld [vmem:[#allocation2 + $0xdc8] ss:$16 sps:$4 sm:$0xff]   ;;  %v11144_v57 = vld [vmem:[#allocation2 + $0x11e0] ss:$16 sps:$4 sm:$0xff]  }
 0x230   :  { %4976 = vmatprep.subr.bf16.mxu0 %v11062_v27  ;;  %5006 = vmatprep.mubr.bf16.mxu0 %v12585_v58  ;;  %v11149_v27 = vld [vmem:[#allocation2 + $0xdec] ss:$16 sps:$4 sm:$0xff]  }
 0x231   :  { %5416 = vmatprep.mubr.bf16.mxu1 %v12551_v41  ;;  %v11081_v41 = vld [vmem:[#allocation2 + $0xc88] ss:$16 sps:$4 sm:$0xff]  }
 0x232   :  { %5387 = vmatpush1.bf16.msra.mxu1 %v11063_v59  ;;  %v11154_v59 = vld [vmem:[#allocation2 + $0x1204] ss:$16 sps:$4 sm:$0xff]  }
 0x233   :  { %4977 = vmatpush1.bf16.msra.mxu0 %v11060_v43  ;;  %5388 = vmatprep.subr.bf16.mxu1 %v11071_v61  ;;  %v11147_v43 = vld [vmem:[#allocation2 + $0xde8] ss:$16 sps:$4 sm:$0xff]  }
 0x234   :  { %4978 = vmatprep.subr.bf16.mxu0 %v11068_v60  ;;  %v11157_v60 = vld [vmem:[#allocation2 + $0xe0c] ss:$16 sps:$4 sm:$0xff]  }
 0x235   :  { %v12594_v61 = vld [vmem:[%s12714_s0 + $0x48] sm:$0xff] }
 0x236   :  { %5389 = vmatpush1.bf16.msra.mxu1 %v11069_v62  ;;  %v11152_v62 = vld [vmem:[#allocation2 + $0x1200] ss:$16 sps:$4 sm:$0xff]  }
 0x237   :  { %4979 = vmatpush1.bf16.msra.mxu0 %v11066_v7  ;;  %5390 = vmatprep.subr.bf16.mxu1 %v11077_v34  ;;  %v12598_v7 = vcombine.low %v12577_v54, %v12577_v54  ;;  %v11160_v34 = vld [vmem:[#allocation2 + $0x1224] ss:$16 sps:$4 sm:$0xff]   ;;  %v11158_v54 = vld [vmem:[#allocation2 + $0x1220] ss:$16 sps:$4 sm:$0xff]  }
 0x238   :  { %4980 = vmatprep.subr.bf16.mxu0 %v11074_v63  ;;  %v11155_v63 = vld [vmem:[#allocation2 + $0xe08] ss:$16 sps:$4 sm:$0xff]  }
 0x23a   :  { %5391 = vmatpush1.bf16.msra.mxu1 %v11075_v1  ;;  %v12602_v1 = vcombine.high %v12594_v61, %v12594_v61 }
 0x23b   :  { %4981 = vmatpush1.bf16.msra.mxu0 %v11072_v0  ;;  %5392 = vmatprep.subr.bf16.mxu1 %v11083_v3  ;;  %v11163_v0 = vld [vmem:[#allocation2 + $0xe2c] ss:$16 sps:$4 sm:$0xff]   ;;  %v11166_v3 = vld [vmem:[#allocation2 + $0x1244] ss:$16 sps:$4 sm:$0xff]  }
 0x23c   :  { %4982 = vmatprep.subr.bf16.mxu0 %v11080_v2  ;;  %v11161_v2 = vld [vmem:[#allocation2 + $0xe28] ss:$16 sps:$4 sm:$0xff]  }
 0x23e   :  { %5393 = vmatpush1.bf16.msra.mxu1 %v11081_v41  ;;  %v11164_v41 = vld [vmem:[#allocation2 + $0x1240] ss:$16 sps:$4 sm:$0xff]  }
 0x23f   :  { %4983 = vmatpush1.bf16.msra.mxu0 %v11078_v4  ;;  %5394 = vmatprep.subr.bf16.mxu1 %v11089_v8  ;;  %v11169_v4 = vld [vmem:[#allocation2 + $0xe4c] ss:$16 sps:$4 sm:$0xff]   ;;  %v11172_v8 = vld [vmem:[#allocation2 + $0x1264] ss:$16 sps:$4 sm:$0xff]  }
 0x240   :  { %4984 = vmatprep.subr.bf16.mxu0 %v11086_v5  ;;  %v11167_v5 = vld [vmem:[#allocation2 + $0xe48] ss:$16 sps:$4 sm:$0xff]  }
 0x242   :  { %5395 = vmatpush1.bf16.msra.mxu1 %v11087_v10  ;;  %v11173_v10 = vld [vmem:[#allocation2 + $0xe68] ss:$16 sps:$4 sm:$0xff]  }
 0x243   :  { %4985 = vmatpush1.bf16.msra.mxu0 %v11084_v9  ;;  %5396 = vmatprep.subr.bf16.mxu1 %v11095_v12  ;;  %v11170_v9 = vld [vmem:[#allocation2 + $0x1260] ss:$16 sps:$4 sm:$0xff]   ;;  %v11181_v12 = vld [vmem:[#allocation2 + $0xe8c] ss:$16 sps:$4 sm:$0xff]  }
 0x244   :  { %4986 = vmatprep.subr.bf16.mxu0 %v11092_v11  ;;  %v11178_v11 = vld [vmem:[#allocation2 + $0x1284] ss:$16 sps:$4 sm:$0xff]  }
 0x246   :  { %5397 = vmatpush1.bf16.msra.mxu1 %v11093_v15  ;;  %v11184_v15 = vld [vmem:[#allocation2 + $0x12a4] ss:$16 sps:$4 sm:$0xff]  }
 0x247   :  { %4987 = vmatpush1.bf16.msra.mxu0 %v11090_v14  ;;  %5398 = vmatprep.subr.bf16.mxu1 %v11101_v17  ;;  %v11176_v14 = vld [vmem:[#allocation2 + $0x1280] ss:$16 sps:$4 sm:$0xff]  }
 0x248   :  { %4988 = vmatprep.subr.bf16.mxu0 %v11098_v16  ;;  %v11187_v16 = vld [vmem:[#allocation2 + $0xeac] ss:$16 sps:$4 sm:$0xff]   ;;  %v11182_v17 = vld [vmem:[#allocation2 + $0x12a0] ss:$16 sps:$4 sm:$0xff]  }
 0x24a   :  { %5399 = vmatpush1.bf16.msra.mxu1 %v11099_v23  ;;  %v11190_v23 = vld [vmem:[#allocation2 + $0x12c4] ss:$16 sps:$4 sm:$0xff]  }
 0x24b   :  { %4989 = vmatpush1.bf16.msra.mxu0 %v11096_v20  ;;  %5400 = vmatprep.subr.bf16.mxu1 %v11107_v25  ;;  %v11185_v20 = vld [vmem:[#allocation2 + $0xea8] ss:$16 sps:$4 sm:$0xff]   ;;  %v11188_v25 = vld [vmem:[#allocation2 + $0x12c0] ss:$16 sps:$4 sm:$0xff]  }
 0x24c   :  { %4990 = vmatprep.subr.bf16.mxu0 %v11104_v24  ;;  %v11193_v24 = vld [vmem:[#allocation2 + $0xecc] ss:$16 sps:$4 sm:$0xff]  }
 0x24e   :  { %5401 = vmatpush1.bf16.msra.mxu1 %v11105_v18  ;;  %v11196_v18 = vld [vmem:[#allocation2 + $0x12e4] ss:$16 sps:$4 sm:$0xff]  }
 0x24f   :  { %4991 = vmatpush1.bf16.msra.mxu0 %v11102_v26  ;;  %5402 = vmatprep.subr.bf16.mxu1 %v11113_v30  ;;  %v11191_v26 = vld [vmem:[#allocation2 + $0xec8] ss:$16 sps:$4 sm:$0xff]   ;;  %v11194_v30 = vld [vmem:[#allocation2 + $0x12e0] ss:$16 sps:$4 sm:$0xff]  }
 0x250   :  { %4992 = vmatprep.subr.bf16.mxu0 %v11110_v28  ;;  %v11199_v28 = vld [vmem:[#allocation2 + $0xeec] ss:$16 sps:$4 sm:$0xff]  }
 0x252   :  { %5403 = vmatpush1.bf16.msra.mxu1 %v11111_v32  ;;  %v11202_v32 = vld [vmem:[#allocation2 + $0x1304] ss:$16 sps:$4 sm:$0xff]  }
 0x253   :  { %4993 = vmatpush1.bf16.msra.mxu0 %v11108_v31  ;;  %5404 = vmatprep.subr.bf16.mxu1 %v11119_v51  ;;  %v11197_v31 = vld [vmem:[#allocation2 + $0xee8] ss:$16 sps:$4 sm:$0xff]   ;;  %v11200_v51 = vld [vmem:[#allocation2 + $0x1300] ss:$16 sps:$4 sm:$0xff]  }
 0x254   :  { %4994 = vmatprep.subr.bf16.mxu0 %v11116_v22  ;;  %v11205_v22 = vld [vmem:[#allocation2 + $0xf0c] ss:$16 sps:$4 sm:$0xff]  }
 0x256   :  { %5405 = vmatpush1.bf16.msra.mxu1 %v11117_v35  ;;  %v11208_v35 = vld [vmem:[#allocation2 + $0x1324] ss:$16 sps:$4 sm:$0xff]  }
 0x257   :  { %4995 = vmatpush1.bf16.msra.mxu0 %v11114_v33  ;;  %5406 = vmatprep.subr.bf16.mxu1 %v11125_v13  ;;  %v11203_v33 = vld [vmem:[#allocation2 + $0xf08] ss:$16 sps:$4 sm:$0xff]   ;;  %v11206_v13 = vld [vmem:[#allocation2 + $0x1320] ss:$16 sps:$4 sm:$0xff]  }
 0x258   :  { %4996 = vmatprep.subr.bf16.mxu0 %v11122_v36  ;;  %v11211_v36 = vld [vmem:[#allocation2 + $0xf2c] ss:$16 sps:$4 sm:$0xff]  }
 0x25a   :  { %5407 = vmatpush1.bf16.msra.mxu1 %v11123_v39  ;;  %v11214_v39 = vld [vmem:[#allocation2 + $0x1344] ss:$16 sps:$4 sm:$0xff]  }
 0x25b   :  { %4997 = vmatpush1.bf16.msra.mxu0 %v11120_v38  ;;  %5408 = vmatprep.subr.bf16.mxu1 %v11131_v29  ;;  %v11209_v38 = vld [vmem:[#allocation2 + $0xf28] ss:$16 sps:$4 sm:$0xff]   ;;  %v11212_v29 = vld [vmem:[#allocation2 + $0x1340] ss:$16 sps:$4 sm:$0xff]  }
 0x25c   :  { %4998 = vmatprep.subr.bf16.mxu0 %v11128_v40  ;;  %v11217_v40 = vld [vmem:[#allocation2 + $0xf4c] ss:$16 sps:$4 sm:$0xff]  }
 0x25e   :  { %5409 = vmatpush1.bf16.msra.mxu1 %v11129_v19  ;;  %v11220_v19 = vld [vmem:[#allocation2 + $0x1364] ss:$16 sps:$4 sm:$0xff]  }
 0x25f   :  { %4999 = vmatpush1.bf16.msra.mxu0 %v11126_v42  ;;  %5410 = vmatprep.subr.bf16.mxu1 %v11137_v46  ;;  %v11215_v42 = vld [vmem:[#allocation2 + $0xf48] ss:$16 sps:$4 sm:$0xff]   ;;  %v11218_v46 = vld [vmem:[#allocation2 + $0x1360] ss:$16 sps:$4 sm:$0xff]  }
 0x260   :  { %5000 = vmatprep.subr.bf16.mxu0 %v11134_v45  ;;  %v11223_v45 = vld [vmem:[#allocation2 + $0xf6c] ss:$16 sps:$4 sm:$0xff]  }
 0x262   :  { %5411 = vmatpush1.bf16.msra.mxu1 %v11135_v47  ;;  %v11226_v47 = vld [vmem:[#allocation2 + $0x1384] ss:$16 sps:$4 sm:$0xff]  }
 0x263   :  { %5001 = vmatpush1.bf16.msra.mxu0 %v11132_v21  ;;  %5412 = vmatprep.subr.bf16.mxu1 %v11143_v52  ;;  %v11221_v21 = vld [vmem:[#allocation2 + $0xf68] ss:$16 sps:$4 sm:$0xff]   ;;  %v11224_v52 = vld [vmem:[#allocation2 + $0x1380] ss:$16 sps:$4 sm:$0xff]  }
 0x264   :  { %5002 = vmatprep.subr.bf16.mxu0 %v11140_v37  ;;  %v11229_v37 = vld [vmem:[#allocation2 + $0xf8c] ss:$16 sps:$4 sm:$0xff]  }
 0x266   :  { %5413 = vmatpush1.bf16.msra.mxu1 %v11141_v55  ;;  %v11232_v55 = vld [vmem:[#allocation2 + $0x13a4] ss:$16 sps:$4 sm:$0xff]  }
 0x267   :  { %5003 = vmatpush1.bf16.msra.mxu0 %v11138_v53  ;;  %5414 = vmatprep.subr.bf16.mxu1 %v11149_v27  ;;  %v11227_v53 = vld [vmem:[#allocation2 + $0xf88] ss:$16 sps:$4 sm:$0xff]   ;;  %v11230_v27 = vld [vmem:[#allocation2 + $0x13a0] ss:$16 sps:$4 sm:$0xff]  }
 0x268   :  { %5004 = vmatprep.subr.bf16.mxu0 %v11146_v56  ;;  %v11235_v56 = vld [vmem:[#allocation2 + $0xfac] ss:$16 sps:$4 sm:$0xff]  }
 0x26a   :  { %5415 = vmatpush1.bf16.msra.mxu1 %v11147_v43  ;;  %v11238_v43 = vld [vmem:[#allocation2 + $0x13c4] ss:$16 sps:$4 sm:$0xff]  }
 0x26b   :  { %5005 = vmatpush1.bf16.msra.mxu0 %v11144_v57  ;;  %5425 = vmatprep.subr.bf16.mxu1 %v11157_v60  ;;  %v11233_v57 = vld [vmem:[#allocation2 + $0xfa8] ss:$16 sps:$4 sm:$0xff]   ;;  %v11236_v60 = vld [vmem:[#allocation2 + $0x13c0] ss:$16 sps:$4 sm:$0xff]  }
 0x26c   :  { %5015 = vmatprep.subr.bf16.mxu0 %v11154_v59  ;;  %v11241_v59 = vld [vmem:[#allocation2 + $0xfcc] ss:$16 sps:$4 sm:$0xff]  }
 0x26d   :  { %5417 = vmatmul.mubr.bf16.vlgmr.msra.gmra.mrb[4].mxu1 %v12564_v44  ;;  %v11175_v44 = vld [vmem:[#allocation2 + $0xe6c] ss:$16 sps:$4 sm:$0xff]  }
 0x26e   :  { %5007 = vmatmul.mubr.bf16.vlgmr.msra.gmra.mrb[0].mxu0 %v12598_v7  ;;  %5426 = vmatpush1.bf16.msra.mxu1 %v11155_v63  ;;  %v11244_v63 = vld [vmem:[#allocation2 + $0x13e4] ss:$16 sps:$4 sm:$0xff]  }
 0x26f   :  { %5016 = vmatpush1.bf16.msra.mxu0 %v11152_v62  ;;  %5427 = vmatprep.subr.bf16.mxu1 %v11163_v0  ;;  %v11239_v62 = vld [vmem:[#allocation2 + $0xfc8] ss:$16 sps:$4 sm:$0xff]   ;;  %v11242_v0 = vld [vmem:[#allocation2 + $0x13e0] ss:$16 sps:$4 sm:$0xff]  }
 0x270   :  { %5017 = vmatprep.subr.bf16.mxu0 %v11160_v34  ;;  %5047 = vmatprep.mubr.bf16.mxu0 %v12602_v1  ;;  %v11247_v34 = vld [vmem:[#allocation2 + $0xfec] ss:$16 sps:$4 sm:$0xff]  }
 0x271   :  { %5457 = vmatprep.mubr.bf16.mxu1 %v12568_v48  ;;  %v11179_v48 = vld [vmem:[#allocation2 + $0xe88] ss:$16 sps:$4 sm:$0xff]  }
 0x272   :  { %5428 = vmatpush1.bf16.msra.mxu1 %v11161_v2  ;;  %v11252_v2 = vld [vmem:[#allocation2 + $0x1404] ss:$16 sps:$4 sm:$0xff]  }
 0x273   :  { %5018 = vmatpush1.bf16.msra.mxu0 %v11158_v54  ;;  %5429 = vmatprep.subr.bf16.mxu1 %v11169_v4  ;;  %v11245_v54 = vld [vmem:[#allocation2 + $0xfe8] ss:$16 sps:$4 sm:$0xff]   ;;  %v12611_v4 = vld [vmem:[%s12714_s0 + $0x50] sm:$0xff] }
 0x274   :  { %5019 = vmatprep.subr.bf16.mxu0 %v11166_v3  ;;  %v11255_v3 = vld [vmem:[#allocation2 + $0x100c] ss:$16 sps:$4 sm:$0xff]  }
 0x276   :  { %5430 = vmatpush1.bf16.msra.mxu1 %v11167_v5  ;;  %v11253_v5 = vld [vmem:[#allocation2 + $0x1008] ss:$16 sps:$4 sm:$0xff]  }
 0x277   :  { %5020 = vmatpush1.bf16.msra.mxu0 %v11164_v41  ;;  %5431 = vmatprep.subr.bf16.mxu1 %v11175_v44  ;;  %v11250_v41 = vld [vmem:[#allocation2 + $0x1400] ss:$16 sps:$4 sm:$0xff]   ;;  %v11258_v44 = vld [vmem:[#allocation2 + $0x1424] ss:$16 sps:$4 sm:$0xff]  }
 0x278   :  { %5021 = vmatprep.subr.bf16.mxu0 %v11172_v8  ;;  %v12615_v8 = vcombine.low %v12594_v61, %v12594_v61  ;;  %v11264_v61 = vld [vmem:[#allocation2 + $0x1444] ss:$16 sps:$4 sm:$0xff]  }
 0x27a   :  { %5432 = vmatpush1.bf16.msra.mxu1 %v11173_v10  ;;  %v11256_v10 = vld [vmem:[#allocation2 + $0x1420] ss:$16 sps:$4 sm:$0xff]  }
 0x27b   :  { %5022 = vmatpush1.bf16.msra.mxu0 %v11170_v9  ;;  %5433 = vmatprep.subr.bf16.mxu1 %v11181_v12  ;;  %v11261_v9 = vld [vmem:[#allocation2 + $0x102c] ss:$16 sps:$4 sm:$0xff]   ;;  %v12619_v12 = vcombine.high %v12611_v4, %v12611_v4 }
 0x27c   :  { %5023 = vmatprep.subr.bf16.mxu0 %v11178_v11  ;;  %v11259_v11 = vld [vmem:[#allocation2 + $0x1028] ss:$16 sps:$4 sm:$0xff]  }
 0x27e   :  { %5434 = vmatpush1.bf16.msra.mxu1 %v11179_v48  ;;  %v11262_v48 = vld [vmem:[#allocation2 + $0x1440] ss:$16 sps:$4 sm:$0xff]  }
 0x27f   :  { %5024 = vmatpush1.bf16.msra.mxu0 %v11176_v14  ;;  %5435 = vmatprep.subr.bf16.mxu1 %v11187_v16  ;;  %v11267_v14 = vld [vmem:[#allocation2 + $0x104c] ss:$16 sps:$4 sm:$0xff]   ;;  %v11270_v16 = vld [vmem:[#allocation2 + $0x1464] ss:$16 sps:$4 sm:$0xff]  }
 0x280   :  { %5025 = vmatprep.subr.bf16.mxu0 %v11184_v15  ;;  %v11265_v15 = vld [vmem:[#allocation2 + $0x1048] ss:$16 sps:$4 sm:$0xff]  }
 0x282   :  { %5436 = vmatpush1.bf16.msra.mxu1 %v11185_v20  ;;  %v11268_v20 = vld [vmem:[#allocation2 + $0x1460] ss:$16 sps:$4 sm:$0xff]  }
 0x283   :  { %5026 = vmatpush1.bf16.msra.mxu0 %v11182_v17  ;;  %5437 = vmatprep.subr.bf16.mxu1 %v11193_v24  ;;  %v11273_v17 = vld [vmem:[#allocation2 + $0x106c] ss:$16 sps:$4 sm:$0xff]  }
 0x284   :  { %5027 = vmatprep.subr.bf16.mxu0 %v11190_v23  ;;  %v11276_v23 = vld [vmem:[#allocation2 + $0x1484] ss:$16 sps:$4 sm:$0xff]   ;;  %v11279_v24 = vld [vmem:[#allocation2 + $0x108c] ss:$16 sps:$4 sm:$0xff]  }
 0x286   :  { %5438 = vmatpush1.bf16.msra.mxu1 %v11191_v26  ;;  %v11277_v26 = vld [vmem:[#allocation2 + $0x1088] ss:$16 sps:$4 sm:$0xff]  }
 0x287   :  { %5028 = vmatpush1.bf16.msra.mxu0 %v11188_v25  ;;  %5439 = vmatprep.subr.bf16.mxu1 %v11199_v28  ;;  %v11274_v25 = vld [vmem:[#allocation2 + $0x1480] ss:$16 sps:$4 sm:$0xff]  }
 0x288   :  { %5029 = vmatprep.subr.bf16.mxu0 %v11196_v18  ;;  %v11282_v18 = vld [vmem:[#allocation2 + $0x14a4] ss:$16 sps:$4 sm:$0xff]   ;;  %v11280_v28 = vld [vmem:[#allocation2 + $0x14a0] ss:$16 sps:$4 sm:$0xff]  }
 0x28a   :  { %5440 = vmatpush1.bf16.msra.mxu1 %v11197_v31  ;;  %v11288_v31 = vld [vmem:[#allocation2 + $0x14c4] ss:$16 sps:$4 sm:$0xff]  }
 0x28b   :  { %5030 = vmatpush1.bf16.msra.mxu0 %v11194_v30  ;;  %5441 = vmatprep.subr.bf16.mxu1 %v11205_v22  ;;  %v11283_v30 = vld [vmem:[#allocation2 + $0x10a8] ss:$16 sps:$4 sm:$0xff]   ;;  %v11286_v22 = vld [vmem:[#allocation2 + $0x14c0] ss:$16 sps:$4 sm:$0xff]  }
 0x28c   :  { %5031 = vmatprep.subr.bf16.mxu0 %v11202_v32  ;;  %v11291_v32 = vld [vmem:[#allocation2 + $0x10cc] ss:$16 sps:$4 sm:$0xff]  }
 0x28e   :  { %5442 = vmatpush1.bf16.msra.mxu1 %v11203_v33  ;;  %v11294_v33 = vld [vmem:[#allocation2 + $0x14e4] ss:$16 sps:$4 sm:$0xff]  }
 0x28f   :  { %5032 = vmatpush1.bf16.msra.mxu0 %v11200_v51  ;;  %5443 = vmatprep.subr.bf16.mxu1 %v11211_v36  ;;  %v11289_v51 = vld [vmem:[#allocation2 + $0x10c8] ss:$16 sps:$4 sm:$0xff]   ;;  %v11292_v36 = vld [vmem:[#allocation2 + $0x14e0] ss:$16 sps:$4 sm:$0xff]  }
 0x290   :  { %5033 = vmatprep.subr.bf16.mxu0 %v11208_v35  ;;  %v11297_v35 = vld [vmem:[#allocation2 + $0x10ec] ss:$16 sps:$4 sm:$0xff]  }
 0x292   :  { %5444 = vmatpush1.bf16.msra.mxu1 %v11209_v38  ;;  %v11300_v38 = vld [vmem:[#allocation2 + $0x1504] ss:$16 sps:$4 sm:$0xff]  }
 0x293   :  { %5034 = vmatpush1.bf16.msra.mxu0 %v11206_v13  ;;  %5445 = vmatprep.subr.bf16.mxu1 %v11217_v40  ;;  %v11295_v13 = vld [vmem:[#allocation2 + $0x10e8] ss:$16 sps:$4 sm:$0xff]   ;;  %v11298_v40 = vld [vmem:[#allocation2 + $0x1500] ss:$16 sps:$4 sm:$0xff]  }
 0x294   :  { %5035 = vmatprep.subr.bf16.mxu0 %v11214_v39  ;;  %v11303_v39 = vld [vmem:[#allocation2 + $0x110c] ss:$16 sps:$4 sm:$0xff]  }
 0x296   :  { %5446 = vmatpush1.bf16.msra.mxu1 %v11215_v42  ;;  %v11306_v42 = vld [vmem:[#allocation2 + $0x1524] ss:$16 sps:$4 sm:$0xff]  }
 0x297   :  { %5036 = vmatpush1.bf16.msra.mxu0 %v11212_v29  ;;  %5447 = vmatprep.subr.bf16.mxu1 %v11223_v45  ;;  %v11301_v29 = vld [vmem:[#allocation2 + $0x1108] ss:$16 sps:$4 sm:$0xff]   ;;  %v11304_v45 = vld [vmem:[#allocation2 + $0x1520] ss:$16 sps:$4 sm:$0xff]  }
 0x298   :  { %5037 = vmatprep.subr.bf16.mxu0 %v11220_v19  ;;  %v11309_v19 = vld [vmem:[#allocation2 + $0x112c] ss:$16 sps:$4 sm:$0xff]  }
 0x29a   :  { %5448 = vmatpush1.bf16.msra.mxu1 %v11221_v21  ;;  %v11312_v21 = vld [vmem:[#allocation2 + $0x1544] ss:$16 sps:$4 sm:$0xff]  }
 0x29b   :  { %5038 = vmatpush1.bf16.msra.mxu0 %v11218_v46  ;;  %5449 = vmatprep.subr.bf16.mxu1 %v11229_v37  ;;  %v11307_v46 = vld [vmem:[#allocation2 + $0x1128] ss:$16 sps:$4 sm:$0xff]   ;;  %v11310_v37 = vld [vmem:[#allocation2 + $0x1540] ss:$16 sps:$4 sm:$0xff]  }
 0x29c   :  { %5039 = vmatprep.subr.bf16.mxu0 %v11226_v47  ;;  %v11315_v47 = vld [vmem:[#allocation2 + $0x114c] ss:$16 sps:$4 sm:$0xff]  }
 0x29e   :  { %5450 = vmatpush1.bf16.msra.mxu1 %v11227_v53  ;;  %v11318_v53 = vld [vmem:[#allocation2 + $0x1564] ss:$16 sps:$4 sm:$0xff]  }
 0x29f   :  { %5040 = vmatpush1.bf16.msra.mxu0 %v11224_v52  ;;  %5451 = vmatprep.subr.bf16.mxu1 %v11235_v56  ;;  %v11313_v52 = vld [vmem:[#allocation2 + $0x1148] ss:$16 sps:$4 sm:$0xff]   ;;  %v11316_v56 = vld [vmem:[#allocation2 + $0x1560] ss:$16 sps:$4 sm:$0xff]  }
 0x2a0   :  { %5041 = vmatprep.subr.bf16.mxu0 %v11232_v55  ;;  %v11321_v55 = vld [vmem:[#allocation2 + $0x116c] ss:$16 sps:$4 sm:$0xff]  }
 0x2a2   :  { %5452 = vmatpush1.bf16.msra.mxu1 %v11233_v57  ;;  %v11324_v57 = vld [vmem:[#allocation2 + $0x1584] ss:$16 sps:$4 sm:$0xff]  }
 0x2a3   :  { %5042 = vmatpush1.bf16.msra.mxu0 %v11230_v27  ;;  %5453 = vmatprep.subr.bf16.mxu1 %v11241_v59  ;;  %v11319_v27 = vld [vmem:[#allocation2 + $0x1168] ss:$16 sps:$4 sm:$0xff]   ;;  %v11322_v59 = vld [vmem:[#allocation2 + $0x1580] ss:$16 sps:$4 sm:$0xff]  }
 0x2a4   :  { %5043 = vmatprep.subr.bf16.mxu0 %v11238_v43  ;;  %v11327_v43 = vld [vmem:[#allocation2 + $0x118c] ss:$16 sps:$4 sm:$0xff]  }
 0x2a6   :  { %5454 = vmatpush1.bf16.msra.mxu1 %v11239_v62  ;;  %v11330_v62 = vld [vmem:[#allocation2 + $0x15a4] ss:$16 sps:$4 sm:$0xff]  }
 0x2a7   :  { %5044 = vmatpush1.bf16.msra.mxu0 %v11236_v60  ;;  %5455 = vmatprep.subr.bf16.mxu1 %v11247_v34  ;;  %v11325_v60 = vld [vmem:[#allocation2 + $0x1188] ss:$16 sps:$4 sm:$0xff]   ;;  %v11328_v34 = vld [vmem:[#allocation2 + $0x15a0] ss:$16 sps:$4 sm:$0xff]  }
 0x2a8   :  { %5045 = vmatprep.subr.bf16.mxu0 %v11244_v63  ;;  %v11333_v63 = vld [vmem:[#allocation2 + $0x11ac] ss:$16 sps:$4 sm:$0xff]  }
 0x2aa   :  { %5456 = vmatpush1.bf16.msra.mxu1 %v11245_v54  ;;  %v11336_v54 = vld [vmem:[#allocation2 + $0x15c4] ss:$16 sps:$4 sm:$0xff]  }
 0x2ab   :  { %5046 = vmatpush1.bf16.msra.mxu0 %v11242_v0  ;;  %5466 = vmatprep.subr.bf16.mxu1 %v11255_v3  ;;  %v11331_v0 = vld [vmem:[#allocation2 + $0x11a8] ss:$16 sps:$4 sm:$0xff]   ;;  %v11334_v3 = vld [vmem:[#allocation2 + $0x15c0] ss:$16 sps:$4 sm:$0xff]  }
 0x2ac   :  { %5056 = vmatprep.subr.bf16.mxu0 %v11252_v2  ;;  %v11339_v2 = vld [vmem:[#allocation2 + $0x11cc] ss:$16 sps:$4 sm:$0xff]  }
 0x2ad   :  { %5458 = vmatmul.mubr.bf16.vlgmr.msra.gmra.mrb[4].mxu1 %v12581_v6  ;;  %v11271_v6 = vld [vmem:[#allocation2 + $0x1068] ss:$16 sps:$4 sm:$0xff]  }
 0x2ae   :  { %5048 = vmatmul.mubr.bf16.vlgmr.msra.gmra.mrb[0].mxu0 %v12615_v8  ;;  %5467 = vmatpush1.bf16.msra.mxu1 %v11253_v5  ;;  %v11342_v5 = vld [vmem:[#allocation2 + $0x15e4] ss:$16 sps:$4 sm:$0xff]  }
 0x2af   :  { %5057 = vmatpush1.bf16.msra.mxu0 %v11250_v41  ;;  %5468 = vmatprep.subr.bf16.mxu1 %v11261_v9  ;;  %v11337_v41 = vld [vmem:[#allocation2 + $0x11c8] ss:$16 sps:$4 sm:$0xff]   ;;  %v11340_v9 = vld [vmem:[#allocation2 + $0x15e0] ss:$16 sps:$4 sm:$0xff]  }
 0x2b0   :  { %5058 = vmatprep.subr.bf16.mxu0 %v11258_v44  ;;  %5088 = vmatprep.mubr.bf16.mxu0 %v12619_v12  ;;  %v11345_v44 = vld [vmem:[#allocation2 + $0x11ec] ss:$16 sps:$4 sm:$0xff]  }
 0x2b1   :  { %5498 = vmatprep.mubr.bf16.mxu1 %v12585_v58  ;;  %v11285_v58 = vld [vmem:[#allocation2 + $0x10ac] ss:$16 sps:$4 sm:$0xff]  }
 0x2b2   :  { %5469 = vmatpush1.bf16.msra.mxu1 %v11259_v11  ;;  %v11350_v11 = vld [vmem:[#allocation2 + $0x1604] ss:$16 sps:$4 sm:$0xff]  }
 0x2b3   :  { %5059 = vmatpush1.bf16.msra.mxu0 %v11256_v10  ;;  %5470 = vmatprep.subr.bf16.mxu1 %v11267_v14  ;;  %v11343_v10 = vld [vmem:[#allocation2 + $0x11e8] ss:$16 sps:$4 sm:$0xff]   ;;  %v12627_v14 = vcombine.low %v12611_v4, %v12611_v4  ;;  %v11362_v4 = vld [vmem:[#allocation2 + $0x1644] ss:$16 sps:$4 sm:$0xff]  }
 0x2b4   :  { %5060 = vmatprep.subr.bf16.mxu0 %v11264_v61  ;;  %v11353_v61 = vld [vmem:[#allocation2 + $0x120c] ss:$16 sps:$4 sm:$0xff]  }
 0x2b6   :  { %5471 = vmatpush1.bf16.msra.mxu1 %v11265_v15  ;;  %v11351_v15 = vld [vmem:[#allocation2 + $0x1208] ss:$16 sps:$4 sm:$0xff]  }
 0x2b7   :  { %5061 = vmatpush1.bf16.msra.mxu0 %v11262_v48  ;;  %5472 = vmatprep.subr.bf16.mxu1 %v11273_v17  ;;  %v11348_v48 = vld [vmem:[#allocation2 + $0x1600] ss:$16 sps:$4 sm:$0xff]   ;;  %v11359_v17 = vld [vmem:[#allocation2 + $0x122c] ss:$16 sps:$4 sm:$0xff]  }
 0x2b8   :  { %5062 = vmatprep.subr.bf16.mxu0 %v11270_v16  ;;  %v11356_v16 = vld [vmem:[#allocation2 + $0x1624] ss:$16 sps:$4 sm:$0xff]  }
 0x2ba   :  { %5473 = vmatpush1.bf16.msra.mxu1 %v11271_v6  ;;  %v11357_v6 = vld [vmem:[#allocation2 + $0x1228] ss:$16 sps:$4 sm:$0xff]  }
 0x2bb   :  { %5063 = vmatpush1.bf16.msra.mxu0 %v11268_v20  ;;  %5474 = vmatprep.subr.bf16.mxu1 %v11279_v24  ;;  %v11354_v20 = vld [vmem:[#allocation2 + $0x1620] ss:$16 sps:$4 sm:$0xff]   ;;  %v12317_v24 = vmov 0  }
 0x2bc   :  { %5064 = vmatprep.subr.bf16.mxu0 %v11276_v23  ;;  %v11365_v23 = vld [vmem:[#allocation2 + $0x124c] ss:$16 sps:$4 sm:$0xff]  }
 0x2be   :  { %5475 = vmatpush1.bf16.msra.mxu1 %v11277_v26  ;;  %v11363_v26 = vld [vmem:[#allocation2 + $0x1248] ss:$16 sps:$4 sm:$0xff]  }
 0x2bf   :  { %5065 = vmatpush1.bf16.msra.mxu0 %v11274_v25  ;;  %5476 = vmatprep.subr.bf16.mxu1 %v11285_v58  ;;  %v11360_v25 = vld [vmem:[#allocation2 + $0x1640] ss:$16 sps:$4 sm:$0xff]  }
 0x2c0   :  { %5066 = vmatprep.subr.bf16.mxu0 %v11282_v18  ;;  %v11371_v18 = vld [vmem:[#allocation2 + $0x126c] ss:$16 sps:$4 sm:$0xff]   ;;  %v11366_v58 = vld [vmem:[#allocation2 + $0x1660] ss:$16 sps:$4 sm:$0xff]  }
 0x2c2   :  { %5477 = vmatpush1.bf16.msra.mxu1 %v11283_v30  ;;  %v11374_v30 = vld [vmem:[#allocation2 + $0x1684] ss:$16 sps:$4 sm:$0xff]  }
 0x2c3   :  { %5067 = vmatpush1.bf16.msra.mxu0 %v11280_v28  ;;  %5478 = vmatprep.subr.bf16.mxu1 %v11291_v32  ;;  %v11369_v28 = vld [vmem:[#allocation2 + $0x1268] ss:$16 sps:$4 sm:$0xff]   ;;  %v11372_v32 = vld [vmem:[#allocation2 + $0x1680] ss:$16 sps:$4 sm:$0xff]  }
 0x2c4   :  { %5068 = vmatprep.subr.bf16.mxu0 %v11288_v31  ;;  %v11377_v31 = vld [vmem:[#allocation2 + $0x128c] ss:$16 sps:$4 sm:$0xff]  }
 0x2c6   :  { %5479 = vmatpush1.bf16.msra.mxu1 %v11289_v51  ;;  %v11383_v51 = vld [vmem:[#allocation2 + $0x12ac] ss:$16 sps:$4 sm:$0xff]  }
 0x2c7   :  { %5069 = vmatpush1.bf16.msra.mxu0 %v11286_v22  ;;  %5480 = vmatprep.subr.bf16.mxu1 %v11297_v35  ;;  %v11380_v22 = vld [vmem:[#allocation2 + $0x16a4] ss:$16 sps:$4 sm:$0xff]   ;;  %v11381_v35 = vld [vmem:[#allocation2 + $0x12a8] ss:$16 sps:$4 sm:$0xff]  }
 0x2c8   :  { %5070 = vmatprep.subr.bf16.mxu0 %v11294_v33  ;;  %v11378_v33 = vld [vmem:[#allocation2 + $0x16a0] ss:$16 sps:$4 sm:$0xff]  }
 0x2ca   :  { %5481 = vmatpush1.bf16.msra.mxu1 %v11295_v13  ;;  %v11389_v13 = vld [vmem:[#allocation2 + $0x12cc] ss:$16 sps:$4 sm:$0xff]  }
 0x2cb   :  { %5071 = vmatpush1.bf16.msra.mxu0 %v11292_v36  ;;  %5482 = vmatprep.subr.bf16.mxu1 %v11303_v39  ;;  %v11386_v36 = vld [vmem:[#allocation2 + $0x16c4] ss:$16 sps:$4 sm:$0xff]   ;;  %v11387_v39 = vld [vmem:[#allocation2 + $0x12c8] ss:$16 sps:$4 sm:$0xff]  }
 0x2cc   :  { %5072 = vmatprep.subr.bf16.mxu0 %v11300_v38  ;;  %v11384_v38 = vld [vmem:[#allocation2 + $0x16c0] ss:$16 sps:$4 sm:$0xff]  }
 0x2ce   :  { %5483 = vmatpush1.bf16.msra.mxu1 %v11301_v29  ;;  %v11395_v29 = vld [vmem:[#allocation2 + $0x12ec] ss:$16 sps:$4 sm:$0xff]  }
 0x2cf   :  { %5073 = vmatpush1.bf16.msra.mxu0 %v11298_v40  ;;  %5484 = vmatprep.subr.bf16.mxu1 %v11309_v19  ;;  %v11392_v40 = vld [vmem:[#allocation2 + $0x16e4] ss:$16 sps:$4 sm:$0xff]   ;;  %v11393_v19 = vld [vmem:[#allocation2 + $0x12e8] ss:$16 sps:$4 sm:$0xff]  }
 0x2d0   :  { %5074 = vmatprep.subr.bf16.mxu0 %v11306_v42  ;;  %v11390_v42 = vld [vmem:[#allocation2 + $0x16e0] ss:$16 sps:$4 sm:$0xff]  }
 0x2d2   :  { %5485 = vmatpush1.bf16.msra.mxu1 %v11307_v46  ;;  %v12636_v46 = vld [vmem:[%s12714_s0 + $0x58] ss:$0 sps:$4 sm:$0xff]  }
 0x2d3   :  { %5075 = vmatpush1.bf16.msra.mxu0 %v11304_v45  ;;  %5486 = vmatprep.subr.bf16.mxu1 %v11315_v47  ;;  %v11399_v45 = vld [vmem:[#allocation2 + $0x130c] ss:$16 sps:$4 sm:$0xff]  }
 0x2d4   :  { %5076 = vmatprep.subr.bf16.mxu0 %v11312_v21  ;;  %v11397_v21 = vld [vmem:[#allocation2 + $0x1308] ss:$16 sps:$4 sm:$0xff]   ;;  %v11402_v47 = vld [vmem:[#allocation2 + $0x132c] ss:$16 sps:$4 sm:$0xff]  }
 0x2d6   :  { %5487 = vmatpush1.bf16.msra.mxu1 %v11313_v52  ;;  %v11495_v52 = vld [vmem:[#allocation4 + $0x4] ss:$16 sps:$4 sm:$0xff]  }
 0x2d7   :  { %5077 = vmatpush1.bf16.msra.mxu0 %v11310_v37  ;;  %5488 = vmatprep.subr.bf16.mxu1 %v11321_v55  ;;  %v11493_v37 = vld [vmem:[#allocation4] ss:$16 sps:$4 sm:$0xff]   ;;  %v11501_v55 = vld [vmem:[#allocation4 + $0x24] ss:$16 sps:$4 sm:$0xff]  }
 0x2d8   :  { %5078 = vmatprep.subr.bf16.mxu0 %v11318_v53  ;;  %v11400_v53 = vld [vmem:[#allocation2 + $0x1328] ss:$16 sps:$4 sm:$0xff]  }
 0x2da   :  { %5489 = vmatpush1.bf16.msra.mxu1 %v11319_v27  ;;  %v11499_v27 = vld [vmem:[#allocation4 + $0x20] ss:$16 sps:$4 sm:$0xff]  }
 0x2db   :  { %5079 = vmatpush1.bf16.msra.mxu0 %v11316_v56  ;;  %5490 = vmatprep.subr.bf16.mxu1 %v11327_v43  ;;  %v11405_v56 = vld [vmem:[#allocation2 + $0x134c] ss:$16 sps:$4 sm:$0xff]   ;;  %v11507_v43 = vld [vmem:[#allocation4 + $0x44] ss:$16 sps:$4 sm:$0xff]  }
 0x2dc   :  { %5080 = vmatprep.subr.bf16.mxu0 %v11324_v57  ;;  %v11403_v57 = vld [vmem:[#allocation2 + $0x1348] ss:$16 sps:$4 sm:$0xff]  }
 0x2de   :  { %5491 = vmatpush1.bf16.msra.mxu1 %v11325_v60  ;;  %v11505_v60 = vld [vmem:[#allocation4 + $0x40] ss:$16 sps:$4 sm:$0xff]  }
 0x2df   :  { %5081 = vmatpush1.bf16.msra.mxu0 %v11322_v59  ;;  %5492 = vmatprep.subr.bf16.mxu1 %v11333_v63  ;;  %v11408_v59 = vld [vmem:[#allocation2 + $0x136c] ss:$16 sps:$4 sm:$0xff]   ;;  %v11513_v63 = vld [vmem:[#allocation4 + $0x64] ss:$16 sps:$4 sm:$0xff]  }
 0x2e0   :  { %5082 = vmatprep.subr.bf16.mxu0 %v11330_v62  ;;  %v11406_v62 = vld [vmem:[#allocation2 + $0x1368] ss:$16 sps:$4 sm:$0xff]  }
 0x2e2   :  { %5493 = vmatpush1.bf16.msra.mxu1 %v11331_v0  ;;  %v11511_v0 = vld [vmem:[#allocation4 + $0x60] ss:$16 sps:$4 sm:$0xff]  }
 0x2e3   :  { %5083 = vmatpush1.bf16.msra.mxu0 %v11328_v34  ;;  %5494 = vmatprep.subr.bf16.mxu1 %v11339_v2  ;;  %v11411_v34 = vld [vmem:[#allocation2 + $0x138c] ss:$16 sps:$4 sm:$0xff]   ;;  %v11519_v2 = vld [vmem:[#allocation4 + $0x84] ss:$16 sps:$4 sm:$0xff]  }
 0x2e4   :  { %5084 = vmatprep.subr.bf16.mxu0 %v11336_v54  ;;  %v11409_v54 = vld [vmem:[#allocation2 + $0x1388] ss:$16 sps:$4 sm:$0xff]  }
 0x2e6   :  { %5495 = vmatpush1.bf16.msra.mxu1 %v11337_v41  ;;  %v11517_v41 = vld [vmem:[#allocation4 + $0x80] ss:$16 sps:$4 sm:$0xff]  }
 0x2e7   :  { %5085 = vmatpush1.bf16.msra.mxu0 %v11334_v3  ;;  %5496 = vmatprep.subr.bf16.mxu1 %v11345_v44  ;;  %v11414_v3 = vld [vmem:[#allocation2 + $0x13ac] ss:$16 sps:$4 sm:$0xff]   ;;  %v11525_v44 = vld [vmem:[#allocation4 + $0xa4] ss:$16 sps:$4 sm:$0xff]  }
 0x2e8   :  { %5086 = vmatprep.subr.bf16.mxu0 %v11342_v5  ;;  %v11412_v5 = vld [vmem:[#allocation2 + $0x13a8] ss:$16 sps:$4 sm:$0xff]  }
 0x2ea   :  { %5497 = vmatpush1.bf16.msra.mxu1 %v11343_v10  ;;  %v11523_v10 = vld [vmem:[#allocation4 + $0xa0] ss:$16 sps:$4 sm:$0xff]  }
 0x2eb   :  { %5087 = vmatpush1.bf16.msra.mxu0 %v11340_v9  ;;  %5507 = vmatprep.subr.bf16.mxu1 %v11353_v61  ;;  %v11417_v9 = vld [vmem:[#allocation2 + $0x13cc] ss:$16 sps:$4 sm:$0xff]   ;;  %v11531_v61 = vld [vmem:[#allocation4 + $0xc4] ss:$16 sps:$4 sm:$0xff]  }
 0x2ec   :  { %5097 = vmatprep.subr.bf16.mxu0 %v11350_v11  ;;  %v11415_v11 = vld [vmem:[#allocation2 + $0x13c8] ss:$16 sps:$4 sm:$0xff]  }
 0x2ed   :  { %5499 = vmatmul.mubr.bf16.vlgmr.msra.gmra.mrb[4].mxu1 %v12598_v7  ;;  %v11368_v7 = vld [vmem:[#allocation2 + $0x1664] ss:$16 sps:$4 sm:$0xff]  }
 0x2ee   :  { %5089 = vmatmul.mubr.bf16.vlgmr.msra.gmra.mrb[0].mxu0 %v12627_v14  ;;  %5508 = vmatpush1.bf16.msra.mxu1 %v11351_v15  ;;  %v11529_v15 = vld [vmem:[#allocation4 + $0xc0] ss:$16 sps:$4 sm:$0xff]  }
 0x2ef   :  { %5098 = vmatpush1.bf16.msra.mxu0 %v11348_v48  ;;  %5509 = vmatprep.subr.bf16.mxu1 %v11359_v17  ;;  %v11420_v48 = vld [vmem:[#allocation2 + $0x13ec] ss:$16 sps:$4 sm:$0xff]   ;;  %v11537_v17 = vld [vmem:[#allocation4 + $0xe4] ss:$16 sps:$4 sm:$0xff]  }
 0x2f0   :  { %5099 = vmatprep.subr.bf16.mxu0 %v11356_v16  ;;  %5129 = vmatprep.mubr.bf16.mxu0 %v12317_v24  ;;  %v11418_v16 = vld [vmem:[#allocation2 + $0x13e8] ss:$16 sps:$4 sm:$0xff]  }
 0x2f1   :  { %5539 = vmatprep.mubr.bf16.mxu1 %v12602_v1  ;;  %v11375_v1 = vld [vmem:[#allocation2 + $0x1288] ss:$16 sps:$4 sm:$0xff]  }
 0x2f2   :  { %5510 = vmatpush1.bf16.msra.mxu1 %v11357_v6  ;;  %v11535_v6 = vld [vmem:[#allocation4 + $0xe0] ss:$16 sps:$4 sm:$0xff]  }
 0x2f3   :  { %5100 = vmatpush1.bf16.msra.mxu0 %v11354_v20  ;;  %5511 = vmatprep.subr.bf16.mxu1 %v11365_v23  ;;  %v11423_v20 = vld [vmem:[#allocation2 + $0x140c] ss:$16 sps:$4 sm:$0xff]   ;;  %v11543_v23 = vld [vmem:[#allocation4 + $0x104] ss:$16 sps:$4 sm:$0xff]  }
 0x2f4   :  { %5101 = vmatprep.subr.bf16.mxu0 %v11362_v4  ;;  %v11421_v4 = vld [vmem:[#allocation2 + $0x1408] ss:$16 sps:$4 sm:$0xff]  }
 0x2f6   :  { %5512 = vmatpush1.bf16.msra.mxu1 %v11363_v26  ;;  %v11541_v26 = vld [vmem:[#allocation4 + $0x100] ss:$16 sps:$4 sm:$0xff]  }
 0x2f7   :  { %5102 = vmatpush1.bf16.msra.mxu0 %v11360_v25  ;;  %5513 = vmatprep.subr.bf16.mxu1 %v11371_v18  ;;  %v11426_v25 = vld [vmem:[#allocation2 + $0x142c] ss:$16 sps:$4 sm:$0xff]   ;;  %v11549_v18 = vld [vmem:[#allocation4 + $0x124] ss:$16 sps:$4 sm:$0xff]  }
 0x2f8   :  { %5103 = vmatprep.subr.bf16.mxu0 %v11368_v7  ;;  %v11424_v7 = vld [vmem:[#allocation2 + $0x1428] ss:$16 sps:$4 sm:$0xff]  }
 0x2fa   :  { %5514 = vmatpush1.bf16.msra.mxu1 %v11369_v28  ;;  %v11547_v28 = vld [vmem:[#allocation4 + $0x120] ss:$16 sps:$4 sm:$0xff]  }
 0x2fb   :  { %5104 = vmatpush1.bf16.msra.mxu0 %v11366_v58  ;;  %5515 = vmatprep.subr.bf16.mxu1 %v11377_v31  ;;  %v11429_v58 = vld [vmem:[#allocation2 + $0x144c] ss:$16 sps:$4 sm:$0xff]   ;;  %v11555_v31 = vld [vmem:[#allocation4 + $0x144] ss:$16 sps:$4 sm:$0xff]  }
 0x2fc   :  { %5105 = vmatprep.subr.bf16.mxu0 %v11374_v30  ;;  %v11427_v30 = vld [vmem:[#allocation2 + $0x1448] ss:$16 sps:$4 sm:$0xff]  }
 0x2fe   :  { %5516 = vmatpush1.bf16.msra.mxu1 %v11375_v1  ;;  %v11553_v1 = vld [vmem:[#allocation4 + $0x140] ss:$16 sps:$4 sm:$0xff]  }
 0x2ff   :  { %5106 = vmatpush1.bf16.msra.mxu0 %v11372_v32  ;;  %5517 = vmatprep.subr.bf16.mxu1 %v11383_v51  ;;  %v11432_v32 = vld [vmem:[#allocation2 + $0x146c] ss:$16 sps:$4 sm:$0xff]  }
 0x300   :  { %5107 = vmatprep.subr.bf16.mxu0 %v11380_v22  ;;  %v11561_v22 = vld [vmem:[#allocation4 + $0x164] ss:$16 sps:$4 sm:$0xff]   ;;  %v11435_v51 = vld [vmem:[#allocation2 + $0x148c] ss:$16 sps:$4 sm:$0xff]  }
 0x302   :  { %5518 = vmatpush1.bf16.msra.mxu1 %v11381_v35  ;;  %v11567_v35 = vld [vmem:[#allocation4 + $0x184] ss:$16 sps:$4 sm:$0xff]  }
 0x303   :  { %5108 = vmatpush1.bf16.msra.mxu0 %v11378_v33  ;;  %5519 = vmatprep.subr.bf16.mxu1 %v11389_v13  ;;  %v11433_v33 = vld [vmem:[#allocation2 + $0x1488] ss:$16 sps:$4 sm:$0xff]   ;;  %v11565_v13 = vld [vmem:[#allocation4 + $0x180] ss:$16 sps:$4 sm:$0xff]  }
 0x304   :  { %5109 = vmatprep.subr.bf16.mxu0 %v11386_v36  ;;  %v11438_v36 = vld [vmem:[#allocation2 + $0x14ac] ss:$16 sps:$4 sm:$0xff]  }
 0x306   :  { %5520 = vmatpush1.bf16.msra.mxu1 %v11387_v39  ;;  %v11573_v39 = vld [vmem:[#allocation4 + $0x1a4] ss:$16 sps:$4 sm:$0xff]  }
 0x307   :  { %5110 = vmatpush1.bf16.msra.mxu0 %v11384_v38  ;;  %5521 = vmatprep.subr.bf16.mxu1 %v11395_v29  ;;  %v11436_v38 = vld [vmem:[#allocation2 + $0x14a8] ss:$16 sps:$4 sm:$0xff]   ;;  %v11571_v29 = vld [vmem:[#allocation4 + $0x1a0] ss:$16 sps:$4 sm:$0xff]  }
 0x308   :  { %5111 = vmatprep.subr.bf16.mxu0 %v11392_v40  ;;  %v11441_v40 = vld [vmem:[#allocation2 + $0x14cc] ss:$16 sps:$4 sm:$0xff]  }
 0x30a   :  { %5522 = vmatpush1.bf16.msra.mxu1 %v11393_v19  ;;  %v11444_v19 = vld [vmem:[#allocation2 + $0x14ec] ss:$16 sps:$4 sm:$0xff]  }
 0x30b   :  { %5112 = vmatpush1.bf16.msra.mxu0 %v11390_v42  ;;  %5523 = vmatprep.subr.bf16.mxu1 %v11399_v45  ;;  %v11439_v42 = vld [vmem:[#allocation2 + $0x14c8] ss:$16 sps:$4 sm:$0xff]  }
 0x30c   :  { %6427 = vmatprep.subr.bf16.mxu0 %v11495_v52  ;;  %v11442_v45 = vld [vmem:[#allocation2 + $0x14e8] ss:$16 sps:$4 sm:$0xff]  }
 0x30d   :  { %v11448_v52 = vld [vmem:[#allocation2 + $0x1528] ss:$16 sps:$4 sm:$0xff]  }
 0x30e   :  { %5130 = vmatmul.mubr.bf16.vlgmr.msra.gmra.mrb[0].mxu0 %v12636_v46  ;;  %5524 = vmatpush1.bf16.msra.mxu1 %v11397_v21  ;;  %v11447_v21 = vld [vmem:[#allocation2 + $0x150c] ss:$16 sps:$4 sm:$0xff]  }
 0x30f   :  { %5525 = vmatprep.subr.bf16.mxu1 %v11402_v47  ;;  %6428 = vmatpush1.bf16.msra.mxu0 %v11493_v37  ;;  %v11445_v47 = vld [vmem:[#allocation2 + $0x1508] ss:$16 sps:$4 sm:$0xff]   ;;  %v11450_v37 = vld [vmem:[#allocation2 + $0x152c] ss:$16 sps:$4 sm:$0xff]  }
 0x310   :  { %6429 = vmatprep.subr.bf16.mxu0 %v11501_v55  ;;  %v11451_v55 = vld [vmem:[#allocation2 + $0x1548] ss:$16 sps:$4 sm:$0xff]  }
 0x312   :  { %5526 = vmatpush1.bf16.msra.mxu1 %v11400_v53  ;;  %v11453_v53 = vld [vmem:[#allocation2 + $0x154c] ss:$16 sps:$4 sm:$0xff]  }
 0x313   :  { %5527 = vmatprep.subr.bf16.mxu1 %v11405_v56  ;;  %6430 = vmatpush1.bf16.msra.mxu0 %v11499_v27  ;;  %v11456_v56 = vld [vmem:[#allocation2 + $0x156c] ss:$16 sps:$4 sm:$0xff]   ;;  %v11454_v27 = vld [vmem:[#allocation2 + $0x1568] ss:$16 sps:$4 sm:$0xff]  }
 0x314   :  { %6431 = vmatprep.subr.bf16.mxu0 %v11507_v43  ;;  %v11457_v43 = vld [vmem:[#allocation2 + $0x1588] ss:$16 sps:$4 sm:$0xff]  }
 0x316   :  { %5528 = vmatpush1.bf16.msra.mxu1 %v11403_v57  ;;  %v11459_v57 = vld [vmem:[#allocation2 + $0x158c] ss:$16 sps:$4 sm:$0xff]  }
 0x317   :  { %5529 = vmatprep.subr.bf16.mxu1 %v11408_v59  ;;  %6432 = vmatpush1.bf16.msra.mxu0 %v11505_v60  ;;  %v11462_v59 = vld [vmem:[#allocation2 + $0x15ac] ss:$16 sps:$4 sm:$0xff]   ;;  %v11460_v60 = vld [vmem:[#allocation2 + $0x15a8] ss:$16 sps:$4 sm:$0xff]  }
 0x318   :  { %6433 = vmatprep.subr.bf16.mxu0 %v11513_v63  ;;  %v11579_v63 = vld [vmem:[#allocation4 + $0x1c4] ss:$16 sps:$4 sm:$0xff]  }
 0x31a   :  { %5530 = vmatpush1.bf16.msra.mxu1 %v11406_v62  ;;  %v11465_v62 = vld [vmem:[#allocation2 + $0x15cc] ss:$16 sps:$4 sm:$0xff]  }
 0x31b   :  { %5531 = vmatprep.subr.bf16.mxu1 %v11411_v34  ;;  %6434 = vmatpush1.bf16.msra.mxu0 %v11511_v0  ;;  %v11577_v34 = vld [vmem:[#allocation4 + $0x1c0] ss:$16 sps:$4 sm:$0xff]   ;;  %v11463_v0 = vld [vmem:[#allocation2 + $0x15c8] ss:$16 sps:$4 sm:$0xff]  }
 0x31c   :  { %6435 = vmatprep.subr.bf16.mxu0 %v11519_v2  ;;  %v11585_v2 = vld [vmem:[#allocation4 + $0x1e4] ss:$16 sps:$4 sm:$0xff]  }
 0x31e   :  { %5532 = vmatpush1.bf16.msra.mxu1 %v11409_v54  ;;  %v11468_v54 = vld [vmem:[#allocation2 + $0x15ec] ss:$16 sps:$4 sm:$0xff]  }
 0x31f   :  { %5533 = vmatprep.subr.bf16.mxu1 %v11414_v3  ;;  %6436 = vmatpush1.bf16.msra.mxu0 %v11517_v41  ;;  %v11583_v3 = vld [vmem:[#allocation4 + $0x1e0] ss:$16 sps:$4 sm:$0xff]   ;;  %v11466_v41 = vld [vmem:[#allocation2 + $0x15e8] ss:$16 sps:$4 sm:$0xff]  }
 0x320   :  { %6437 = vmatprep.subr.bf16.mxu0 %v11525_v44  ;;  %v11591_v44 = vld [vmem:[#allocation4 + $0x204] ss:$16 sps:$4 sm:$0xff]  }
 0x322   :  { %5534 = vmatpush1.bf16.msra.mxu1 %v11412_v5  ;;  %v11471_v5 = vld [vmem:[#allocation2 + $0x160c] ss:$16 sps:$4 sm:$0xff]  }
 0x323   :  { %5535 = vmatprep.subr.bf16.mxu1 %v11417_v9  ;;  %6438 = vmatpush1.bf16.msra.mxu0 %v11523_v10  ;;  %v11469_v9 = vld [vmem:[#allocation2 + $0x1608] ss:$16 sps:$4 sm:$0xff]   ;;  %v11474_v10 = vld [vmem:[#allocation2 + $0x162c] ss:$16 sps:$4 sm:$0xff]  }
 0x324   :  { %6439 = vmatprep.subr.bf16.mxu0 %v11531_v61  ;;  %v11477_v61 = vld [vmem:[#allocation2 + $0x164c] ss:$16 sps:$4 sm:$0xff]  }
 0x326   :  { %5536 = vmatpush1.bf16.msra.mxu1 %v11415_v11  ;;  %v11472_v11 = vld [vmem:[#allocation2 + $0x1628] ss:$16 sps:$4 sm:$0xff]  }
 0x327   :  { %5537 = vmatprep.subr.bf16.mxu1 %v11420_v48  ;;  %6440 = vmatpush1.bf16.msra.mxu0 %v11529_v15  ;;  %v11475_v48 = vld [vmem:[#allocation2 + $0x1648] ss:$16 sps:$4 sm:$0xff]   ;;  %v11480_v15 = vld [vmem:[#allocation2 + $0x166c] ss:$16 sps:$4 sm:$0xff]  }
 0x328   :  { %6441 = vmatprep.subr.bf16.mxu0 %v11537_v17  ;;  %v11483_v17 = vld [vmem:[#allocation2 + $0x168c] ss:$16 sps:$4 sm:$0xff]  }
 0x32a   :  { %5538 = vmatpush1.bf16.msra.mxu1 %v11418_v16  ;;  %v11478_v16 = vld [vmem:[#allocation2 + $0x1668] ss:$16 sps:$4 sm:$0xff]  }
 0x32b   :  { %5548 = vmatprep.subr.bf16.mxu1 %v11423_v20  ;;  %6442 = vmatpush1.bf16.msra.mxu0 %v11535_v6  ;;  %v11481_v20 = vld [vmem:[#allocation2 + $0x1688] ss:$16 sps:$4 sm:$0xff]   ;;  %v11486_v6 = vld [vmem:[#allocation2 + $0x16ac] ss:$16 sps:$4 sm:$0xff]  }
 0x32c   :  { %6443 = vmatprep.subr.bf16.mxu0 %v11543_v23  ;;  %v11492_v23 = vld [vmem:[#allocation2 + $0x16ec] ss:$16 sps:$4 sm:$0xff]  }
 0x32d   :  { %5540 = vmatmul.mubr.bf16.vlgmr.msra.gmra.mrb[4].mxu1 %v12615_v8  ;;  %v11430_v8 = vld [vmem:[#allocation2 + $0x1468] ss:$16 sps:$4 sm:$0xff]  }
 0x32e   :  { %5549 = vmatpush1.bf16.msra.mxu1 %v11421_v4  ;;  %5580 = vmatprep.mubr.bf16.mxu1 %v12619_v12  ;;  %v11559_v12 = vld [vmem:[#allocation4 + $0x160] ss:$16 sps:$4 sm:$0xff]   ;;  %v11489_v4 = vld [vmem:[#allocation2 + $0x16cc] ss:$16 sps:$4 sm:$0xff]  }
 0x32f   :  { %5550 = vmatprep.subr.bf16.mxu1 %v11426_v25  ;;  %6444 = vmatpush1.bf16.msra.mxu0 %v11541_v26  ;;  %v11490_v25 = vld [vmem:[#allocation2 + $0x16e8] ss:$16 sps:$4 sm:$0xff]   ;;  %v11498_v26 = vld [vmem:[#allocation4 + $0xc] ss:$16 sps:$4 sm:$0xff]  }
 0x330   :  { %6445 = vmatprep.subr.bf16.mxu0 %v11549_v18  ;;  %v11504_v18 = vld [vmem:[#allocation4 + $0x2c] ss:$16 sps:$4 sm:$0xff]  }
 0x332   :  { %5551 = vmatpush1.bf16.msra.mxu1 %v11424_v7  ;;  %v11496_v7 = vld [vmem:[#allocation4 + $0x8] ss:$16 sps:$4 sm:$0xff]  }
 0x333   :  { %5552 = vmatprep.subr.bf16.mxu1 %v11429_v58  ;;  %6446 = vmatpush1.bf16.msra.mxu0 %v11547_v28  ;;  %v11502_v58 = vld [vmem:[#allocation4 + $0x28] ss:$16 sps:$4 sm:$0xff]   ;;  %v11510_v28 = vld [vmem:[#allocation4 + $0x4c] ss:$16 sps:$4 sm:$0xff]  }
 0x334   :  { %6447 = vmatprep.subr.bf16.mxu0 %v11555_v31  ;;  %v11516_v31 = vld [vmem:[#allocation4 + $0x6c] ss:$16 sps:$4 sm:$0xff]  }
 0x336   :  { %5553 = vmatpush1.bf16.msra.mxu1 %v11427_v30  ;;  %v11508_v30 = vld [vmem:[#allocation4 + $0x48] ss:$16 sps:$4 sm:$0xff]  }
 0x337   :  { %5554 = vmatprep.subr.bf16.mxu1 %v11432_v32  ;;  %6448 = vmatpush1.bf16.msra.mxu0 %v11553_v1  ;;  %v11514_v32 = vld [vmem:[#allocation4 + $0x68] ss:$16 sps:$4 sm:$0xff]   ;;  %v11522_v1 = vld [vmem:[#allocation4 + $0x8c] ss:$16 sps:$4 sm:$0xff]  }
 0x338   :  { %6449 = vmatprep.subr.bf16.mxu0 %v11561_v22  ;;  %v11528_v22 = vld [vmem:[#allocation4 + $0xac] ss:$16 sps:$4 sm:$0xff]  }
 0x33a   :  { %5555 = vmatpush1.bf16.msra.mxu1 %v11430_v8  ;;  %v11520_v8 = vld [vmem:[#allocation4 + $0x88] ss:$16 sps:$4 sm:$0xff]  }
 0x33b   :  { %5556 = vmatprep.subr.bf16.mxu1 %v11435_v51  ;;  %6450 = vmatpush1.bf16.msra.mxu0 %v11559_v12  ;;  %v11526_v51 = vld [vmem:[#allocation4 + $0xa8] ss:$16 sps:$4 sm:$0xff]  }
 0x33c   :  { %6451 = vmatprep.subr.bf16.mxu0 %v11567_v35  ;;  %v11532_v12 = vld [vmem:[#allocation4 + $0xc8] ss:$16 sps:$4 sm:$0xff]  }
 0x33d   :  { %v11538_v35 = vld [vmem:[#allocation4 + $0xe8] ss:$16 sps:$4 sm:$0xff]  }
 0x33e   :  { %5557 = vmatpush1.bf16.msra.mxu1 %v11433_v33  ;;  %v11540_v33 = vld [vmem:[#allocation4 + $0xec] ss:$16 sps:$4 sm:$0xff]  }
 0x33f   :  { %5558 = vmatprep.subr.bf16.mxu1 %v11438_v36  ;;  %6452 = vmatpush1.bf16.msra.mxu0 %v11565_v13  ;;  %v11546_v36 = vld [vmem:[#allocation4 + $0x10c] ss:$16 sps:$4 sm:$0xff]   ;;  %v11544_v13 = vld [vmem:[#allocation4 + $0x108] ss:$16 sps:$4 sm:$0xff]  }
 0x340   :  { %6453 = vmatprep.subr.bf16.mxu0 %v11573_v39  ;;  %v11550_v39 = vld [vmem:[#allocation4 + $0x128] ss:$16 sps:$4 sm:$0xff]  }
 0x342   :  { %5559 = vmatpush1.bf16.msra.mxu1 %v11436_v38  ;;  %v11552_v38 = vld [vmem:[#allocation4 + $0x12c] ss:$16 sps:$4 sm:$0xff]  }
 0x343   :  { %5560 = vmatprep.subr.bf16.mxu1 %v11441_v40  ;;  %6454 = vmatpush1.bf16.msra.mxu0 %v11571_v29  ;;  %v11558_v40 = vld [vmem:[#allocation4 + $0x14c] ss:$16 sps:$4 sm:$0xff]   ;;  %v11556_v29 = vld [vmem:[#allocation4 + $0x148] ss:$16 sps:$4 sm:$0xff]  }
 0x344   :  { %6455 = vmatprep.subr.bf16.mxu0 %v11579_v63 }
 0x346   :  { %5561 = vmatpush1.bf16.msra.mxu1 %v11439_v42  ;;  %v11564_v42 = vld [vmem:[#allocation4 + $0x16c] ss:$16 sps:$4 sm:$0xff]  }
 0x347   :  { %5562 = vmatprep.subr.bf16.mxu1 %v11444_v19  ;;  %6456 = vmatpush1.bf16.msra.mxu0 %v11577_v34  ;;  %v11562_v19 = vld [vmem:[#allocation4 + $0x168] ss:$16 sps:$4 sm:$0xff]  }
 0x348   :  { %6457 = vmatprep.subr.bf16.mxu0 %v11585_v2 }
 0x34a   :  { %5563 = vmatpush1.bf16.msra.mxu1 %v11442_v45  ;;  %v11570_v45 = vld [vmem:[#allocation4 + $0x18c] ss:$16 sps:$4 sm:$0xff]  }
 0x34b   :  { %5564 = vmatprep.subr.bf16.mxu1 %v11447_v21  ;;  %6458 = vmatpush1.bf16.msra.mxu0 %v11583_v3  ;;  %v11568_v21 = vld [vmem:[#allocation4 + $0x188] ss:$16 sps:$4 sm:$0xff]  }
 0x34c   :  { %6468 = vmatprep.subr.bf16.mxu0 %v11591_v44 }
 0x34e   :  { %5565 = vmatpush1.bf16.msra.mxu1 %v11445_v47  ;;  %v11576_v47 = vld [vmem:[#allocation4 + $0x1ac] ss:$16 sps:$4 sm:$0xff]  }
 0x34f   :  { %5566 = vmatprep.subr.bf16.mxu1 %v11450_v37  ;;  %v11574_v37 = vld [vmem:[#allocation4 + $0x1a8] ss:$16 sps:$4 sm:$0xff]  }
 0x352   :  { %5567 = vmatpush1.bf16.msra.mxu1 %v11448_v52  ;;  %v11582_v52 = vld [vmem:[#allocation4 + $0x1cc] ss:$16 sps:$4 sm:$0xff]  }
 0x353   :  { %5568 = vmatprep.subr.bf16.mxu1 %v11453_v53  ;;  %v11580_v53 = vld [vmem:[#allocation4 + $0x1c8] ss:$16 sps:$4 sm:$0xff]  }
 0x356   :  { %5569 = vmatpush1.bf16.msra.mxu1 %v11451_v55  ;;  %v11588_v55 = vld [vmem:[#allocation4 + $0x1ec] ss:$16 sps:$4 sm:$0xff]  }
 0x357   :  { %5570 = vmatprep.subr.bf16.mxu1 %v11456_v56  ;;  %v11586_v56 = vld [vmem:[#allocation4 + $0x1e8] ss:$16 sps:$4 sm:$0xff]  }
 0x35a   :  { %5571 = vmatpush1.bf16.msra.mxu1 %v11454_v27  ;;  %v11594_v27 = vld [vmem:[#allocation4 + $0x20c] ss:$16 sps:$4 sm:$0xff]  }
 0x35b   :  { %5572 = vmatprep.subr.bf16.mxu1 %v11459_v57  ;;  %v865_v57 = vlaneseq }
 0x35e   :  { %5573 = vmatpush1.bf16.msra.mxu1 %v11457_v43  ;;  %v12644_v43 = vshrl.u32 %v865_v57, 7  ;;  %v11658_v57 = vld [vmem:[#allocation4 + $0x368] ss:$16 sps:$4 sm:$0xff]  }
 0x35f   :  { %5574 = vmatprep.subr.bf16.mxu1 %v11462_v59 }
 0x360   :  { %v12647_v59 = vsub.s32 0, %v12644_v43 }
 0x362   :  { %5575 = vmatpush1.bf16.msra.mxu1 %v11460_v60  ;;  %v12649_v60 = vld [vmem:[#allocation10] ss:$8 sm:$0xf] }
 0x363   :  { %5576 = vmatprep.subr.bf16.mxu1 %v11465_v62  ;;  %v12652_v62 = vsub.s32 1, %v12644_v43  ;;  %v868_v63 = vrot.slane %v12649_v60, %v12647_v59 }
 0x365   :  { %v872_v34 = vrot.slane %v12649_v60, %v12652_v62 }
 0x366   :  { %5577 = vmatpush1.bf16.msra.mxu1 %v11463_v0  ;;  %v4681_v0 = vadd.f32 %v12536_v49, %v868_v63  ;;  %v11595_v49 = vld [vmem:[#allocation4 + $0x220] ss:$16 sps:$4 sm:$0xff]   ;;  %v11663_v63 = vld [vmem:[#allocation4 + $0x384] ss:$16 sps:$4 sm:$0xff]  }
 0x367   :  { %5578 = vmatprep.subr.bf16.mxu1 %v11468_v54  ;;  %v4683_v54 = vadd.f32 %v12538_v50, %v872_v34  ;;  %v11598_v50 = vld [vmem:[#allocation4 + $0x228] ss:$16 sps:$4 sm:$0xff]   ;;  %v11666_v34 = vld [vmem:[#allocation4 + $0x38c] ss:$16 sps:$4 sm:$0xff]  }
 0x36a   :  { %5579 = vmatpush1.bf16.msra.mxu1 %v11466_v41 }
 0x36b   :  { %5589 = vmatprep.subr.bf16.mxu1 %v11471_v5 }
 0x36d   :  { %5581 = vmatmul.mubr.bf16.vlgmr.msra.gmra.mrb[4].mxu1 %v12627_v14  ;;  %v11484_v14 = vld [vmem:[#allocation2 + $0x16a8] ss:$16 sps:$4 sm:$0xff]  }
 0x36e   :  { %5590 = vmatpush1.bf16.msra.mxu1 %v11469_v9  ;;  %5621 = vmatprep.mubr.bf16.mxu1 %v12317_v24  ;;  %v11487_v24 = vld [vmem:[#allocation2 + $0x16c8] ss:$16 sps:$4 sm:$0xff]  }
 0x36f   :  { %5591 = vmatprep.subr.bf16.mxu1 %v11474_v10 }
 0x372   :  { %5592 = vmatpush1.bf16.msra.mxu1 %v11472_v11 }
 0x373   :  { %5593 = vmatprep.subr.bf16.mxu1 %v11477_v61 }
 0x376   :  { %5594 = vmatpush1.bf16.msra.mxu1 %v11475_v48  ;;  %v11589_v48 = vld [vmem:[#allocation4 + $0x200] ss:$16 sps:$4 sm:$0xff]  }
 0x377   :  { %5595 = vmatprep.subr.bf16.mxu1 %v11480_v15  ;;  %v11592_v15 = vld [vmem:[#allocation4 + $0x208] ss:$16 sps:$4 sm:$0xff]  }
 0x37a   :  { %5596 = vmatpush1.bf16.msra.mxu1 %v11478_v16 }
 0x37b   :  { %5597 = vmatprep.subr.bf16.mxu1 %v11483_v17  ;;  %v11597_v17 = vld [vmem:[#allocation4 + $0x224] ss:$16 sps:$4 sm:$0xff]  }
 0x37e   :  { %5598 = vmatpush1.bf16.msra.mxu1 %v11481_v20  ;;  %v11600_v20 = vld [vmem:[#allocation4 + $0x22c] ss:$16 sps:$4 sm:$0xff]  }
 0x37f   :  { %5599 = vmatprep.subr.bf16.mxu1 %v11486_v6  ;;  %v11603_v6 = vld [vmem:[#allocation4 + $0x244] ss:$16 sps:$4 sm:$0xff]  }
 0x382   :  { %5600 = vmatpush1.bf16.msra.mxu1 %v11484_v14  ;;  %v11606_v14 = vld [vmem:[#allocation4 + $0x24c] ss:$16 sps:$4 sm:$0xff]  }
 0x383   :  { %5601 = vmatprep.subr.bf16.mxu1 %v11489_v4  ;;  %v11601_v4 = vld [vmem:[#allocation4 + $0x240] ss:$16 sps:$4 sm:$0xff]  }
 0x386   :  { %5602 = vmatpush1.bf16.msra.mxu1 %v11487_v24  ;;  %v11604_v24 = vld [vmem:[#allocation4 + $0x248] ss:$16 sps:$4 sm:$0xff]  }
 0x387   :  { %5603 = vmatprep.subr.bf16.mxu1 %v11492_v23  ;;  %v11609_v23 = vld [vmem:[#allocation4 + $0x264] ss:$16 sps:$4 sm:$0xff]  }
 0x38a   :  { %5604 = vmatpush1.bf16.msra.mxu1 %v11490_v25  ;;  %v11612_v25 = vld [vmem:[#allocation4 + $0x26c] ss:$16 sps:$4 sm:$0xff]  }
 0x38b   :  { %6509 = vmatprep.subr.bf16.mxu1 %v11498_v26  ;;  %v11607_v26 = vld [vmem:[#allocation4 + $0x260] ss:$16 sps:$4 sm:$0xff]  }
 0x38d   :  { %5622 = vmatmul.mubr.bf16.vlgmr.msra.gmra.mrb[4].mxu1 %v12636_v46  ;;  %v11534_v46 = vld [vmem:[#allocation4 + $0xcc] ss:$16 sps:$4 sm:$0xff]  }
 0x38e   :  { %6510 = vmatpush1.bf16.msra.mxu1 %v11496_v7  ;;  %v11610_v7 = vld [vmem:[#allocation4 + $0x268] ss:$16 sps:$4 sm:$0xff]  }
 0x38f   :  { %6511 = vmatprep.subr.bf16.mxu1 %v11504_v18  ;;  %v11615_v18 = vld [vmem:[#allocation4 + $0x284] ss:$16 sps:$4 sm:$0xff]  }
 0x392   :  { %6512 = vmatpush1.bf16.msra.mxu1 %v11502_v58  ;;  %v11618_v58 = vld [vmem:[#allocation4 + $0x28c] ss:$16 sps:$4 sm:$0xff]  }
 0x393   :  { %6513 = vmatprep.subr.bf16.mxu1 %v11510_v28  ;;  %v11613_v28 = vld [vmem:[#allocation4 + $0x280] ss:$16 sps:$4 sm:$0xff]  }
 0x396   :  { %6514 = vmatpush1.bf16.msra.mxu1 %v11508_v30  ;;  %v11616_v30 = vld [vmem:[#allocation4 + $0x288] ss:$16 sps:$4 sm:$0xff]  }
 0x397   :  { %6515 = vmatprep.subr.bf16.mxu1 %v11516_v31  ;;  %v11621_v31 = vld [vmem:[#allocation4 + $0x2a4] ss:$16 sps:$4 sm:$0xff]  }
 0x39a   :  { %6516 = vmatpush1.bf16.msra.mxu1 %v11514_v32  ;;  %v11624_v32 = vld [vmem:[#allocation4 + $0x2ac] ss:$16 sps:$4 sm:$0xff]  }
 0x39b   :  { %6517 = vmatprep.subr.bf16.mxu1 %v11522_v1  ;;  %v11619_v1 = vld [vmem:[#allocation4 + $0x2a0] ss:$16 sps:$4 sm:$0xff]  }
 0x39e   :  { %6518 = vmatpush1.bf16.msra.mxu1 %v11520_v8  ;;  %v11622_v8 = vld [vmem:[#allocation4 + $0x2a8] ss:$16 sps:$4 sm:$0xff]  }
 0x39f   :  { %6519 = vmatprep.subr.bf16.mxu1 %v11528_v22  ;;  %v11627_v22 = vld [vmem:[#allocation4 + $0x2c4] ss:$16 sps:$4 sm:$0xff]  }
 0x3a2   :  { %6520 = vmatpush1.bf16.msra.mxu1 %v11526_v51  ;;  %v11630_v51 = vld [vmem:[#allocation4 + $0x2cc] ss:$16 sps:$4 sm:$0xff]  }
 0x3a3   :  { %6521 = vmatprep.subr.bf16.mxu1 %v11534_v46  ;;  %v11625_v46 = vld [vmem:[#allocation4 + $0x2c0] ss:$16 sps:$4 sm:$0xff]  }
 0x3a6   :  { %6522 = vmatpush1.bf16.msra.mxu1 %v11532_v12  ;;  %v11628_v12 = vld [vmem:[#allocation4 + $0x2c8] ss:$16 sps:$4 sm:$0xff]  }
 0x3a7   :  { %6523 = vmatprep.subr.bf16.mxu1 %v11540_v33  ;;  %v11633_v33 = vld [vmem:[#allocation4 + $0x2e4] ss:$16 sps:$4 sm:$0xff]  }
 0x3aa   :  { %6524 = vmatpush1.bf16.msra.mxu1 %v11538_v35  ;;  %v11636_v35 = vld [vmem:[#allocation4 + $0x2ec] ss:$16 sps:$4 sm:$0xff]  }
 0x3ab   :  { %6525 = vmatprep.subr.bf16.mxu1 %v11546_v36  ;;  %v11631_v36 = vld [vmem:[#allocation4 + $0x2e0] ss:$16 sps:$4 sm:$0xff]  }
 0x3ae   :  { %6526 = vmatpush1.bf16.msra.mxu1 %v11544_v13  ;;  %v11634_v13 = vld [vmem:[#allocation4 + $0x2e8] ss:$16 sps:$4 sm:$0xff]  }
 0x3af   :  { %6527 = vmatprep.subr.bf16.mxu1 %v11552_v38  ;;  %v11639_v38 = vld [vmem:[#allocation4 + $0x304] ss:$16 sps:$4 sm:$0xff]  }
 0x3b2   :  { %6528 = vmatpush1.bf16.msra.mxu1 %v11550_v39  ;;  %v11642_v39 = vld [vmem:[#allocation4 + $0x30c] ss:$16 sps:$4 sm:$0xff]  }
 0x3b3   :  { %6529 = vmatprep.subr.bf16.mxu1 %v11558_v40  ;;  %v11637_v40 = vld [vmem:[#allocation4 + $0x300] ss:$16 sps:$4 sm:$0xff]  }
 0x3b6   :  { %6530 = vmatpush1.bf16.msra.mxu1 %v11556_v29  ;;  %v11640_v29 = vld [vmem:[#allocation4 + $0x308] ss:$16 sps:$4 sm:$0xff]  }
 0x3b7   :  { %6531 = vmatprep.subr.bf16.mxu1 %v11564_v42  ;;  %v11645_v42 = vld [vmem:[#allocation4 + $0x324] ss:$16 sps:$4 sm:$0xff]  }
 0x3ba   :  { %6532 = vmatpush1.bf16.msra.mxu1 %v11562_v19  ;;  %v11648_v19 = vld [vmem:[#allocation4 + $0x32c] ss:$16 sps:$4 sm:$0xff]  }
 0x3bb   :  { %6533 = vmatprep.subr.bf16.mxu1 %v11570_v45  ;;  %v11643_v45 = vld [vmem:[#allocation4 + $0x320] ss:$16 sps:$4 sm:$0xff]  }
 0x3be   :  { %6534 = vmatpush1.bf16.msra.mxu1 %v11568_v21  ;;  %v11646_v21 = vld [vmem:[#allocation4 + $0x328] ss:$16 sps:$4 sm:$0xff]  }
 0x3bf   :  { %6535 = vmatprep.subr.bf16.mxu1 %v11576_v47  ;;  %v11651_v47 = vld [vmem:[#allocation4 + $0x344] ss:$16 sps:$4 sm:$0xff]  }
 0x3c2   :  { %6536 = vmatpush1.bf16.msra.mxu1 %v11574_v37  ;;  %v11654_v37 = vld [vmem:[#allocation4 + $0x34c] ss:$16 sps:$4 sm:$0xff]  }
 0x3c3   :  { %6537 = vmatprep.subr.bf16.mxu1 %v11582_v52  ;;  %v11649_v52 = vld [vmem:[#allocation4 + $0x340] ss:$16 sps:$4 sm:$0xff]  }
 0x3c6   :  { %6538 = vmatpush1.bf16.msra.mxu1 %v11580_v53  ;;  %v11652_v53 = vld [vmem:[#allocation4 + $0x348] ss:$16 sps:$4 sm:$0xff]  }
 0x3c7   :  { %6539 = vmatprep.subr.bf16.mxu1 %v11588_v55  ;;  %v11657_v55 = vld [vmem:[#allocation4 + $0x364] ss:$16 sps:$4 sm:$0xff]  }
 0x3ca   :  { %6540 = vmatpush1.bf16.msra.mxu1 %v11586_v56  ;;  %v11660_v56 = vld [vmem:[#allocation4 + $0x36c] ss:$16 sps:$4 sm:$0xff]  }
 0x3cb   :  { %6550 = vmatprep.subr.bf16.mxu1 %v11594_v27  ;;  %v11655_v27 = vld [vmem:[#allocation4 + $0x360] ss:$16 sps:$4 sm:$0xff]  }
 0x3e1   :  { %v5131_v2 = vpop.f32.mrb[0].mxu0 }
 0x3e2   :  { %v10224_v3 = vadd.f32 %v5131_v2, %v4681_v0  ;;  %v5133_v41 = vpop.f32.mrb[1].mxu0  ;;  %v11661_v0 = vld [vmem:[#allocation4 + $0x380] ss:$16 sps:$4 sm:$0xff]   ;;  %v11669_v2 = vld [vmem:[#allocation4 + $0x3a4] ss:$16 sps:$4 sm:$0xff]  }
 0x3e3   :  { %v10226_v5 = vadd.f32 %v5133_v41, %v4683_v54  ;;  %v5135_v44 = vpop.f32.mrb[2].mxu0  ;;  %v11664_v54 = vld [vmem:[#allocation4 + $0x388] ss:$16 sps:$4 sm:$0xff]   ;;  %v11667_v41 = vld [vmem:[#allocation4 + $0x3a0] ss:$16 sps:$4 sm:$0xff]  }
 0x3e4   :  { %v5630_v9 = vmax.f32 %v10224_v3, 0.0  ;;  %v5136_v10 = vpop.f32.mrb[3].mxu0  ;;  %v11672_v3 = vld [vmem:[#allocation4 + $0x3ac] ss:$16 sps:$4 sm:$0xff]   ;;  %v11675_v44 = vld [vmem:[#allocation4 + $0x3c4] ss:$16 sps:$4 sm:$0xff]  }
 0x3e5   :  { %v5631_v11 = vmax.f32 %v10226_v5, 0.0  ;;  %v11670_v5 = vld [vmem:[#allocation4 + $0x3a8] ss:$16 sps:$4 sm:$0xff]   ;;  %v11673_v10 = vld [vmem:[#allocation4 + $0x3c0] ss:$16 sps:$4 sm:$0xff]  }
 0x3e6   :  { %v5634_v16 = vpack.c.bf16 %v5630_v9, %v5630_v9  ;;  %v11678_v9 = vld [vmem:[#allocation4 + $0x3cc] ss:$16 sps:$4 sm:$0xff]  }
 0x3e7   :  { %v5635_v61 = vpack.c.bf16 %v5631_v11, %v5631_v11  ;;  %v11676_v11 = vld [vmem:[#allocation4 + $0x3c8] ss:$16 sps:$4 sm:$0xff]  }
 0x3e9   :  { %6459 = vmatprep.mubr.bf16.mxu0 %v5635_v61  ;;  %6541 = vmatprep.mubr.bf16.mxu1 %v5635_v61  ;;  %v11681_v61 = vld [vmem:[#allocation4 + $0x3e4] ss:$16 sps:$4 sm:$0xff]  }
 0x3ea   :  { %6460 = vmatmul.mubr.bf16.vlgmr.msra.gmra.mrb[4].mxu0 %v5634_v16  ;;  %6542 = vmatmul.mubr.bf16.vlgmr.msra.gmra.mrb[8].mxu1 %v5634_v16  ;;  %v11682_v16 = vld [vmem:[#allocation4 + $0x3e8] ss:$16 sps:$4 sm:$0xff]  }
 0x3eb   :  { %6469 = vmatpush1.bf16.msra.mxu0 %v11589_v48  ;;  %6551 = vmatpush1.bf16.msra.mxu1 %v11592_v15  ;;  %v11684_v48 = vld [vmem:[#allocation4 + $0x3ec] ss:$16 sps:$4 sm:$0xff]   ;;  %v11679_v15 = vld [vmem:[#allocation4 + $0x3e0] ss:$16 sps:$4 sm:$0xff]  }
 0x3ec   :  { %6470 = vmatprep.subr.bf16.mxu0 %v11597_v17  ;;  %6552 = vmatprep.subr.bf16.mxu1 %v11600_v20  ;;  %v11687_v17 = vld [vmem:[#allocation6 + $0x4] ss:$16 sps:$4 sm:$0xff]   ;;  %v11690_v20 = vld [vmem:[#allocation6 + $0xc] ss:$16 sps:$4 sm:$0xff]  }
 0x3ef   :  { %6471 = vmatpush1.bf16.msra.mxu0 %v11595_v49  ;;  %6553 = vmatpush1.bf16.msra.mxu1 %v11598_v50  ;;  %v12661_v49 = vsub.s32 2, %v12644_v43  ;;  %v12664_v50 = vsub.s32 3, %v12644_v43  ;;  %v11693_v43 = vld [vmem:[#allocation6 + $0x24] ss:$16 sps:$4 sm:$0xff]  }
 0x3f0   :  { %6472 = vmatprep.subr.bf16.mxu0 %v11603_v6  ;;  %6554 = vmatprep.subr.bf16.mxu1 %v11606_v14 }
 0x3f1   :  { %v876_v6 = vrot.slane %v12649_v60, %v12661_v49  ;;  %v880_v14 = vrot.slane %v12649_v60, %v12664_v50  ;;  %v11691_v60 = vld [vmem:[#allocation6 + $0x20] ss:$16 sps:$4 sm:$0xff]  }
 0x3f3   :  { %6473 = vmatpush1.bf16.msra.mxu0 %v11601_v4  ;;  %6555 = vmatpush1.bf16.msra.mxu1 %v11604_v24 }
 0x3f4   :  { %6474 = vmatprep.subr.bf16.mxu0 %v11609_v23  ;;  %6556 = vmatprep.subr.bf16.mxu1 %v11612_v25 }
 0x3f7   :  { %6475 = vmatpush1.bf16.msra.mxu0 %v11607_v26  ;;  %6557 = vmatpush1.bf16.msra.mxu1 %v11610_v7 }
 0x3f8   :  { %6476 = vmatprep.subr.bf16.mxu0 %v11615_v18  ;;  %6558 = vmatprep.subr.bf16.mxu1 %v11618_v58 }
 0x3fb   :  { %6477 = vmatpush1.bf16.msra.mxu0 %v11613_v28  ;;  %6559 = vmatpush1.bf16.msra.mxu1 %v11616_v30  ;;  %v11685_v30 = vld [vmem:[#allocation6] ss:$16 sps:$4 sm:$0xff]  }
 0x3fc   :  { %6478 = vmatprep.subr.bf16.mxu0 %v11621_v31  ;;  %6560 = vmatprep.subr.bf16.mxu1 %v11624_v32  ;;  %v11688_v31 = vld [vmem:[#allocation6 + $0x8] ss:$16 sps:$4 sm:$0xff]  }
 0x3ff   :  { %6479 = vmatpush1.bf16.msra.mxu0 %v11619_v1  ;;  %6561 = vmatpush1.bf16.msra.mxu1 %v11622_v8  ;;  %v11696_v1 = vld [vmem:[#allocation6 + $0x2c] ss:$16 sps:$4 sm:$0xff]   ;;  %v11694_v8 = vld [vmem:[#allocation6 + $0x28] ss:$16 sps:$4 sm:$0xff]  }
 0x400   :  { %6480 = vmatprep.subr.bf16.mxu0 %v11627_v22  ;;  %6562 = vmatprep.subr.bf16.mxu1 %v11630_v51  ;;  %v11699_v22 = vld [vmem:[#allocation6 + $0x44] ss:$16 sps:$4 sm:$0xff]   ;;  %v11702_v51 = vld [vmem:[#allocation6 + $0x4c] ss:$16 sps:$4 sm:$0xff]  }
 0x403   :  { %6481 = vmatpush1.bf16.msra.mxu0 %v11625_v46  ;;  %6563 = vmatpush1.bf16.msra.mxu1 %v11628_v12  ;;  %v11697_v46 = vld [vmem:[#allocation6 + $0x40] ss:$16 sps:$4 sm:$0xff]   ;;  %v11700_v12 = vld [vmem:[#allocation6 + $0x48] ss:$16 sps:$4 sm:$0xff]  }
 0x404   :  { %6482 = vmatprep.subr.bf16.mxu0 %v11633_v33  ;;  %6564 = vmatprep.subr.bf16.mxu1 %v11636_v35  ;;  %v11705_v33 = vld [vmem:[#allocation6 + $0x64] ss:$16 sps:$4 sm:$0xff]   ;;  %v11708_v35 = vld [vmem:[#allocation6 + $0x6c] ss:$16 sps:$4 sm:$0xff]  }
 0x407   :  { %6483 = vmatpush1.bf16.msra.mxu0 %v11631_v36  ;;  %6565 = vmatpush1.bf16.msra.mxu1 %v11634_v13  ;;  %v11703_v36 = vld [vmem:[#allocation6 + $0x60] ss:$16 sps:$4 sm:$0xff]   ;;  %v11706_v13 = vld [vmem:[#allocation6 + $0x68] ss:$16 sps:$4 sm:$0xff]  }
 0x408   :  { %6484 = vmatprep.subr.bf16.mxu0 %v11639_v38  ;;  %6566 = vmatprep.subr.bf16.mxu1 %v11642_v39  ;;  %v11711_v38 = vld [vmem:[#allocation6 + $0x84] ss:$16 sps:$4 sm:$0xff]   ;;  %v11714_v39 = vld [vmem:[#allocation6 + $0x8c] ss:$16 sps:$4 sm:$0xff]  }
 0x40b   :  { %6485 = vmatpush1.bf16.msra.mxu0 %v11637_v40  ;;  %6567 = vmatpush1.bf16.msra.mxu1 %v11640_v29  ;;  %v11709_v40 = vld [vmem:[#allocation6 + $0x80] ss:$16 sps:$4 sm:$0xff]   ;;  %v11712_v29 = vld [vmem:[#allocation6 + $0x88] ss:$16 sps:$4 sm:$0xff]  }
 0x40c   :  { %6486 = vmatprep.subr.bf16.mxu0 %v11645_v42  ;;  %6568 = vmatprep.subr.bf16.mxu1 %v11648_v19  ;;  %v11717_v42 = vld [vmem:[#allocation6 + $0xa4] ss:$16 sps:$4 sm:$0xff]   ;;  %v11720_v19 = vld [vmem:[#allocation6 + $0xac] ss:$16 sps:$4 sm:$0xff]  }
 0x40f   :  { %6487 = vmatpush1.bf16.msra.mxu0 %v11643_v45  ;;  %6569 = vmatpush1.bf16.msra.mxu1 %v11646_v21  ;;  %v11715_v45 = vld [vmem:[#allocation6 + $0xa0] ss:$16 sps:$4 sm:$0xff]   ;;  %v11718_v21 = vld [vmem:[#allocation6 + $0xa8] ss:$16 sps:$4 sm:$0xff]  }
 0x410   :  { %6488 = vmatprep.subr.bf16.mxu0 %v11651_v47  ;;  %6570 = vmatprep.subr.bf16.mxu1 %v11654_v37  ;;  %v11723_v47 = vld [vmem:[#allocation6 + $0xc4] ss:$16 sps:$4 sm:$0xff]   ;;  %v11726_v37 = vld [vmem:[#allocation6 + $0xcc] ss:$16 sps:$4 sm:$0xff]  }
 0x413   :  { %6489 = vmatpush1.bf16.msra.mxu0 %v11649_v52  ;;  %6571 = vmatpush1.bf16.msra.mxu1 %v11652_v53  ;;  %v11721_v52 = vld [vmem:[#allocation6 + $0xc0] ss:$16 sps:$4 sm:$0xff]   ;;  %v11724_v53 = vld [vmem:[#allocation6 + $0xc8] ss:$16 sps:$4 sm:$0xff]  }
 0x414   :  { %6490 = vmatprep.subr.bf16.mxu0 %v11657_v55  ;;  %6572 = vmatprep.subr.bf16.mxu1 %v11660_v56  ;;  %v11729_v55 = vld [vmem:[#allocation6 + $0xe4] ss:$16 sps:$4 sm:$0xff]   ;;  %v11732_v56 = vld [vmem:[#allocation6 + $0xec] ss:$16 sps:$4 sm:$0xff]  }
 0x417   :  { %6491 = vmatpush1.bf16.msra.mxu0 %v11655_v27  ;;  %6573 = vmatpush1.bf16.msra.mxu1 %v11658_v57  ;;  %v11727_v27 = vld [vmem:[#allocation6 + $0xe0] ss:$16 sps:$4 sm:$0xff]   ;;  %v11730_v57 = vld [vmem:[#allocation6 + $0xe8] ss:$16 sps:$4 sm:$0xff]  }
 0x418   :  { %6492 = vmatprep.subr.bf16.mxu0 %v11663_v63  ;;  %6574 = vmatprep.subr.bf16.mxu1 %v11666_v34  ;;  %v11735_v63 = vld [vmem:[#allocation6 + $0x104] ss:$16 sps:$4 sm:$0xff]   ;;  %v11738_v34 = vld [vmem:[#allocation6 + $0x10c] ss:$16 sps:$4 sm:$0xff]  }
 0x41b   :  { %6493 = vmatpush1.bf16.msra.mxu0 %v11661_v0  ;;  %6575 = vmatpush1.bf16.msra.mxu1 %v11664_v54  ;;  %v11733_v0 = vld [vmem:[#allocation6 + $0x100] ss:$16 sps:$4 sm:$0xff]   ;;  %v11736_v54 = vld [vmem:[#allocation6 + $0x108] ss:$16 sps:$4 sm:$0xff]  }
 0x41c   :  { %6494 = vmatprep.subr.bf16.mxu0 %v11669_v2  ;;  %6576 = vmatprep.subr.bf16.mxu1 %v11672_v3  ;;  %v11741_v2 = vld [vmem:[#allocation6 + $0x124] ss:$16 sps:$4 sm:$0xff]   ;;  %v11744_v3 = vld [vmem:[#allocation6 + $0x12c] ss:$16 sps:$4 sm:$0xff]  }
 0x41f   :  { %6495 = vmatpush1.bf16.msra.mxu0 %v11667_v41  ;;  %6577 = vmatpush1.bf16.msra.mxu1 %v11670_v5  ;;  %v11739_v41 = vld [vmem:[#allocation6 + $0x120] ss:$16 sps:$4 sm:$0xff]   ;;  %v11742_v5 = vld [vmem:[#allocation6 + $0x128] ss:$16 sps:$4 sm:$0xff]  }
 0x420   :  { %6496 = vmatprep.subr.bf16.mxu0 %v11675_v44  ;;  %6578 = vmatprep.subr.bf16.mxu1 %v11678_v9  ;;  %v11747_v44 = vld [vmem:[#allocation6 + $0x144] ss:$16 sps:$4 sm:$0xff]   ;;  %v11750_v9 = vld [vmem:[#allocation6 + $0x14c] ss:$16 sps:$4 sm:$0xff]  }
 0x423   :  { %6497 = vmatpush1.bf16.msra.mxu0 %v11673_v10  ;;  %6579 = vmatpush1.bf16.msra.mxu1 %v11676_v11  ;;  %v11745_v10 = vld [vmem:[#allocation6 + $0x140] ss:$16 sps:$4 sm:$0xff]   ;;  %v11748_v11 = vld [vmem:[#allocation6 + $0x148] ss:$16 sps:$4 sm:$0xff]  }
 0x424   :  { %6498 = vmatprep.subr.bf16.mxu0 %v11681_v61  ;;  %6580 = vmatprep.subr.bf16.mxu1 %v11684_v48  ;;  %v11753_v61 = vld [vmem:[#allocation6 + $0x164] ss:$16 sps:$4 sm:$0xff]   ;;  %v11756_v48 = vld [vmem:[#allocation6 + $0x16c] ss:$16 sps:$4 sm:$0xff]  }
 0x427   :  { %6499 = vmatpush1.bf16.msra.mxu0 %v11679_v15  ;;  %6581 = vmatpush1.bf16.msra.mxu1 %v11682_v16  ;;  %v11751_v15 = vld [vmem:[#allocation6 + $0x160] ss:$16 sps:$4 sm:$0xff]   ;;  %v11754_v16 = vld [vmem:[#allocation6 + $0x168] ss:$16 sps:$4 sm:$0xff]  }
 0x428   :  { %7388 = vmatprep.subr.bf16.mxu0 %v11687_v17  ;;  %7470 = vmatprep.subr.bf16.mxu1 %v11690_v20  ;;  %v11759_v17 = vld [vmem:[#allocation6 + $0x184] ss:$16 sps:$4 sm:$0xff]   ;;  %v11762_v20 = vld [vmem:[#allocation6 + $0x18c] ss:$16 sps:$4 sm:$0xff]  }
 0x460   :  { %v5623_v4 = vpop.f32.mrb[4].mxu1 }
 0x461   :  { %v10227_v24 = vadd.f32 %v5623_v4, %v876_v6  ;;  %v5625_v23 = vpop.f32.mrb[5].mxu1  ;;  %v11757_v6 = vld [vmem:[#allocation6 + $0x180] ss:$16 sps:$4 sm:$0xff]   ;;  %v11765_v4 = vld [vmem:[#allocation6 + $0x1a4] ss:$16 sps:$4 sm:$0xff]  }
 0x462   :  { %v10228_v25 = vadd.f32 %v5625_v23, %v880_v14  ;;  %v5627_v26 = vpop.f32.mrb[6].mxu1  ;;  %v11760_v14 = vld [vmem:[#allocation6 + $0x188] ss:$16 sps:$4 sm:$0xff]   ;;  %v11763_v23 = vld [vmem:[#allocation6 + $0x1a0] ss:$16 sps:$4 sm:$0xff]  }
 0x463   :  { %v5632_v7 = vmax.f32 %v10227_v24, 0.0  ;;  %v5628_v18 = vpop.f32.mrb[7].mxu1  ;;  %v11768_v24 = vld [vmem:[#allocation6 + $0x1ac] ss:$16 sps:$4 sm:$0xff]   ;;  %v11771_v26 = vld [vmem:[#allocation6 + $0x1c4] ss:$16 sps:$4 sm:$0xff]  }
 0x464   :  { %v5633_v58 = vmax.f32 %v10228_v25, 0.0  ;;  %v11766_v25 = vld [vmem:[#allocation6 + $0x1a8] ss:$16 sps:$4 sm:$0xff]   ;;  %v11769_v18 = vld [vmem:[#allocation6 + $0x1c0] ss:$16 sps:$4 sm:$0xff]  }
 0x465   :  { %v5636_v32 = vpack.c.bf16 %v5632_v7, %v5632_v7  ;;  %v11774_v7 = vld [vmem:[#allocation6 + $0x1cc] ss:$16 sps:$4 sm:$0xff]  }
 0x466   :  { %v5637_v28 = vpack.c.bf16 %v5633_v58, %v5633_v58  ;;  %v11772_v58 = vld [vmem:[#allocation6 + $0x1c8] ss:$16 sps:$4 sm:$0xff]  }
 0x468   :  { %6500 = vmatprep.mubr.bf16.mxu0 %v5637_v28  ;;  %6582 = vmatprep.mubr.bf16.mxu1 %v5637_v28  ;;  %v11777_v28 = vld [vmem:[#allocation6 + $0x1e4] ss:$16 sps:$4 sm:$0xff]  }
 0x469   :  { %6501 = vmatmul.mubr.bf16.vlgmr.msra.gmra.mrb[4].mxu0 %v5636_v32  ;;  %6583 = vmatmul.mubr.bf16.vlgmr.msra.gmra.mrb[8].mxu1 %v5636_v32  ;;  %v11778_v32 = vld [vmem:[#allocation6 + $0x1e8] ss:$16 sps:$4 sm:$0xff]  }
 0x46a   :  { %7389 = vmatpush1.bf16.msra.mxu0 %v11685_v30  ;;  %7471 = vmatpush1.bf16.msra.mxu1 %v11688_v31  ;;  %v11780_v30 = vld [vmem:[#allocation6 + $0x1ec] ss:$16 sps:$4 sm:$0xff]   ;;  %v11775_v31 = vld [vmem:[#allocation6 + $0x1e0] ss:$16 sps:$4 sm:$0xff]  }
 0x46b   :  { %7390 = vmatprep.subr.bf16.mxu0 %v11693_v43  ;;  %7472 = vmatprep.subr.bf16.mxu1 %v11696_v1  ;;  %v11783_v43 = vld [vmem:[#allocation6 + $0x204] ss:$16 sps:$4 sm:$0xff]   ;;  %v11786_v1 = vld [vmem:[#allocation6 + $0x20c] ss:$16 sps:$4 sm:$0xff]  }
 0x46e   :  { %7391 = vmatpush1.bf16.msra.mxu0 %v11691_v60  ;;  %7473 = vmatpush1.bf16.msra.mxu1 %v11694_v8  ;;  %v12670_v60 = vld [vmem:[#allocation10 + $0x1] ss:$8 sm:$0xf] }
 0x46f   :  { %7392 = vmatprep.subr.bf16.mxu0 %v11699_v22  ;;  %7474 = vmatprep.subr.bf16.mxu1 %v11702_v51  ;;  %v5770_v8 = vrot.slane %v12670_v60, %v12647_v59  ;;  %v5774_v22 = vrot.slane %v12670_v60, %v12652_v62  ;;  %v5782_v51 = vrot.slane %v12670_v60, %v12664_v50 }
 0x472   :  { %7393 = vmatpush1.bf16.msra.mxu0 %v11697_v46  ;;  %7475 = vmatpush1.bf16.msra.mxu1 %v11700_v12 }
 0x473   :  { %7394 = vmatprep.subr.bf16.mxu0 %v11705_v33  ;;  %7476 = vmatprep.subr.bf16.mxu1 %v11708_v35 }
 0x476   :  { %7395 = vmatpush1.bf16.msra.mxu0 %v11703_v36  ;;  %7477 = vmatpush1.bf16.msra.mxu1 %v11706_v13 }
 0x477   :  { %7396 = vmatprep.subr.bf16.mxu0 %v11711_v38  ;;  %7478 = vmatprep.subr.bf16.mxu1 %v11714_v39 }
 0x47a   :  { %7397 = vmatpush1.bf16.msra.mxu0 %v11709_v40  ;;  %7479 = vmatpush1.bf16.msra.mxu1 %v11712_v29 }
 0x47b   :  { %7398 = vmatprep.subr.bf16.mxu0 %v11717_v42  ;;  %7480 = vmatprep.subr.bf16.mxu1 %v11720_v19 }
 0x47e   :  { %7399 = vmatpush1.bf16.msra.mxu0 %v11715_v45  ;;  %7481 = vmatpush1.bf16.msra.mxu1 %v11718_v21 }
 0x47f   :  { %7400 = vmatprep.subr.bf16.mxu0 %v11723_v47  ;;  %7482 = vmatprep.subr.bf16.mxu1 %v11726_v37  ;;  %v11781_v37 = vld [vmem:[#allocation6 + $0x200] ss:$16 sps:$4 sm:$0xff]  }
 0x482   :  { %7401 = vmatpush1.bf16.msra.mxu0 %v11721_v52  ;;  %7483 = vmatpush1.bf16.msra.mxu1 %v11724_v53  ;;  %v11784_v52 = vld [vmem:[#allocation6 + $0x208] ss:$16 sps:$4 sm:$0xff]  }
 0x483   :  { %7402 = vmatprep.subr.bf16.mxu0 %v11729_v55  ;;  %7484 = vmatprep.subr.bf16.mxu1 %v11732_v56  ;;  %v11789_v55 = vld [vmem:[#allocation6 + $0x224] ss:$16 sps:$4 sm:$0xff]   ;;  %v11792_v56 = vld [vmem:[#allocation6 + $0x22c] ss:$16 sps:$4 sm:$0xff]  }
 0x486   :  { %7403 = vmatpush1.bf16.msra.mxu0 %v11727_v27  ;;  %7485 = vmatpush1.bf16.msra.mxu1 %v11730_v57  ;;  %v11787_v57 = vld [vmem:[#allocation6 + $0x220] ss:$16 sps:$4 sm:$0xff]  }
 0x487   :  { %7404 = vmatprep.subr.bf16.mxu0 %v11735_v63  ;;  %7486 = vmatprep.subr.bf16.mxu1 %v11738_v34  ;;  %v11790_v63 = vld [vmem:[#allocation6 + $0x228] ss:$16 sps:$4 sm:$0xff]   ;;  %v11795_v34 = vld [vmem:[#allocation6 + $0x244] ss:$16 sps:$4 sm:$0xff]  }
 0x48a   :  { %7405 = vmatpush1.bf16.msra.mxu0 %v11733_v0  ;;  %7487 = vmatpush1.bf16.msra.mxu1 %v11736_v54  ;;  %v11798_v0 = vld [vmem:[#allocation6 + $0x24c] ss:$16 sps:$4 sm:$0xff]   ;;  %v11793_v54 = vld [vmem:[#allocation6 + $0x240] ss:$16 sps:$4 sm:$0xff]  }
 0x48b   :  { %7406 = vmatprep.subr.bf16.mxu0 %v11741_v2  ;;  %7488 = vmatprep.subr.bf16.mxu1 %v11744_v3  ;;  %v11796_v2 = vld [vmem:[#allocation6 + $0x248] ss:$16 sps:$4 sm:$0xff]   ;;  %v11801_v3 = vld [vmem:[#allocation6 + $0x264] ss:$16 sps:$4 sm:$0xff]  }
 0x48e   :  { %7407 = vmatpush1.bf16.msra.mxu0 %v11739_v41  ;;  %7489 = vmatpush1.bf16.msra.mxu1 %v11742_v5  ;;  %v11804_v41 = vld [vmem:[#allocation6 + $0x26c] ss:$16 sps:$4 sm:$0xff]   ;;  %v11799_v5 = vld [vmem:[#allocation6 + $0x260] ss:$16 sps:$4 sm:$0xff]  }
 0x48f   :  { %7408 = vmatprep.subr.bf16.mxu0 %v11747_v44  ;;  %7490 = vmatprep.subr.bf16.mxu1 %v11750_v9  ;;  %v11802_v44 = vld [vmem:[#allocation6 + $0x268] ss:$16 sps:$4 sm:$0xff]   ;;  %v11807_v9 = vld [vmem:[#allocation6 + $0x284] ss:$16 sps:$4 sm:$0xff]  }
 0x492   :  { %7409 = vmatpush1.bf16.msra.mxu0 %v11745_v10  ;;  %7491 = vmatpush1.bf16.msra.mxu1 %v11748_v11  ;;  %v11810_v10 = vld [vmem:[#allocation6 + $0x28c] ss:$16 sps:$4 sm:$0xff]   ;;  %v11805_v11 = vld [vmem:[#allocation6 + $0x280] ss:$16 sps:$4 sm:$0xff]  }
 0x493   :  { %7410 = vmatprep.subr.bf16.mxu0 %v11753_v61  ;;  %7492 = vmatprep.subr.bf16.mxu1 %v11756_v48  ;;  %v11808_v61 = vld [vmem:[#allocation6 + $0x288] ss:$16 sps:$4 sm:$0xff]   ;;  %v11813_v48 = vld [vmem:[#allocation6 + $0x2a4] ss:$16 sps:$4 sm:$0xff]  }
 0x496   :  { %7411 = vmatpush1.bf16.msra.mxu0 %v11751_v15  ;;  %7493 = vmatpush1.bf16.msra.mxu1 %v11754_v16  ;;  %v11816_v15 = vld [vmem:[#allocation6 + $0x2ac] ss:$16 sps:$4 sm:$0xff]   ;;  %v11811_v16 = vld [vmem:[#allocation6 + $0x2a0] ss:$16 sps:$4 sm:$0xff]  }
 0x497   :  { %7412 = vmatprep.subr.bf16.mxu0 %v11759_v17  ;;  %7494 = vmatprep.subr.bf16.mxu1 %v11762_v20  ;;  %v11814_v17 = vld [vmem:[#allocation6 + $0x2a8] ss:$16 sps:$4 sm:$0xff]   ;;  %v11819_v20 = vld [vmem:[#allocation6 + $0x2c4] ss:$16 sps:$4 sm:$0xff]  }
 0x49a   :  { %7413 = vmatpush1.bf16.msra.mxu0 %v11757_v6  ;;  %7495 = vmatpush1.bf16.msra.mxu1 %v11760_v14  ;;  %v11822_v6 = vld [vmem:[#allocation6 + $0x2cc] ss:$16 sps:$4 sm:$0xff]   ;;  %v11817_v14 = vld [vmem:[#allocation6 + $0x2c0] ss:$16 sps:$4 sm:$0xff]  }
 0x49b   :  { %7414 = vmatprep.subr.bf16.mxu0 %v11765_v4  ;;  %7496 = vmatprep.subr.bf16.mxu1 %v11768_v24  ;;  %v11820_v4 = vld [vmem:[#allocation6 + $0x2c8] ss:$16 sps:$4 sm:$0xff]   ;;  %v11825_v24 = vld [vmem:[#allocation6 + $0x2e4] ss:$16 sps:$4 sm:$0xff]  }
 0x49e   :  { %7415 = vmatpush1.bf16.msra.mxu0 %v11763_v23  ;;  %7497 = vmatpush1.bf16.msra.mxu1 %v11766_v25  ;;  %v11828_v23 = vld [vmem:[#allocation6 + $0x2ec] ss:$16 sps:$4 sm:$0xff]   ;;  %v11823_v25 = vld [vmem:[#allocation6 + $0x2e0] ss:$16 sps:$4 sm:$0xff]  }
 0x49f   :  { %7416 = vmatprep.subr.bf16.mxu0 %v11771_v26  ;;  %7498 = vmatprep.subr.bf16.mxu1 %v11774_v7  ;;  %v11826_v26 = vld [vmem:[#allocation6 + $0x2e8] ss:$16 sps:$4 sm:$0xff]   ;;  %v11831_v7 = vld [vmem:[#allocation6 + $0x304] ss:$16 sps:$4 sm:$0xff]  }
 0x4a2   :  { %7417 = vmatpush1.bf16.msra.mxu0 %v11769_v18  ;;  %7499 = vmatpush1.bf16.msra.mxu1 %v11772_v58  ;;  %v11834_v18 = vld [vmem:[#allocation6 + $0x30c] ss:$16 sps:$4 sm:$0xff]   ;;  %v11829_v58 = vld [vmem:[#allocation6 + $0x300] ss:$16 sps:$4 sm:$0xff]  }
 0x4a3   :  { %7418 = vmatprep.subr.bf16.mxu0 %v11777_v28  ;;  %7500 = vmatprep.subr.bf16.mxu1 %v11780_v30  ;;  %v11832_v28 = vld [vmem:[#allocation6 + $0x308] ss:$16 sps:$4 sm:$0xff]   ;;  %v11837_v30 = vld [vmem:[#allocation6 + $0x324] ss:$16 sps:$4 sm:$0xff]  }
 0x4a6   :  { %7419 = vmatpush1.bf16.msra.mxu0 %v11775_v31  ;;  %7501 = vmatpush1.bf16.msra.mxu1 %v11778_v32  ;;  %v11840_v31 = vld [vmem:[#allocation6 + $0x32c] ss:$16 sps:$4 sm:$0xff]   ;;  %v11835_v32 = vld [vmem:[#allocation6 + $0x320] ss:$16 sps:$4 sm:$0xff]  }
 0x4a7   :  { %7429 = vmatprep.subr.bf16.mxu0 %v11783_v43  ;;  %7511 = vmatprep.subr.bf16.mxu1 %v11786_v1  ;;  %v11838_v43 = vld [vmem:[#allocation6 + $0x328] ss:$16 sps:$4 sm:$0xff]   ;;  %v11843_v1 = vld [vmem:[#allocation6 + $0x344] ss:$16 sps:$4 sm:$0xff]  }
 0x53c   :  { %v6502_v46 = vpop.f32.mrb[4].mxu0  ;;  %v12678_v12 = vpop.f32.mrb[8].mxu1 }
 0x53d   :  { %v10229_v33 = vadd.f32 %v6502_v46, %v5770_v8  ;;  %v6504_v35 = vpop.f32.mrb[5].mxu0  ;;  %v6586_v36 = vpop.f32.mrb[9].mxu1  ;;  %v11846_v8 = vld [vmem:[#allocation6 + $0x34c] ss:$16 sps:$4 sm:$0xff]   ;;  %v11849_v46 = vld [vmem:[#allocation6 + $0x364] ss:$16 sps:$4 sm:$0xff]  }
 0x53e   :  { %v10230_v13 = vadd.f32 %v6504_v35, %v5774_v22  ;;  %v10232_v38 = vadd.f32 %v6586_v36, %v5782_v51  ;;  %v6506_v39 = vpop.f32.mrb[6].mxu0  ;;  %v6588_v40 = vpop.f32.mrb[10].mxu1  ;;  %v11841_v22 = vld [vmem:[#allocation6 + $0x340] ss:$16 sps:$4 sm:$0xff]   ;;  %v11844_v51 = vld [vmem:[#allocation6 + $0x348] ss:$16 sps:$4 sm:$0xff]  }
 0x53f   :  { %v6591_v29 = vmax.f32 %v10229_v33, 0.0  ;;  %v6507_v42 = vpop.f32.mrb[7].mxu0  ;;  %v6589_v19 = vpop.f32.mrb[11].mxu1  ;;  %v11852_v33 = vld [vmem:[#allocation6 + $0x36c] ss:$16 sps:$4 sm:$0xff]  }
 0x540   :  { %v6592_v45 = vmax.f32 %v10230_v13, 0.0  ;;  %v6594_v21 = vmax.f32 %v10232_v38, 0.0  ;;  %v11847_v35 = vld [vmem:[#allocation6 + $0x360] ss:$16 sps:$4 sm:$0xff]   ;;  %v11850_v36 = vld [vmem:[#allocation6 + $0x368] ss:$16 sps:$4 sm:$0xff]  }
 0x541   :  { %v6595_v53 = vpack.c.bf16 %v6591_v29, %v6591_v29  ;;  %v11855_v13 = vld [vmem:[#allocation6 + $0x384] ss:$16 sps:$4 sm:$0xff]   ;;  %v11858_v38 = vld [vmem:[#allocation6 + $0x38c] ss:$16 sps:$4 sm:$0xff]   ;;  %v11853_v39 = vld [vmem:[#allocation6 + $0x380] ss:$16 sps:$4 sm:$0xff]  }
 0x542   :  { %v6596_v47 = vpack.c.bf16 %v6592_v45, %v6592_v45  ;;  %v6598_v27 = vpack.c.bf16 %v6594_v21, %v6594_v21  ;;  %v11856_v40 = vld [vmem:[#allocation6 + $0x388] ss:$16 sps:$4 sm:$0xff]   ;;  %v11861_v29 = vld [vmem:[#allocation6 + $0x3a4] ss:$16 sps:$4 sm:$0xff]   ;;  %v11864_v42 = vld [vmem:[#allocation6 + $0x3ac] ss:$16 sps:$4 sm:$0xff]   ;;  %v5778_v21 = vrot.slane %v12670_v60, %v12661_v49 }
 0x543   :  { %v11859_v19 = vld [vmem:[#allocation6 + $0x3a0] ss:$16 sps:$4 sm:$0xff]   ;;  %v11862_v45 = vld [vmem:[#allocation6 + $0x3a8] ss:$16 sps:$4 sm:$0xff]   ;;  %v11879_v60 = vld [vmem:[#allocation7 + $0x4] ss:$16 sps:$4 sm:$0xff]  }
 0x544   :  { %7420 = vmatprep.mubr.bf16.mxu0 %v6596_v47  ;;  %7502 = vmatprep.mubr.bf16.mxu1 %v6596_v47  ;;  %v11867_v47 = vld [vmem:[#allocation6 + $0x3c4] ss:$16 sps:$4 sm:$0xff]  }
 0x545   :  { %7421 = vmatmul.mubr.bf16.vlgmr.msra.gmra.mrb[8].mxu0 %v6595_v53  ;;  %7503 = vmatmul.mubr.bf16.vlgmr.msra.gmra.mrb[12].mxu1 %v6595_v53  ;;  %v11868_v53 = vld [vmem:[#allocation6 + $0x3c8] ss:$16 sps:$4 sm:$0xff]  }
 0x546   :  { %7430 = vmatpush1.bf16.msra.mxu0 %v11781_v37  ;;  %7512 = vmatpush1.bf16.msra.mxu1 %v11784_v52  ;;  %v11870_v37 = vld [vmem:[#allocation6 + $0x3cc] ss:$16 sps:$4 sm:$0xff]   ;;  %v11865_v52 = vld [vmem:[#allocation6 + $0x3c0] ss:$16 sps:$4 sm:$0xff]  }
 0x547   :  { %7461 = vmatprep.mubr.bf16.mxu0 %v6598_v27  ;;  %7543 = vmatprep.mubr.bf16.mxu1 %v6598_v27  ;;  %v11876_v27 = vld [vmem:[#allocation6 + $0x3ec] ss:$16 sps:$4 sm:$0xff]  }
 0x548   :  { %7431 = vmatprep.subr.bf16.mxu0 %v11789_v55  ;;  %7513 = vmatprep.subr.bf16.mxu1 %v11792_v56  ;;  %v10231_v55 = vadd.f32 %v12678_v12, %v5778_v21  ;;  %v11873_v56 = vld [vmem:[#allocation6 + $0x3e4] ss:$16 sps:$4 sm:$0xff]  }
 0x549   :  { %v11885_v12 = vld [vmem:[#allocation7 + $0x24] ss:$16 sps:$4 sm:$0xff]  }
 0x54a   :  { %7432 = vmatpush1.bf16.msra.mxu0 %v11787_v57  ;;  %7514 = vmatpush1.bf16.msra.mxu1 %v11790_v63  ;;  %v11871_v57 = vld [vmem:[#allocation6 + $0x3e0] ss:$16 sps:$4 sm:$0xff]   ;;  %v11874_v63 = vld [vmem:[#allocation6 + $0x3e8] ss:$16 sps:$4 sm:$0xff]   ;;  %v11951_v21 = vld [vmem:[#allocation7 + $0x184] ss:$16 sps:$4 sm:$0xff]  }
 0x54b   :  { %7433 = vmatprep.subr.bf16.mxu0 %v11795_v34  ;;  %7515 = vmatprep.subr.bf16.mxu1 %v11798_v0  ;;  %v6593_v34 = vmax.f32 %v10231_v55, 0.0  ;;  %v11882_v0 = vld [vmem:[#allocation7 + $0xc] ss:$16 sps:$4 sm:$0xff]  }
 0x54c   :  { %v11960_v55 = vld [vmem:[#allocation7 + $0x1ac] ss:$16 sps:$4 sm:$0xff]  }
 0x54e   :  { %7434 = vmatpush1.bf16.msra.mxu0 %v11793_v54  ;;  %7516 = vmatpush1.bf16.msra.mxu1 %v11796_v2  ;;  %v11877_v54 = vld [vmem:[#allocation7] ss:$16 sps:$4 sm:$0xff]   ;;  %v11880_v2 = vld [vmem:[#allocation7 + $0x8] ss:$16 sps:$4 sm:$0xff]  }
 0x54f   :  { %7435 = vmatprep.subr.bf16.mxu0 %v11801_v3  ;;  %7517 = vmatprep.subr.bf16.mxu1 %v11804_v41  ;;  %v6597_v3 = vpack.c.bf16 %v6593_v34, %v6593_v34  ;;  %v11888_v41 = vld [vmem:[#allocation7 + $0x2c] ss:$16 sps:$4 sm:$0xff]   ;;  %v11961_v34 = vld [vmem:[#allocation7 + $0x1c0] ss:$16 sps:$4 sm:$0xff]  }
 0x552   :  { %7436 = vmatpush1.bf16.msra.mxu0 %v11799_v5  ;;  %7518 = vmatpush1.bf16.msra.mxu1 %v11802_v44  ;;  %v11883_v5 = vld [vmem:[#allocation7 + $0x20] ss:$16 sps:$4 sm:$0xff]   ;;  %v11886_v44 = vld [vmem:[#allocation7 + $0x28] ss:$16 sps:$4 sm:$0xff]  }
 0x553   :  { %7437 = vmatprep.subr.bf16.mxu0 %v11807_v9  ;;  %7519 = vmatprep.subr.bf16.mxu1 %v11810_v10  ;;  %v11891_v9 = vld [vmem:[#allocation7 + $0x44] ss:$16 sps:$4 sm:$0xff]   ;;  %v11894_v10 = vld [vmem:[#allocation7 + $0x4c] ss:$16 sps:$4 sm:$0xff]  }
 0x556   :  { %7438 = vmatpush1.bf16.msra.mxu0 %v11805_v11  ;;  %7520 = vmatpush1.bf16.msra.mxu1 %v11808_v61  ;;  %v11889_v11 = vld [vmem:[#allocation7 + $0x40] ss:$16 sps:$4 sm:$0xff]   ;;  %v11892_v61 = vld [vmem:[#allocation7 + $0x48] ss:$16 sps:$4 sm:$0xff]  }
 0x557   :  { %7439 = vmatprep.subr.bf16.mxu0 %v11813_v48  ;;  %7521 = vmatprep.subr.bf16.mxu1 %v11816_v15  ;;  %v11897_v48 = vld [vmem:[#allocation7 + $0x64] ss:$16 sps:$4 sm:$0xff]   ;;  %v11900_v15 = vld [vmem:[#allocation7 + $0x6c] ss:$16 sps:$4 sm:$0xff]  }
 0x55a   :  { %7440 = vmatpush1.bf16.msra.mxu0 %v11811_v16  ;;  %7522 = vmatpush1.bf16.msra.mxu1 %v11814_v17  ;;  %v11895_v16 = vld [vmem:[#allocation7 + $0x60] ss:$16 sps:$4 sm:$0xff]   ;;  %v11898_v17 = vld [vmem:[#allocation7 + $0x68] ss:$16 sps:$4 sm:$0xff]  }
 0x55b   :  { %7441 = vmatprep.subr.bf16.mxu0 %v11819_v20  ;;  %7523 = vmatprep.subr.bf16.mxu1 %v11822_v6  ;;  %v11903_v20 = vld [vmem:[#allocation7 + $0x84] ss:$16 sps:$4 sm:$0xff]   ;;  %v11906_v6 = vld [vmem:[#allocation7 + $0x8c] ss:$16 sps:$4 sm:$0xff]  }
 0x55e   :  { %7442 = vmatpush1.bf16.msra.mxu0 %v11817_v14  ;;  %7524 = vmatpush1.bf16.msra.mxu1 %v11820_v4  ;;  %v11901_v14 = vld [vmem:[#allocation7 + $0x80] ss:$16 sps:$4 sm:$0xff]   ;;  %v11904_v4 = vld [vmem:[#allocation7 + $0x88] ss:$16 sps:$4 sm:$0xff]  }
 0x55f   :  { %7443 = vmatprep.subr.bf16.mxu0 %v11825_v24  ;;  %7525 = vmatprep.subr.bf16.mxu1 %v11828_v23  ;;  %v11909_v24 = vld [vmem:[#allocation7 + $0xa4] ss:$16 sps:$4 sm:$0xff]   ;;  %v11912_v23 = vld [vmem:[#allocation7 + $0xac] ss:$16 sps:$4 sm:$0xff]  }
 0x562   :  { %7444 = vmatpush1.bf16.msra.mxu0 %v11823_v25  ;;  %7526 = vmatpush1.bf16.msra.mxu1 %v11826_v26  ;;  %v11907_v25 = vld [vmem:[#allocation7 + $0xa0] ss:$16 sps:$4 sm:$0xff]   ;;  %v11910_v26 = vld [vmem:[#allocation7 + $0xa8] ss:$16 sps:$4 sm:$0xff]  }
 0x563   :  { %7445 = vmatprep.subr.bf16.mxu0 %v11831_v7  ;;  %7527 = vmatprep.subr.bf16.mxu1 %v11834_v18  ;;  %v11915_v7 = vld [vmem:[#allocation7 + $0xc4] ss:$16 sps:$4 sm:$0xff]   ;;  %v11918_v18 = vld [vmem:[#allocation7 + $0xcc] ss:$16 sps:$4 sm:$0xff]  }
 0x566   :  { %7446 = vmatpush1.bf16.msra.mxu0 %v11829_v58  ;;  %7528 = vmatpush1.bf16.msra.mxu1 %v11832_v28  ;;  %v11913_v58 = vld [vmem:[#allocation7 + $0xc0] ss:$16 sps:$4 sm:$0xff]   ;;  %v11916_v28 = vld [vmem:[#allocation7 + $0xc8] ss:$16 sps:$4 sm:$0xff]  }
 0x567   :  { %7447 = vmatprep.subr.bf16.mxu0 %v11837_v30  ;;  %7529 = vmatprep.subr.bf16.mxu1 %v11840_v31  ;;  %v11921_v30 = vld [vmem:[#allocation7 + $0xe4] ss:$16 sps:$4 sm:$0xff]   ;;  %v11924_v31 = vld [vmem:[#allocation7 + $0xec] ss:$16 sps:$4 sm:$0xff]  }
 0x56a   :  { %7448 = vmatpush1.bf16.msra.mxu0 %v11835_v32  ;;  %7530 = vmatpush1.bf16.msra.mxu1 %v11838_v43  ;;  %v11919_v32 = vld [vmem:[#allocation7 + $0xe0] ss:$16 sps:$4 sm:$0xff]   ;;  %v11922_v43 = vld [vmem:[#allocation7 + $0xe8] ss:$16 sps:$4 sm:$0xff]  }
 0x56b   :  { %7449 = vmatprep.subr.bf16.mxu0 %v11843_v1  ;;  %7531 = vmatprep.subr.bf16.mxu1 %v11846_v8  ;;  %v11927_v1 = vld [vmem:[#allocation7 + $0x104] ss:$16 sps:$4 sm:$0xff]   ;;  %v11930_v8 = vld [vmem:[#allocation7 + $0x10c] ss:$16 sps:$4 sm:$0xff]  }
 0x56e   :  { %7450 = vmatpush1.bf16.msra.mxu0 %v11841_v22  ;;  %7532 = vmatpush1.bf16.msra.mxu1 %v11844_v51  ;;  %v11925_v22 = vld [vmem:[#allocation7 + $0x100] ss:$16 sps:$4 sm:$0xff]   ;;  %v11928_v51 = vld [vmem:[#allocation7 + $0x108] ss:$16 sps:$4 sm:$0xff]  }
 0x56f   :  { %7451 = vmatprep.subr.bf16.mxu0 %v11849_v46  ;;  %7533 = vmatprep.subr.bf16.mxu1 %v11852_v33  ;;  %v11933_v46 = vld [vmem:[#allocation7 + $0x124] ss:$16 sps:$4 sm:$0xff]   ;;  %v11936_v33 = vld [vmem:[#allocation7 + $0x12c] ss:$16 sps:$4 sm:$0xff]  }
 0x572   :  { %7452 = vmatpush1.bf16.msra.mxu0 %v11847_v35  ;;  %7534 = vmatpush1.bf16.msra.mxu1 %v11850_v36  ;;  %v11931_v35 = vld [vmem:[#allocation7 + $0x120] ss:$16 sps:$4 sm:$0xff]   ;;  %v11934_v36 = vld [vmem:[#allocation7 + $0x128] ss:$16 sps:$4 sm:$0xff]  }
 0x573   :  { %7453 = vmatprep.subr.bf16.mxu0 %v11855_v13  ;;  %7535 = vmatprep.subr.bf16.mxu1 %v11858_v38  ;;  %v11939_v13 = vld [vmem:[#allocation7 + $0x144] ss:$16 sps:$4 sm:$0xff]   ;;  %v11942_v38 = vld [vmem:[#allocation7 + $0x14c] ss:$16 sps:$4 sm:$0xff]  }
 0x576   :  { %7454 = vmatpush1.bf16.msra.mxu0 %v11853_v39  ;;  %7536 = vmatpush1.bf16.msra.mxu1 %v11856_v40  ;;  %v11937_v39 = vld [vmem:[#allocation7 + $0x140] ss:$16 sps:$4 sm:$0xff]   ;;  %v11940_v40 = vld [vmem:[#allocation7 + $0x148] ss:$16 sps:$4 sm:$0xff]  }
 0x577   :  { %7455 = vmatprep.subr.bf16.mxu0 %v11861_v29  ;;  %7537 = vmatprep.subr.bf16.mxu1 %v11864_v42  ;;  %v11945_v29 = vld [vmem:[#allocation7 + $0x164] ss:$16 sps:$4 sm:$0xff]   ;;  %v11948_v42 = vld [vmem:[#allocation7 + $0x16c] ss:$16 sps:$4 sm:$0xff]  }
 0x57a   :  { %7456 = vmatpush1.bf16.msra.mxu0 %v11859_v19  ;;  %7538 = vmatpush1.bf16.msra.mxu1 %v11862_v45  ;;  %v11943_v19 = vld [vmem:[#allocation7 + $0x160] ss:$16 sps:$4 sm:$0xff]   ;;  %v11946_v45 = vld [vmem:[#allocation7 + $0x168] ss:$16 sps:$4 sm:$0xff]  }
 0x57b   :  { %7457 = vmatprep.subr.bf16.mxu0 %v11867_v47  ;;  %7539 = vmatprep.subr.bf16.mxu1 %v11870_v37  ;;  %v11954_v47 = vld [vmem:[#allocation7 + $0x18c] ss:$16 sps:$4 sm:$0xff]   ;;  %v11949_v37 = vld [vmem:[#allocation7 + $0x180] ss:$16 sps:$4 sm:$0xff]  }
 0x57e   :  { %7458 = vmatpush1.bf16.msra.mxu0 %v11865_v52  ;;  %7540 = vmatpush1.bf16.msra.mxu1 %v11868_v53  ;;  %v11952_v52 = vld [vmem:[#allocation7 + $0x188] ss:$16 sps:$4 sm:$0xff]   ;;  %v11957_v53 = vld [vmem:[#allocation7 + $0x1a4] ss:$16 sps:$4 sm:$0xff]  }
 0x57f   :  { %7459 = vmatprep.subr.bf16.mxu0 %v11873_v56  ;;  %7541 = vmatprep.subr.bf16.mxu1 %v11876_v27  ;;  %v11955_v56 = vld [vmem:[#allocation7 + $0x1a0] ss:$16 sps:$4 sm:$0xff]   ;;  %v11958_v27 = vld [vmem:[#allocation7 + $0x1a8] ss:$16 sps:$4 sm:$0xff]  }
 0x582   :  { %7460 = vmatpush1.bf16.msra.mxu0 %v11871_v57  ;;  %7542 = vmatpush1.bf16.msra.mxu1 %v11874_v63  ;;  %v11963_v57 = vld [vmem:[#allocation7 + $0x1c4] ss:$16 sps:$4 sm:$0xff]   ;;  %v11966_v63 = vld [vmem:[#allocation7 + $0x1cc] ss:$16 sps:$4 sm:$0xff]  }
 0x583   :  { %8349 = vmatprep.subr.bf16.mxu0 %v11879_v60  ;;  %8431 = vmatprep.subr.bf16.mxu1 %v11882_v0  ;;  %v11964_v60 = vld [vmem:[#allocation7 + $0x1c8] ss:$16 sps:$4 sm:$0xff]   ;;  %v11969_v0 = vld [vmem:[#allocation7 + $0x1e4] ss:$16 sps:$4 sm:$0xff]  }
 0x585   :  { %7462 = vmatmul.mubr.bf16.vlgmr.msra.gmra.mrb[8].mxu0 %v6597_v3  ;;  %7544 = vmatmul.mubr.bf16.vlgmr.msra.gmra.mrb[12].mxu1 %v6597_v3  ;;  %v11970_v3 = vld [vmem:[#allocation7 + $0x1e8] ss:$16 sps:$4 sm:$0xff]  }
 0x586   :  { %8350 = vmatpush1.bf16.msra.mxu0 %v11877_v54  ;;  %8432 = vmatpush1.bf16.msra.mxu1 %v11880_v2  ;;  %v11972_v54 = vld [vmem:[#allocation7 + $0x1ec] ss:$16 sps:$4 sm:$0xff]   ;;  %v11967_v2 = vld [vmem:[#allocation7 + $0x1e0] ss:$16 sps:$4 sm:$0xff]  }
 0x587   :  { %8351 = vmatprep.subr.bf16.mxu0 %v11885_v12  ;;  %8433 = vmatprep.subr.bf16.mxu1 %v11888_v41  ;;  %v11975_v12 = vld [vmem:[#allocation7 + $0x204] ss:$16 sps:$4 sm:$0xff]   ;;  %v11978_v41 = vld [vmem:[#allocation7 + $0x20c] ss:$16 sps:$4 sm:$0xff]  }
 0x58a   :  { %8352 = vmatpush1.bf16.msra.mxu0 %v11883_v5  ;;  %8434 = vmatpush1.bf16.msra.mxu1 %v11886_v44  ;;  %v12683_v5 = vld [vmem:[#allocation10 + $0x2] ss:$8 sm:$0xf] }
 0x58b   :  { %8353 = vmatprep.subr.bf16.mxu0 %v11891_v9  ;;  %8435 = vmatprep.subr.bf16.mxu1 %v11894_v10  ;;  %v6731_v44 = vrot.slane %v12683_v5, %v12647_v59  ;;  %v6735_v9 = vrot.slane %v12683_v5, %v12652_v62  ;;  %v6743_v10 = vrot.slane %v12683_v5, %v12664_v50 }
 0x58e   :  { %8354 = vmatpush1.bf16.msra.mxu0 %v11889_v11  ;;  %8436 = vmatpush1.bf16.msra.mxu1 %v11892_v61 }
 0x58f   :  { %8355 = vmatprep.subr.bf16.mxu0 %v11897_v48  ;;  %8437 = vmatprep.subr.bf16.mxu1 %v11900_v15 }
 0x592   :  { %8356 = vmatpush1.bf16.msra.mxu0 %v11895_v16  ;;  %8438 = vmatpush1.bf16.msra.mxu1 %v11898_v17 }
 0x593   :  { %8357 = vmatprep.subr.bf16.mxu0 %v11903_v20  ;;  %8439 = vmatprep.subr.bf16.mxu1 %v11906_v6 }
 0x596   :  { %8358 = vmatpush1.bf16.msra.mxu0 %v11901_v14  ;;  %8440 = vmatpush1.bf16.msra.mxu1 %v11904_v4 }
 0x597   :  { %8359 = vmatprep.subr.bf16.mxu0 %v11909_v24  ;;  %8441 = vmatprep.subr.bf16.mxu1 %v11912_v23 }
 0x59a   :  { %8360 = vmatpush1.bf16.msra.mxu0 %v11907_v25  ;;  %8442 = vmatpush1.bf16.msra.mxu1 %v11910_v26 }
 0x59b   :  { %8361 = vmatprep.subr.bf16.mxu0 %v11915_v7  ;;  %8443 = vmatprep.subr.bf16.mxu1 %v11918_v18  ;;  %v11973_v18 = vld [vmem:[#allocation7 + $0x200] ss:$16 sps:$4 sm:$0xff]  }
 0x59e   :  { %8362 = vmatpush1.bf16.msra.mxu0 %v11913_v58  ;;  %8444 = vmatpush1.bf16.msra.mxu1 %v11916_v28  ;;  %v11976_v58 = vld [vmem:[#allocation7 + $0x208] ss:$16 sps:$4 sm:$0xff]  }
 0x59f   :  { %8363 = vmatprep.subr.bf16.mxu0 %v11921_v30  ;;  %8445 = vmatprep.subr.bf16.mxu1 %v11924_v31  ;;  %v11981_v30 = vld [vmem:[#allocation7 + $0x224] ss:$16 sps:$4 sm:$0xff]   ;;  %v11984_v31 = vld [vmem:[#allocation7 + $0x22c] ss:$16 sps:$4 sm:$0xff]  }
 0x5a2   :  { %8364 = vmatpush1.bf16.msra.mxu0 %v11919_v32  ;;  %8446 = vmatpush1.bf16.msra.mxu1 %v11922_v43  ;;  %v11979_v43 = vld [vmem:[#allocation7 + $0x220] ss:$16 sps:$4 sm:$0xff]  }
 0x5a3   :  { %8365 = vmatprep.subr.bf16.mxu0 %v11927_v1  ;;  %8447 = vmatprep.subr.bf16.mxu1 %v11930_v8  ;;  %v11982_v1 = vld [vmem:[#allocation7 + $0x228] ss:$16 sps:$4 sm:$0xff]   ;;  %v11987_v8 = vld [vmem:[#allocation7 + $0x244] ss:$16 sps:$4 sm:$0xff]  }
 0x5a6   :  { %8366 = vmatpush1.bf16.msra.mxu0 %v11925_v22  ;;  %8448 = vmatpush1.bf16.msra.mxu1 %v11928_v51  ;;  %v11990_v22 = vld [vmem:[#allocation7 + $0x24c] ss:$16 sps:$4 sm:$0xff]   ;;  %v11985_v51 = vld [vmem:[#allocation7 + $0x240] ss:$16 sps:$4 sm:$0xff]  }
 0x5a7   :  { %8367 = vmatprep.subr.bf16.mxu0 %v11933_v46  ;;  %8449 = vmatprep.subr.bf16.mxu1 %v11936_v33  ;;  %v11988_v46 = vld [vmem:[#allocation7 + $0x248] ss:$16 sps:$4 sm:$0xff]   ;;  %v11993_v33 = vld [vmem:[#allocation7 + $0x264] ss:$16 sps:$4 sm:$0xff]  }
 0x5aa   :  { %8368 = vmatpush1.bf16.msra.mxu0 %v11931_v35  ;;  %8450 = vmatpush1.bf16.msra.mxu1 %v11934_v36  ;;  %v11996_v35 = vld [vmem:[#allocation7 + $0x26c] ss:$16 sps:$4 sm:$0xff]   ;;  %v11991_v36 = vld [vmem:[#allocation7 + $0x260] ss:$16 sps:$4 sm:$0xff]  }
 0x5ab   :  { %8369 = vmatprep.subr.bf16.mxu0 %v11939_v13  ;;  %8451 = vmatprep.subr.bf16.mxu1 %v11942_v38  ;;  %v11994_v13 = vld [vmem:[#allocation7 + $0x268] ss:$16 sps:$4 sm:$0xff]   ;;  %v11999_v38 = vld [vmem:[#allocation7 + $0x284] ss:$16 sps:$4 sm:$0xff]  }
 0x5ae   :  { %8370 = vmatpush1.bf16.msra.mxu0 %v11937_v39  ;;  %8452 = vmatpush1.bf16.msra.mxu1 %v11940_v40  ;;  %v12002_v39 = vld [vmem:[#allocation7 + $0x28c] ss:$16 sps:$4 sm:$0xff]   ;;  %v11997_v40 = vld [vmem:[#allocation7 + $0x280] ss:$16 sps:$4 sm:$0xff]  }
 0x5af   :  { %8371 = vmatprep.subr.bf16.mxu0 %v11945_v29  ;;  %8453 = vmatprep.subr.bf16.mxu1 %v11948_v42  ;;  %v12000_v29 = vld [vmem:[#allocation7 + $0x288] ss:$16 sps:$4 sm:$0xff]   ;;  %v12005_v42 = vld [vmem:[#allocation7 + $0x2a4] ss:$16 sps:$4 sm:$0xff]  }
 0x5b2   :  { %8372 = vmatpush1.bf16.msra.mxu0 %v11943_v19  ;;  %8454 = vmatpush1.bf16.msra.mxu1 %v11946_v45  ;;  %v12008_v19 = vld [vmem:[#allocation7 + $0x2ac] ss:$16 sps:$4 sm:$0xff]   ;;  %v12003_v45 = vld [vmem:[#allocation7 + $0x2a0] ss:$16 sps:$4 sm:$0xff]  }
 0x5b3   :  { %8373 = vmatprep.subr.bf16.mxu0 %v11951_v21  ;;  %8455 = vmatprep.subr.bf16.mxu1 %v11954_v47  ;;  %v12006_v21 = vld [vmem:[#allocation7 + $0x2a8] ss:$16 sps:$4 sm:$0xff]   ;;  %v12011_v47 = vld [vmem:[#allocation7 + $0x2c4] ss:$16 sps:$4 sm:$0xff]  }
 0x5b6   :  { %8374 = vmatpush1.bf16.msra.mxu0 %v11949_v37  ;;  %8456 = vmatpush1.bf16.msra.mxu1 %v11952_v52  ;;  %v12014_v37 = vld [vmem:[#allocation7 + $0x2cc] ss:$16 sps:$4 sm:$0xff]   ;;  %v12009_v52 = vld [vmem:[#allocation7 + $0x2c0] ss:$16 sps:$4 sm:$0xff]  }
 0x5b7   :  { %8375 = vmatprep.subr.bf16.mxu0 %v11957_v53  ;;  %8457 = vmatprep.subr.bf16.mxu1 %v11960_v55  ;;  %v12012_v53 = vld [vmem:[#allocation7 + $0x2c8] ss:$16 sps:$4 sm:$0xff]   ;;  %v12017_v55 = vld [vmem:[#allocation7 + $0x2e4] ss:$16 sps:$4 sm:$0xff]  }
 0x5ba   :  { %8376 = vmatpush1.bf16.msra.mxu0 %v11955_v56  ;;  %8458 = vmatpush1.bf16.msra.mxu1 %v11958_v27  ;;  %v12020_v56 = vld [vmem:[#allocation7 + $0x2ec] ss:$16 sps:$4 sm:$0xff]   ;;  %v12015_v27 = vld [vmem:[#allocation7 + $0x2e0] ss:$16 sps:$4 sm:$0xff]  }
 0x5bb   :  { %8377 = vmatprep.subr.bf16.mxu0 %v11963_v57  ;;  %8459 = vmatprep.subr.bf16.mxu1 %v11966_v63  ;;  %v12018_v57 = vld [vmem:[#allocation7 + $0x2e8] ss:$16 sps:$4 sm:$0xff]   ;;  %v12023_v63 = vld [vmem:[#allocation7 + $0x304] ss:$16 sps:$4 sm:$0xff]  }
 0x5be   :  { %8378 = vmatpush1.bf16.msra.mxu0 %v11961_v34  ;;  %8460 = vmatpush1.bf16.msra.mxu1 %v11964_v60  ;;  %v12026_v34 = vld [vmem:[#allocation7 + $0x30c] ss:$16 sps:$4 sm:$0xff]   ;;  %v12021_v60 = vld [vmem:[#allocation7 + $0x300] ss:$16 sps:$4 sm:$0xff]  }
 0x5bf   :  { %8379 = vmatprep.subr.bf16.mxu0 %v11969_v0  ;;  %8461 = vmatprep.subr.bf16.mxu1 %v11972_v54  ;;  %v12024_v0 = vld [vmem:[#allocation7 + $0x308] ss:$16 sps:$4 sm:$0xff]   ;;  %v12029_v54 = vld [vmem:[#allocation7 + $0x324] ss:$16 sps:$4 sm:$0xff]  }
 0x5c2   :  { %8380 = vmatpush1.bf16.msra.mxu0 %v11967_v2  ;;  %8462 = vmatpush1.bf16.msra.mxu1 %v11970_v3  ;;  %v12032_v2 = vld [vmem:[#allocation7 + $0x32c] ss:$16 sps:$4 sm:$0xff]   ;;  %v12027_v3 = vld [vmem:[#allocation7 + $0x320] ss:$16 sps:$4 sm:$0xff]  }
 0x5c3   :  { %8390 = vmatprep.subr.bf16.mxu0 %v11975_v12  ;;  %8472 = vmatprep.subr.bf16.mxu1 %v11978_v41  ;;  %v12030_v12 = vld [vmem:[#allocation7 + $0x328] ss:$16 sps:$4 sm:$0xff]   ;;  %v12035_v41 = vld [vmem:[#allocation7 + $0x344] ss:$16 sps:$4 sm:$0xff]  }
 0x658   :  { %v7463_v11 = vpop.f32.mrb[8].mxu0  ;;  %v12691_v61 = vpop.f32.mrb[12].mxu1 }
 0x659   :  { %v10233_v48 = vadd.f32 %v7463_v11, %v6731_v44  ;;  %v7465_v15 = vpop.f32.mrb[9].mxu0  ;;  %v7547_v16 = vpop.f32.mrb[13].mxu1  ;;  %v12038_v44 = vld [vmem:[#allocation7 + $0x34c] ss:$16 sps:$4 sm:$0xff]   ;;  %v12041_v11 = vld [vmem:[#allocation7 + $0x364] ss:$16 sps:$4 sm:$0xff]  }
 0x65a   :  { %v10234_v17 = vadd.f32 %v7465_v15, %v6735_v9  ;;  %v10236_v20 = vadd.f32 %v7547_v16, %v6743_v10  ;;  %v7467_v6 = vpop.f32.mrb[10].mxu0  ;;  %v7549_v14 = vpop.f32.mrb[14].mxu1  ;;  %v12033_v9 = vld [vmem:[#allocation7 + $0x340] ss:$16 sps:$4 sm:$0xff]   ;;  %v12036_v10 = vld [vmem:[#allocation7 + $0x348] ss:$16 sps:$4 sm:$0xff]  }
 0x65b   :  { %v7552_v4 = vmax.f32 %v10233_v48, 0.0  ;;  %v7468_v24 = vpop.f32.mrb[11].mxu0  ;;  %v7550_v23 = vpop.f32.mrb[15].mxu1  ;;  %v12044_v48 = vld [vmem:[#allocation7 + $0x36c] ss:$16 sps:$4 sm:$0xff]  }
 0x65c   :  { %v7553_v25 = vmax.f32 %v10234_v17, 0.0  ;;  %v7555_v26 = vmax.f32 %v10236_v20, 0.0  ;;  %v12039_v15 = vld [vmem:[#allocation7 + $0x360] ss:$16 sps:$4 sm:$0xff]   ;;  %v12042_v16 = vld [vmem:[#allocation7 + $0x368] ss:$16 sps:$4 sm:$0xff]  }
 0x65d   :  { %v7556_v28 = vpack.c.bf16 %v7552_v4, %v7552_v4  ;;  %v12047_v17 = vld [vmem:[#allocation7 + $0x384] ss:$16 sps:$4 sm:$0xff]   ;;  %v12050_v20 = vld [vmem:[#allocation7 + $0x38c] ss:$16 sps:$4 sm:$0xff]   ;;  %v12045_v6 = vld [vmem:[#allocation7 + $0x380] ss:$16 sps:$4 sm:$0xff]  }
 0x65e   :  { %v7557_v7 = vpack.c.bf16 %v7553_v25, %v7553_v25  ;;  %v7559_v32 = vpack.c.bf16 %v7555_v26, %v7555_v26  ;;  %v12048_v14 = vld [vmem:[#allocation7 + $0x388] ss:$16 sps:$4 sm:$0xff]   ;;  %v12053_v4 = vld [vmem:[#allocation7 + $0x3a4] ss:$16 sps:$4 sm:$0xff]   ;;  %v12056_v24 = vld [vmem:[#allocation7 + $0x3ac] ss:$16 sps:$4 sm:$0xff]   ;;  %v6739_v26 = vrot.slane %v12683_v5, %v12661_v49 }
 0x65f   :  { %v12051_v23 = vld [vmem:[#allocation7 + $0x3a0] ss:$16 sps:$4 sm:$0xff]   ;;  %v12054_v25 = vld [vmem:[#allocation7 + $0x3a8] ss:$16 sps:$4 sm:$0xff]   ;;  %v12071_v5 = vld [vmem:[#allocation9 + $0x4] ss:$8 sps:$4 sm:$0xff]  }
 0x660   :  { %8381 = vmatprep.mubr.bf16.mxu0 %v7557_v7  ;;  %8463 = vmatprep.mubr.bf16.mxu1 %v7557_v7  ;;  %v12059_v7 = vld [vmem:[#allocation7 + $0x3c4] ss:$16 sps:$4 sm:$0xff]  }
 0x661   :  { %8382 = vmatmul.mubr.bf16.vlgmr.msra.gmra.mrb[12].mxu0 %v7556_v28  ;;  %8464 = vmatmul.mubr.bf16.vlgmr.msra.gmra.mrb[16].mxu1 %v7556_v28  ;;  %v12060_v28 = vld [vmem:[#allocation7 + $0x3c8] ss:$16 sps:$4 sm:$0xff]  }
 0x662   :  { %8391 = vmatpush1.bf16.msra.mxu0 %v11973_v18  ;;  %8473 = vmatpush1.bf16.msra.mxu1 %v11976_v58  ;;  %v12062_v18 = vld [vmem:[#allocation7 + $0x3cc] ss:$16 sps:$4 sm:$0xff]   ;;  %v12057_v58 = vld [vmem:[#allocation7 + $0x3c0] ss:$16 sps:$4 sm:$0xff]  }
 0x663   :  { %8422 = vmatprep.mubr.bf16.mxu0 %v7559_v32  ;;  %8504 = vmatprep.mubr.bf16.mxu1 %v7559_v32  ;;  %v12068_v32 = vld [vmem:[#allocation7 + $0x3ec] ss:$16 sps:$4 sm:$0xff]  }
 0x664   :  { %8392 = vmatprep.subr.bf16.mxu0 %v11981_v30  ;;  %8474 = vmatprep.subr.bf16.mxu1 %v11984_v31  ;;  %v10235_v30 = vadd.f32 %v12691_v61, %v6739_v26  ;;  %v12065_v31 = vld [vmem:[#allocation7 + $0x3e4] ss:$16 sps:$4 sm:$0xff]   ;;  %v12072_v61 = vld [vmem:[#allocation9 + $0x10] ss:$8 sps:$4 sm:$0xff]  }
 0x666   :  { %8393 = vmatpush1.bf16.msra.mxu0 %v11979_v43  ;;  %8475 = vmatpush1.bf16.msra.mxu1 %v11982_v1  ;;  %v12063_v43 = vld [vmem:[#allocation7 + $0x3e0] ss:$16 sps:$4 sm:$0xff]   ;;  %v12066_v1 = vld [vmem:[#allocation7 + $0x3e8] ss:$16 sps:$4 sm:$0xff]  }
 0x667   :  { %8394 = vmatprep.subr.bf16.mxu0 %v11987_v8  ;;  %8476 = vmatprep.subr.bf16.mxu1 %v11990_v22  ;;  %v7554_v8 = vmax.f32 %v10235_v30, 0.0  ;;  %v12069_v22 = vld [vmem:[#allocation9] ss:$8 sps:$4 sm:$0xff]  }
 0x66a   :  { %8395 = vmatpush1.bf16.msra.mxu0 %v11985_v51  ;;  %8477 = vmatpush1.bf16.msra.mxu1 %v11988_v46  ;;  %v7558_v51 = vpack.c.bf16 %v7554_v8, %v7554_v8  ;;  %v12074_v46 = vld [vmem:[#allocation9 + $0x14] ss:$8 sps:$4 sm:$0xff]  }
 0x66b   :  { %8396 = vmatprep.subr.bf16.mxu0 %v11993_v33  ;;  %8478 = vmatprep.subr.bf16.mxu1 %v11996_v35  ;;  %v12077_v33 = vld [vmem:[#allocation9 + $0x24] ss:$8 sps:$4 sm:$0xff]   ;;  %v12075_v35 = vld [vmem:[#allocation9 + $0x20] ss:$8 sps:$4 sm:$0xff]   ;;  %v12128_v8 = vld [vmem:[#allocation9 + $0x134] ss:$8 sps:$4 sm:$0xff]  }
 0x66e   :  { %8397 = vmatpush1.bf16.msra.mxu0 %v11991_v36  ;;  %8479 = vmatpush1.bf16.msra.mxu1 %v11994_v13  ;;  %v12080_v36 = vld [vmem:[#allocation9 + $0x34] ss:$8 sps:$4 sm:$0xff]   ;;  %v12078_v13 = vld [vmem:[#allocation9 + $0x30] ss:$8 sps:$4 sm:$0xff]  }
 0x66f   :  { %8398 = vmatprep.subr.bf16.mxu0 %v11999_v38  ;;  %8480 = vmatprep.subr.bf16.mxu1 %v12002_v39  ;;  %v12083_v38 = vld [vmem:[#allocation9 + $0x44] ss:$8 sps:$4 sm:$0xff]   ;;  %v12081_v39 = vld [vmem:[#allocation9 + $0x40] ss:$8 sps:$4 sm:$0xff]  }
 0x672   :  { %8399 = vmatpush1.bf16.msra.mxu0 %v11997_v40  ;;  %8481 = vmatpush1.bf16.msra.mxu1 %v12000_v29  ;;  %v12086_v40 = vld [vmem:[#allocation9 + $0x54] ss:$8 sps:$4 sm:$0xff]   ;;  %v12084_v29 = vld [vmem:[#allocation9 + $0x50] ss:$8 sps:$4 sm:$0xff]  }
 0x673   :  { %8400 = vmatprep.subr.bf16.mxu0 %v12005_v42  ;;  %8482 = vmatprep.subr.bf16.mxu1 %v12008_v19  ;;  %v12089_v42 = vld [vmem:[#allocation9 + $0x64] ss:$8 sps:$4 sm:$0xff]   ;;  %v12087_v19 = vld [vmem:[#allocation9 + $0x60] ss:$8 sps:$4 sm:$0xff]  }
 0x676   :  { %8401 = vmatpush1.bf16.msra.mxu0 %v12003_v45  ;;  %8483 = vmatpush1.bf16.msra.mxu1 %v12006_v21  ;;  %v12092_v45 = vld [vmem:[#allocation9 + $0x74] ss:$8 sps:$4 sm:$0xff]   ;;  %v12090_v21 = vld [vmem:[#allocation9 + $0x70] ss:$8 sps:$4 sm:$0xff]  }
 0x677   :  { %8402 = vmatprep.subr.bf16.mxu0 %v12011_v47  ;;  %8484 = vmatprep.subr.bf16.mxu1 %v12014_v37  ;;  %v12095_v47 = vld [vmem:[#allocation9 + $0x84] ss:$8 sps:$4 sm:$0xff]   ;;  %v12093_v37 = vld [vmem:[#allocation9 + $0x80] ss:$8 sps:$4 sm:$0xff]  }
 0x67a   :  { %8403 = vmatpush1.bf16.msra.mxu0 %v12009_v52  ;;  %8485 = vmatpush1.bf16.msra.mxu1 %v12012_v53  ;;  %v12098_v52 = vld [vmem:[#allocation9 + $0x94] ss:$8 sps:$4 sm:$0xff]   ;;  %v12096_v53 = vld [vmem:[#allocation9 + $0x90] ss:$8 sps:$4 sm:$0xff]  }
 0x67b   :  { %8404 = vmatprep.subr.bf16.mxu0 %v12017_v55  ;;  %8486 = vmatprep.subr.bf16.mxu1 %v12020_v56  ;;  %v12101_v55 = vld [vmem:[#allocation9 + $0xa4] ss:$8 sps:$4 sm:$0xff]   ;;  %v12099_v56 = vld [vmem:[#allocation9 + $0xa0] ss:$8 sps:$4 sm:$0xff]  }
 0x67e   :  { %8405 = vmatpush1.bf16.msra.mxu0 %v12015_v27  ;;  %8487 = vmatpush1.bf16.msra.mxu1 %v12018_v57  ;;  %v12104_v27 = vld [vmem:[#allocation9 + $0xb4] ss:$8 sps:$4 sm:$0xff]   ;;  %v12102_v57 = vld [vmem:[#allocation9 + $0xb0] ss:$8 sps:$4 sm:$0xff]  }
 0x67f   :  { %8406 = vmatprep.subr.bf16.mxu0 %v12023_v63  ;;  %8488 = vmatprep.subr.bf16.mxu1 %v12026_v34  ;;  %v12107_v63 = vld [vmem:[#allocation9 + $0xc4] ss:$8 sps:$4 sm:$0xff]   ;;  %v12105_v34 = vld [vmem:[#allocation9 + $0xc0] ss:$8 sps:$4 sm:$0xff]  }
 0x682   :  { %8407 = vmatpush1.bf16.msra.mxu0 %v12021_v60  ;;  %8489 = vmatpush1.bf16.msra.mxu1 %v12024_v0  ;;  %v12110_v60 = vld [vmem:[#allocation9 + $0xd4] ss:$8 sps:$4 sm:$0xff]   ;;  %v12108_v0 = vld [vmem:[#allocation9 + $0xd0] ss:$8 sps:$4 sm:$0xff]  }
 0x683   :  { %8408 = vmatprep.subr.bf16.mxu0 %v12029_v54  ;;  %8490 = vmatprep.subr.bf16.mxu1 %v12032_v2  ;;  %v12113_v54 = vld [vmem:[#allocation9 + $0xe4] ss:$8 sps:$4 sm:$0xff]   ;;  %v12111_v2 = vld [vmem:[#allocation9 + $0xe0] ss:$8 sps:$4 sm:$0xff]  }
 0x686   :  { %8409 = vmatpush1.bf16.msra.mxu0 %v12027_v3  ;;  %8491 = vmatpush1.bf16.msra.mxu1 %v12030_v12  ;;  %v12116_v3 = vld [vmem:[#allocation9 + $0xf4] ss:$8 sps:$4 sm:$0xff]   ;;  %v12114_v12 = vld [vmem:[#allocation9 + $0xf0] ss:$8 sps:$4 sm:$0xff]  }
 0x687   :  { %8410 = vmatprep.subr.bf16.mxu0 %v12035_v41  ;;  %8492 = vmatprep.subr.bf16.mxu1 %v12038_v44  ;;  %v12119_v41 = vld [vmem:[#allocation9 + $0x104] ss:$8 sps:$4 sm:$0xff]   ;;  %v12696_v44 = vld [vmem:[#allocation10 + $0x3] ss:$8 sm:$0xf] }
 0x68a   :  { %8411 = vmatpush1.bf16.msra.mxu0 %v12033_v9  ;;  %8493 = vmatpush1.bf16.msra.mxu1 %v12036_v10  ;;  %v7692_v9 = vrot.slane %v12696_v44, %v12647_v59  ;;  %v7696_v10 = vrot.slane %v12696_v44, %v12652_v62 }
 0x68b   :  { %8412 = vmatprep.subr.bf16.mxu0 %v12041_v11  ;;  %8494 = vmatprep.subr.bf16.mxu1 %v12044_v48  ;;  %v7704_v11 = vrot.slane %v12696_v44, %v12664_v50 }
 0x68e   :  { %8413 = vmatpush1.bf16.msra.mxu0 %v12039_v15  ;;  %8495 = vmatpush1.bf16.msra.mxu1 %v12042_v16 }
 0x68f   :  { %8414 = vmatprep.subr.bf16.mxu0 %v12047_v17  ;;  %8496 = vmatprep.subr.bf16.mxu1 %v12050_v20 }
 0x692   :  { %8415 = vmatpush1.bf16.msra.mxu0 %v12045_v6  ;;  %8497 = vmatpush1.bf16.msra.mxu1 %v12048_v14 }
 0x693   :  { %8416 = vmatprep.subr.bf16.mxu0 %v12053_v4  ;;  %8498 = vmatprep.subr.bf16.mxu1 %v12056_v24 }
 0x696   :  { %8417 = vmatpush1.bf16.msra.mxu0 %v12051_v23  ;;  %8499 = vmatpush1.bf16.msra.mxu1 %v12054_v25 }
 0x697   :  { %8418 = vmatprep.subr.bf16.mxu0 %v12059_v7  ;;  %8500 = vmatprep.subr.bf16.mxu1 %v12062_v18 }
 0x69a   :  { %8419 = vmatpush1.bf16.msra.mxu0 %v12057_v58  ;;  %8501 = vmatpush1.bf16.msra.mxu1 %v12060_v28  ;;  %v12117_v28 = vld [vmem:[#allocation9 + $0x100] ss:$8 sps:$4 sm:$0xff]  }
 0x69b   :  { %8420 = vmatprep.subr.bf16.mxu0 %v12065_v31  ;;  %8502 = vmatprep.subr.bf16.mxu1 %v12068_v32  ;;  %v12122_v31 = vld [vmem:[#allocation9 + $0x114] ss:$8 sps:$4 sm:$0xff]   ;;  %v12120_v32 = vld [vmem:[#allocation9 + $0x110] ss:$8 sps:$4 sm:$0xff]  }
 0x69e   :  { %8421 = vmatpush1.bf16.msra.mxu0 %v12063_v43  ;;  %8503 = vmatpush1.bf16.msra.mxu1 %v12066_v1  ;;  %v12125_v43 = vld [vmem:[#allocation9 + $0x124] ss:$8 sps:$4 sm:$0xff]   ;;  %v12123_v1 = vld [vmem:[#allocation9 + $0x120] ss:$8 sps:$4 sm:$0xff]  }
 0x69f   :  { %8916 = vmatprep.subr.bf16.mxu0 %v12071_v5  ;;  %v12126_v5 = vld [vmem:[#allocation9 + $0x130] ss:$8 sps:$4 sm:$0xff]  }
 0x6a1   :  { %8423 = vmatmul.mubr.bf16.vlgmr.msra.gmra.mrb[12].mxu0 %v7558_v51  ;;  %8505 = vmatmul.mubr.bf16.vlgmr.msra.gmra.mrb[16].mxu1 %v7558_v51  ;;  %v12129_v51 = vld [vmem:[#allocation9 + $0x140] ss:$8 sps:$4 sm:$0xff]  }
 0x6a2   :  { %8917 = vmatpush1.bf16.msra.mxu0 %v12069_v22  ;;  %v12131_v22 = vld [vmem:[#allocation9 + $0x144] ss:$8 sps:$4 sm:$0xff]  }
 0x6a3   :  { %8918 = vmatprep.subr.bf16.mxu0 %v12074_v46  ;;  %v12134_v46 = vld [vmem:[#allocation9 + $0x154] ss:$8 sps:$4 sm:$0xff]  }
 0x6a6   :  { %8919 = vmatpush1.bf16.msra.mxu0 %v12072_v61  ;;  %v12132_v61 = vld [vmem:[#allocation9 + $0x150] ss:$8 sps:$4 sm:$0xff]  }
 0x6a7   :  { %8920 = vmatprep.subr.bf16.mxu0 %v12077_v33  ;;  %v12137_v33 = vld [vmem:[#allocation9 + $0x164] ss:$8 sps:$4 sm:$0xff]  }
 0x6aa   :  { %8921 = vmatpush1.bf16.msra.mxu0 %v12075_v35  ;;  %v12135_v35 = vld [vmem:[#allocation9 + $0x160] ss:$8 sps:$4 sm:$0xff]  }
 0x6ab   :  { %8922 = vmatprep.subr.bf16.mxu0 %v12080_v36  ;;  %v12140_v36 = vld [vmem:[#allocation9 + $0x174] ss:$8 sps:$4 sm:$0xff]  }
 0x6ae   :  { %8923 = vmatpush1.bf16.msra.mxu0 %v12078_v13  ;;  %v12138_v13 = vld [vmem:[#allocation9 + $0x170] ss:$8 sps:$4 sm:$0xff]  }
 0x6af   :  { %8924 = vmatprep.subr.bf16.mxu0 %v12083_v38  ;;  %v12143_v38 = vld [vmem:[#allocation9 + $0x184] ss:$8 sps:$4 sm:$0xff]  }
 0x6b2   :  { %8925 = vmatpush1.bf16.msra.mxu0 %v12081_v39  ;;  %v12141_v39 = vld [vmem:[#allocation9 + $0x180] ss:$8 sps:$4 sm:$0xff]  }
 0x6b3   :  { %8926 = vmatprep.subr.bf16.mxu0 %v12086_v40  ;;  %v12146_v40 = vld [vmem:[#allocation9 + $0x194] ss:$8 sps:$4 sm:$0xff]  }
 0x6b6   :  { %8927 = vmatpush1.bf16.msra.mxu0 %v12084_v29  ;;  %v12144_v29 = vld [vmem:[#allocation9 + $0x190] ss:$8 sps:$4 sm:$0xff]  }
 0x6b7   :  { %8928 = vmatprep.subr.bf16.mxu0 %v12089_v42  ;;  %v12149_v42 = vld [vmem:[#allocation9 + $0x1a4] ss:$8 sps:$4 sm:$0xff]  }
 0x6ba   :  { %8929 = vmatpush1.bf16.msra.mxu0 %v12087_v19  ;;  %v12147_v19 = vld [vmem:[#allocation9 + $0x1a0] ss:$8 sps:$4 sm:$0xff]  }
 0x6bb   :  { %8930 = vmatprep.subr.bf16.mxu0 %v12092_v45  ;;  %v12152_v45 = vld [vmem:[#allocation9 + $0x1b4] ss:$8 sps:$4 sm:$0xff]  }
 0x6be   :  { %8931 = vmatpush1.bf16.msra.mxu0 %v12090_v21  ;;  %v12150_v21 = vld [vmem:[#allocation9 + $0x1b0] ss:$8 sps:$4 sm:$0xff]  }
 0x6bf   :  { %8932 = vmatprep.subr.bf16.mxu0 %v12095_v47  ;;  %v12155_v47 = vld [vmem:[#allocation9 + $0x1c4] ss:$8 sps:$4 sm:$0xff]  }
 0x6c2   :  { %8933 = vmatpush1.bf16.msra.mxu0 %v12093_v37  ;;  %v12153_v37 = vld [vmem:[#allocation9 + $0x1c0] ss:$8 sps:$4 sm:$0xff]  }
 0x6c3   :  { %8934 = vmatprep.subr.bf16.mxu0 %v12098_v52  ;;  %v12158_v52 = vld [vmem:[#allocation9 + $0x1d4] ss:$8 sps:$4 sm:$0xff]  }
 0x6c6   :  { %8935 = vmatpush1.bf16.msra.mxu0 %v12096_v53  ;;  %v12156_v53 = vld [vmem:[#allocation9 + $0x1d0] ss:$8 sps:$4 sm:$0xff]  }
 0x6c7   :  { %8936 = vmatprep.subr.bf16.mxu0 %v12101_v55  ;;  %v7700_v55 = vrot.slane %v12696_v44, %v12661_v49 }
 0x6ca   :  { %8937 = vmatpush1.bf16.msra.mxu0 %v12099_v56  ;;  %v12161_v56 = vld [vmem:[#allocation9 + $0x1e4] ss:$8 sps:$4 sm:$0xff]  }
 0x6cb   :  { %8938 = vmatprep.subr.bf16.mxu0 %v12104_v27  ;;  %v12159_v27 = vld [vmem:[#allocation9 + $0x1e0] ss:$8 sps:$4 sm:$0xff]  }
 0x6ce   :  { %8939 = vmatpush1.bf16.msra.mxu0 %v12102_v57 }
 0x6cf   :  { %8940 = vmatprep.subr.bf16.mxu0 %v12107_v63  ;;  %v12164_v63 = vld [vmem:[#allocation9 + $0x1f4] ss:$8 sps:$4 sm:$0xff]  }
 0x6d2   :  { %8941 = vmatpush1.bf16.msra.mxu0 %v12105_v34  ;;  %v12162_v34 = vld [vmem:[#allocation9 + $0x1f0] ss:$8 sps:$4 sm:$0xff]  }
 0x6d3   :  { %8942 = vmatprep.subr.bf16.mxu0 %v12110_v60 }
 0x6d6   :  { %8943 = vmatpush1.bf16.msra.mxu0 %v12108_v0 }
 0x6d7   :  { %8944 = vmatprep.subr.bf16.mxu0 %v12113_v54  ;;  %v115_v54 = vld [vmem:[#allocation10 + $0x4] ss:$8 sm:$0x3] }
 0x6da   :  { %8945 = vmatpush1.bf16.msra.mxu0 %v12111_v2  ;;  %v8593_v2 = vrot.slane %v115_v54, %v12652_v62 }
 0x6db   :  { %8946 = vmatprep.subr.bf16.mxu0 %v12116_v3 }
 0x6de   :  { %8947 = vmatpush1.bf16.msra.mxu0 %v12114_v12 }
 0x6df   :  { %8957 = vmatprep.subr.bf16.mxu0 %v12119_v41 }
 0x774   :  { %v8424_v48 = vpop.f32.mrb[12].mxu0  ;;  %v12704_v15 = vpop.f32.mrb[16].mxu1 }
 0x775   :  { %v10237_v16 = vadd.f32 %v8424_v48, %v7692_v9  ;;  %v8426_v17 = vpop.f32.mrb[13].mxu0  ;;  %v8508_v20 = vpop.f32.mrb[17].mxu1  ;;  %v10239_v57 = vadd.f32 %v12704_v15, %v7700_v55  ;;  %v8589_v9 = vrot.slane %v115_v54, %v12647_v59 }
 0x776   :  { %v10238_v6 = vadd.f32 %v8426_v17, %v7696_v10  ;;  %v10240_v14 = vadd.f32 %v8508_v20, %v7704_v11  ;;  %v8428_v4 = vpop.f32.mrb[14].mxu0  ;;  %v8510_v24 = vpop.f32.mrb[18].mxu1 }
 0x777   :  { %v8513_v23 = vmax.f32 %v10237_v16, 0.0  ;;  %v8429_v25 = vpop.f32.mrb[15].mxu0  ;;  %v8511_v26 = vpop.f32.mrb[19].mxu1  ;;  %v8515_v60 = vmax.f32 %v10239_v57, 0.0 }
 0x778   :  { %v8514_v7 = vmax.f32 %v10238_v6, 0.0  ;;  %v8516_v18 = vmax.f32 %v10240_v14, 0.0 }
 0x779   :  { %v8517_v30 = vpack.c.bf16 %v8513_v23, %v8513_v23  ;;  %v8519_v0 = vpack.c.bf16 %v8515_v60, %v8515_v60 }
 0x77a   :  { %v8518_v58 = vpack.c.bf16 %v8514_v7, %v8514_v7  ;;  %v8520_v50 = vpack.c.bf16 %v8516_v18, %v8516_v18 }
 0x77c   :  { %8948 = vmatprep.mubr.bf16.mxu0 %v8518_v58 }
 0x77d   :  { %8949 = vmatmul.mubr.bf16.vlgmr.msra.gmra.mrb[16].mxu0 %v8517_v30 }
 0x77e   :  { %8958 = vmatpush1.bf16.msra.mxu0 %v12117_v28  ;;  %8989 = vmatprep.mubr.bf16.mxu0 %v8520_v50 }
 0x77f   :  { %8959 = vmatprep.subr.bf16.mxu0 %v12122_v31 }
 0x782   :  { %8960 = vmatpush1.bf16.msra.mxu0 %v12120_v32 }
 0x783   :  { %8961 = vmatprep.subr.bf16.mxu0 %v12125_v43 }
 0x786   :  { %8962 = vmatpush1.bf16.msra.mxu0 %v12123_v1 }
 0x787   :  { %8963 = vmatprep.subr.bf16.mxu0 %v12128_v8 }
 0x78a   :  { %8964 = vmatpush1.bf16.msra.mxu0 %v12126_v5 }
 0x78b   :  { %8965 = vmatprep.subr.bf16.mxu0 %v12131_v22 }
 0x78e   :  { %8966 = vmatpush1.bf16.msra.mxu0 %v12129_v51 }
 0x78f   :  { %8967 = vmatprep.subr.bf16.mxu0 %v12134_v46 }
 0x792   :  { %8968 = vmatpush1.bf16.msra.mxu0 %v12132_v61 }
 0x793   :  { %8969 = vmatprep.subr.bf16.mxu0 %v12137_v33 }
 0x796   :  { %8970 = vmatpush1.bf16.msra.mxu0 %v12135_v35 }
 0x797   :  { %8971 = vmatprep.subr.bf16.mxu0 %v12140_v36 }
 0x79a   :  { %8972 = vmatpush1.bf16.msra.mxu0 %v12138_v13 }
 0x79b   :  { %8973 = vmatprep.subr.bf16.mxu0 %v12143_v38 }
 0x79e   :  { %8974 = vmatpush1.bf16.msra.mxu0 %v12141_v39 }
 0x79f   :  { %8975 = vmatprep.subr.bf16.mxu0 %v12146_v40 }
 0x7a2   :  { %8976 = vmatpush1.bf16.msra.mxu0 %v12144_v29 }
 0x7a3   :  { %8977 = vmatprep.subr.bf16.mxu0 %v12149_v42 }
 0x7a6   :  { %8978 = vmatpush1.bf16.msra.mxu0 %v12147_v19 }
 0x7a7   :  { %8979 = vmatprep.subr.bf16.mxu0 %v12152_v45 }
 0x7aa   :  { %8980 = vmatpush1.bf16.msra.mxu0 %v12150_v21 }
 0x7ab   :  { %8981 = vmatprep.subr.bf16.mxu0 %v12155_v47 }
 0x7ae   :  { %8982 = vmatpush1.bf16.msra.mxu0 %v12153_v37 }
 0x7af   :  { %8983 = vmatprep.subr.bf16.mxu0 %v12158_v52 }
 0x7b2   :  { %8984 = vmatpush1.bf16.msra.mxu0 %v12156_v53 }
 0x7b3   :  { %8985 = vmatprep.subr.bf16.mxu0 %v12161_v56 }
 0x7b6   :  { %8986 = vmatpush1.bf16.msra.mxu0 %v12159_v27 }
 0x7b7   :  { %8987 = vmatprep.subr.bf16.mxu0 %v12164_v63 }
 0x7ba   :  { %8988 = vmatpush1.bf16.msra.mxu0 %v12162_v34 }
 0x7bd   :  { %8990 = vmatmul.mubr.bf16.vlgmr.msra.gmra.mrb[16].mxu0 %v8519_v0 }
 0x890   :  { %v8991_v3 = vpop.f32.mrb[16].mxu0 }
 0x891   :  { %v8993_v49 = vpop.f32.mrb[17].mxu0  ;;  %v10241_v10 = vadd.f32 %v8991_v3, %v8589_v9 }
 0x892   :  { %v10242_v12 = vadd.f32 %v8993_v49, %v8593_v2  ;;  %v8995_v41 = vpop.f32.mrb[18].mxu0 }
 0x893   :  { %v8996_v44 = vpop.f32.mrb[19].mxu0 }
 0x894   :  { %12165 = vtanh.f32 %v10242_v12 }
 0x89e   :  { %v12166_v11 = vpop.eup %12165 }
 0x89f   :  { %v10221_v48 = vpack.c.bf16 %v12166_v11, %v10241_v10 }
 0x8a1   :  { %10222 = vst [vmem:[%s12721_s7] sm:$0xff] %v10221_v48  }
 0x8a2   :  { %9007 = vsyncpa [#allocation3], 1 }
 0x8a3   :  { %9008 = vsyncpa [#allocation5], 1 }
 0x8a4   :  { %9009 = vsyncpa [#allocation8], 1 }
 0x8a5   :  { %9010 = vsyncpa [#allocation11], 1 }

// kernel: neural_network_forward.1
= control target key start
LH: loop header
LB: loop body
LE: loop exit
PB: predicated region body
PF: predicated region fallthrough
CT: control target
= control target key end

     0   :  { %12 = vsyncpa [#allocation3], 0  ;;  %s12714_s0 = inlined_call_operand.vmem [shape: bf16[8,2944], index: 0, kind: input, shape index: {}]   ;;  %s12715_s1 = inlined_call_operand.hbm [shape: bf16[2944,512], index: 1, kind: input, shape index: {}]   ;;  %s12716_s2 = inlined_call_operand.hbm [shape: bf16[512,512], index: 2, kind: input, shape index: {}]   ;;  %s12717_s3 = inlined_call_operand.hbm [shape: bf16[512,512], index: 3, kind: input, shape index: {}]   ;;  %s12718_s4 = inlined_call_operand.hbm [shape: bf16[512,512], index: 4, kind: input, shape index: {}]   ;;  %s12719_s5 = inlined_call_operand.hbm [shape: bf16[512,256], index: 5, kind: input, shape index: {}]   ;;  %s12720_s6 = inlined_call_operand.hbm [shape: f32[8,512], index: 6, kind: input, shape index: {}]   ;;  %s12721_s7 = inlined_call_operand.vmem [shape: bf16[8,256], index: 7, kind: output, shape index: {}]  }
   0x1   :  { %13 = vsyncpa [#allocation5], 0 }
   0x2   :  { %14 = vsyncpa [#allocation8], 0 }
   0x3   :  { %15 = vsyncpa [#allocation11], 0  ;;  %s12307_s24 = smov [#allocation4]   ;;  %s12308_s26 = smov [#allocation7]  }
   0x4   :  { %s35_s25 = sshll.u32 %s12307_s24, 4  ;;  %s59_s27 = sshll.u32 %s12308_s26, 4  ;;  %s36_s25 = int_to_ptr.vmem [resolvable:$true] %s35_s25  ;;  %s12358_s27 = int_to_ptr.vmem [resolvable:$true] %s59_s27 }
   0x5   :  { %s12167_s30 = scalar_lea.hbm %s12716_s2, 16384 }
   0x6   :  { %p12168_p0 = scmp.ne.s32.totalorder %s12716_s2, %s12167_s30  ;;  %p12171_p1 = scmp.lt.u32.totalorder %s12167_s30, %s12716_s2 }
   0x8   :  { %p12173_p2 = pnand %p12171_p1, %p12168_p0 }
   0xa   :  { %12176 = shalt.err (!%p12173_p2)
}
   0xb   :  { %s12177_s12 = scalar_lea.vmem %s36_s25, 16384  ;;  %p12182_p4 = scmp.lt.s32.totalorder %s36_s25, %s36_s25 }
   0xc   :  { %p12178_p3 = scmp.ne.s32.totalorder %s36_s25, %s12177_s12  ;;  %p12183_p5 = scmp.lt.s32.totalorder %s12177_s12, %s12177_s12 }
   0xe   :  { %p12184_p6 = por %p12183_p5, %p12182_p4 }
  0x10   :  { %p12185_p7 = pnand %p12184_p6, %p12178_p3 }
  0x12   :  { %12188 = shalt.err (!%p12185_p7)
}
  0x13   :  { %s12309_s13 = smov 256   ;;  %s12310_s14 = smov 16  }
  0x14   :  { %41 = dma.hbm_to_vmem [thread:$0]  %s12716_s2, 16384, %s36_s25, [#allocation5], %s12309_s13, %s12309_s13, %s12310_s14  }
  0x15   :  { %s12189_s19 = scalar_lea.hbm %s12718_s4, 16384 }
  0x16   :  { %p12190_p8 = scmp.ne.s32.totalorder %s12718_s4, %s12189_s19  ;;  %p12193_p9 = scmp.lt.u32.totalorder %s12189_s19, %s12718_s4 }
  0x18   :  { %p12195_p10 = pnand %p12193_p9, %p12190_p8 }
  0x1a   :  { %12198 = shalt.err (!%p12195_p10)
}
  0x1b   :  { %s12199_s24 = scalar_lea.vmem %s12358_s27, 16384  ;;  %p12204_p12 = scmp.lt.s32.totalorder %s12358_s27, %s12358_s27 }
  0x1c   :  { %p12200_p11 = scmp.ne.s32.totalorder %s12358_s27, %s12199_s24  ;;  %p12205_p13 = scmp.lt.s32.totalorder %s12199_s24, %s12199_s24 }
  0x1e   :  { %p12206_p0 = por %p12205_p13, %p12204_p12 }
  0x20   :  { %p12207_p1 = pnand %p12206_p0, %p12200_p11 }
  0x22   :  { %12210 = shalt.err (!%p12207_p1)
}
  0x23   :  { %65 = dma.hbm_to_vmem [thread:$0]  %s12718_s4, 16384, %s12358_s27, [#allocation8], %s12309_s13, %s12309_s13, %s12310_s14  }
  0x24   :  { %s12311_s26 = smov [#allocation2]   ;;  %s12312_s29 = smov [#allocation6]  }
  0x25   :  { %s23_s28 = sshll.u32 %s12311_s26, 4  ;;  %s47_s30 = sshll.u32 %s12312_s29, 4  ;;  %s24_s28 = int_to_ptr.vmem [resolvable:$true] %s23_s28  ;;  %s12395_s30 = int_to_ptr.vmem [resolvable:$true] %s47_s30 }
  0x26   :  { %s12211_s10 = scalar_lea.hbm %s12715_s1, 94208 }
  0x27   :  { %p12212_p2 = scmp.ne.s32.totalorder %s12715_s1, %s12211_s10  ;;  %p12215_p3 = scmp.lt.u32.totalorder %s12211_s10, %s12715_s1 }
  0x29   :  { %p12217_p4 = pnand %p12215_p3, %p12212_p2 }
  0x2b   :  { %12220 = shalt.err (!%p12217_p4)
}
  0x2c   :  { %s12221_s4 = scalar_lea.vmem %s24_s28, 94208  ;;  %p12226_p6 = scmp.lt.s32.totalorder %s24_s28, %s24_s28 }
  0x2d   :  { %p12222_p5 = scmp.ne.s32.totalorder %s24_s28, %s12221_s4  ;;  %p12227_p7 = scmp.lt.s32.totalorder %s12221_s4, %s12221_s4 }
  0x2f   :  { %p12228_p8 = por %p12227_p7, %p12226_p6 }
  0x31   :  { %p12229_p9 = pnand %p12228_p8, %p12222_p5 }
  0x33   :  { %12232 = shalt.err (!%p12229_p9)
}
  0x34   :  { %29 = dma.hbm_to_vmem [thread:$0]  %s12715_s1, 94208, %s24_s28, [#allocation3], %s12309_s13, %s12309_s13, %s12310_s14  }
  0x35   :  { %s12233_s20 = scalar_lea.hbm %s12717_s3, 16384 }
  0x36   :  { %p12234_p10 = scmp.ne.s32.totalorder %s12717_s3, %s12233_s20  ;;  %p12237_p11 = scmp.lt.u32.totalorder %s12233_s20, %s12717_s3 }
  0x38   :  { %p12239_p12 = pnand %p12237_p11, %p12234_p10 }
  0x3a   :  { %12242 = shalt.err (!%p12239_p12)
}
  0x3b   :  { %s12243_s2 = scalar_lea.vmem %s12395_s30, 16384  ;;  %p12248_p0 = scmp.lt.s32.totalorder %s12395_s30, %s12395_s30 }
  0x3c   :  { %p12244_p13 = scmp.ne.s32.totalorder %s12395_s30, %s12243_s2  ;;  %p12249_p1 = scmp.lt.s32.totalorder %s12243_s2, %s12243_s2 }
  0x3e   :  { %p12250_p2 = por %p12249_p1, %p12248_p0 }
  0x40   :  { %p12251_p3 = pnand %p12250_p2, %p12244_p13 }
  0x42   :  { %12254 = shalt.err (!%p12251_p3)
}
  0x43   :  { %53 = dma.hbm_to_vmem [thread:$0]  %s12717_s3, 16384, %s12395_s30, [#allocation5], %s12309_s13, %s12309_s13, %s12310_s14  }
  0x44   :  { %s12313_s26 = smov [#allocation9]   ;;  %s12255_s9 = scalar_lea.hbm %s12719_s5, 8192 }
  0x45   :  { %s71_s28 = sshll.u32 %s12313_s26, 4  ;;  %p12256_p4 = scmp.ne.s32.totalorder %s12719_s5, %s12255_s9  ;;  %s72_s28 = int_to_ptr.vmem [resolvable:$true] %s71_s28 }
  0x46   :  { %p12259_p5 = scmp.lt.u32.totalorder %s12255_s9, %s12719_s5 }
  0x48   :  { %p12261_p6 = pnand %p12259_p5, %p12256_p4 }
  0x4a   :  { %12264 = shalt.err (!%p12261_p6)
}
  0x4b   :  { %s12265_s16 = scalar_lea.vmem %s72_s28, 8192  ;;  %p12270_p8 = scmp.lt.s32.totalorder %s72_s28, %s72_s28 }
  0x4c   :  { %p12266_p7 = scmp.ne.s32.totalorder %s72_s28, %s12265_s16  ;;  %p12271_p9 = scmp.lt.s32.totalorder %s12265_s16, %s12265_s16 }
  0x4e   :  { %p12272_p10 = por %p12271_p9, %p12270_p8 }
  0x50   :  { %p12273_p11 = pnand %p12272_p10, %p12266_p7 }
  0x52   :  { %12276 = shalt.err (!%p12273_p11)
}
  0x53   :  { %s12314_s3 = smov 128   ;;  %s12315_s13 = smov 8  }
  0x54   :  { %77 = dma.hbm_to_vmem [thread:$0]  %s12719_s5, 8192, %s72_s28, [#allocation8], %s12314_s3, %s12314_s3, %s12315_s13  }
  0x55   :  { %s12316_s4 = smov [#allocation10]   ;;  %s12277_s19 = scalar_lea.hbm %s12720_s6, 512 }
  0x56   :  { %s84_s27 = sshll.u32 %s12316_s4, 4  ;;  %p12278_p12 = scmp.ne.s32.totalorder %s12720_s6, %s12277_s19  ;;  %s85_s27 = int_to_ptr.vmem [resolvable:$true] %s84_s27 }
  0x57   :  { %p12281_p13 = scmp.lt.u32.totalorder %s12277_s19, %s12720_s6 }
  0x59   :  { %p12283_p0 = pnand %p12281_p13, %p12278_p12 }
  0x5b   :  { %12286 = shalt.err (!%p12283_p0)
}
  0x5c   :  { %s12287_s24 = scalar_lea.vmem %s85_s27, 512  ;;  %p12292_p2 = scmp.lt.s32.totalorder %s85_s27, %s85_s27 }
  0x5d   :  { %p12288_p1 = scmp.ne.s32.totalorder %s85_s27, %s12287_s24  ;;  %p12293_p3 = scmp.lt.s32.totalorder %s12287_s24, %s12287_s24 }
  0x5f   :  { %p12294_p4 = por %p12293_p3, %p12292_p2 }
  0x61   :  { %p12295_p5 = pnand %p12294_p4, %p12288_p1 }
  0x63   :  { %12298 = shalt.err (!%p12295_p5)
}
  0x64   :  { %87 = dma.hbm_to_vmem [thread:$0]  %s12720_s6, 512, %s85_s27, [#allocation11]  }
  0x65   :  { %12299 = dma.done.wait [#allocation3], 94208  }
  0x66   :  { %12300 = vsyncadd [#allocation3], 4294873088 }
  0x67   :  { %12301 = dma.done.wait [#allocation5], 32768  }
  0x68   :  { %12302 = vsyncadd [#allocation5], 4294934528 }
  0x69   :  { %12303 = dma.done.wait [#allocation8], 24576  }
  0x6a   :  { %12304 = vsyncadd [#allocation8], 4294942720 }
  0x6b   :  { %12305 = dma.done.wait [#allocation11], 512  }
  0x6c   :  { %12306 = vsyncadd [#allocation11], 4294966784  ;;  %v10366_v0 = vld [vmem:[#allocation2 + $0x4] ss:$16 sps:$4 sm:$0xff]   ;;  %v10370_v2 = vld [vmem:[#allocation2] ss:$16 sps:$4 sm:$0xff]  }
  0x6d   :  { %v10368_v1 = vld [vmem:[#allocation2 + $0x204] ss:$16 sps:$4 sm:$0xff]   ;;  %4646 = vmatprep.subr.bf16.mxu1 %v10366_v0  ;;  %v10371_v3 = vld [vmem:[#allocation2 + $0x200] ss:$16 sps:$4 sm:$0xff]   ;;  %v117_v48 = vld [vmem:[%s12714_s0 + $0x8] sm:$0xff] }
  0x6e   :  { %4687 = vmatprep.subr.bf16.mxu0 %v10368_v1  ;;  %v10372_v4 = vld [vmem:[#allocation2 + $0x24] ss:$16 sps:$4 sm:$0xff]   ;;  %4647 = vmatpush1.bf16.msra.mxu1 %v10370_v2  ;;  %v10376_v6 = vld [vmem:[#allocation2 + $0x20] ss:$16 sps:$4 sm:$0xff]   ;;  %v12464_v51 = vcombine.high %v117_v48, %v117_v48 }
  0x6f   :  { %4688 = vmatpush1.bf16.msra.mxu0 %v10371_v3  ;;  %v10374_v5 = vld [vmem:[#allocation2 + $0x224] ss:$16 sps:$4 sm:$0xff]   ;;  %4648 = vmatprep.subr.bf16.mxu1 %v10372_v4  ;;  %v10377_v7 = vld [vmem:[#allocation2 + $0x220] ss:$16 sps:$4 sm:$0xff]  }
  0x70   :  { %4689 = vmatprep.subr.bf16.mxu0 %v10374_v5  ;;  %v10378_v8 = vld [vmem:[#allocation2 + $0x44] ss:$16 sps:$4 sm:$0xff]   ;;  %v10382_v10 = vld [vmem:[#allocation2 + $0x40] ss:$16 sps:$4 sm:$0xff]   ;;  %4719 = vmatprep.mubr.bf16.mxu0 %v12464_v51  ;;  %v10471_v5 = vld [vmem:[#allocation2 + $0xc] ss:$16 sps:$4 sm:$0xff]  }
  0x71   :  { %v10380_v9 = vld [vmem:[#allocation2 + $0x244] ss:$16 sps:$4 sm:$0xff]   ;;  %v10383_v11 = vld [vmem:[#allocation2 + $0x240] ss:$16 sps:$4 sm:$0xff]  }
  0x72   :  { %4649 = vmatpush1.bf16.msra.mxu1 %v10376_v6  ;;  %v10384_v12 = vld [vmem:[#allocation2 + $0x64] ss:$16 sps:$4 sm:$0xff]   ;;  %v10388_v14 = vld [vmem:[#allocation2 + $0x60] ss:$16 sps:$4 sm:$0xff]  }
  0x73   :  { %4690 = vmatpush1.bf16.msra.mxu0 %v10377_v7  ;;  %4650 = vmatprep.subr.bf16.mxu1 %v10378_v8  ;;  %v10386_v13 = vld [vmem:[#allocation2 + $0x264] ss:$16 sps:$4 sm:$0xff]   ;;  %v10389_v15 = vld [vmem:[#allocation2 + $0x260] ss:$16 sps:$4 sm:$0xff]   ;;  %v12470_v7 = vcombine.low %v117_v48, %v117_v48 }
  0x74   :  { %4691 = vmatprep.subr.bf16.mxu0 %v10380_v9  ;;  %v10390_v16 = vld [vmem:[#allocation2 + $0x84] ss:$16 sps:$4 sm:$0xff]   ;;  %v10394_v18 = vld [vmem:[#allocation2 + $0x80] ss:$16 sps:$4 sm:$0xff]   ;;  %v10469_v9 = vld [vmem:[#allocation2 + $0x8] ss:$16 sps:$4 sm:$0xff]  }
  0x75   :  { %v10392_v17 = vld [vmem:[#allocation2 + $0x284] ss:$16 sps:$4 sm:$0xff]   ;;  %v10395_v19 = vld [vmem:[#allocation2 + $0x280] ss:$16 sps:$4 sm:$0xff]  }
  0x76   :  { %4651 = vmatpush1.bf16.msra.mxu1 %v10382_v10  ;;  %v10396_v20 = vld [vmem:[#allocation2 + $0xa4] ss:$16 sps:$4 sm:$0xff]   ;;  %v10400_v22 = vld [vmem:[#allocation2 + $0xa0] ss:$16 sps:$4 sm:$0xff]  }
  0x77   :  { %4692 = vmatpush1.bf16.msra.mxu0 %v10383_v11  ;;  %4652 = vmatprep.subr.bf16.mxu1 %v10384_v12  ;;  %v10398_v21 = vld [vmem:[#allocation2 + $0x2a4] ss:$16 sps:$4 sm:$0xff]   ;;  %v10401_v23 = vld [vmem:[#allocation2 + $0x2a0] ss:$16 sps:$4 sm:$0xff]   ;;  %v10477_v11 = vld [vmem:[#allocation2 + $0x2c] ss:$16 sps:$4 sm:$0xff]  }
  0x78   :  { %4693 = vmatprep.subr.bf16.mxu0 %v10386_v13  ;;  %v10402_v24 = vld [vmem:[#allocation2 + $0xc4] ss:$16 sps:$4 sm:$0xff]   ;;  %v10406_v26 = vld [vmem:[#allocation2 + $0xc0] ss:$16 sps:$4 sm:$0xff]   ;;  %v10475_v13 = vld [vmem:[#allocation2 + $0x28] ss:$16 sps:$4 sm:$0xff]  }
  0x79   :  { %v10404_v25 = vld [vmem:[#allocation2 + $0x2c4] ss:$16 sps:$4 sm:$0xff]   ;;  %v10407_v27 = vld [vmem:[#allocation2 + $0x2c0] ss:$16 sps:$4 sm:$0xff]  }
  0x7a   :  { %4653 = vmatpush1.bf16.msra.mxu1 %v10388_v14  ;;  %v10408_v28 = vld [vmem:[#allocation2 + $0xe4] ss:$16 sps:$4 sm:$0xff]   ;;  %v10412_v30 = vld [vmem:[#allocation2 + $0xe0] ss:$16 sps:$4 sm:$0xff]  }
  0x7b   :  { %4694 = vmatpush1.bf16.msra.mxu0 %v10389_v15  ;;  %4654 = vmatprep.subr.bf16.mxu1 %v10390_v16  ;;  %v10410_v29 = vld [vmem:[#allocation2 + $0x2e4] ss:$16 sps:$4 sm:$0xff]   ;;  %v10413_v31 = vld [vmem:[#allocation2 + $0x2e0] ss:$16 sps:$4 sm:$0xff]   ;;  %v10483_v15 = vld [vmem:[#allocation2 + $0x4c] ss:$16 sps:$4 sm:$0xff]  }
  0x7c   :  { %4695 = vmatprep.subr.bf16.mxu0 %v10392_v17  ;;  %v10414_v32 = vld [vmem:[#allocation2 + $0x104] ss:$16 sps:$4 sm:$0xff]   ;;  %v10418_v34 = vld [vmem:[#allocation2 + $0x100] ss:$16 sps:$4 sm:$0xff]   ;;  %v10481_v17 = vld [vmem:[#allocation2 + $0x48] ss:$16 sps:$4 sm:$0xff]  }
  0x7d   :  { %v10416_v33 = vld [vmem:[#allocation2 + $0x304] ss:$16 sps:$4 sm:$0xff]   ;;  %v10419_v35 = vld [vmem:[#allocation2 + $0x300] ss:$16 sps:$4 sm:$0xff]  }
  0x7e   :  { %4655 = vmatpush1.bf16.msra.mxu1 %v10394_v18  ;;  %v10420_v36 = vld [vmem:[#allocation2 + $0x124] ss:$16 sps:$4 sm:$0xff]   ;;  %v10424_v38 = vld [vmem:[#allocation2 + $0x120] ss:$16 sps:$4 sm:$0xff]  }
  0x7f   :  { %4696 = vmatpush1.bf16.msra.mxu0 %v10395_v19  ;;  %4656 = vmatprep.subr.bf16.mxu1 %v10396_v20  ;;  %v10422_v37 = vld [vmem:[#allocation2 + $0x324] ss:$16 sps:$4 sm:$0xff]   ;;  %v10425_v39 = vld [vmem:[#allocation2 + $0x320] ss:$16 sps:$4 sm:$0xff]   ;;  %v10489_v19 = vld [vmem:[#allocation2 + $0x6c] ss:$16 sps:$4 sm:$0xff]  }
  0x80   :  { %4697 = vmatprep.subr.bf16.mxu0 %v10398_v21  ;;  %v10426_v40 = vld [vmem:[#allocation2 + $0x144] ss:$16 sps:$4 sm:$0xff]   ;;  %v10430_v42 = vld [vmem:[#allocation2 + $0x140] ss:$16 sps:$4 sm:$0xff]   ;;  %v10487_v21 = vld [vmem:[#allocation2 + $0x68] ss:$16 sps:$4 sm:$0xff]  }
  0x81   :  { %v10428_v41 = vld [vmem:[#allocation2 + $0x344] ss:$16 sps:$4 sm:$0xff]   ;;  %v10431_v43 = vld [vmem:[#allocation2 + $0x340] ss:$16 sps:$4 sm:$0xff]  }
  0x82   :  { %4657 = vmatpush1.bf16.msra.mxu1 %v10400_v22  ;;  %v10432_v44 = vld [vmem:[#allocation2 + $0x164] ss:$16 sps:$4 sm:$0xff]   ;;  %v10436_v49 = vld [vmem:[#allocation2 + $0x160] ss:$16 sps:$4 sm:$0xff]  }
  0x83   :  { %4698 = vmatpush1.bf16.msra.mxu0 %v10401_v23  ;;  %4658 = vmatprep.subr.bf16.mxu1 %v10402_v24  ;;  %v10434_v45 = vld [vmem:[#allocation2 + $0x364] ss:$16 sps:$4 sm:$0xff]   ;;  %v10437_v50 = vld [vmem:[#allocation2 + $0x360] ss:$16 sps:$4 sm:$0xff]   ;;  %v10495_v23 = vld [vmem:[#allocation2 + $0x8c] ss:$16 sps:$4 sm:$0xff]  }
  0x84   :  { %4699 = vmatprep.subr.bf16.mxu0 %v10404_v25  ;;  %v116_v46 = vld [vmem:[%s12714_s0] sm:$0xff]  ;;  %v10493_v25 = vld [vmem:[#allocation2 + $0x88] ss:$16 sps:$4 sm:$0xff]  }
  0x85   :  { %v12459_v47 = vcombine.high %v116_v46, %v116_v46  ;;  %v10438_v52 = vld [vmem:[#allocation2 + $0x184] ss:$16 sps:$4 sm:$0xff]   ;;  %v10442_v54 = vld [vmem:[#allocation2 + $0x180] ss:$16 sps:$4 sm:$0xff]   ;;  %v12468_v6 = vcombine.low %v116_v46, %v116_v46 }
  0x86   :  { %4659 = vmatpush1.bf16.msra.mxu1 %v10406_v26  ;;  %v10440_v53 = vld [vmem:[#allocation2 + $0x384] ss:$16 sps:$4 sm:$0xff]   ;;  %v10443_v55 = vld [vmem:[#allocation2 + $0x380] ss:$16 sps:$4 sm:$0xff]  }
  0x87   :  { %4700 = vmatpush1.bf16.msra.mxu0 %v10407_v27  ;;  %4660 = vmatprep.subr.bf16.mxu1 %v10408_v28  ;;  %v10444_v56 = vld [vmem:[#allocation2 + $0x1a4] ss:$16 sps:$4 sm:$0xff]   ;;  %v10448_v58 = vld [vmem:[#allocation2 + $0x1a0] ss:$16 sps:$4 sm:$0xff]   ;;  %v10501_v27 = vld [vmem:[#allocation2 + $0xac] ss:$16 sps:$4 sm:$0xff]  }
  0x88   :  { %4701 = vmatprep.subr.bf16.mxu0 %v10410_v29  ;;  %4678 = vmatprep.mubr.bf16.mxu1 %v12459_v47  ;;  %v10446_v57 = vld [vmem:[#allocation2 + $0x3a4] ss:$16 sps:$4 sm:$0xff]   ;;  %v10449_v59 = vld [vmem:[#allocation2 + $0x3a0] ss:$16 sps:$4 sm:$0xff]   ;;  %v10499_v29 = vld [vmem:[#allocation2 + $0xa8] ss:$16 sps:$4 sm:$0xff]  }
  0x89   :  { %v10450_v60 = vld [vmem:[#allocation2 + $0x1c4] ss:$16 sps:$4 sm:$0xff]   ;;  %v10454_v62 = vld [vmem:[#allocation2 + $0x1c0] ss:$16 sps:$4 sm:$0xff]  }
  0x8a   :  { %4661 = vmatpush1.bf16.msra.mxu1 %v10412_v30  ;;  %v10452_v61 = vld [vmem:[#allocation2 + $0x3c4] ss:$16 sps:$4 sm:$0xff]   ;;  %v10455_v63 = vld [vmem:[#allocation2 + $0x3c0] ss:$16 sps:$4 sm:$0xff]  }
  0x8b   :  { %4702 = vmatpush1.bf16.msra.mxu0 %v10413_v31  ;;  %4662 = vmatprep.subr.bf16.mxu1 %v10414_v32  ;;  %v10456_v0 = vld [vmem:[#allocation2 + $0x1e4] ss:$16 sps:$4 sm:$0xff]   ;;  %v10460_v2 = vld [vmem:[#allocation2 + $0x1e0] ss:$16 sps:$4 sm:$0xff]   ;;  %v10507_v31 = vld [vmem:[#allocation2 + $0xcc] ss:$16 sps:$4 sm:$0xff]  }
  0x8c   :  { %4703 = vmatprep.subr.bf16.mxu0 %v10416_v33  ;;  %v10458_v1 = vld [vmem:[#allocation2 + $0x3e4] ss:$16 sps:$4 sm:$0xff]   ;;  %v10461_v3 = vld [vmem:[#allocation2 + $0x3e0] ss:$16 sps:$4 sm:$0xff]  }
  0x8d   :  { %v10468_v4 = vld [vmem:[#allocation2 + $0x404] ss:$16 sps:$4 sm:$0xff]   ;;  %v10466_v8 = vld [vmem:[#allocation2 + $0x400] ss:$16 sps:$4 sm:$0xff]  }
  0x8e   :  { %4663 = vmatpush1.bf16.msra.mxu1 %v10418_v34  ;;  %v10474_v10 = vld [vmem:[#allocation2 + $0x424] ss:$16 sps:$4 sm:$0xff]   ;;  %v10472_v12 = vld [vmem:[#allocation2 + $0x420] ss:$16 sps:$4 sm:$0xff]  }
  0x8f   :  { %4704 = vmatpush1.bf16.msra.mxu0 %v10419_v35  ;;  %4664 = vmatprep.subr.bf16.mxu1 %v10420_v36  ;;  %v10480_v14 = vld [vmem:[#allocation2 + $0x444] ss:$16 sps:$4 sm:$0xff]   ;;  %v10478_v16 = vld [vmem:[#allocation2 + $0x440] ss:$16 sps:$4 sm:$0xff]   ;;  %v10505_v35 = vld [vmem:[#allocation2 + $0xc8] ss:$16 sps:$4 sm:$0xff]  }
  0x90   :  { %4705 = vmatprep.subr.bf16.mxu0 %v10422_v37  ;;  %v10486_v18 = vld [vmem:[#allocation2 + $0x464] ss:$16 sps:$4 sm:$0xff]   ;;  %v10484_v20 = vld [vmem:[#allocation2 + $0x460] ss:$16 sps:$4 sm:$0xff]   ;;  %v10513_v37 = vld [vmem:[#allocation2 + $0xec] ss:$16 sps:$4 sm:$0xff]  }
  0x91   :  { %v10492_v22 = vld [vmem:[#allocation2 + $0x484] ss:$16 sps:$4 sm:$0xff]   ;;  %v10490_v24 = vld [vmem:[#allocation2 + $0x480] ss:$16 sps:$4 sm:$0xff]  }
  0x92   :  { %4665 = vmatpush1.bf16.msra.mxu1 %v10424_v38  ;;  %v10498_v26 = vld [vmem:[#allocation2 + $0x4a4] ss:$16 sps:$4 sm:$0xff]   ;;  %v10496_v28 = vld [vmem:[#allocation2 + $0x4a0] ss:$16 sps:$4 sm:$0xff]  }
  0x93   :  { %4706 = vmatpush1.bf16.msra.mxu0 %v10425_v39  ;;  %4666 = vmatprep.subr.bf16.mxu1 %v10426_v40  ;;  %v10504_v30 = vld [vmem:[#allocation2 + $0x4c4] ss:$16 sps:$4 sm:$0xff]   ;;  %v10502_v33 = vld [vmem:[#allocation2 + $0x4c0] ss:$16 sps:$4 sm:$0xff]   ;;  %v10511_v39 = vld [vmem:[#allocation2 + $0xe8] ss:$16 sps:$4 sm:$0xff]  }
  0x94   :  { %4707 = vmatprep.subr.bf16.mxu0 %v10428_v41  ;;  %v12478_v32 = vld [vmem:[%s12714_s0 + $0x10] sm:$0xff]  ;;  %v10519_v41 = vld [vmem:[#allocation2 + $0x10c] ss:$16 sps:$4 sm:$0xff]  }
  0x95   :  { %v12482_v34 = vcombine.high %v12478_v32, %v12478_v32  ;;  %v10510_v36 = vld [vmem:[#allocation2 + $0x4e4] ss:$16 sps:$4 sm:$0xff]   ;;  %v10508_v38 = vld [vmem:[#allocation2 + $0x4e0] ss:$16 sps:$4 sm:$0xff]  }
  0x96   :  { %4667 = vmatpush1.bf16.msra.mxu1 %v10430_v42  ;;  %v10516_v40 = vld [vmem:[#allocation2 + $0x504] ss:$16 sps:$4 sm:$0xff]   ;;  %v10514_v42 = vld [vmem:[#allocation2 + $0x500] ss:$16 sps:$4 sm:$0xff]  }
  0x97   :  { %4708 = vmatpush1.bf16.msra.mxu0 %v10431_v43  ;;  %4668 = vmatprep.subr.bf16.mxu1 %v10432_v44  ;;  %v10517_v43 = vld [vmem:[#allocation2 + $0x108] ss:$16 sps:$4 sm:$0xff]   ;;  %v10522_v44 = vld [vmem:[#allocation2 + $0x524] ss:$16 sps:$4 sm:$0xff]   ;;  %v10520_v46 = vld [vmem:[#allocation2 + $0x520] ss:$16 sps:$4 sm:$0xff]  }
  0x98   :  { %4709 = vmatprep.subr.bf16.mxu0 %v10434_v45  ;;  %v10525_v45 = vld [vmem:[#allocation2 + $0x12c] ss:$16 sps:$4 sm:$0xff]   ;;  %v10528_v48 = vld [vmem:[#allocation2 + $0x544] ss:$16 sps:$4 sm:$0xff]  }
  0x9a   :  { %4669 = vmatpush1.bf16.msra.mxu1 %v10436_v49  ;;  %v10531_v49 = vld [vmem:[#allocation2 + $0x14c] ss:$16 sps:$4 sm:$0xff]  }
  0x9b   :  { %4710 = vmatpush1.bf16.msra.mxu0 %v10437_v50  ;;  %4670 = vmatprep.subr.bf16.mxu1 %v10438_v52  ;;  %v10526_v50 = vld [vmem:[#allocation2 + $0x540] ss:$16 sps:$4 sm:$0xff]   ;;  %v10529_v52 = vld [vmem:[#allocation2 + $0x148] ss:$16 sps:$4 sm:$0xff]  }
  0x9c   :  { %4711 = vmatprep.subr.bf16.mxu0 %v10440_v53  ;;  %v10534_v53 = vld [vmem:[#allocation2 + $0x564] ss:$16 sps:$4 sm:$0xff]  }
  0x9e   :  { %4671 = vmatpush1.bf16.msra.mxu1 %v10442_v54  ;;  %v10537_v54 = vld [vmem:[#allocation2 + $0x16c] ss:$16 sps:$4 sm:$0xff]  }
  0x9f   :  { %4712 = vmatpush1.bf16.msra.mxu0 %v10443_v55  ;;  %4672 = vmatprep.subr.bf16.mxu1 %v10444_v56  ;;  %v10532_v55 = vld [vmem:[#allocation2 + $0x560] ss:$16 sps:$4 sm:$0xff]   ;;  %v10535_v56 = vld [vmem:[#allocation2 + $0x168] ss:$16 sps:$4 sm:$0xff]  }
  0xa0   :  { %4713 = vmatprep.subr.bf16.mxu0 %v10446_v57  ;;  %v10540_v57 = vld [vmem:[#allocation2 + $0x584] ss:$16 sps:$4 sm:$0xff]  }
  0xa2   :  { %4673 = vmatpush1.bf16.msra.mxu1 %v10448_v58  ;;  %v10543_v58 = vld [vmem:[#allocation2 + $0x18c] ss:$16 sps:$4 sm:$0xff]  }
  0xa3   :  { %4714 = vmatpush1.bf16.msra.mxu0 %v10449_v59  ;;  %4674 = vmatprep.subr.bf16.mxu1 %v10450_v60  ;;  %v10538_v59 = vld [vmem:[#allocation2 + $0x580] ss:$16 sps:$4 sm:$0xff]   ;;  %v10541_v60 = vld [vmem:[#allocation2 + $0x188] ss:$16 sps:$4 sm:$0xff]  }
  0xa4   :  { %4715 = vmatprep.subr.bf16.mxu0 %v10452_v61  ;;  %v10546_v61 = vld [vmem:[#allocation2 + $0x5a4] ss:$16 sps:$4 sm:$0xff]  }
  0xa6   :  { %4675 = vmatpush1.bf16.msra.mxu1 %v10454_v62  ;;  %v10549_v62 = vld [vmem:[#allocation2 + $0x1ac] ss:$16 sps:$4 sm:$0xff]  }
  0xa7   :  { %4716 = vmatpush1.bf16.msra.mxu0 %v10455_v63  ;;  %4676 = vmatprep.subr.bf16.mxu1 %v10456_v0  ;;  %v10544_v63 = vld [vmem:[#allocation2 + $0x5a0] ss:$16 sps:$4 sm:$0xff]   ;;  %v10547_v0 = vld [vmem:[#allocation2 + $0x1a8] ss:$16 sps:$4 sm:$0xff]  }
  0xa8   :  { %4717 = vmatprep.subr.bf16.mxu0 %v10458_v1  ;;  %v10552_v1 = vld [vmem:[#allocation2 + $0x5c4] ss:$16 sps:$4 sm:$0xff]  }
  0xaa   :  { %4677 = vmatpush1.bf16.msra.mxu1 %v10460_v2  ;;  %v10555_v2 = vld [vmem:[#allocation2 + $0x1cc] ss:$16 sps:$4 sm:$0xff]  }
  0xab   :  { %4718 = vmatpush1.bf16.msra.mxu0 %v10461_v3  ;;  %5138 = vmatprep.subr.bf16.mxu1 %v10471_v5  ;;  %v10550_v3 = vld [vmem:[#allocation2 + $0x5c0] ss:$16 sps:$4 sm:$0xff]   ;;  %v10558_v5 = vld [vmem:[#allocation2 + $0x5e4] ss:$16 sps:$4 sm:$0xff]  }
  0xac   :  { %4728 = vmatprep.subr.bf16.mxu0 %v10468_v4  ;;  %v10553_v4 = vld [vmem:[#allocation2 + $0x1c8] ss:$16 sps:$4 sm:$0xff]  }
  0xad   :  { %4679 = vmatmul.mubr.bf16.vlgmr.msra.gmra.mrb[0].mxu1 %v12468_v6 }
  0xae   :  { %4720 = vmatmul.mubr.bf16.vlgmr.msra.gmra.mrb[0].mxu0 %v12470_v7  ;;  %5139 = vmatpush1.bf16.msra.mxu1 %v10469_v9  ;;  %v10556_v9 = vld [vmem:[#allocation2 + $0x5e0] ss:$16 sps:$4 sm:$0xff]  }
  0xaf   :  { %4729 = vmatpush1.bf16.msra.mxu0 %v10466_v8  ;;  %5140 = vmatprep.subr.bf16.mxu1 %v10477_v11  ;;  %v10561_v8 = vld [vmem:[#allocation2 + $0x1ec] ss:$16 sps:$4 sm:$0xff]   ;;  %v10566_v11 = vld [vmem:[#allocation2 + $0x604] ss:$16 sps:$4 sm:$0xff]  }
  0xb0   :  { %4730 = vmatprep.subr.bf16.mxu0 %v10474_v10  ;;  %5170 = vmatprep.mubr.bf16.mxu1 %v12459_v47  ;;  %v10523_v47 = vld [vmem:[#allocation2 + $0x128] ss:$16 sps:$4 sm:$0xff]  }
  0xb1   :  { %4760 = vmatprep.mubr.bf16.mxu0 %v12482_v34  ;;  %v10559_v10 = vld [vmem:[#allocation2 + $0x1e8] ss:$16 sps:$4 sm:$0xff]  }
  0xb2   :  { %5141 = vmatpush1.bf16.msra.mxu1 %v10475_v13  ;;  %v12487_v13 = vcombine.low %v12478_v32, %v12478_v32  ;;  %v10591_v32 = vld [vmem:[#allocation2 + $0x288] ss:$16 sps:$4 sm:$0xff]  }
  0xb3   :  { %4731 = vmatpush1.bf16.msra.mxu0 %v10472_v12  ;;  %5142 = vmatprep.subr.bf16.mxu1 %v10483_v15  ;;  %v10569_v12 = vld [vmem:[#allocation2 + $0x20c] ss:$16 sps:$4 sm:$0xff]   ;;  %v10567_v15 = vld [vmem:[#allocation2 + $0x208] ss:$16 sps:$4 sm:$0xff]  }
  0xb4   :  { %4732 = vmatprep.subr.bf16.mxu0 %v10480_v14  ;;  %v10564_v14 = vld [vmem:[#allocation2 + $0x600] ss:$16 sps:$4 sm:$0xff]  }
  0xb6   :  { %5143 = vmatpush1.bf16.msra.mxu1 %v10481_v17  ;;  %v10575_v17 = vld [vmem:[#allocation2 + $0x22c] ss:$16 sps:$4 sm:$0xff]  }
  0xb7   :  { %4733 = vmatpush1.bf16.msra.mxu0 %v10478_v16  ;;  %5144 = vmatprep.subr.bf16.mxu1 %v10489_v19  ;;  %v10572_v16 = vld [vmem:[#allocation2 + $0x624] ss:$16 sps:$4 sm:$0xff]  }
  0xb8   :  { %4734 = vmatprep.subr.bf16.mxu0 %v10486_v18  ;;  %v12492_v18 = vld [vmem:[%s12714_s0 + $0x18] sm:$0xff] }
  0xb9   :  { %v12496_v19 = vcombine.high %v12492_v18, %v12492_v18 }
  0xba   :  { %5145 = vmatpush1.bf16.msra.mxu1 %v10487_v21  ;;  %v10573_v21 = vld [vmem:[#allocation2 + $0x228] ss:$16 sps:$4 sm:$0xff]  }
  0xbb   :  { %4735 = vmatpush1.bf16.msra.mxu0 %v10484_v20  ;;  %5146 = vmatprep.subr.bf16.mxu1 %v10495_v23  ;;  %v10570_v20 = vld [vmem:[#allocation2 + $0x620] ss:$16 sps:$4 sm:$0xff]   ;;  %v10581_v23 = vld [vmem:[#allocation2 + $0x24c] ss:$16 sps:$4 sm:$0xff]  }
  0xbc   :  { %4736 = vmatprep.subr.bf16.mxu0 %v10492_v22  ;;  %v10578_v22 = vld [vmem:[#allocation2 + $0x644] ss:$16 sps:$4 sm:$0xff]  }
  0xbe   :  { %5147 = vmatpush1.bf16.msra.mxu1 %v10493_v25  ;;  %v10579_v25 = vld [vmem:[#allocation2 + $0x248] ss:$16 sps:$4 sm:$0xff]  }
  0xbf   :  { %4737 = vmatpush1.bf16.msra.mxu0 %v10490_v24  ;;  %5148 = vmatprep.subr.bf16.mxu1 %v10501_v27  ;;  %v10576_v24 = vld [vmem:[#allocation2 + $0x640] ss:$16 sps:$4 sm:$0xff]  }
  0xc0   :  { %4738 = vmatprep.subr.bf16.mxu0 %v10498_v26  ;;  %v10584_v26 = vld [vmem:[#allocation2 + $0x664] ss:$16 sps:$4 sm:$0xff]   ;;  %v10582_v27 = vld [vmem:[#allocation2 + $0x660] ss:$16 sps:$4 sm:$0xff]  }
  0xc2   :  { %5149 = vmatpush1.bf16.msra.mxu1 %v10499_v29  ;;  %v10590_v29 = vld [vmem:[#allocation2 + $0x684] ss:$16 sps:$4 sm:$0xff]  }
  0xc3   :  { %4739 = vmatpush1.bf16.msra.mxu0 %v10496_v28  ;;  %5150 = vmatprep.subr.bf16.mxu1 %v10507_v31  ;;  %v10585_v28 = vld [vmem:[#allocation2 + $0x268] ss:$16 sps:$4 sm:$0xff]   ;;  %v10588_v31 = vld [vmem:[#allocation2 + $0x680] ss:$16 sps:$4 sm:$0xff]  }
  0xc4   :  { %4740 = vmatprep.subr.bf16.mxu0 %v10504_v30  ;;  %v10593_v30 = vld [vmem:[#allocation2 + $0x28c] ss:$16 sps:$4 sm:$0xff]  }
  0xc6   :  { %5151 = vmatpush1.bf16.msra.mxu1 %v10505_v35  ;;  %v10594_v35 = vld [vmem:[#allocation2 + $0x6a0] ss:$16 sps:$4 sm:$0xff]  }
  0xc7   :  { %4741 = vmatpush1.bf16.msra.mxu0 %v10502_v33  ;;  %5152 = vmatprep.subr.bf16.mxu1 %v10513_v37  ;;  %v10599_v33 = vld [vmem:[#allocation2 + $0x2ac] ss:$16 sps:$4 sm:$0xff]   ;;  %v10602_v37 = vld [vmem:[#allocation2 + $0x6c4] ss:$16 sps:$4 sm:$0xff]  }
  0xc8   :  { %4742 = vmatprep.subr.bf16.mxu0 %v10510_v36  ;;  %v10597_v36 = vld [vmem:[#allocation2 + $0x2a8] ss:$16 sps:$4 sm:$0xff]  }
  0xca   :  { %5153 = vmatpush1.bf16.msra.mxu1 %v10511_v39  ;;  %v10600_v39 = vld [vmem:[#allocation2 + $0x6c0] ss:$16 sps:$4 sm:$0xff]  }
  0xcb   :  { %4743 = vmatpush1.bf16.msra.mxu0 %v10508_v38  ;;  %5154 = vmatprep.subr.bf16.mxu1 %v10519_v41  ;;  %v10605_v38 = vld [vmem:[#allocation2 + $0x2cc] ss:$16 sps:$4 sm:$0xff]   ;;  %v10608_v41 = vld [vmem:[#allocation2 + $0x6e4] ss:$16 sps:$4 sm:$0xff]  }
  0xcc   :  { %4744 = vmatprep.subr.bf16.mxu0 %v10516_v40  ;;  %v10603_v40 = vld [vmem:[#allocation2 + $0x2c8] ss:$16 sps:$4 sm:$0xff]  }
  0xce   :  { %5155 = vmatpush1.bf16.msra.mxu1 %v10517_v43  ;;  %v10606_v43 = vld [vmem:[#allocation2 + $0x6e0] ss:$16 sps:$4 sm:$0xff]  }
  0xcf   :  { %4745 = vmatpush1.bf16.msra.mxu0 %v10514_v42  ;;  %5156 = vmatprep.subr.bf16.mxu1 %v10525_v45  ;;  %v10611_v42 = vld [vmem:[#allocation2 + $0x2ec] ss:$16 sps:$4 sm:$0xff]   ;;  %v10614_v45 = vld [vmem:[#allocation2 + $0x704] ss:$16 sps:$4 sm:$0xff]  }
  0xd0   :  { %4746 = vmatprep.subr.bf16.mxu0 %v10522_v44  ;;  %v10609_v44 = vld [vmem:[#allocation2 + $0x2e8] ss:$16 sps:$4 sm:$0xff]  }
  0xd2   :  { %5157 = vmatpush1.bf16.msra.mxu1 %v10523_v47  ;;  %v10612_v47 = vld [vmem:[#allocation2 + $0x700] ss:$16 sps:$4 sm:$0xff]  }
  0xd3   :  { %4747 = vmatpush1.bf16.msra.mxu0 %v10520_v46  ;;  %5158 = vmatprep.subr.bf16.mxu1 %v10531_v49  ;;  %v10617_v46 = vld [vmem:[#allocation2 + $0x30c] ss:$16 sps:$4 sm:$0xff]   ;;  %v10620_v49 = vld [vmem:[#allocation2 + $0x724] ss:$16 sps:$4 sm:$0xff]  }
  0xd4   :  { %4748 = vmatprep.subr.bf16.mxu0 %v10528_v48  ;;  %v10615_v48 = vld [vmem:[#allocation2 + $0x308] ss:$16 sps:$4 sm:$0xff]  }
  0xd6   :  { %5159 = vmatpush1.bf16.msra.mxu1 %v10529_v52  ;;  %v10618_v52 = vld [vmem:[#allocation2 + $0x720] ss:$16 sps:$4 sm:$0xff]  }
  0xd7   :  { %4749 = vmatpush1.bf16.msra.mxu0 %v10526_v50  ;;  %5160 = vmatprep.subr.bf16.mxu1 %v10537_v54  ;;  %v10623_v50 = vld [vmem:[#allocation2 + $0x32c] ss:$16 sps:$4 sm:$0xff]   ;;  %v10626_v54 = vld [vmem:[#allocation2 + $0x744] ss:$16 sps:$4 sm:$0xff]  }
  0xd8   :  { %4750 = vmatprep.subr.bf16.mxu0 %v10534_v53  ;;  %v10621_v53 = vld [vmem:[#allocation2 + $0x328] ss:$16 sps:$4 sm:$0xff]  }
  0xda   :  { %5161 = vmatpush1.bf16.msra.mxu1 %v10535_v56  ;;  %v10624_v56 = vld [vmem:[#allocation2 + $0x740] ss:$16 sps:$4 sm:$0xff]  }
  0xdb   :  { %4751 = vmatpush1.bf16.msra.mxu0 %v10532_v55  ;;  %5162 = vmatprep.subr.bf16.mxu1 %v10543_v58  ;;  %v10629_v55 = vld [vmem:[#allocation2 + $0x34c] ss:$16 sps:$4 sm:$0xff]   ;;  %v10632_v58 = vld [vmem:[#allocation2 + $0x764] ss:$16 sps:$4 sm:$0xff]  }
  0xdc   :  { %4752 = vmatprep.subr.bf16.mxu0 %v10540_v57  ;;  %v10627_v57 = vld [vmem:[#allocation2 + $0x348] ss:$16 sps:$4 sm:$0xff]  }
  0xde   :  { %5163 = vmatpush1.bf16.msra.mxu1 %v10541_v60  ;;  %v10630_v60 = vld [vmem:[#allocation2 + $0x760] ss:$16 sps:$4 sm:$0xff]  }
  0xdf   :  { %4753 = vmatpush1.bf16.msra.mxu0 %v10538_v59  ;;  %5164 = vmatprep.subr.bf16.mxu1 %v10549_v62  ;;  %v10635_v59 = vld [vmem:[#allocation2 + $0x36c] ss:$16 sps:$4 sm:$0xff]   ;;  %v10638_v62 = vld [vmem:[#allocation2 + $0x784] ss:$16 sps:$4 sm:$0xff]  }
  0xe0   :  { %4754 = vmatprep.subr.bf16.mxu0 %v10546_v61  ;;  %v10633_v61 = vld [vmem:[#allocation2 + $0x368] ss:$16 sps:$4 sm:$0xff]  }
  0xe2   :  { %5165 = vmatpush1.bf16.msra.mxu1 %v10547_v0  ;;  %v10636_v0 = vld [vmem:[#allocation2 + $0x780] ss:$16 sps:$4 sm:$0xff]  }
  0xe3   :  { %4755 = vmatpush1.bf16.msra.mxu0 %v10544_v63  ;;  %5166 = vmatprep.subr.bf16.mxu1 %v10555_v2  ;;  %v10641_v63 = vld [vmem:[#allocation2 + $0x38c] ss:$16 sps:$4 sm:$0xff]   ;;  %v10644_v2 = vld [vmem:[#allocation2 + $0x7a4] ss:$16 sps:$4 sm:$0xff]  }
  0xe4   :  { %4756 = vmatprep.subr.bf16.mxu0 %v10552_v1  ;;  %v10639_v1 = vld [vmem:[#allocation2 + $0x388] ss:$16 sps:$4 sm:$0xff]  }
  0xe6   :  { %5167 = vmatpush1.bf16.msra.mxu1 %v10553_v4  ;;  %v10642_v4 = vld [vmem:[#allocation2 + $0x7a0] ss:$16 sps:$4 sm:$0xff]  }
  0xe7   :  { %4757 = vmatpush1.bf16.msra.mxu0 %v10550_v3  ;;  %5168 = vmatprep.subr.bf16.mxu1 %v10561_v8  ;;  %v10647_v3 = vld [vmem:[#allocation2 + $0x3ac] ss:$16 sps:$4 sm:$0xff]   ;;  %v10650_v8 = vld [vmem:[#allocation2 + $0x7c4] ss:$16 sps:$4 sm:$0xff]  }
  0xe8   :  { %4758 = vmatprep.subr.bf16.mxu0 %v10558_v5  ;;  %v10645_v5 = vld [vmem:[#allocation2 + $0x3a8] ss:$16 sps:$4 sm:$0xff]  }
  0xea   :  { %5169 = vmatpush1.bf16.msra.mxu1 %v10559_v10  ;;  %v10648_v10 = vld [vmem:[#allocation2 + $0x7c0] ss:$16 sps:$4 sm:$0xff]  }
  0xeb   :  { %4759 = vmatpush1.bf16.msra.mxu0 %v10556_v9  ;;  %5179 = vmatprep.subr.bf16.mxu1 %v10569_v12  ;;  %v10653_v9 = vld [vmem:[#allocation2 + $0x3cc] ss:$16 sps:$4 sm:$0xff]   ;;  %v10656_v12 = vld [vmem:[#allocation2 + $0x7e4] ss:$16 sps:$4 sm:$0xff]  }
  0xec   :  { %4769 = vmatprep.subr.bf16.mxu0 %v10566_v11  ;;  %v10651_v11 = vld [vmem:[#allocation2 + $0x3c8] ss:$16 sps:$4 sm:$0xff]  }
  0xed   :  { %5171 = vmatmul.mubr.bf16.vlgmr.msra.gmra.mrb[4].mxu1 %v12468_v6  ;;  %v10587_v6 = vld [vmem:[#allocation2 + $0x26c] ss:$16 sps:$4 sm:$0xff]  }
  0xee   :  { %4761 = vmatmul.mubr.bf16.vlgmr.msra.gmra.mrb[0].mxu0 %v12487_v13  ;;  %5180 = vmatpush1.bf16.msra.mxu1 %v10567_v15  ;;  %v10654_v15 = vld [vmem:[#allocation2 + $0x7e0] ss:$16 sps:$4 sm:$0xff]  }
  0xef   :  { %4770 = vmatpush1.bf16.msra.mxu0 %v10564_v14  ;;  %5181 = vmatprep.subr.bf16.mxu1 %v10575_v17  ;;  %v10659_v14 = vld [vmem:[#allocation2 + $0x3ec] ss:$16 sps:$4 sm:$0xff]   ;;  %v10664_v17 = vld [vmem:[#allocation2 + $0x804] ss:$16 sps:$4 sm:$0xff]  }
  0xf0   :  { %4771 = vmatprep.subr.bf16.mxu0 %v10572_v16  ;;  %4801 = vmatprep.mubr.bf16.mxu0 %v12496_v19  ;;  %v10657_v16 = vld [vmem:[#allocation2 + $0x3e8] ss:$16 sps:$4 sm:$0xff]  }
  0xf1   :  { %5211 = vmatprep.mubr.bf16.mxu1 %v12464_v51  ;;  %v10596_v51 = vld [vmem:[#allocation2 + $0x6a4] ss:$16 sps:$4 sm:$0xff]  }
  0xf2   :  { %5182 = vmatpush1.bf16.msra.mxu1 %v10573_v21  ;;  %v12504_v21 = vcombine.low %v12492_v18, %v12492_v18  ;;  %v10668_v18 = vld [vmem:[#allocation2 + $0x820] ss:$16 sps:$4 sm:$0xff]  }
  0xf3   :  { %4772 = vmatpush1.bf16.msra.mxu0 %v10570_v20  ;;  %5183 = vmatprep.subr.bf16.mxu1 %v10581_v23  ;;  %v10667_v20 = vld [vmem:[#allocation2 + $0x40c] ss:$16 sps:$4 sm:$0xff]   ;;  %v10662_v23 = vld [vmem:[#allocation2 + $0x800] ss:$16 sps:$4 sm:$0xff]  }
  0xf4   :  { %4773 = vmatprep.subr.bf16.mxu0 %v10578_v22  ;;  %v12509_v22 = vld [vmem:[%s12714_s0 + $0x20] sm:$0xff] }
  0xf6   :  { %5184 = vmatpush1.bf16.msra.mxu1 %v10579_v25  ;;  %v10670_v25 = vld [vmem:[#allocation2 + $0x824] ss:$16 sps:$4 sm:$0xff]  }
  0xf7   :  { %4774 = vmatpush1.bf16.msra.mxu0 %v10576_v24  ;;  %5185 = vmatprep.subr.bf16.mxu1 %v10587_v6  ;;  %v10665_v24 = vld [vmem:[#allocation2 + $0x408] ss:$16 sps:$4 sm:$0xff]   ;;  %v12513_v6 = vcombine.high %v12509_v22, %v12509_v22 }
  0xf8   :  { %4775 = vmatprep.subr.bf16.mxu0 %v10584_v26  ;;  %v10673_v26 = vld [vmem:[#allocation2 + $0x42c] ss:$16 sps:$4 sm:$0xff]  }
  0xfa   :  { %5186 = vmatpush1.bf16.msra.mxu1 %v10585_v28  ;;  %v10676_v28 = vld [vmem:[#allocation2 + $0x844] ss:$16 sps:$4 sm:$0xff]  }
  0xfb   :  { %4776 = vmatpush1.bf16.msra.mxu0 %v10582_v27  ;;  %5187 = vmatprep.subr.bf16.mxu1 %v10593_v30  ;;  %v10671_v27 = vld [vmem:[#allocation2 + $0x428] ss:$16 sps:$4 sm:$0xff]   ;;  %v10674_v30 = vld [vmem:[#allocation2 + $0x840] ss:$16 sps:$4 sm:$0xff]  }
  0xfc   :  { %4777 = vmatprep.subr.bf16.mxu0 %v10590_v29  ;;  %v10679_v29 = vld [vmem:[#allocation2 + $0x44c] ss:$16 sps:$4 sm:$0xff]  }
  0xfe   :  { %5188 = vmatpush1.bf16.msra.mxu1 %v10591_v32  ;;  %v10682_v32 = vld [vmem:[#allocation2 + $0x864] ss:$16 sps:$4 sm:$0xff]  }
  0xff   :  { %4778 = vmatpush1.bf16.msra.mxu0 %v10588_v31  ;;  %5189 = vmatprep.subr.bf16.mxu1 %v10599_v33  ;;  %v10677_v31 = vld [vmem:[#allocation2 + $0x448] ss:$16 sps:$4 sm:$0xff]  }
 0x100   :  { %4779 = vmatprep.subr.bf16.mxu0 %v10596_v51  ;;  %v10680_v51 = vld [vmem:[#allocation2 + $0x860] ss:$16 sps:$4 sm:$0xff]   ;;  %v10683_v33 = vld [vmem:[#allocation2 + $0x468] ss:$16 sps:$4 sm:$0xff]  }
 0x102   :  { %5190 = vmatpush1.bf16.msra.mxu1 %v10597_v36  ;;  %v10691_v36 = vld [vmem:[#allocation2 + $0x48c] ss:$16 sps:$4 sm:$0xff]  }
 0x103   :  { %4780 = vmatpush1.bf16.msra.mxu0 %v10594_v35  ;;  %5191 = vmatprep.subr.bf16.mxu1 %v10605_v38  ;;  %v10688_v35 = vld [vmem:[#allocation2 + $0x884] ss:$16 sps:$4 sm:$0xff]  }
 0x104   :  { %4781 = vmatprep.subr.bf16.mxu0 %v10602_v37  ;;  %v10686_v37 = vld [vmem:[#allocation2 + $0x880] ss:$16 sps:$4 sm:$0xff]   ;;  %v10694_v38 = vld [vmem:[#allocation2 + $0x8a4] ss:$16 sps:$4 sm:$0xff]  }
 0x106   :  { %5192 = vmatpush1.bf16.msra.mxu1 %v10603_v40  ;;  %v10692_v40 = vld [vmem:[#allocation2 + $0x8a0] ss:$16 sps:$4 sm:$0xff]  }
 0x107   :  { %4782 = vmatpush1.bf16.msra.mxu0 %v10600_v39  ;;  %5193 = vmatprep.subr.bf16.mxu1 %v10611_v42  ;;  %v10697_v39 = vld [vmem:[#allocation2 + $0x4ac] ss:$16 sps:$4 sm:$0xff]   ;;  %v10700_v42 = vld [vmem:[#allocation2 + $0x8c4] ss:$16 sps:$4 sm:$0xff]  }
 0x108   :  { %4783 = vmatprep.subr.bf16.mxu0 %v10608_v41  ;;  %v10695_v41 = vld [vmem:[#allocation2 + $0x4a8] ss:$16 sps:$4 sm:$0xff]  }
 0x10a   :  { %5194 = vmatpush1.bf16.msra.mxu1 %v10609_v44  ;;  %v10698_v44 = vld [vmem:[#allocation2 + $0x8c0] ss:$16 sps:$4 sm:$0xff]  }
 0x10b   :  { %4784 = vmatpush1.bf16.msra.mxu0 %v10606_v43  ;;  %5195 = vmatprep.subr.bf16.mxu1 %v10617_v46  ;;  %v10703_v43 = vld [vmem:[#allocation2 + $0x4cc] ss:$16 sps:$4 sm:$0xff]   ;;  %v10706_v46 = vld [vmem:[#allocation2 + $0x8e4] ss:$16 sps:$4 sm:$0xff]  }
 0x10c   :  { %4785 = vmatprep.subr.bf16.mxu0 %v10614_v45  ;;  %v10701_v45 = vld [vmem:[#allocation2 + $0x4c8] ss:$16 sps:$4 sm:$0xff]  }
 0x10e   :  { %5196 = vmatpush1.bf16.msra.mxu1 %v10615_v48  ;;  %v10704_v48 = vld [vmem:[#allocation2 + $0x8e0] ss:$16 sps:$4 sm:$0xff]  }
 0x10f   :  { %4786 = vmatpush1.bf16.msra.mxu0 %v10612_v47  ;;  %5197 = vmatprep.subr.bf16.mxu1 %v10623_v50  ;;  %v10709_v47 = vld [vmem:[#allocation2 + $0x4ec] ss:$16 sps:$4 sm:$0xff]   ;;  %v10712_v50 = vld [vmem:[#allocation2 + $0x904] ss:$16 sps:$4 sm:$0xff]  }
 0x110   :  { %4787 = vmatprep.subr.bf16.mxu0 %v10620_v49  ;;  %v10707_v49 = vld [vmem:[#allocation2 + $0x4e8] ss:$16 sps:$4 sm:$0xff]  }
 0x112   :  { %5198 = vmatpush1.bf16.msra.mxu1 %v10621_v53  ;;  %v10710_v53 = vld [vmem:[#allocation2 + $0x900] ss:$16 sps:$4 sm:$0xff]  }
 0x113   :  { %4788 = vmatpush1.bf16.msra.mxu0 %v10618_v52  ;;  %5199 = vmatprep.subr.bf16.mxu1 %v10629_v55  ;;  %v10715_v52 = vld [vmem:[#allocation2 + $0x50c] ss:$16 sps:$4 sm:$0xff]   ;;  %v10718_v55 = vld [vmem:[#allocation2 + $0x924] ss:$16 sps:$4 sm:$0xff]  }
 0x114   :  { %4789 = vmatprep.subr.bf16.mxu0 %v10626_v54  ;;  %v10713_v54 = vld [vmem:[#allocation2 + $0x508] ss:$16 sps:$4 sm:$0xff]  }
 0x116   :  { %5200 = vmatpush1.bf16.msra.mxu1 %v10627_v57  ;;  %v10716_v57 = vld [vmem:[#allocation2 + $0x920] ss:$16 sps:$4 sm:$0xff]  }
 0x117   :  { %4790 = vmatpush1.bf16.msra.mxu0 %v10624_v56  ;;  %5201 = vmatprep.subr.bf16.mxu1 %v10635_v59  ;;  %v10721_v56 = vld [vmem:[#allocation2 + $0x52c] ss:$16 sps:$4 sm:$0xff]   ;;  %v10724_v59 = vld [vmem:[#allocation2 + $0x944] ss:$16 sps:$4 sm:$0xff]  }
 0x118   :  { %4791 = vmatprep.subr.bf16.mxu0 %v10632_v58  ;;  %v10719_v58 = vld [vmem:[#allocation2 + $0x528] ss:$16 sps:$4 sm:$0xff]  }
 0x11a   :  { %5202 = vmatpush1.bf16.msra.mxu1 %v10633_v61  ;;  %v10722_v61 = vld [vmem:[#allocation2 + $0x940] ss:$16 sps:$4 sm:$0xff]  }
 0x11b   :  { %4792 = vmatpush1.bf16.msra.mxu0 %v10630_v60  ;;  %5203 = vmatprep.subr.bf16.mxu1 %v10641_v63  ;;  %v10727_v60 = vld [vmem:[#allocation2 + $0x54c] ss:$16 sps:$4 sm:$0xff]   ;;  %v10730_v63 = vld [vmem:[#allocation2 + $0x964] ss:$16 sps:$4 sm:$0xff]  }
 0x11c   :  { %4793 = vmatprep.subr.bf16.mxu0 %v10638_v62  ;;  %v10725_v62 = vld [vmem:[#allocation2 + $0x548] ss:$16 sps:$4 sm:$0xff]  }
 0x11e   :  { %5204 = vmatpush1.bf16.msra.mxu1 %v10639_v1  ;;  %v10728_v1 = vld [vmem:[#allocation2 + $0x960] ss:$16 sps:$4 sm:$0xff]  }
 0x11f   :  { %4794 = vmatpush1.bf16.msra.mxu0 %v10636_v0  ;;  %5205 = vmatprep.subr.bf16.mxu1 %v10647_v3  ;;  %v10733_v0 = vld [vmem:[#allocation2 + $0x56c] ss:$16 sps:$4 sm:$0xff]   ;;  %v10736_v3 = vld [vmem:[#allocation2 + $0x984] ss:$16 sps:$4 sm:$0xff]  }
 0x120   :  { %4795 = vmatprep.subr.bf16.mxu0 %v10644_v2  ;;  %v10731_v2 = vld [vmem:[#allocation2 + $0x568] ss:$16 sps:$4 sm:$0xff]  }
 0x122   :  { %5206 = vmatpush1.bf16.msra.mxu1 %v10645_v5  ;;  %v10734_v5 = vld [vmem:[#allocation2 + $0x980] ss:$16 sps:$4 sm:$0xff]  }
 0x123   :  { %4796 = vmatpush1.bf16.msra.mxu0 %v10642_v4  ;;  %5207 = vmatprep.subr.bf16.mxu1 %v10653_v9  ;;  %v10739_v4 = vld [vmem:[#allocation2 + $0x58c] ss:$16 sps:$4 sm:$0xff]   ;;  %v10742_v9 = vld [vmem:[#allocation2 + $0x9a4] ss:$16 sps:$4 sm:$0xff]  }
 0x124   :  { %4797 = vmatprep.subr.bf16.mxu0 %v10650_v8  ;;  %v10737_v8 = vld [vmem:[#allocation2 + $0x588] ss:$16 sps:$4 sm:$0xff]  }
 0x126   :  { %5208 = vmatpush1.bf16.msra.mxu1 %v10651_v11  ;;  %v10740_v11 = vld [vmem:[#allocation2 + $0x9a0] ss:$16 sps:$4 sm:$0xff]  }
 0x127   :  { %4798 = vmatpush1.bf16.msra.mxu0 %v10648_v10  ;;  %5209 = vmatprep.subr.bf16.mxu1 %v10659_v14  ;;  %v10745_v10 = vld [vmem:[#allocation2 + $0x5ac] ss:$16 sps:$4 sm:$0xff]   ;;  %v10748_v14 = vld [vmem:[#allocation2 + $0x9c4] ss:$16 sps:$4 sm:$0xff]  }
 0x128   :  { %4799 = vmatprep.subr.bf16.mxu0 %v10656_v12  ;;  %v10743_v12 = vld [vmem:[#allocation2 + $0x5a8] ss:$16 sps:$4 sm:$0xff]  }
 0x12a   :  { %5210 = vmatpush1.bf16.msra.mxu1 %v10657_v16  ;;  %v10746_v16 = vld [vmem:[#allocation2 + $0x9c0] ss:$16 sps:$4 sm:$0xff]  }
 0x12b   :  { %4800 = vmatpush1.bf16.msra.mxu0 %v10654_v15  ;;  %5220 = vmatprep.subr.bf16.mxu1 %v10667_v20  ;;  %v10751_v15 = vld [vmem:[#allocation2 + $0x5cc] ss:$16 sps:$4 sm:$0xff]   ;;  %v10754_v20 = vld [vmem:[#allocation2 + $0x9e4] ss:$16 sps:$4 sm:$0xff]  }
 0x12c   :  { %4810 = vmatprep.subr.bf16.mxu0 %v10664_v17  ;;  %v10749_v17 = vld [vmem:[#allocation2 + $0x5c8] ss:$16 sps:$4 sm:$0xff]  }
 0x12d   :  { %5212 = vmatmul.mubr.bf16.vlgmr.msra.gmra.mrb[4].mxu1 %v12470_v7  ;;  %v10685_v7 = vld [vmem:[#allocation2 + $0x46c] ss:$16 sps:$4 sm:$0xff]  }
 0x12e   :  { %4802 = vmatmul.mubr.bf16.vlgmr.msra.gmra.mrb[0].mxu0 %v12504_v21  ;;  %5221 = vmatpush1.bf16.msra.mxu1 %v10665_v24  ;;  %v10752_v24 = vld [vmem:[#allocation2 + $0x9e0] ss:$16 sps:$4 sm:$0xff]  }
 0x12f   :  { %4811 = vmatpush1.bf16.msra.mxu0 %v10662_v23  ;;  %5222 = vmatprep.subr.bf16.mxu1 %v10673_v26  ;;  %v10757_v23 = vld [vmem:[#allocation2 + $0x5ec] ss:$16 sps:$4 sm:$0xff]   ;;  %v10762_v26 = vld [vmem:[#allocation2 + $0xa04] ss:$16 sps:$4 sm:$0xff]  }
 0x130   :  { %4812 = vmatprep.subr.bf16.mxu0 %v10670_v25  ;;  %4842 = vmatprep.mubr.bf16.mxu0 %v12513_v6  ;;  %v10755_v25 = vld [vmem:[#allocation2 + $0x5e8] ss:$16 sps:$4 sm:$0xff]  }
 0x131   :  { %5252 = vmatprep.mubr.bf16.mxu1 %v12482_v34  ;;  %v10689_v34 = vld [vmem:[#allocation2 + $0x488] ss:$16 sps:$4 sm:$0xff]  }
 0x132   :  { %5223 = vmatpush1.bf16.msra.mxu1 %v10671_v27  ;;  %v12521_v27 = vcombine.low %v12509_v22, %v12509_v22  ;;  %v10766_v22 = vld [vmem:[#allocation2 + $0xa20] ss:$16 sps:$4 sm:$0xff]  }
 0x133   :  { %4813 = vmatpush1.bf16.msra.mxu0 %v10668_v18  ;;  %5224 = vmatprep.subr.bf16.mxu1 %v10679_v29  ;;  %v10765_v18 = vld [vmem:[#allocation2 + $0x60c] ss:$16 sps:$4 sm:$0xff]  }
 0x134   :  { %4814 = vmatprep.subr.bf16.mxu0 %v10676_v28  ;;  %v10760_v28 = vld [vmem:[#allocation2 + $0xa00] ss:$16 sps:$4 sm:$0xff]   ;;  %v12526_v29 = vld [vmem:[%s12714_s0 + $0x28] sm:$0xff] }
 0x136   :  { %5225 = vmatpush1.bf16.msra.mxu1 %v10677_v31  ;;  %v10768_v31 = vld [vmem:[#allocation2 + $0xa24] ss:$16 sps:$4 sm:$0xff]  }
 0x137   :  { %4815 = vmatpush1.bf16.msra.mxu0 %v10674_v30  ;;  %5226 = vmatprep.subr.bf16.mxu1 %v10685_v7  ;;  %v10763_v30 = vld [vmem:[#allocation2 + $0x608] ss:$16 sps:$4 sm:$0xff]   ;;  %v12530_v7 = vcombine.high %v12526_v29, %v12526_v29 }
 0x138   :  { %4816 = vmatprep.subr.bf16.mxu0 %v10682_v32  ;;  %v10771_v32 = vld [vmem:[#allocation2 + $0x62c] ss:$16 sps:$4 sm:$0xff]  }
 0x13a   :  { %5227 = vmatpush1.bf16.msra.mxu1 %v10683_v33  ;;  %v10774_v33 = vld [vmem:[#allocation2 + $0xa44] ss:$16 sps:$4 sm:$0xff]  }
 0x13b   :  { %4817 = vmatpush1.bf16.msra.mxu0 %v10680_v51  ;;  %5228 = vmatprep.subr.bf16.mxu1 %v10691_v36  ;;  %v10769_v51 = vld [vmem:[#allocation2 + $0x628] ss:$16 sps:$4 sm:$0xff]   ;;  %v10772_v36 = vld [vmem:[#allocation2 + $0xa40] ss:$16 sps:$4 sm:$0xff]  }
 0x13c   :  { %4818 = vmatprep.subr.bf16.mxu0 %v10688_v35  ;;  %v10777_v35 = vld [vmem:[#allocation2 + $0x64c] ss:$16 sps:$4 sm:$0xff]  }
 0x13e   :  { %5229 = vmatpush1.bf16.msra.mxu1 %v10689_v34  ;;  %v10780_v34 = vld [vmem:[#allocation2 + $0xa64] ss:$16 sps:$4 sm:$0xff]  }
 0x13f   :  { %4819 = vmatpush1.bf16.msra.mxu0 %v10686_v37  ;;  %5230 = vmatprep.subr.bf16.mxu1 %v10697_v39  ;;  %v10775_v37 = vld [vmem:[#allocation2 + $0x648] ss:$16 sps:$4 sm:$0xff]  }
 0x140   :  { %4820 = vmatprep.subr.bf16.mxu0 %v10694_v38  ;;  %v10778_v38 = vld [vmem:[#allocation2 + $0xa60] ss:$16 sps:$4 sm:$0xff]   ;;  %v10781_v39 = vld [vmem:[#allocation2 + $0x668] ss:$16 sps:$4 sm:$0xff]  }
 0x142   :  { %5231 = vmatpush1.bf16.msra.mxu1 %v10695_v41  ;;  %v10789_v41 = vld [vmem:[#allocation2 + $0x68c] ss:$16 sps:$4 sm:$0xff]  }
 0x143   :  { %4821 = vmatpush1.bf16.msra.mxu0 %v10692_v40  ;;  %5232 = vmatprep.subr.bf16.mxu1 %v10703_v43  ;;  %v10786_v40 = vld [vmem:[#allocation2 + $0xa84] ss:$16 sps:$4 sm:$0xff]  }
 0x144   :  { %4822 = vmatprep.subr.bf16.mxu0 %v10700_v42  ;;  %v10784_v42 = vld [vmem:[#allocation2 + $0xa80] ss:$16 sps:$4 sm:$0xff]   ;;  %v10792_v43 = vld [vmem:[#allocation2 + $0xaa4] ss:$16 sps:$4 sm:$0xff]  }
 0x146   :  { %5233 = vmatpush1.bf16.msra.mxu1 %v10701_v45  ;;  %v10790_v45 = vld [vmem:[#allocation2 + $0xaa0] ss:$16 sps:$4 sm:$0xff]  }
 0x147   :  { %4823 = vmatpush1.bf16.msra.mxu0 %v10698_v44  ;;  %5234 = vmatprep.subr.bf16.mxu1 %v10709_v47  ;;  %v10795_v44 = vld [vmem:[#allocation2 + $0x6ac] ss:$16 sps:$4 sm:$0xff]   ;;  %v10798_v47 = vld [vmem:[#allocation2 + $0xac4] ss:$16 sps:$4 sm:$0xff]  }
 0x148   :  { %4824 = vmatprep.subr.bf16.mxu0 %v10706_v46  ;;  %v10793_v46 = vld [vmem:[#allocation2 + $0x6a8] ss:$16 sps:$4 sm:$0xff]  }
 0x14a   :  { %5235 = vmatpush1.bf16.msra.mxu1 %v10707_v49 }
 0x14b   :  { %4825 = vmatpush1.bf16.msra.mxu0 %v10704_v48  ;;  %5236 = vmatprep.subr.bf16.mxu1 %v10715_v52  ;;  %v10801_v48 = vld [vmem:[#allocation2 + $0x6cc] ss:$16 sps:$4 sm:$0xff]  }
 0x14c   :  { %4826 = vmatprep.subr.bf16.mxu0 %v10712_v50 }
 0x14e   :  { %5237 = vmatpush1.bf16.msra.mxu1 %v10713_v54  ;;  %v10799_v54 = vld [vmem:[#allocation2 + $0x6c8] ss:$16 sps:$4 sm:$0xff]  }
 0x14f   :  { %4827 = vmatpush1.bf16.msra.mxu0 %v10710_v53  ;;  %5238 = vmatprep.subr.bf16.mxu1 %v10721_v56  ;;  %v10796_v53 = vld [vmem:[#allocation2 + $0xac0] ss:$16 sps:$4 sm:$0xff]   ;;  %v10804_v56 = vld [vmem:[#allocation2 + $0xae4] ss:$16 sps:$4 sm:$0xff]  }
 0x150   :  { %4828 = vmatprep.subr.bf16.mxu0 %v10718_v55 }
 0x152   :  { %5239 = vmatpush1.bf16.msra.mxu1 %v10719_v58  ;;  %v10802_v58 = vld [vmem:[#allocation2 + $0xae0] ss:$16 sps:$4 sm:$0xff]  }
 0x153   :  { %4829 = vmatpush1.bf16.msra.mxu0 %v10716_v57  ;;  %5240 = vmatprep.subr.bf16.mxu1 %v10727_v60  ;;  %v10807_v57 = vld [vmem:[#allocation2 + $0x6ec] ss:$16 sps:$4 sm:$0xff]   ;;  %v10810_v60 = vld [vmem:[#allocation2 + $0xb04] ss:$16 sps:$4 sm:$0xff]  }
 0x154   :  { %4830 = vmatprep.subr.bf16.mxu0 %v10724_v59  ;;  %v10805_v59 = vld [vmem:[#allocation2 + $0x6e8] ss:$16 sps:$4 sm:$0xff]  }
 0x156   :  { %5241 = vmatpush1.bf16.msra.mxu1 %v10725_v62  ;;  %v10808_v62 = vld [vmem:[#allocation2 + $0xb00] ss:$16 sps:$4 sm:$0xff]  }
 0x157   :  { %4831 = vmatpush1.bf16.msra.mxu0 %v10722_v61  ;;  %5242 = vmatprep.subr.bf16.mxu1 %v10733_v0  ;;  %v10813_v61 = vld [vmem:[#allocation2 + $0x70c] ss:$16 sps:$4 sm:$0xff]   ;;  %v10816_v0 = vld [vmem:[#allocation2 + $0xb24] ss:$16 sps:$4 sm:$0xff]  }
 0x158   :  { %4832 = vmatprep.subr.bf16.mxu0 %v10730_v63  ;;  %v10811_v63 = vld [vmem:[#allocation2 + $0x708] ss:$16 sps:$4 sm:$0xff]  }
 0x15a   :  { %5243 = vmatpush1.bf16.msra.mxu1 %v10731_v2  ;;  %v10814_v2 = vld [vmem:[#allocation2 + $0xb20] ss:$16 sps:$4 sm:$0xff]  }
 0x15b   :  { %4833 = vmatpush1.bf16.msra.mxu0 %v10728_v1  ;;  %5244 = vmatprep.subr.bf16.mxu1 %v10739_v4  ;;  %v10819_v1 = vld [vmem:[#allocation2 + $0x72c] ss:$16 sps:$4 sm:$0xff]   ;;  %v10822_v4 = vld [vmem:[#allocation2 + $0xb44] ss:$16 sps:$4 sm:$0xff]  }
 0x15c   :  { %4834 = vmatprep.subr.bf16.mxu0 %v10736_v3  ;;  %v10817_v3 = vld [vmem:[#allocation2 + $0x728] ss:$16 sps:$4 sm:$0xff]  }
 0x15e   :  { %5245 = vmatpush1.bf16.msra.mxu1 %v10737_v8  ;;  %v10820_v8 = vld [vmem:[#allocation2 + $0xb40] ss:$16 sps:$4 sm:$0xff]  }
 0x15f   :  { %4835 = vmatpush1.bf16.msra.mxu0 %v10734_v5  ;;  %5246 = vmatprep.subr.bf16.mxu1 %v10745_v10  ;;  %v10825_v5 = vld [vmem:[#allocation2 + $0x74c] ss:$16 sps:$4 sm:$0xff]   ;;  %v10828_v10 = vld [vmem:[#allocation2 + $0xb64] ss:$16 sps:$4 sm:$0xff]  }
 0x160   :  { %4836 = vmatprep.subr.bf16.mxu0 %v10742_v9  ;;  %v10823_v9 = vld [vmem:[#allocation2 + $0x748] ss:$16 sps:$4 sm:$0xff]  }
 0x162   :  { %5247 = vmatpush1.bf16.msra.mxu1 %v10743_v12  ;;  %v10826_v12 = vld [vmem:[#allocation2 + $0xb60] ss:$16 sps:$4 sm:$0xff]  }
 0x163   :  { %4837 = vmatpush1.bf16.msra.mxu0 %v10740_v11  ;;  %5248 = vmatprep.subr.bf16.mxu1 %v10751_v15  ;;  %v10831_v11 = vld [vmem:[#allocation2 + $0x76c] ss:$16 sps:$4 sm:$0xff]   ;;  %v10834_v15 = vld [vmem:[#allocation2 + $0xb84] ss:$16 sps:$4 sm:$0xff]  }
 0x164   :  { %4838 = vmatprep.subr.bf16.mxu0 %v10748_v14  ;;  %v10829_v14 = vld [vmem:[#allocation2 + $0x768] ss:$16 sps:$4 sm:$0xff]  }
 0x166   :  { %5249 = vmatpush1.bf16.msra.mxu1 %v10749_v17  ;;  %v10832_v17 = vld [vmem:[#allocation2 + $0xb80] ss:$16 sps:$4 sm:$0xff]  }
 0x167   :  { %4839 = vmatpush1.bf16.msra.mxu0 %v10746_v16  ;;  %5250 = vmatprep.subr.bf16.mxu1 %v10757_v23  ;;  %v10837_v16 = vld [vmem:[#allocation2 + $0x78c] ss:$16 sps:$4 sm:$0xff]   ;;  %v10840_v23 = vld [vmem:[#allocation2 + $0xba4] ss:$16 sps:$4 sm:$0xff]  }
 0x168   :  { %4840 = vmatprep.subr.bf16.mxu0 %v10754_v20  ;;  %v10835_v20 = vld [vmem:[#allocation2 + $0x788] ss:$16 sps:$4 sm:$0xff]  }
 0x16a   :  { %5251 = vmatpush1.bf16.msra.mxu1 %v10755_v25  ;;  %v10838_v25 = vld [vmem:[#allocation2 + $0xba0] ss:$16 sps:$4 sm:$0xff]  }
 0x16b   :  { %4841 = vmatpush1.bf16.msra.mxu0 %v10752_v24  ;;  %5261 = vmatprep.subr.bf16.mxu1 %v10765_v18  ;;  %v10843_v24 = vld [vmem:[#allocation2 + $0x7ac] ss:$16 sps:$4 sm:$0xff]   ;;  %v10846_v18 = vld [vmem:[#allocation2 + $0xbc4] ss:$16 sps:$4 sm:$0xff]  }
 0x16c   :  { %4851 = vmatprep.subr.bf16.mxu0 %v10762_v26  ;;  %v10841_v26 = vld [vmem:[#allocation2 + $0x7a8] ss:$16 sps:$4 sm:$0xff]  }
 0x16d   :  { %5253 = vmatmul.mubr.bf16.vlgmr.msra.gmra.mrb[4].mxu1 %v12487_v13  ;;  %v10783_v13 = vld [vmem:[#allocation2 + $0x66c] ss:$16 sps:$4 sm:$0xff]  }
 0x16e   :  { %4843 = vmatmul.mubr.bf16.vlgmr.msra.gmra.mrb[0].mxu0 %v12521_v27  ;;  %5262 = vmatpush1.bf16.msra.mxu1 %v10763_v30  ;;  %v10844_v30 = vld [vmem:[#allocation2 + $0xbc0] ss:$16 sps:$4 sm:$0xff]  }
 0x16f   :  { %4852 = vmatpush1.bf16.msra.mxu0 %v10760_v28  ;;  %5263 = vmatprep.subr.bf16.mxu1 %v10771_v32  ;;  %v10849_v28 = vld [vmem:[#allocation2 + $0x7cc] ss:$16 sps:$4 sm:$0xff]   ;;  %v10852_v32 = vld [vmem:[#allocation2 + $0xbe4] ss:$16 sps:$4 sm:$0xff]  }
 0x170   :  { %4853 = vmatprep.subr.bf16.mxu0 %v10768_v31  ;;  %4883 = vmatprep.mubr.bf16.mxu0 %v12530_v7  ;;  %v10847_v31 = vld [vmem:[#allocation2 + $0x7c8] ss:$16 sps:$4 sm:$0xff]  }
 0x171   :  { %5293 = vmatprep.mubr.bf16.mxu1 %v12496_v19  ;;  %v10787_v19 = vld [vmem:[#allocation2 + $0x688] ss:$16 sps:$4 sm:$0xff]  }
 0x172   :  { %5264 = vmatpush1.bf16.msra.mxu1 %v10769_v51  ;;  %v10850_v51 = vld [vmem:[#allocation2 + $0xbe0] ss:$16 sps:$4 sm:$0xff]  }
 0x173   :  { %4854 = vmatpush1.bf16.msra.mxu0 %v10766_v22  ;;  %5265 = vmatprep.subr.bf16.mxu1 %v10777_v35  ;;  %v10855_v22 = vld [vmem:[#allocation2 + $0x7ec] ss:$16 sps:$4 sm:$0xff]   ;;  %v10860_v35 = vld [vmem:[#allocation2 + $0xc04] ss:$16 sps:$4 sm:$0xff]  }
 0x174   :  { %4855 = vmatprep.subr.bf16.mxu0 %v10774_v33  ;;  %v10853_v33 = vld [vmem:[#allocation2 + $0x7e8] ss:$16 sps:$4 sm:$0xff]  }
 0x176   :  { %5266 = vmatpush1.bf16.msra.mxu1 %v10775_v37  ;;  %v12543_v37 = vld [vmem:[%s12714_s0 + $0x30] sm:$0xff] }
 0x177   :  { %4856 = vmatpush1.bf16.msra.mxu0 %v10772_v36  ;;  %5267 = vmatprep.subr.bf16.mxu1 %v10783_v13  ;;  %v10863_v36 = vld [vmem:[#allocation2 + $0x80c] ss:$16 sps:$4 sm:$0xff]   ;;  %v10858_v13 = vld [vmem:[#allocation2 + $0xc00] ss:$16 sps:$4 sm:$0xff]  }
 0x178   :  { %4857 = vmatprep.subr.bf16.mxu0 %v10780_v34  ;;  %v12547_v34 = vcombine.low %v12526_v29, %v12526_v29  ;;  %v10864_v29 = vld [vmem:[#allocation2 + $0xc20] ss:$16 sps:$4 sm:$0xff]  }
 0x17a   :  { %5268 = vmatpush1.bf16.msra.mxu1 %v10781_v39  ;;  %v10866_v39 = vld [vmem:[#allocation2 + $0xc24] ss:$16 sps:$4 sm:$0xff]  }
 0x17b   :  { %4858 = vmatpush1.bf16.msra.mxu0 %v10778_v38  ;;  %5269 = vmatprep.subr.bf16.mxu1 %v10789_v41  ;;  %v10861_v38 = vld [vmem:[#allocation2 + $0x808] ss:$16 sps:$4 sm:$0xff]   ;;  %v12551_v41 = vcombine.high %v12543_v37, %v12543_v37 }
 0x17c   :  { %4859 = vmatprep.subr.bf16.mxu0 %v10786_v40  ;;  %v10869_v40 = vld [vmem:[#allocation2 + $0x82c] ss:$16 sps:$4 sm:$0xff]  }
 0x17e   :  { %5270 = vmatpush1.bf16.msra.mxu1 %v10787_v19  ;;  %v10872_v19 = vld [vmem:[#allocation2 + $0xc44] ss:$16 sps:$4 sm:$0xff]  }
 0x17f   :  { %4860 = vmatpush1.bf16.msra.mxu0 %v10784_v42  ;;  %5271 = vmatprep.subr.bf16.mxu1 %v10795_v44  ;;  %v10867_v42 = vld [vmem:[#allocation2 + $0x828] ss:$16 sps:$4 sm:$0xff]   ;;  %v10870_v44 = vld [vmem:[#allocation2 + $0xc40] ss:$16 sps:$4 sm:$0xff]  }
 0x180   :  { %4861 = vmatprep.subr.bf16.mxu0 %v10792_v43  ;;  %v12536_v49 = vpop.f32.mrb[0].mxu1  ;;  %v10875_v43 = vld [vmem:[#allocation2 + $0x84c] ss:$16 sps:$4 sm:$0xff]  }
 0x181   :  { %v12538_v50 = vpop.f32.mrb[1].mxu1 }
 0x182   :  { %v4684_v52 = vpop.f32.mrb[2].mxu1  ;;  %5272 = vmatpush1.bf16.msra.mxu1 %v10793_v46  ;;  %v10878_v46 = vld [vmem:[#allocation2 + $0xc64] ss:$16 sps:$4 sm:$0xff]  }
 0x183   :  { %4862 = vmatpush1.bf16.msra.mxu0 %v10790_v45  ;;  %v4685_v55 = vpop.f32.mrb[3].mxu1  ;;  %5273 = vmatprep.subr.bf16.mxu1 %v10801_v48  ;;  %v10873_v45 = vld [vmem:[#allocation2 + $0x848] ss:$16 sps:$4 sm:$0xff]   ;;  %v10884_v52 = vld [vmem:[#allocation2 + $0xc84] ss:$16 sps:$4 sm:$0xff]  }
 0x184   :  { %4863 = vmatprep.subr.bf16.mxu0 %v10798_v47  ;;  %v10876_v47 = vld [vmem:[#allocation2 + $0xc60] ss:$16 sps:$4 sm:$0xff]   ;;  %v10879_v48 = vld [vmem:[#allocation2 + $0x868] ss:$16 sps:$4 sm:$0xff]   ;;  %v10890_v55 = vld [vmem:[#allocation2 + $0xca4] ss:$16 sps:$4 sm:$0xff]  }
 0x186   :  { %5274 = vmatpush1.bf16.msra.mxu1 %v10799_v54  ;;  %v10882_v54 = vld [vmem:[#allocation2 + $0xc80] ss:$16 sps:$4 sm:$0xff]  }
 0x187   :  { %4864 = vmatpush1.bf16.msra.mxu0 %v10796_v53  ;;  %5275 = vmatprep.subr.bf16.mxu1 %v10807_v57  ;;  %v10887_v53 = vld [vmem:[#allocation2 + $0x88c] ss:$16 sps:$4 sm:$0xff]   ;;  %v10888_v57 = vld [vmem:[#allocation2 + $0xca0] ss:$16 sps:$4 sm:$0xff]  }
 0x188   :  { %4865 = vmatprep.subr.bf16.mxu0 %v10804_v56  ;;  %v10893_v56 = vld [vmem:[#allocation2 + $0x8ac] ss:$16 sps:$4 sm:$0xff]  }
 0x18a   :  { %5276 = vmatpush1.bf16.msra.mxu1 %v10805_v59  ;;  %v10896_v59 = vld [vmem:[#allocation2 + $0xcc4] ss:$16 sps:$4 sm:$0xff]  }
 0x18b   :  { %4866 = vmatpush1.bf16.msra.mxu0 %v10802_v58  ;;  %5277 = vmatprep.subr.bf16.mxu1 %v10813_v61  ;;  %v10891_v58 = vld [vmem:[#allocation2 + $0x8a8] ss:$16 sps:$4 sm:$0xff]   ;;  %v10894_v61 = vld [vmem:[#allocation2 + $0xcc0] ss:$16 sps:$4 sm:$0xff]  }
 0x18c   :  { %4867 = vmatprep.subr.bf16.mxu0 %v10810_v60  ;;  %v10899_v60 = vld [vmem:[#allocation2 + $0x8cc] ss:$16 sps:$4 sm:$0xff]  }
 0x18e   :  { %5278 = vmatpush1.bf16.msra.mxu1 %v10811_v63  ;;  %v10902_v63 = vld [vmem:[#allocation2 + $0xce4] ss:$16 sps:$4 sm:$0xff]  }
 0x18f   :  { %4868 = vmatpush1.bf16.msra.mxu0 %v10808_v62  ;;  %5279 = vmatprep.subr.bf16.mxu1 %v10819_v1  ;;  %v10897_v62 = vld [vmem:[#allocation2 + $0x8c8] ss:$16 sps:$4 sm:$0xff]   ;;  %v10900_v1 = vld [vmem:[#allocation2 + $0xce0] ss:$16 sps:$4 sm:$0xff]  }
 0x190   :  { %4869 = vmatprep.subr.bf16.mxu0 %v10816_v0  ;;  %v10905_v0 = vld [vmem:[#allocation2 + $0x8ec] ss:$16 sps:$4 sm:$0xff]  }
 0x192   :  { %5280 = vmatpush1.bf16.msra.mxu1 %v10817_v3  ;;  %v10908_v3 = vld [vmem:[#allocation2 + $0xd04] ss:$16 sps:$4 sm:$0xff]  }
 0x193   :  { %4870 = vmatpush1.bf16.msra.mxu0 %v10814_v2  ;;  %5281 = vmatprep.subr.bf16.mxu1 %v10825_v5  ;;  %v10903_v2 = vld [vmem:[#allocation2 + $0x8e8] ss:$16 sps:$4 sm:$0xff]   ;;  %v10906_v5 = vld [vmem:[#allocation2 + $0xd00] ss:$16 sps:$4 sm:$0xff]  }
 0x194   :  { %4871 = vmatprep.subr.bf16.mxu0 %v10822_v4  ;;  %v10911_v4 = vld [vmem:[#allocation2 + $0x90c] ss:$16 sps:$4 sm:$0xff]  }
 0x196   :  { %5282 = vmatpush1.bf16.msra.mxu1 %v10823_v9  ;;  %v10914_v9 = vld [vmem:[#allocation2 + $0xd24] ss:$16 sps:$4 sm:$0xff]  }
 0x197   :  { %4872 = vmatpush1.bf16.msra.mxu0 %v10820_v8  ;;  %5283 = vmatprep.subr.bf16.mxu1 %v10831_v11  ;;  %v10909_v8 = vld [vmem:[#allocation2 + $0x908] ss:$16 sps:$4 sm:$0xff]   ;;  %v10912_v11 = vld [vmem:[#allocation2 + $0xd20] ss:$16 sps:$4 sm:$0xff]  }
 0x198   :  { %4873 = vmatprep.subr.bf16.mxu0 %v10828_v10  ;;  %v10917_v10 = vld [vmem:[#allocation2 + $0x92c] ss:$16 sps:$4 sm:$0xff]  }
 0x19a   :  { %5284 = vmatpush1.bf16.msra.mxu1 %v10829_v14  ;;  %v10920_v14 = vld [vmem:[#allocation2 + $0xd44] ss:$16 sps:$4 sm:$0xff]  }
 0x19b   :  { %4874 = vmatpush1.bf16.msra.mxu0 %v10826_v12  ;;  %5285 = vmatprep.subr.bf16.mxu1 %v10837_v16  ;;  %v10915_v12 = vld [vmem:[#allocation2 + $0x928] ss:$16 sps:$4 sm:$0xff]   ;;  %v10918_v16 = vld [vmem:[#allocation2 + $0xd40] ss:$16 sps:$4 sm:$0xff]  }
 0x19c   :  { %4875 = vmatprep.subr.bf16.mxu0 %v10834_v15  ;;  %v10923_v15 = vld [vmem:[#allocation2 + $0x94c] ss:$16 sps:$4 sm:$0xff]  }
 0x19e   :  { %5286 = vmatpush1.bf16.msra.mxu1 %v10835_v20  ;;  %v10926_v20 = vld [vmem:[#allocation2 + $0xd64] ss:$16 sps:$4 sm:$0xff]  }
 0x19f   :  { %4876 = vmatpush1.bf16.msra.mxu0 %v10832_v17  ;;  %5287 = vmatprep.subr.bf16.mxu1 %v10843_v24  ;;  %v10921_v17 = vld [vmem:[#allocation2 + $0x948] ss:$16 sps:$4 sm:$0xff]   ;;  %v10924_v24 = vld [vmem:[#allocation2 + $0xd60] ss:$16 sps:$4 sm:$0xff]  }
 0x1a0   :  { %4877 = vmatprep.subr.bf16.mxu0 %v10840_v23  ;;  %v10929_v23 = vld [vmem:[#allocation2 + $0x96c] ss:$16 sps:$4 sm:$0xff]  }
 0x1a2   :  { %5288 = vmatpush1.bf16.msra.mxu1 %v10841_v26  ;;  %v10932_v26 = vld [vmem:[#allocation2 + $0xd84] ss:$16 sps:$4 sm:$0xff]  }
 0x1a3   :  { %4878 = vmatpush1.bf16.msra.mxu0 %v10838_v25  ;;  %5289 = vmatprep.subr.bf16.mxu1 %v10849_v28  ;;  %v10927_v25 = vld [vmem:[#allocation2 + $0x968] ss:$16 sps:$4 sm:$0xff]   ;;  %v10930_v28 = vld [vmem:[#allocation2 + $0xd80] ss:$16 sps:$4 sm:$0xff]  }
 0x1a4   :  { %4879 = vmatprep.subr.bf16.mxu0 %v10846_v18  ;;  %v10935_v18 = vld [vmem:[#allocation2 + $0x98c] ss:$16 sps:$4 sm:$0xff]  }
 0x1a6   :  { %5290 = vmatpush1.bf16.msra.mxu1 %v10847_v31  ;;  %v10938_v31 = vld [vmem:[#allocation2 + $0xda4] ss:$16 sps:$4 sm:$0xff]  }
 0x1a7   :  { %4880 = vmatpush1.bf16.msra.mxu0 %v10844_v30  ;;  %5291 = vmatprep.subr.bf16.mxu1 %v10855_v22  ;;  %v10933_v30 = vld [vmem:[#allocation2 + $0x988] ss:$16 sps:$4 sm:$0xff]   ;;  %v10936_v22 = vld [vmem:[#allocation2 + $0xda0] ss:$16 sps:$4 sm:$0xff]  }
 0x1a8   :  { %4881 = vmatprep.subr.bf16.mxu0 %v10852_v32  ;;  %v10941_v32 = vld [vmem:[#allocation2 + $0x9ac] ss:$16 sps:$4 sm:$0xff]  }
 0x1aa   :  { %5292 = vmatpush1.bf16.msra.mxu1 %v10853_v33  ;;  %v10944_v33 = vld [vmem:[#allocation2 + $0xdc4] ss:$16 sps:$4 sm:$0xff]  }
 0x1ab   :  { %4882 = vmatpush1.bf16.msra.mxu0 %v10850_v51  ;;  %5302 = vmatprep.subr.bf16.mxu1 %v10863_v36  ;;  %v10939_v51 = vld [vmem:[#allocation2 + $0x9a8] ss:$16 sps:$4 sm:$0xff]   ;;  %v10942_v36 = vld [vmem:[#allocation2 + $0xdc0] ss:$16 sps:$4 sm:$0xff]  }
 0x1ac   :  { %4892 = vmatprep.subr.bf16.mxu0 %v10860_v35  ;;  %v10947_v35 = vld [vmem:[#allocation2 + $0x9cc] ss:$16 sps:$4 sm:$0xff]  }
 0x1ad   :  { %5294 = vmatmul.mubr.bf16.vlgmr.msra.gmra.mrb[4].mxu1 %v12504_v21  ;;  %v10881_v21 = vld [vmem:[#allocation2 + $0x86c] ss:$16 sps:$4 sm:$0xff]  }
 0x1ae   :  { %4884 = vmatmul.mubr.bf16.vlgmr.msra.gmra.mrb[0].mxu0 %v12547_v34  ;;  %5303 = vmatpush1.bf16.msra.mxu1 %v10861_v38  ;;  %v10950_v38 = vld [vmem:[#allocation2 + $0xde4] ss:$16 sps:$4 sm:$0xff]  }
 0x1af   :  { %4893 = vmatpush1.bf16.msra.mxu0 %v10858_v13  ;;  %5304 = vmatprep.subr.bf16.mxu1 %v10869_v40  ;;  %v10945_v13 = vld [vmem:[#allocation2 + $0x9c8] ss:$16 sps:$4 sm:$0xff]   ;;  %v10948_v40 = vld [vmem:[#allocation2 + $0xde0] ss:$16 sps:$4 sm:$0xff]  }
 0x1b0   :  { %4894 = vmatprep.subr.bf16.mxu0 %v10866_v39  ;;  %4924 = vmatprep.mubr.bf16.mxu0 %v12551_v41  ;;  %v10953_v39 = vld [vmem:[#allocation2 + $0x9ec] ss:$16 sps:$4 sm:$0xff]  }
 0x1b1   :  { %5334 = vmatprep.mubr.bf16.mxu1 %v12513_v6  ;;  %v10885_v6 = vld [vmem:[#allocation2 + $0x888] ss:$16 sps:$4 sm:$0xff]  }
 0x1b2   :  { %5305 = vmatpush1.bf16.msra.mxu1 %v10867_v42  ;;  %v10958_v42 = vld [vmem:[#allocation2 + $0xe04] ss:$16 sps:$4 sm:$0xff]  }
 0x1b3   :  { %4895 = vmatpush1.bf16.msra.mxu0 %v10864_v29  ;;  %5306 = vmatprep.subr.bf16.mxu1 %v10875_v43  ;;  %v10951_v29 = vld [vmem:[#allocation2 + $0x9e8] ss:$16 sps:$4 sm:$0xff]  }
 0x1b4   :  { %4896 = vmatprep.subr.bf16.mxu0 %v10872_v19  ;;  %v10961_v19 = vld [vmem:[#allocation2 + $0xa0c] ss:$16 sps:$4 sm:$0xff]  }
 0x1b5   :  { %v12560_v43 = vld [vmem:[%s12714_s0 + $0x38] sm:$0xff] }
 0x1b6   :  { %5307 = vmatpush1.bf16.msra.mxu1 %v10873_v45  ;;  %v10956_v45 = vld [vmem:[#allocation2 + $0xe00] ss:$16 sps:$4 sm:$0xff]  }
 0x1b7   :  { %4897 = vmatpush1.bf16.msra.mxu0 %v10870_v44  ;;  %5308 = vmatprep.subr.bf16.mxu1 %v10881_v21  ;;  %v12564_v44 = vcombine.low %v12543_v37, %v12543_v37  ;;  %v10964_v21 = vld [vmem:[#allocation2 + $0xe24] ss:$16 sps:$4 sm:$0xff]   ;;  %v10962_v37 = vld [vmem:[#allocation2 + $0xe20] ss:$16 sps:$4 sm:$0xff]  }
 0x1b8   :  { %4898 = vmatprep.subr.bf16.mxu0 %v10878_v46  ;;  %v10959_v46 = vld [vmem:[#allocation2 + $0xa08] ss:$16 sps:$4 sm:$0xff]  }
 0x1ba   :  { %5309 = vmatpush1.bf16.msra.mxu1 %v10879_v48  ;;  %v12568_v48 = vcombine.high %v12560_v43, %v12560_v43 }
 0x1bb   :  { %4899 = vmatpush1.bf16.msra.mxu0 %v10876_v47  ;;  %5310 = vmatprep.subr.bf16.mxu1 %v10887_v53  ;;  %v10967_v47 = vld [vmem:[#allocation2 + $0xa2c] ss:$16 sps:$4 sm:$0xff]   ;;  %v10970_v53 = vld [vmem:[#allocation2 + $0xe44] ss:$16 sps:$4 sm:$0xff]  }
 0x1bc   :  { %4900 = vmatprep.subr.bf16.mxu0 %v10884_v52  ;;  %v10965_v52 = vld [vmem:[#allocation2 + $0xa28] ss:$16 sps:$4 sm:$0xff]  }
 0x1be   :  { %5311 = vmatpush1.bf16.msra.mxu1 %v10885_v6  ;;  %v10968_v6 = vld [vmem:[#allocation2 + $0xe40] ss:$16 sps:$4 sm:$0xff]  }
 0x1bf   :  { %4901 = vmatpush1.bf16.msra.mxu0 %v10882_v54  ;;  %5312 = vmatprep.subr.bf16.mxu1 %v10893_v56  ;;  %v10973_v54 = vld [vmem:[#allocation2 + $0xa4c] ss:$16 sps:$4 sm:$0xff]   ;;  %v10976_v56 = vld [vmem:[#allocation2 + $0xe64] ss:$16 sps:$4 sm:$0xff]  }
 0x1c0   :  { %4902 = vmatprep.subr.bf16.mxu0 %v10890_v55  ;;  %v10971_v55 = vld [vmem:[#allocation2 + $0xa48] ss:$16 sps:$4 sm:$0xff]  }
 0x1c2   :  { %5313 = vmatpush1.bf16.msra.mxu1 %v10891_v58  ;;  %v10977_v58 = vld [vmem:[#allocation2 + $0xa68] ss:$16 sps:$4 sm:$0xff]  }
 0x1c3   :  { %4903 = vmatpush1.bf16.msra.mxu0 %v10888_v57  ;;  %5314 = vmatprep.subr.bf16.mxu1 %v10899_v60  ;;  %v10974_v57 = vld [vmem:[#allocation2 + $0xe60] ss:$16 sps:$4 sm:$0xff]   ;;  %v10985_v60 = vld [vmem:[#allocation2 + $0xa8c] ss:$16 sps:$4 sm:$0xff]  }
 0x1c4   :  { %4904 = vmatprep.subr.bf16.mxu0 %v10896_v59  ;;  %v10982_v59 = vld [vmem:[#allocation2 + $0xe84] ss:$16 sps:$4 sm:$0xff]  }
 0x1c6   :  { %5315 = vmatpush1.bf16.msra.mxu1 %v10897_v62  ;;  %v10988_v62 = vld [vmem:[#allocation2 + $0xea4] ss:$16 sps:$4 sm:$0xff]  }
 0x1c7   :  { %4905 = vmatpush1.bf16.msra.mxu0 %v10894_v61  ;;  %5316 = vmatprep.subr.bf16.mxu1 %v10905_v0  ;;  %v10980_v61 = vld [vmem:[#allocation2 + $0xe80] ss:$16 sps:$4 sm:$0xff]  }
 0x1c8   :  { %4906 = vmatprep.subr.bf16.mxu0 %v10902_v63  ;;  %v10991_v63 = vld [vmem:[#allocation2 + $0xaac] ss:$16 sps:$4 sm:$0xff]   ;;  %v10986_v0 = vld [vmem:[#allocation2 + $0xea0] ss:$16 sps:$4 sm:$0xff]  }
 0x1ca   :  { %5317 = vmatpush1.bf16.msra.mxu1 %v10903_v2  ;;  %v10994_v2 = vld [vmem:[#allocation2 + $0xec4] ss:$16 sps:$4 sm:$0xff]  }
 0x1cb   :  { %4907 = vmatpush1.bf16.msra.mxu0 %v10900_v1  ;;  %5318 = vmatprep.subr.bf16.mxu1 %v10911_v4  ;;  %v10989_v1 = vld [vmem:[#allocation2 + $0xaa8] ss:$16 sps:$4 sm:$0xff]   ;;  %v10992_v4 = vld [vmem:[#allocation2 + $0xec0] ss:$16 sps:$4 sm:$0xff]  }
 0x1cc   :  { %4908 = vmatprep.subr.bf16.mxu0 %v10908_v3  ;;  %v10997_v3 = vld [vmem:[#allocation2 + $0xacc] ss:$16 sps:$4 sm:$0xff]  }
 0x1ce   :  { %5319 = vmatpush1.bf16.msra.mxu1 %v10909_v8  ;;  %v11000_v8 = vld [vmem:[#allocation2 + $0xee4] ss:$16 sps:$4 sm:$0xff]  }
 0x1cf   :  { %4909 = vmatpush1.bf16.msra.mxu0 %v10906_v5  ;;  %5320 = vmatprep.subr.bf16.mxu1 %v10917_v10  ;;  %v10995_v5 = vld [vmem:[#allocation2 + $0xac8] ss:$16 sps:$4 sm:$0xff]   ;;  %v10998_v10 = vld [vmem:[#allocation2 + $0xee0] ss:$16 sps:$4 sm:$0xff]  }
 0x1d0   :  { %4910 = vmatprep.subr.bf16.mxu0 %v10914_v9  ;;  %v11003_v9 = vld [vmem:[#allocation2 + $0xaec] ss:$16 sps:$4 sm:$0xff]  }
 0x1d2   :  { %5321 = vmatpush1.bf16.msra.mxu1 %v10915_v12  ;;  %v11006_v12 = vld [vmem:[#allocation2 + $0xf04] ss:$16 sps:$4 sm:$0xff]  }
 0x1d3   :  { %4911 = vmatpush1.bf16.msra.mxu0 %v10912_v11  ;;  %5322 = vmatprep.subr.bf16.mxu1 %v10923_v15  ;;  %v11001_v11 = vld [vmem:[#allocation2 + $0xae8] ss:$16 sps:$4 sm:$0xff]   ;;  %v11004_v15 = vld [vmem:[#allocation2 + $0xf00] ss:$16 sps:$4 sm:$0xff]  }
 0x1d4   :  { %4912 = vmatprep.subr.bf16.mxu0 %v10920_v14  ;;  %v11009_v14 = vld [vmem:[#allocation2 + $0xb0c] ss:$16 sps:$4 sm:$0xff]  }
 0x1d6   :  { %5323 = vmatpush1.bf16.msra.mxu1 %v10921_v17  ;;  %v11012_v17 = vld [vmem:[#allocation2 + $0xf24] ss:$16 sps:$4 sm:$0xff]  }
 0x1d7   :  { %4913 = vmatpush1.bf16.msra.mxu0 %v10918_v16  ;;  %5324 = vmatprep.subr.bf16.mxu1 %v10929_v23  ;;  %v11007_v16 = vld [vmem:[#allocation2 + $0xb08] ss:$16 sps:$4 sm:$0xff]   ;;  %v11010_v23 = vld [vmem:[#allocation2 + $0xf20] ss:$16 sps:$4 sm:$0xff]  }
 0x1d8   :  { %4914 = vmatprep.subr.bf16.mxu0 %v10926_v20  ;;  %v11015_v20 = vld [vmem:[#allocation2 + $0xb2c] ss:$16 sps:$4 sm:$0xff]  }
 0x1da   :  { %5325 = vmatpush1.bf16.msra.mxu1 %v10927_v25  ;;  %v11018_v25 = vld [vmem:[#allocation2 + $0xf44] ss:$16 sps:$4 sm:$0xff]  }
 0x1db   :  { %4915 = vmatpush1.bf16.msra.mxu0 %v10924_v24  ;;  %5326 = vmatprep.subr.bf16.mxu1 %v10935_v18  ;;  %v11013_v24 = vld [vmem:[#allocation2 + $0xb28] ss:$16 sps:$4 sm:$0xff]   ;;  %v11016_v18 = vld [vmem:[#allocation2 + $0xf40] ss:$16 sps:$4 sm:$0xff]  }
 0x1dc   :  { %4916 = vmatprep.subr.bf16.mxu0 %v10932_v26  ;;  %v11021_v26 = vld [vmem:[#allocation2 + $0xb4c] ss:$16 sps:$4 sm:$0xff]  }
 0x1de   :  { %5327 = vmatpush1.bf16.msra.mxu1 %v10933_v30  ;;  %v11024_v30 = vld [vmem:[#allocation2 + $0xf64] ss:$16 sps:$4 sm:$0xff]  }
 0x1df   :  { %4917 = vmatpush1.bf16.msra.mxu0 %v10930_v28  ;;  %5328 = vmatprep.subr.bf16.mxu1 %v10941_v32  ;;  %v11019_v28 = vld [vmem:[#allocation2 + $0xb48] ss:$16 sps:$4 sm:$0xff]   ;;  %v11022_v32 = vld [vmem:[#allocation2 + $0xf60] ss:$16 sps:$4 sm:$0xff]  }
 0x1e0   :  { %4918 = vmatprep.subr.bf16.mxu0 %v10938_v31  ;;  %v11027_v31 = vld [vmem:[#allocation2 + $0xb6c] ss:$16 sps:$4 sm:$0xff]  }
 0x1e2   :  { %5329 = vmatpush1.bf16.msra.mxu1 %v10939_v51  ;;  %v11030_v51 = vld [vmem:[#allocation2 + $0xf84] ss:$16 sps:$4 sm:$0xff]  }
 0x1e3   :  { %4919 = vmatpush1.bf16.msra.mxu0 %v10936_v22  ;;  %5330 = vmatprep.subr.bf16.mxu1 %v10947_v35  ;;  %v11025_v22 = vld [vmem:[#allocation2 + $0xb68] ss:$16 sps:$4 sm:$0xff]   ;;  %v11028_v35 = vld [vmem:[#allocation2 + $0xf80] ss:$16 sps:$4 sm:$0xff]  }
 0x1e4   :  { %4920 = vmatprep.subr.bf16.mxu0 %v10944_v33  ;;  %v11033_v33 = vld [vmem:[#allocation2 + $0xb8c] ss:$16 sps:$4 sm:$0xff]  }
 0x1e6   :  { %5331 = vmatpush1.bf16.msra.mxu1 %v10945_v13  ;;  %v11036_v13 = vld [vmem:[#allocation2 + $0xfa4] ss:$16 sps:$4 sm:$0xff]  }
 0x1e7   :  { %4921 = vmatpush1.bf16.msra.mxu0 %v10942_v36  ;;  %5332 = vmatprep.subr.bf16.mxu1 %v10953_v39  ;;  %v11031_v36 = vld [vmem:[#allocation2 + $0xb88] ss:$16 sps:$4 sm:$0xff]   ;;  %v11034_v39 = vld [vmem:[#allocation2 + $0xfa0] ss:$16 sps:$4 sm:$0xff]  }
 0x1e8   :  { %4922 = vmatprep.subr.bf16.mxu0 %v10950_v38  ;;  %v11039_v38 = vld [vmem:[#allocation2 + $0xbac] ss:$16 sps:$4 sm:$0xff]  }
 0x1ea   :  { %5333 = vmatpush1.bf16.msra.mxu1 %v10951_v29  ;;  %v11042_v29 = vld [vmem:[#allocation2 + $0xfc4] ss:$16 sps:$4 sm:$0xff]  }
 0x1eb   :  { %4923 = vmatpush1.bf16.msra.mxu0 %v10948_v40  ;;  %5343 = vmatprep.subr.bf16.mxu1 %v10961_v19  ;;  %v11037_v40 = vld [vmem:[#allocation2 + $0xba8] ss:$16 sps:$4 sm:$0xff]   ;;  %v11040_v19 = vld [vmem:[#allocation2 + $0xfc0] ss:$16 sps:$4 sm:$0xff]  }
 0x1ec   :  { %4933 = vmatprep.subr.bf16.mxu0 %v10958_v42  ;;  %v11045_v42 = vld [vmem:[#allocation2 + $0xbcc] ss:$16 sps:$4 sm:$0xff]  }
 0x1ed   :  { %5335 = vmatmul.mubr.bf16.vlgmr.msra.gmra.mrb[4].mxu1 %v12521_v27  ;;  %v10979_v27 = vld [vmem:[#allocation2 + $0xa6c] ss:$16 sps:$4 sm:$0xff]  }
 0x1ee   :  { %4925 = vmatmul.mubr.bf16.vlgmr.msra.gmra.mrb[0].mxu0 %v12564_v44  ;;  %5344 = vmatpush1.bf16.msra.mxu1 %v10959_v46  ;;  %v11048_v46 = vld [vmem:[#allocation2 + $0xfe4] ss:$16 sps:$4 sm:$0xff]  }
 0x1ef   :  { %4934 = vmatpush1.bf16.msra.mxu0 %v10956_v45  ;;  %5345 = vmatprep.subr.bf16.mxu1 %v10967_v47  ;;  %v11043_v45 = vld [vmem:[#allocation2 + $0xbc8] ss:$16 sps:$4 sm:$0xff]   ;;  %v11046_v47 = vld [vmem:[#allocation2 + $0xfe0] ss:$16 sps:$4 sm:$0xff]  }
 0x1f0   :  { %4935 = vmatprep.subr.bf16.mxu0 %v10964_v21  ;;  %4965 = vmatprep.mubr.bf16.mxu0 %v12568_v48  ;;  %v11051_v21 = vld [vmem:[#allocation2 + $0xbec] ss:$16 sps:$4 sm:$0xff]  }
 0x1f1   :  { %5375 = vmatprep.mubr.bf16.mxu1 %v12530_v7  ;;  %v10983_v7 = vld [vmem:[#allocation2 + $0xa88] ss:$16 sps:$4 sm:$0xff]  }
 0x1f2   :  { %5346 = vmatpush1.bf16.msra.mxu1 %v10965_v52  ;;  %v11056_v52 = vld [vmem:[#allocation2 + $0x1004] ss:$16 sps:$4 sm:$0xff]  }
 0x1f3   :  { %4936 = vmatpush1.bf16.msra.mxu0 %v10962_v37  ;;  %5347 = vmatprep.subr.bf16.mxu1 %v10973_v54  ;;  %v11049_v37 = vld [vmem:[#allocation2 + $0xbe8] ss:$16 sps:$4 sm:$0xff]   ;;  %v12577_v54 = vld [vmem:[%s12714_s0 + $0x40] sm:$0xff] }
 0x1f4   :  { %4937 = vmatprep.subr.bf16.mxu0 %v10970_v53  ;;  %v11059_v53 = vld [vmem:[#allocation2 + $0xc0c] ss:$16 sps:$4 sm:$0xff]  }
 0x1f6   :  { %5348 = vmatpush1.bf16.msra.mxu1 %v10971_v55  ;;  %v11054_v55 = vld [vmem:[#allocation2 + $0x1000] ss:$16 sps:$4 sm:$0xff]  }
 0x1f7   :  { %4938 = vmatpush1.bf16.msra.mxu0 %v10968_v6  ;;  %5349 = vmatprep.subr.bf16.mxu1 %v10979_v27  ;;  %v12581_v6 = vcombine.low %v12560_v43, %v12560_v43  ;;  %v11062_v27 = vld [vmem:[#allocation2 + $0x1024] ss:$16 sps:$4 sm:$0xff]   ;;  %v11060_v43 = vld [vmem:[#allocation2 + $0x1020] ss:$16 sps:$4 sm:$0xff]  }
 0x1f8   :  { %4939 = vmatprep.subr.bf16.mxu0 %v10976_v56  ;;  %v11057_v56 = vld [vmem:[#allocation2 + $0xc08] ss:$16 sps:$4 sm:$0xff]  }
 0x1fa   :  { %5350 = vmatpush1.bf16.msra.mxu1 %v10977_v58  ;;  %v12585_v58 = vcombine.high %v12577_v54, %v12577_v54 }
 0x1fb   :  { %4940 = vmatpush1.bf16.msra.mxu0 %v10974_v57  ;;  %5351 = vmatprep.subr.bf16.mxu1 %v10985_v60  ;;  %v11065_v57 = vld [vmem:[#allocation2 + $0xc2c] ss:$16 sps:$4 sm:$0xff]   ;;  %v11068_v60 = vld [vmem:[#allocation2 + $0x1044] ss:$16 sps:$4 sm:$0xff]  }
 0x1fc   :  { %4941 = vmatprep.subr.bf16.mxu0 %v10982_v59  ;;  %v11063_v59 = vld [vmem:[#allocation2 + $0xc28] ss:$16 sps:$4 sm:$0xff]  }
 0x1fe   :  { %5352 = vmatpush1.bf16.msra.mxu1 %v10983_v7  ;;  %v11066_v7 = vld [vmem:[#allocation2 + $0x1040] ss:$16 sps:$4 sm:$0xff]  }
 0x1ff   :  { %4942 = vmatpush1.bf16.msra.mxu0 %v10980_v61  ;;  %5353 = vmatprep.subr.bf16.mxu1 %v10991_v63  ;;  %v11071_v61 = vld [vmem:[#allocation2 + $0xc4c] ss:$16 sps:$4 sm:$0xff]   ;;  %v11074_v63 = vld [vmem:[#allocation2 + $0x1064] ss:$16 sps:$4 sm:$0xff]  }
 0x200   :  { %4943 = vmatprep.subr.bf16.mxu0 %v10988_v62  ;;  %v11069_v62 = vld [vmem:[#allocation2 + $0xc48] ss:$16 sps:$4 sm:$0xff]  }
 0x202   :  { %5354 = vmatpush1.bf16.msra.mxu1 %v10989_v1  ;;  %v11075_v1 = vld [vmem:[#allocation2 + $0xc68] ss:$16 sps:$4 sm:$0xff]  }
 0x203   :  { %4944 = vmatpush1.bf16.msra.mxu0 %v10986_v0  ;;  %5355 = vmatprep.subr.bf16.mxu1 %v10997_v3  ;;  %v11072_v0 = vld [vmem:[#allocation2 + $0x1060] ss:$16 sps:$4 sm:$0xff]   ;;  %v11083_v3 = vld [vmem:[#allocation2 + $0xc8c] ss:$16 sps:$4 sm:$0xff]  }
 0x204   :  { %4945 = vmatprep.subr.bf16.mxu0 %v10994_v2  ;;  %v11080_v2 = vld [vmem:[#allocation2 + $0x1084] ss:$16 sps:$4 sm:$0xff]  }
 0x206   :  { %5356 = vmatpush1.bf16.msra.mxu1 %v10995_v5  ;;  %v11086_v5 = vld [vmem:[#allocation2 + $0x10a4] ss:$16 sps:$4 sm:$0xff]  }
 0x207   :  { %4946 = vmatpush1.bf16.msra.mxu0 %v10992_v4  ;;  %5357 = vmatprep.subr.bf16.mxu1 %v11003_v9  ;;  %v11078_v4 = vld [vmem:[#allocation2 + $0x1080] ss:$16 sps:$4 sm:$0xff]  }
 0x208   :  { %4947 = vmatprep.subr.bf16.mxu0 %v11000_v8  ;;  %v11089_v8 = vld [vmem:[#allocation2 + $0xcac] ss:$16 sps:$4 sm:$0xff]   ;;  %v11084_v9 = vld [vmem:[#allocation2 + $0x10a0] ss:$16 sps:$4 sm:$0xff]  }
 0x20a   :  { %5358 = vmatpush1.bf16.msra.mxu1 %v11001_v11  ;;  %v11092_v11 = vld [vmem:[#allocation2 + $0x10c4] ss:$16 sps:$4 sm:$0xff]  }
 0x20b   :  { %4948 = vmatpush1.bf16.msra.mxu0 %v10998_v10  ;;  %5359 = vmatprep.subr.bf16.mxu1 %v11009_v14  ;;  %v11087_v10 = vld [vmem:[#allocation2 + $0xca8] ss:$16 sps:$4 sm:$0xff]   ;;  %v11090_v14 = vld [vmem:[#allocation2 + $0x10c0] ss:$16 sps:$4 sm:$0xff]  }
 0x20c   :  { %4949 = vmatprep.subr.bf16.mxu0 %v11006_v12  ;;  %v11095_v12 = vld [vmem:[#allocation2 + $0xccc] ss:$16 sps:$4 sm:$0xff]  }
 0x20e   :  { %5360 = vmatpush1.bf16.msra.mxu1 %v11007_v16  ;;  %v11098_v16 = vld [vmem:[#allocation2 + $0x10e4] ss:$16 sps:$4 sm:$0xff]  }
 0x20f   :  { %4950 = vmatpush1.bf16.msra.mxu0 %v11004_v15  ;;  %5361 = vmatprep.subr.bf16.mxu1 %v11015_v20  ;;  %v11093_v15 = vld [vmem:[#allocation2 + $0xcc8] ss:$16 sps:$4 sm:$0xff]   ;;  %v11096_v20 = vld [vmem:[#allocation2 + $0x10e0] ss:$16 sps:$4 sm:$0xff]  }
 0x210   :  { %4951 = vmatprep.subr.bf16.mxu0 %v11012_v17  ;;  %v11101_v17 = vld [vmem:[#allocation2 + $0xcec] ss:$16 sps:$4 sm:$0xff]  }
 0x212   :  { %5362 = vmatpush1.bf16.msra.mxu1 %v11013_v24  ;;  %v11104_v24 = vld [vmem:[#allocation2 + $0x1104] ss:$16 sps:$4 sm:$0xff]  }
 0x213   :  { %4952 = vmatpush1.bf16.msra.mxu0 %v11010_v23  ;;  %5363 = vmatprep.subr.bf16.mxu1 %v11021_v26  ;;  %v11099_v23 = vld [vmem:[#allocation2 + $0xce8] ss:$16 sps:$4 sm:$0xff]   ;;  %v11102_v26 = vld [vmem:[#allocation2 + $0x1100] ss:$16 sps:$4 sm:$0xff]  }
 0x214   :  { %4953 = vmatprep.subr.bf16.mxu0 %v11018_v25  ;;  %v11107_v25 = vld [vmem:[#allocation2 + $0xd0c] ss:$16 sps:$4 sm:$0xff]  }
 0x216   :  { %5364 = vmatpush1.bf16.msra.mxu1 %v11019_v28  ;;  %v11110_v28 = vld [vmem:[#allocation2 + $0x1124] ss:$16 sps:$4 sm:$0xff]  }
 0x217   :  { %4954 = vmatpush1.bf16.msra.mxu0 %v11016_v18  ;;  %5365 = vmatprep.subr.bf16.mxu1 %v11027_v31  ;;  %v11105_v18 = vld [vmem:[#allocation2 + $0xd08] ss:$16 sps:$4 sm:$0xff]   ;;  %v11108_v31 = vld [vmem:[#allocation2 + $0x1120] ss:$16 sps:$4 sm:$0xff]  }
 0x218   :  { %4955 = vmatprep.subr.bf16.mxu0 %v11024_v30  ;;  %v11113_v30 = vld [vmem:[#allocation2 + $0xd2c] ss:$16 sps:$4 sm:$0xff]  }
 0x21a   :  { %5366 = vmatpush1.bf16.msra.mxu1 %v11025_v22  ;;  %v11116_v22 = vld [vmem:[#allocation2 + $0x1144] ss:$16 sps:$4 sm:$0xff]  }
 0x21b   :  { %4956 = vmatpush1.bf16.msra.mxu0 %v11022_v32  ;;  %5367 = vmatprep.subr.bf16.mxu1 %v11033_v33  ;;  %v11111_v32 = vld [vmem:[#allocation2 + $0xd28] ss:$16 sps:$4 sm:$0xff]   ;;  %v11114_v33 = vld [vmem:[#allocation2 + $0x1140] ss:$16 sps:$4 sm:$0xff]  }
 0x21c   :  { %4957 = vmatprep.subr.bf16.mxu0 %v11030_v51  ;;  %v11119_v51 = vld [vmem:[#allocation2 + $0xd4c] ss:$16 sps:$4 sm:$0xff]  }
 0x21e   :  { %5368 = vmatpush1.bf16.msra.mxu1 %v11031_v36  ;;  %v11122_v36 = vld [vmem:[#allocation2 + $0x1164] ss:$16 sps:$4 sm:$0xff]  }
 0x21f   :  { %4958 = vmatpush1.bf16.msra.mxu0 %v11028_v35  ;;  %5369 = vmatprep.subr.bf16.mxu1 %v11039_v38  ;;  %v11117_v35 = vld [vmem:[#allocation2 + $0xd48] ss:$16 sps:$4 sm:$0xff]   ;;  %v11120_v38 = vld [vmem:[#allocation2 + $0x1160] ss:$16 sps:$4 sm:$0xff]  }
 0x220   :  { %4959 = vmatprep.subr.bf16.mxu0 %v11036_v13  ;;  %v11125_v13 = vld [vmem:[#allocation2 + $0xd6c] ss:$16 sps:$4 sm:$0xff]  }
 0x222   :  { %5370 = vmatpush1.bf16.msra.mxu1 %v11037_v40  ;;  %v11128_v40 = vld [vmem:[#allocation2 + $0x1184] ss:$16 sps:$4 sm:$0xff]  }
 0x223   :  { %4960 = vmatpush1.bf16.msra.mxu0 %v11034_v39  ;;  %5371 = vmatprep.subr.bf16.mxu1 %v11045_v42  ;;  %v11123_v39 = vld [vmem:[#allocation2 + $0xd68] ss:$16 sps:$4 sm:$0xff]   ;;  %v11126_v42 = vld [vmem:[#allocation2 + $0x1180] ss:$16 sps:$4 sm:$0xff]  }
 0x224   :  { %4961 = vmatprep.subr.bf16.mxu0 %v11042_v29  ;;  %v11131_v29 = vld [vmem:[#allocation2 + $0xd8c] ss:$16 sps:$4 sm:$0xff]  }
 0x226   :  { %5372 = vmatpush1.bf16.msra.mxu1 %v11043_v45  ;;  %v11134_v45 = vld [vmem:[#allocation2 + $0x11a4] ss:$16 sps:$4 sm:$0xff]  }
 0x227   :  { %4962 = vmatpush1.bf16.msra.mxu0 %v11040_v19  ;;  %5373 = vmatprep.subr.bf16.mxu1 %v11051_v21  ;;  %v11129_v19 = vld [vmem:[#allocation2 + $0xd88] ss:$16 sps:$4 sm:$0xff]   ;;  %v11132_v21 = vld [vmem:[#allocation2 + $0x11a0] ss:$16 sps:$4 sm:$0xff]  }
 0x228   :  { %4963 = vmatprep.subr.bf16.mxu0 %v11048_v46  ;;  %v11137_v46 = vld [vmem:[#allocation2 + $0xdac] ss:$16 sps:$4 sm:$0xff]  }
 0x22a   :  { %5374 = vmatpush1.bf16.msra.mxu1 %v11049_v37  ;;  %v11140_v37 = vld [vmem:[#allocation2 + $0x11c4] ss:$16 sps:$4 sm:$0xff]  }
 0x22b   :  { %4964 = vmatpush1.bf16.msra.mxu0 %v11046_v47  ;;  %5384 = vmatprep.subr.bf16.mxu1 %v11059_v53  ;;  %v11135_v47 = vld [vmem:[#allocation2 + $0xda8] ss:$16 sps:$4 sm:$0xff]   ;;  %v11138_v53 = vld [vmem:[#allocation2 + $0x11c0] ss:$16 sps:$4 sm:$0xff]  }
 0x22c   :  { %4974 = vmatprep.subr.bf16.mxu0 %v11056_v52  ;;  %v11143_v52 = vld [vmem:[#allocation2 + $0xdcc] ss:$16 sps:$4 sm:$0xff]  }
 0x22d   :  { %5376 = vmatmul.mubr.bf16.vlgmr.msra.gmra.mrb[4].mxu1 %v12547_v34  ;;  %v11077_v34 = vld [vmem:[#allocation2 + $0xc6c] ss:$16 sps:$4 sm:$0xff]  }
 0x22e   :  { %4966 = vmatmul.mubr.bf16.vlgmr.msra.gmra.mrb[0].mxu0 %v12581_v6  ;;  %5385 = vmatpush1.bf16.msra.mxu1 %v11057_v56  ;;  %v11146_v56 = vld [vmem:[#allocation2 + $0x11e4] ss:$16 sps:$4 sm:$0xff]  }
 0x22f   :  { %4975 = vmatpush1.bf16.msra.mxu0 %v11054_v55  ;;  %5386 = vmatprep.subr.bf16.mxu1 %v11065_v57  ;;  %v11141_v55 = vld [vmem:[#allocation2 + $0xdc8] ss:$16 sps:$4 sm:$0xff]   ;;  %v11144_v57 = vld [vmem:[#allocation2 + $0x11e0] ss:$16 sps:$4 sm:$0xff]  }
 0x230   :  { %4976 = vmatprep.subr.bf16.mxu0 %v11062_v27  ;;  %5006 = vmatprep.mubr.bf16.mxu0 %v12585_v58  ;;  %v11149_v27 = vld [vmem:[#allocation2 + $0xdec] ss:$16 sps:$4 sm:$0xff]  }
 0x231   :  { %5416 = vmatprep.mubr.bf16.mxu1 %v12551_v41  ;;  %v11081_v41 = vld [vmem:[#allocation2 + $0xc88] ss:$16 sps:$4 sm:$0xff]  }
 0x232   :  { %5387 = vmatpush1.bf16.msra.mxu1 %v11063_v59  ;;  %v11154_v59 = vld [vmem:[#allocation2 + $0x1204] ss:$16 sps:$4 sm:$0xff]  }
 0x233   :  { %4977 = vmatpush1.bf16.msra.mxu0 %v11060_v43  ;;  %5388 = vmatprep.subr.bf16.mxu1 %v11071_v61  ;;  %v11147_v43 = vld [vmem:[#allocation2 + $0xde8] ss:$16 sps:$4 sm:$0xff]  }
 0x234   :  { %4978 = vmatprep.subr.bf16.mxu0 %v11068_v60  ;;  %v11157_v60 = vld [vmem:[#allocation2 + $0xe0c] ss:$16 sps:$4 sm:$0xff]  }
 0x235   :  { %v12594_v61 = vld [vmem:[%s12714_s0 + $0x48] sm:$0xff] }
 0x236   :  { %5389 = vmatpush1.bf16.msra.mxu1 %v11069_v62  ;;  %v11152_v62 = vld [vmem:[#allocation2 + $0x1200] ss:$16 sps:$4 sm:$0xff]  }
 0x237   :  { %4979 = vmatpush1.bf16.msra.mxu0 %v11066_v7  ;;  %5390 = vmatprep.subr.bf16.mxu1 %v11077_v34  ;;  %v12598_v7 = vcombine.low %v12577_v54, %v12577_v54  ;;  %v11160_v34 = vld [vmem:[#allocation2 + $0x1224] ss:$16 sps:$4 sm:$0xff]   ;;  %v11158_v54 = vld [vmem:[#allocation2 + $0x1220] ss:$16 sps:$4 sm:$0xff]  }
 0x238   :  { %4980 = vmatprep.subr.bf16.mxu0 %v11074_v63  ;;  %v11155_v63 = vld [vmem:[#allocation2 + $0xe08] ss:$16 sps:$4 sm:$0xff]  }
 0x23a   :  { %5391 = vmatpush1.bf16.msra.mxu1 %v11075_v1  ;;  %v12602_v1 = vcombine.high %v12594_v61, %v12594_v61 }
 0x23b   :  { %4981 = vmatpush1.bf16.msra.mxu0 %v11072_v0  ;;  %5392 = vmatprep.subr.bf16.mxu1 %v11083_v3  ;;  %v11163_v0 = vld [vmem:[#allocation2 + $0xe2c] ss:$16 sps:$4 sm:$0xff]   ;;  %v11166_v3 = vld [vmem:[#allocation2 + $0x1244] ss:$16 sps:$4 sm:$0xff]  }
 0x23c   :  { %4982 = vmatprep.subr.bf16.mxu0 %v11080_v2  ;;  %v11161_v2 = vld [vmem:[#allocation2 + $0xe28] ss:$16 sps:$4 sm:$0xff]  }
 0x23e   :  { %5393 = vmatpush1.bf16.msra.mxu1 %v11081_v41  ;;  %v11164_v41 = vld [vmem:[#allocation2 + $0x1240] ss:$16 sps:$4 sm:$0xff]  }
 0x23f   :  { %4983 = vmatpush1.bf16.msra.mxu0 %v11078_v4  ;;  %5394 = vmatprep.subr.bf16.mxu1 %v11089_v8  ;;  %v11169_v4 = vld [vmem:[#allocation2 + $0xe4c] ss:$16 sps:$4 sm:$0xff]   ;;  %v11172_v8 = vld [vmem:[#allocation2 + $0x1264] ss:$16 sps:$4 sm:$0xff]  }
 0x240   :  { %4984 = vmatprep.subr.bf16.mxu0 %v11086_v5  ;;  %v11167_v5 = vld [vmem:[#allocation2 + $0xe48] ss:$16 sps:$4 sm:$0xff]  }
 0x242   :  { %5395 = vmatpush1.bf16.msra.mxu1 %v11087_v10  ;;  %v11173_v10 = vld [vmem:[#allocation2 + $0xe68] ss:$16 sps:$4 sm:$0xff]  }
 0x243   :  { %4985 = vmatpush1.bf16.msra.mxu0 %v11084_v9  ;;  %5396 = vmatprep.subr.bf16.mxu1 %v11095_v12  ;;  %v11170_v9 = vld [vmem:[#allocation2 + $0x1260] ss:$16 sps:$4 sm:$0xff]   ;;  %v11181_v12 = vld [vmem:[#allocation2 + $0xe8c] ss:$16 sps:$4 sm:$0xff]  }
 0x244   :  { %4986 = vmatprep.subr.bf16.mxu0 %v11092_v11  ;;  %v11178_v11 = vld [vmem:[#allocation2 + $0x1284] ss:$16 sps:$4 sm:$0xff]  }
 0x246   :  { %5397 = vmatpush1.bf16.msra.mxu1 %v11093_v15  ;;  %v11184_v15 = vld [vmem:[#allocation2 + $0x12a4] ss:$16 sps:$4 sm:$0xff]  }
 0x247   :  { %4987 = vmatpush1.bf16.msra.mxu0 %v11090_v14  ;;  %5398 = vmatprep.subr.bf16.mxu1 %v11101_v17  ;;  %v11176_v14 = vld [vmem:[#allocation2 + $0x1280] ss:$16 sps:$4 sm:$0xff]  }
 0x248   :  { %4988 = vmatprep.subr.bf16.mxu0 %v11098_v16  ;;  %v11187_v16 = vld [vmem:[#allocation2 + $0xeac] ss:$16 sps:$4 sm:$0xff]   ;;  %v11182_v17 = vld [vmem:[#allocation2 + $0x12a0] ss:$16 sps:$4 sm:$0xff]  }
 0x24a   :  { %5399 = vmatpush1.bf16.msra.mxu1 %v11099_v23  ;;  %v11190_v23 = vld [vmem:[#allocation2 + $0x12c4] ss:$16 sps:$4 sm:$0xff]  }
 0x24b   :  { %4989 = vmatpush1.bf16.msra.mxu0 %v11096_v20  ;;  %5400 = vmatprep.subr.bf16.mxu1 %v11107_v25  ;;  %v11185_v20 = vld [vmem:[#allocation2 + $0xea8] ss:$16 sps:$4 sm:$0xff]   ;;  %v11188_v25 = vld [vmem:[#allocation2 + $0x12c0] ss:$16 sps:$4 sm:$0xff]  }
 0x24c   :  { %4990 = vmatprep.subr.bf16.mxu0 %v11104_v24  ;;  %v11193_v24 = vld [vmem:[#allocation2 + $0xecc] ss:$16 sps:$4 sm:$0xff]  }
 0x24e   :  { %5401 = vmatpush1.bf16.msra.mxu1 %v11105_v18  ;;  %v11196_v18 = vld [vmem:[#allocation2 + $0x12e4] ss:$16 sps:$4 sm:$0xff]  }
 0x24f   :  { %4991 = vmatpush1.bf16.msra.mxu0 %v11102_v26  ;;  %5402 = vmatprep.subr.bf16.mxu1 %v11113_v30  ;;  %v11191_v26 = vld [vmem:[#allocation2 + $0xec8] ss:$16 sps:$4 sm:$0xff]   ;;  %v11194_v30 = vld [vmem:[#allocation2 + $0x12e0] ss:$16 sps:$4 sm:$0xff]  }
 0x250   :  { %4992 = vmatprep.subr.bf16.mxu0 %v11110_v28  ;;  %v11199_v28 = vld [vmem:[#allocation2 + $0xeec] ss:$16 sps:$4 sm:$0xff]  }
 0x252   :  { %5403 = vmatpush1.bf16.msra.mxu1 %v11111_v32  ;;  %v11202_v32 = vld [vmem:[#allocation2 + $0x1304] ss:$16 sps:$4 sm:$0xff]  }
 0x253   :  { %4993 = vmatpush1.bf16.msra.mxu0 %v11108_v31  ;;  %5404 = vmatprep.subr.bf16.mxu1 %v11119_v51  ;;  %v11197_v31 = vld [vmem:[#allocation2 + $0xee8] ss:$16 sps:$4 sm:$0xff]   ;;  %v11200_v51 = vld [vmem:[#allocation2 + $0x1300] ss:$16 sps:$4 sm:$0xff]  }
 0x254   :  { %4994 = vmatprep.subr.bf16.mxu0 %v11116_v22  ;;  %v11205_v22 = vld [vmem:[#allocation2 + $0xf0c] ss:$16 sps:$4 sm:$0xff]  }
 0x256   :  { %5405 = vmatpush1.bf16.msra.mxu1 %v11117_v35  ;;  %v11208_v35 = vld [vmem:[#allocation2 + $0x1324] ss:$16 sps:$4 sm:$0xff]  }
 0x257   :  { %4995 = vmatpush1.bf16.msra.mxu0 %v11114_v33  ;;  %5406 = vmatprep.subr.bf16.mxu1 %v11125_v13  ;;  %v11203_v33 = vld [vmem:[#allocation2 + $0xf08] ss:$16 sps:$4 sm:$0xff]   ;;  %v11206_v13 = vld [vmem:[#allocation2 + $0x1320] ss:$16 sps:$4 sm:$0xff]  }
 0x258   :  { %4996 = vmatprep.subr.bf16.mxu0 %v11122_v36  ;;  %v11211_v36 = vld [vmem:[#allocation2 + $0xf2c] ss:$16 sps:$4 sm:$0xff]  }
 0x25a   :  { %5407 = vmatpush1.bf16.msra.mxu1 %v11123_v39  ;;  %v11214_v39 = vld [vmem:[#allocation2 + $0x1344] ss:$16 sps:$4 sm:$0xff]  }
 0x25b   :  { %4997 = vmatpush1.bf16.msra.mxu0 %v11120_v38  ;;  %5408 = vmatprep.subr.bf16.mxu1 %v11131_v29  ;;  %v11209_v38 = vld [vmem:[#allocation2 + $0xf28] ss:$16 sps:$4 sm:$0xff]   ;;  %v11212_v29 = vld [vmem:[#allocation2 + $0x1340] ss:$16 sps:$4 sm:$0xff]  }
 0x25c   :  { %4998 = vmatprep.subr.bf16.mxu0 %v11128_v40  ;;  %v11217_v40 = vld [vmem:[#allocation2 + $0xf4c] ss:$16 sps:$4 sm:$0xff]  }
 0x25e   :  { %5409 = vmatpush1.bf16.msra.mxu1 %v11129_v19  ;;  %v11220_v19 = vld [vmem:[#allocation2 + $0x1364] ss:$16 sps:$4 sm:$0xff]  }
 0x25f   :  { %4999 = vmatpush1.bf16.msra.mxu0 %v11126_v42  ;;  %5410 = vmatprep.subr.bf16.mxu1 %v11137_v46  ;;  %v11215_v42 = vld [vmem:[#allocation2 + $0xf48] ss:$16 sps:$4 sm:$0xff]   ;;  %v11218_v46 = vld [vmem:[#allocation2 + $0x1360] ss:$16 sps:$4 sm:$0xff]  }
 0x260   :  { %5000 = vmatprep.subr.bf16.mxu0 %v11134_v45  ;;  %v11223_v45 = vld [vmem:[#allocation2 + $0xf6c] ss:$16 sps:$4 sm:$0xff]  }
 0x262   :  { %5411 = vmatpush1.bf16.msra.mxu1 %v11135_v47  ;;  %v11226_v47 = vld [vmem:[#allocation2 + $0x1384] ss:$16 sps:$4 sm:$0xff]  }
 0x263   :  { %5001 = vmatpush1.bf16.msra.mxu0 %v11132_v21  ;;  %5412 = vmatprep.subr.bf16.mxu1 %v11143_v52  ;;  %v11221_v21 = vld [vmem:[#allocation2 + $0xf68] ss:$16 sps:$4 sm:$0xff]   ;;  %v11224_v52 = vld [vmem:[#allocation2 + $0x1380] ss:$16 sps:$4 sm:$0xff]  }
 0x264   :  { %5002 = vmatprep.subr.bf16.mxu0 %v11140_v37  ;;  %v11229_v37 = vld [vmem:[#allocation2 + $0xf8c] ss:$16 sps:$4 sm:$0xff]  }
 0x266   :  { %5413 = vmatpush1.bf16.msra.mxu1 %v11141_v55  ;;  %v11232_v55 = vld [vmem:[#allocation2 + $0x13a4] ss:$16 sps:$4 sm:$0xff]  }
 0x267   :  { %5003 = vmatpush1.bf16.msra.mxu0 %v11138_v53  ;;  %5414 = vmatprep.subr.bf16.mxu1 %v11149_v27  ;;  %v11227_v53 = vld [vmem:[#allocation2 + $0xf88] ss:$16 sps:$4 sm:$0xff]   ;;  %v11230_v27 = vld [vmem:[#allocation2 + $0x13a0] ss:$16 sps:$4 sm:$0xff]  }
 0x268   :  { %5004 = vmatprep.subr.bf16.mxu0 %v11146_v56  ;;  %v11235_v56 = vld [vmem:[#allocation2 + $0xfac] ss:$16 sps:$4 sm:$0xff]  }
 0x26a   :  { %5415 = vmatpush1.bf16.msra.mxu1 %v11147_v43  ;;  %v11238_v43 = vld [vmem:[#allocation2 + $0x13c4] ss:$16 sps:$4 sm:$0xff]  }
 0x26b   :  { %5005 = vmatpush1.bf16.msra.mxu0 %v11144_v57  ;;  %5425 = vmatprep.subr.bf16.mxu1 %v11157_v60  ;;  %v11233_v57 = vld [vmem:[#allocation2 + $0xfa8] ss:$16 sps:$4 sm:$0xff]   ;;  %v11236_v60 = vld [vmem:[#allocation2 + $0x13c0] ss:$16 sps:$4 sm:$0xff]  }
 0x26c   :  { %5015 = vmatprep.subr.bf16.mxu0 %v11154_v59  ;;  %v11241_v59 = vld [vmem:[#allocation2 + $0xfcc] ss:$16 sps:$4 sm:$0xff]  }
 0x26d   :  { %5417 = vmatmul.mubr.bf16.vlgmr.msra.gmra.mrb[4].mxu1 %v12564_v44  ;;  %v11175_v44 = vld [vmem:[#allocation2 + $0xe6c] ss:$16 sps:$4 sm:$0xff]  }
 0x26e   :  { %5007 = vmatmul.mubr.bf16.vlgmr.msra.gmra.mrb[0].mxu0 %v12598_v7  ;;  %5426 = vmatpush1.bf16.msra.mxu1 %v11155_v63  ;;  %v11244_v63 = vld [vmem:[#allocation2 + $0x13e4] ss:$16 sps:$4 sm:$0xff]  }
 0x26f   :  { %5016 = vmatpush1.bf16.msra.mxu0 %v11152_v62  ;;  %5427 = vmatprep.subr.bf16.mxu1 %v11163_v0  ;;  %v11239_v62 = vld [vmem:[#allocation2 + $0xfc8] ss:$16 sps:$4 sm:$0xff]   ;;  %v11242_v0 = vld [vmem:[#allocation2 + $0x13e0] ss:$16 sps:$4 sm:$0xff]  }
 0x270   :  { %5017 = vmatprep.subr.bf16.mxu0 %v11160_v34  ;;  %5047 = vmatprep.mubr.bf16.mxu0 %v12602_v1  ;;  %v11247_v34 = vld [vmem:[#allocation2 + $0xfec] ss:$16 sps:$4 sm:$0xff]  }
 0x271   :  { %5457 = vmatprep.mubr.bf16.mxu1 %v12568_v48  ;;  %v11179_v48 = vld [vmem:[#allocation2 + $0xe88] ss:$16 sps:$4 sm:$0xff]  }
 0x272   :  { %5428 = vmatpush1.bf16.msra.mxu1 %v11161_v2  ;;  %v11252_v2 = vld [vmem:[#allocation2 + $0x1404] ss:$16 sps:$4 sm:$0xff]  }
 0x273   :  { %5018 = vmatpush1.bf16.msra.mxu0 %v11158_v54  ;;  %5429 = vmatprep.subr.bf16.mxu1 %v11169_v4  ;;  %v11245_v54 = vld [vmem:[#allocation2 + $0xfe8] ss:$16 sps:$4 sm:$0xff]   ;;  %v12611_v4 = vld [vmem:[%s12714_s0 + $0x50] sm:$0xff] }
 0x274   :  { %5019 = vmatprep.subr.bf16.mxu0 %v11166_v3  ;;  %v11255_v3 = vld [vmem:[#allocation2 + $0x100c] ss:$16 sps:$4 sm:$0xff]  }
 0x276   :  { %5430 = vmatpush1.bf16.msra.mxu1 %v11167_v5  ;;  %v11253_v5 = vld [vmem:[#allocation2 + $0x1008] ss:$16 sps:$4 sm:$0xff]  }
 0x277   :  { %5020 = vmatpush1.bf16.msra.mxu0 %v11164_v41  ;;  %5431 = vmatprep.subr.bf16.mxu1 %v11175_v44  ;;  %v11250_v41 = vld [vmem:[#allocation2 + $0x1400] ss:$16 sps:$4 sm:$0xff]   ;;  %v11258_v44 = vld [vmem:[#allocation2 + $0x1424] ss:$16 sps:$4 sm:$0xff]  }
 0x278   :  { %5021 = vmatprep.subr.bf16.mxu0 %v11172_v8  ;;  %v12615_v8 = vcombine.low %v12594_v61, %v12594_v61  ;;  %v11264_v61 = vld [vmem:[#allocation2 + $0x1444] ss:$16 sps:$4 sm:$0xff]  }
 0x27a   :  { %5432 = vmatpush1.bf16.msra.mxu1 %v11173_v10  ;;  %v11256_v10 = vld [vmem:[#allocation2 + $0x1420] ss:$16 sps:$4 sm:$0xff]  }
 0x27b   :  { %5022 = vmatpush1.bf16.msra.mxu0 %v11170_v9  ;;  %5433 = vmatprep.subr.bf16.mxu1 %v11181_v12  ;;  %v11261_v9 = vld [vmem:[#allocation2 + $0x102c] ss:$16 sps:$4 sm:$0xff]   ;;  %v12619_v12 = vcombine.high %v12611_v4, %v12611_v4 }
 0x27c   :  { %5023 = vmatprep.subr.bf16.mxu0 %v11178_v11  ;;  %v11259_v11 = vld [vmem:[#allocation2 + $0x1028] ss:$16 sps:$4 sm:$0xff]  }
 0x27e   :  { %5434 = vmatpush1.bf16.msra.mxu1 %v11179_v48  ;;  %v11262_v48 = vld [vmem:[#allocation2 + $0x1440] ss:$16 sps:$4 sm:$0xff]  }
 0x27f   :  { %5024 = vmatpush1.bf16.msra.mxu0 %v11176_v14  ;;  %5435 = vmatprep.subr.bf16.mxu1 %v11187_v16  ;;  %v11267_v14 = vld [vmem:[#allocation2 + $0x104c] ss:$16 sps:$4 sm:$0xff]   ;;  %v11270_v16 = vld [vmem:[#allocation2 + $0x1464] ss:$16 sps:$4 sm:$0xff]  }
 0x280   :  { %5025 = vmatprep.subr.bf16.mxu0 %v11184_v15  ;;  %v11265_v15 = vld [vmem:[#allocation2 + $0x1048] ss:$16 sps:$4 sm:$0xff]  }
 0x282   :  { %5436 = vmatpush1.bf16.msra.mxu1 %v11185_v20  ;;  %v11268_v20 = vld [vmem:[#allocation2 + $0x1460] ss:$16 sps:$4 sm:$0xff]  }
 0x283   :  { %5026 = vmatpush1.bf16.msra.mxu0 %v11182_v17  ;;  %5437 = vmatprep.subr.bf16.mxu1 %v11193_v24  ;;  %v11273_v17 = vld [vmem:[#allocation2 + $0x106c] ss:$16 sps:$4 sm:$0xff]  }
 0x284   :  { %5027 = vmatprep.subr.bf16.mxu0 %v11190_v23  ;;  %v11276_v23 = vld [vmem:[#allocation2 + $0x1484] ss:$16 sps:$4 sm:$0xff]   ;;  %v11279_v24 = vld [vmem:[#allocation2 + $0x108c] ss:$16 sps:$4 sm:$0xff]  }
 0x286   :  { %5438 = vmatpush1.bf16.msra.mxu1 %v11191_v26  ;;  %v11277_v26 = vld [vmem:[#allocation2 + $0x1088] ss:$16 sps:$4 sm:$0xff]  }
 0x287   :  { %5028 = vmatpush1.bf16.msra.mxu0 %v11188_v25  ;;  %5439 = vmatprep.subr.bf16.mxu1 %v11199_v28  ;;  %v11274_v25 = vld [vmem:[#allocation2 + $0x1480] ss:$16 sps:$4 sm:$0xff]  }
 0x288   :  { %5029 = vmatprep.subr.bf16.mxu0 %v11196_v18  ;;  %v11282_v18 = vld [vmem:[#allocation2 + $0x14a4] ss:$16 sps:$4 sm:$0xff]   ;;  %v11280_v28 = vld [vmem:[#allocation2 + $0x14a0] ss:$16 sps:$4 sm:$0xff]  }
 0x28a   :  { %5440 = vmatpush1.bf16.msra.mxu1 %v11197_v31  ;;  %v11288_v31 = vld [vmem:[#allocation2 + $0x14c4] ss:$16 sps:$4 sm:$0xff]  }
 0x28b   :  { %5030 = vmatpush1.bf16.msra.mxu0 %v11194_v30  ;;  %5441 = vmatprep.subr.bf16.mxu1 %v11205_v22  ;;  %v11283_v30 = vld [vmem:[#allocation2 + $0x10a8] ss:$16 sps:$4 sm:$0xff]   ;;  %v11286_v22 = vld [vmem:[#allocation2 + $0x14c0] ss:$16 sps:$4 sm:$0xff]  }
 0x28c   :  { %5031 = vmatprep.subr.bf16.mxu0 %v11202_v32  ;;  %v11291_v32 = vld [vmem:[#allocation2 + $0x10cc] ss:$16 sps:$4 sm:$0xff]  }
 0x28e   :  { %5442 = vmatpush1.bf16.msra.mxu1 %v11203_v33  ;;  %v11294_v33 = vld [vmem:[#allocation2 + $0x14e4] ss:$16 sps:$4 sm:$0xff]  }
 0x28f   :  { %5032 = vmatpush1.bf16.msra.mxu0 %v11200_v51  ;;  %5443 = vmatprep.subr.bf16.mxu1 %v11211_v36  ;;  %v11289_v51 = vld [vmem:[#allocation2 + $0x10c8] ss:$16 sps:$4 sm:$0xff]   ;;  %v11292_v36 = vld [vmem:[#allocation2 + $0x14e0] ss:$16 sps:$4 sm:$0xff]  }
 0x290   :  { %5033 = vmatprep.subr.bf16.mxu0 %v11208_v35  ;;  %v11297_v35 = vld [vmem:[#allocation2 + $0x10ec] ss:$16 sps:$4 sm:$0xff]  }
 0x292   :  { %5444 = vmatpush1.bf16.msra.mxu1 %v11209_v38  ;;  %v11300_v38 = vld [vmem:[#allocation2 + $0x1504] ss:$16 sps:$4 sm:$0xff]  }
 0x293   :  { %5034 = vmatpush1.bf16.msra.mxu0 %v11206_v13  ;;  %5445 = vmatprep.subr.bf16.mxu1 %v11217_v40  ;;  %v11295_v13 = vld [vmem:[#allocation2 + $0x10e8] ss:$16 sps:$4 sm:$0xff]   ;;  %v11298_v40 = vld [vmem:[#allocation2 + $0x1500] ss:$16 sps:$4 sm:$0xff]  }
 0x294   :  { %5035 = vmatprep.subr.bf16.mxu0 %v11214_v39  ;;  %v11303_v39 = vld [vmem:[#allocation2 + $0x110c] ss:$16 sps:$4 sm:$0xff]  }
 0x296   :  { %5446 = vmatpush1.bf16.msra.mxu1 %v11215_v42  ;;  %v11306_v42 = vld [vmem:[#allocation2 + $0x1524] ss:$16 sps:$4 sm:$0xff]  }
 0x297   :  { %5036 = vmatpush1.bf16.msra.mxu0 %v11212_v29  ;;  %5447 = vmatprep.subr.bf16.mxu1 %v11223_v45  ;;  %v11301_v29 = vld [vmem:[#allocation2 + $0x1108] ss:$16 sps:$4 sm:$0xff]   ;;  %v11304_v45 = vld [vmem:[#allocation2 + $0x1520] ss:$16 sps:$4 sm:$0xff]  }
 0x298   :  { %5037 = vmatprep.subr.bf16.mxu0 %v11220_v19  ;;  %v11309_v19 = vld [vmem:[#allocation2 + $0x112c] ss:$16 sps:$4 sm:$0xff]  }
 0x29a   :  { %5448 = vmatpush1.bf16.msra.mxu1 %v11221_v21  ;;  %v11312_v21 = vld [vmem:[#allocation2 + $0x1544] ss:$16 sps:$4 sm:$0xff]  }
 0x29b   :  { %5038 = vmatpush1.bf16.msra.mxu0 %v11218_v46  ;;  %5449 = vmatprep.subr.bf16.mxu1 %v11229_v37  ;;  %v11307_v46 = vld [vmem:[#allocation2 + $0x1128] ss:$16 sps:$4 sm:$0xff]   ;;  %v11310_v37 = vld [vmem:[#allocation2 + $0x1540] ss:$16 sps:$4 sm:$0xff]  }
 0x29c   :  { %5039 = vmatprep.subr.bf16.mxu0 %v11226_v47  ;;  %v11315_v47 = vld [vmem:[#allocation2 + $0x114c] ss:$16 sps:$4 sm:$0xff]  }
 0x29e   :  { %5450 = vmatpush1.bf16.msra.mxu1 %v11227_v53  ;;  %v11318_v53 = vld [vmem:[#allocation2 + $0x1564] ss:$16 sps:$4 sm:$0xff]  }
 0x29f   :  { %5040 = vmatpush1.bf16.msra.mxu0 %v11224_v52  ;;  %5451 = vmatprep.subr.bf16.mxu1 %v11235_v56  ;;  %v11313_v52 = vld [vmem:[#allocation2 + $0x1148] ss:$16 sps:$4 sm:$0xff]   ;;  %v11316_v56 = vld [vmem:[#allocation2 + $0x1560] ss:$16 sps:$4 sm:$0xff]  }
 0x2a0   :  { %5041 = vmatprep.subr.bf16.mxu0 %v11232_v55  ;;  %v11321_v55 = vld [vmem:[#allocation2 + $0x116c] ss:$16 sps:$4 sm:$0xff]  }
 0x2a2   :  { %5452 = vmatpush1.bf16.msra.mxu1 %v11233_v57  ;;  %v11324_v57 = vld [vmem:[#allocation2 + $0x1584] ss:$16 sps:$4 sm:$0xff]  }
 0x2a3   :  { %5042 = vmatpush1.bf16.msra.mxu0 %v11230_v27  ;;  %5453 = vmatprep.subr.bf16.mxu1 %v11241_v59  ;;  %v11319_v27 = vld [vmem:[#allocation2 + $0x1168] ss:$16 sps:$4 sm:$0xff]   ;;  %v11322_v59 = vld [vmem:[#allocation2 + $0x1580] ss:$16 sps:$4 sm:$0xff]  }
 0x2a4   :  { %5043 = vmatprep.subr.bf16.mxu0 %v11238_v43  ;;  %v11327_v43 = vld [vmem:[#allocation2 + $0x118c] ss:$16 sps:$4 sm:$0xff]  }
 0x2a6   :  { %5454 = vmatpush1.bf16.msra.mxu1 %v11239_v62  ;;  %v11330_v62 = vld [vmem:[#allocation2 + $0x15a4] ss:$16 sps:$4 sm:$0xff]  }
 0x2a7   :  { %5044 = vmatpush1.bf16.msra.mxu0 %v11236_v60  ;;  %5455 = vmatprep.subr.bf16.mxu1 %v11247_v34  ;;  %v11325_v60 = vld [vmem:[#allocation2 + $0x1188] ss:$16 sps:$4 sm:$0xff]   ;;  %v11328_v34 = vld [vmem:[#allocation2 + $0x15a0] ss:$16 sps:$4 sm:$0xff]  }
 0x2a8   :  { %5045 = vmatprep.subr.bf16.mxu0 %v11244_v63  ;;  %v11333_v63 = vld [vmem:[#allocation2 + $0x11ac] ss:$16 sps:$4 sm:$0xff]  }
 0x2aa   :  { %5456 = vmatpush1.bf16.msra.mxu1 %v11245_v54  ;;  %v11336_v54 = vld [vmem:[#allocation2 + $0x15c4] ss:$16 sps:$4 sm:$0xff]  }
 0x2ab   :  { %5046 = vmatpush1.bf16.msra.mxu0 %v11242_v0  ;;  %5466 = vmatprep.subr.bf16.mxu1 %v11255_v3  ;;  %v11331_v0 = vld [vmem:[#allocation2 + $0x11a8] ss:$16 sps:$4 sm:$0xff]   ;;  %v11334_v3 = vld [vmem:[#allocation2 + $0x15c0] ss:$16 sps:$4 sm:$0xff]  }
 0x2ac   :  { %5056 = vmatprep.subr.bf16.mxu0 %v11252_v2  ;;  %v11339_v2 = vld [vmem:[#allocation2 + $0x11cc] ss:$16 sps:$4 sm:$0xff]  }
 0x2ad   :  { %5458 = vmatmul.mubr.bf16.vlgmr.msra.gmra.mrb[4].mxu1 %v12581_v6  ;;  %v11271_v6 = vld [vmem:[#allocation2 + $0x1068] ss:$16 sps:$4 sm:$0xff]  }
 0x2ae   :  { %5048 = vmatmul.mubr.bf16.vlgmr.msra.gmra.mrb[0].mxu0 %v12615_v8  ;;  %5467 = vmatpush1.bf16.msra.mxu1 %v11253_v5  ;;  %v11342_v5 = vld [vmem:[#allocation2 + $0x15e4] ss:$16 sps:$4 sm:$0xff]  }
 0x2af   :  { %5057 = vmatpush1.bf16.msra.mxu0 %v11250_v41  ;;  %5468 = vmatprep.subr.bf16.mxu1 %v11261_v9  ;;  %v11337_v41 = vld [vmem:[#allocation2 + $0x11c8] ss:$16 sps:$4 sm:$0xff]   ;;  %v11340_v9 = vld [vmem:[#allocation2 + $0x15e0] ss:$16 sps:$4 sm:$0xff]  }
 0x2b0   :  { %5058 = vmatprep.subr.bf16.mxu0 %v11258_v44  ;;  %5088 = vmatprep.mubr.bf16.mxu0 %v12619_v12  ;;  %v11345_v44 = vld [vmem:[#allocation2 + $0x11ec] ss:$16 sps:$4 sm:$0xff]  }
 0x2b1   :  { %5498 = vmatprep.mubr.bf16.mxu1 %v12585_v58  ;;  %v11285_v58 = vld [vmem:[#allocation2 + $0x10ac] ss:$16 sps:$4 sm:$0xff]  }
 0x2b2   :  { %5469 = vmatpush1.bf16.msra.mxu1 %v11259_v11  ;;  %v11350_v11 = vld [vmem:[#allocation2 + $0x1604] ss:$16 sps:$4 sm:$0xff]  }
 0x2b3   :  { %5059 = vmatpush1.bf16.msra.mxu0 %v11256_v10  ;;  %5470 = vmatprep.subr.bf16.mxu1 %v11267_v14  ;;  %v11343_v10 = vld [vmem:[#allocation2 + $0x11e8] ss:$16 sps:$4 sm:$0xff]   ;;  %v12627_v14 = vcombine.low %v12611_v4, %v12611_v4  ;;  %v11362_v4 = vld [vmem:[#allocation2 + $0x1644] ss:$16 sps:$4 sm:$0xff]  }
 0x2b4   :  { %5060 = vmatprep.subr.bf16.mxu0 %v11264_v61  ;;  %v11353_v61 = vld [vmem:[#allocation2 + $0x120c] ss:$16 sps:$4 sm:$0xff]  }
 0x2b6   :  { %5471 = vmatpush1.bf16.msra.mxu1 %v11265_v15  ;;  %v11351_v15 = vld [vmem:[#allocation2 + $0x1208] ss:$16 sps:$4 sm:$0xff]  }
 0x2b7   :  { %5061 = vmatpush1.bf16.msra.mxu0 %v11262_v48  ;;  %5472 = vmatprep.subr.bf16.mxu1 %v11273_v17  ;;  %v11348_v48 = vld [vmem:[#allocation2 + $0x1600] ss:$16 sps:$4 sm:$0xff]   ;;  %v11359_v17 = vld [vmem:[#allocation2 + $0x122c] ss:$16 sps:$4 sm:$0xff]  }
 0x2b8   :  { %5062 = vmatprep.subr.bf16.mxu0 %v11270_v16  ;;  %v11356_v16 = vld [vmem:[#allocation2 + $0x1624] ss:$16 sps:$4 sm:$0xff]  }
 0x2ba   :  { %5473 = vmatpush1.bf16.msra.mxu1 %v11271_v6  ;;  %v11357_v6 = vld [vmem:[#allocation2 + $0x1228] ss:$16 sps:$4 sm:$0xff]  }
 0x2bb   :  { %5063 = vmatpush1.bf16.msra.mxu0 %v11268_v20  ;;  %5474 = vmatprep.subr.bf16.mxu1 %v11279_v24  ;;  %v11354_v20 = vld [vmem:[#allocation2 + $0x1620] ss:$16 sps:$4 sm:$0xff]   ;;  %v12317_v24 = vmov 0  }
 0x2bc   :  { %5064 = vmatprep.subr.bf16.mxu0 %v11276_v23  ;;  %v11365_v23 = vld [vmem:[#allocation2 + $0x124c] ss:$16 sps:$4 sm:$0xff]  }
 0x2be   :  { %5475 = vmatpush1.bf16.msra.mxu1 %v11277_v26  ;;  %v11363_v26 = vld [vmem:[#allocation2 + $0x1248] ss:$16 sps:$4 sm:$0xff]  }
 0x2bf   :  { %5065 = vmatpush1.bf16.msra.mxu0 %v11274_v25  ;;  %5476 = vmatprep.subr.bf16.mxu1 %v11285_v58  ;;  %v11360_v25 = vld [vmem:[#allocation2 + $0x1640] ss:$16 sps:$4 sm:$0xff]  }
 0x2c0   :  { %5066 = vmatprep.subr.bf16.mxu0 %v11282_v18  ;;  %v11371_v18 = vld [vmem:[#allocation2 + $0x126c] ss:$16 sps:$4 sm:$0xff]   ;;  %v11366_v58 = vld [vmem:[#allocation2 + $0x1660] ss:$16 sps:$4 sm:$0xff]  }
 0x2c2   :  { %5477 = vmatpush1.bf16.msra.mxu1 %v11283_v30  ;;  %v11374_v30 = vld [vmem:[#allocation2 + $0x1684] ss:$16 sps:$4 sm:$0xff]  }
 0x2c3   :  { %5067 = vmatpush1.bf16.msra.mxu0 %v11280_v28  ;;  %5478 = vmatprep.subr.bf16.mxu1 %v11291_v32  ;;  %v11369_v28 = vld [vmem:[#allocation2 + $0x1268] ss:$16 sps:$4 sm:$0xff]   ;;  %v11372_v32 = vld [vmem:[#allocation2 + $0x1680] ss:$16 sps:$4 sm:$0xff]  }
 0x2c4   :  { %5068 = vmatprep.subr.bf16.mxu0 %v11288_v31  ;;  %v11377_v31 = vld [vmem:[#allocation2 + $0x128c] ss:$16 sps:$4 sm:$0xff]  }
 0x2c6   :  { %5479 = vmatpush1.bf16.msra.mxu1 %v11289_v51  ;;  %v11383_v51 = vld [vmem:[#allocation2 + $0x12ac] ss:$16 sps:$4 sm:$0xff]  }
 0x2c7   :  { %5069 = vmatpush1.bf16.msra.mxu0 %v11286_v22  ;;  %5480 = vmatprep.subr.bf16.mxu1 %v11297_v35  ;;  %v11380_v22 = vld [vmem:[#allocation2 + $0x16a4] ss:$16 sps:$4 sm:$0xff]   ;;  %v11381_v35 = vld [vmem:[#allocation2 + $0x12a8] ss:$16 sps:$4 sm:$0xff]  }
 0x2c8   :  { %5070 = vmatprep.subr.bf16.mxu0 %v11294_v33  ;;  %v11378_v33 = vld [vmem:[#allocation2 + $0x16a0] ss:$16 sps:$4 sm:$0xff]  }
 0x2ca   :  { %5481 = vmatpush1.bf16.msra.mxu1 %v11295_v13  ;;  %v11389_v13 = vld [vmem:[#allocation2 + $0x12cc] ss:$16 sps:$4 sm:$0xff]  }
 0x2cb   :  { %5071 = vmatpush1.bf16.msra.mxu0 %v11292_v36  ;;  %5482 = vmatprep.subr.bf16.mxu1 %v11303_v39  ;;  %v11386_v36 = vld [vmem:[#allocation2 + $0x16c4] ss:$16 sps:$4 sm:$0xff]   ;;  %v11387_v39 = vld [vmem:[#allocation2 + $0x12c8] ss:$16 sps:$4 sm:$0xff]  }
 0x2cc   :  { %5072 = vmatprep.subr.bf16.mxu0 %v11300_v38  ;;  %v11384_v38 = vld [vmem:[#allocation2 + $0x16c0] ss:$16 sps:$4 sm:$0xff]  }
 0x2ce   :  { %5483 = vmatpush1.bf16.msra.mxu1 %v11301_v29  ;;  %v11395_v29 = vld [vmem:[#allocation2 + $0x12ec] ss:$16 sps:$4 sm:$0xff]  }
 0x2cf   :  { %5073 = vmatpush1.bf16.msra.mxu0 %v11298_v40  ;;  %5484 = vmatprep.subr.bf16.mxu1 %v11309_v19  ;;  %v11392_v40 = vld [vmem:[#allocation2 + $0x16e4] ss:$16 sps:$4 sm:$0xff]   ;;  %v11393_v19 = vld [vmem:[#allocation2 + $0x12e8] ss:$16 sps:$4 sm:$0xff]  }
 0x2d0   :  { %5074 = vmatprep.subr.bf16.mxu0 %v11306_v42  ;;  %v11390_v42 = vld [vmem:[#allocation2 + $0x16e0] ss:$16 sps:$4 sm:$0xff]  }
 0x2d2   :  { %5485 = vmatpush1.bf16.msra.mxu1 %v11307_v46  ;;  %v12636_v46 = vld [vmem:[%s12714_s0 + $0x58] ss:$0 sps:$4 sm:$0xff]  }
 0x2d3   :  { %5075 = vmatpush1.bf16.msra.mxu0 %v11304_v45  ;;  %5486 = vmatprep.subr.bf16.mxu1 %v11315_v47  ;;  %v11399_v45 = vld [vmem:[#allocation2 + $0x130c] ss:$16 sps:$4 sm:$0xff]  }
 0x2d4   :  { %5076 = vmatprep.subr.bf16.mxu0 %v11312_v21  ;;  %v11397_v21 = vld [vmem:[#allocation2 + $0x1308] ss:$16 sps:$4 sm:$0xff]   ;;  %v11402_v47 = vld [vmem:[#allocation2 + $0x132c] ss:$16 sps:$4 sm:$0xff]  }
 0x2d6   :  { %5487 = vmatpush1.bf16.msra.mxu1 %v11313_v52  ;;  %v11495_v52 = vld [vmem:[#allocation4 + $0x4] ss:$16 sps:$4 sm:$0xff]  }
 0x2d7   :  { %5077 = vmatpush1.bf16.msra.mxu0 %v11310_v37  ;;  %5488 = vmatprep.subr.bf16.mxu1 %v11321_v55  ;;  %v11493_v37 = vld [vmem:[#allocation4] ss:$16 sps:$4 sm:$0xff]   ;;  %v11501_v55 = vld [vmem:[#allocation4 + $0x24] ss:$16 sps:$4 sm:$0xff]  }
 0x2d8   :  { %5078 = vmatprep.subr.bf16.mxu0 %v11318_v53  ;;  %v11400_v53 = vld [vmem:[#allocation2 + $0x1328] ss:$16 sps:$4 sm:$0xff]  }
 0x2da   :  { %5489 = vmatpush1.bf16.msra.mxu1 %v11319_v27  ;;  %v11499_v27 = vld [vmem:[#allocation4 + $0x20] ss:$16 sps:$4 sm:$0xff]  }
 0x2db   :  { %5079 = vmatpush1.bf16.msra.mxu0 %v11316_v56  ;;  %5490 = vmatprep.subr.bf16.mxu1 %v11327_v43  ;;  %v11405_v56 = vld [vmem:[#allocation2 + $0x134c] ss:$16 sps:$4 sm:$0xff]   ;;  %v11507_v43 = vld [vmem:[#allocation4 + $0x44] ss:$16 sps:$4 sm:$0xff]  }
 0x2dc   :  { %5080 = vmatprep.subr.bf16.mxu0 %v11324_v57  ;;  %v11403_v57 = vld [vmem:[#allocation2 + $0x1348] ss:$16 sps:$4 sm:$0xff]  }
 0x2de   :  { %5491 = vmatpush1.bf16.msra.mxu1 %v11325_v60  ;;  %v11505_v60 = vld [vmem:[#allocation4 + $0x40] ss:$16 sps:$4 sm:$0xff]  }
 0x2df   :  { %5081 = vmatpush1.bf16.msra.mxu0 %v11322_v59  ;;  %5492 = vmatprep.subr.bf16.mxu1 %v11333_v63  ;;  %v11408_v59 = vld [vmem:[#allocation2 + $0x136c] ss:$16 sps:$4 sm:$0xff]   ;;  %v11513_v63 = vld [vmem:[#allocation4 + $0x64] ss:$16 sps:$4 sm:$0xff]  }
 0x2e0   :  { %5082 = vmatprep.subr.bf16.mxu0 %v11330_v62  ;;  %v11406_v62 = vld [vmem:[#allocation2 + $0x1368] ss:$16 sps:$4 sm:$0xff]  }
 0x2e2   :  { %5493 = vmatpush1.bf16.msra.mxu1 %v11331_v0  ;;  %v11511_v0 = vld [vmem:[#allocation4 + $0x60] ss:$16 sps:$4 sm:$0xff]  }
 0x2e3   :  { %5083 = vmatpush1.bf16.msra.mxu0 %v11328_v34  ;;  %5494 = vmatprep.subr.bf16.mxu1 %v11339_v2  ;;  %v11411_v34 = vld [vmem:[#allocation2 + $0x138c] ss:$16 sps:$4 sm:$0xff]   ;;  %v11519_v2 = vld [vmem:[#allocation4 + $0x84] ss:$16 sps:$4 sm:$0xff]  }
 0x2e4   :  { %5084 = vmatprep.subr.bf16.mxu0 %v11336_v54  ;;  %v11409_v54 = vld [vmem:[#allocation2 + $0x1388] ss:$16 sps:$4 sm:$0xff]  }
 0x2e6   :  { %5495 = vmatpush1.bf16.msra.mxu1 %v11337_v41  ;;  %v11517_v41 = vld [vmem:[#allocation4 + $0x80] ss:$16 sps:$4 sm:$0xff]  }
 0x2e7   :  { %5085 = vmatpush1.bf16.msra.mxu0 %v11334_v3  ;;  %5496 = vmatprep.subr.bf16.mxu1 %v11345_v44  ;;  %v11414_v3 = vld [vmem:[#allocation2 + $0x13ac] ss:$16 sps:$4 sm:$0xff]   ;;  %v11525_v44 = vld [vmem:[#allocation4 + $0xa4] ss:$16 sps:$4 sm:$0xff]  }
 0x2e8   :  { %5086 = vmatprep.subr.bf16.mxu0 %v11342_v5  ;;  %v11412_v5 = vld [vmem:[#allocation2 + $0x13a8] ss:$16 sps:$4 sm:$0xff]  }
 0x2ea   :  { %5497 = vmatpush1.bf16.msra.mxu1 %v11343_v10  ;;  %v11523_v10 = vld [vmem:[#allocation4 + $0xa0] ss:$16 sps:$4 sm:$0xff]  }
 0x2eb   :  { %5087 = vmatpush1.bf16.msra.mxu0 %v11340_v9  ;;  %5507 = vmatprep.subr.bf16.mxu1 %v11353_v61  ;;  %v11417_v9 = vld [vmem:[#allocation2 + $0x13cc] ss:$16 sps:$4 sm:$0xff]   ;;  %v11531_v61 = vld [vmem:[#allocation4 + $0xc4] ss:$16 sps:$4 sm:$0xff]  }
 0x2ec   :  { %5097 = vmatprep.subr.bf16.mxu0 %v11350_v11  ;;  %v11415_v11 = vld [vmem:[#allocation2 + $0x13c8] ss:$16 sps:$4 sm:$0xff]  }
 0x2ed   :  { %5499 = vmatmul.mubr.bf16.vlgmr.msra.gmra.mrb[4].mxu1 %v12598_v7  ;;  %v11368_v7 = vld [vmem:[#allocation2 + $0x1664] ss:$16 sps:$4 sm:$0xff]  }
 0x2ee   :  { %5089 = vmatmul.mubr.bf16.vlgmr.msra.gmra.mrb[0].mxu0 %v12627_v14  ;;  %5508 = vmatpush1.bf16.msra.mxu1 %v11351_v15  ;;  %v11529_v15 = vld [vmem:[#allocation4 + $0xc0] ss:$16 sps:$4 sm:$0xff]  }
 0x2ef   :  { %5098 = vmatpush1.bf16.msra.mxu0 %v11348_v48  ;;  %5509 = vmatprep.subr.bf16.mxu1 %v11359_v17  ;;  %v11420_v48 = vld [vmem:[#allocation2 + $0x13ec] ss:$16 sps:$4 sm:$0xff]   ;;  %v11537_v17 = vld [vmem:[#allocation4 + $0xe4] ss:$16 sps:$4 sm:$0xff]  }
 0x2f0   :  { %5099 = vmatprep.subr.bf16.mxu0 %v11356_v16  ;;  %5129 = vmatprep.mubr.bf16.mxu0 %v12317_v24  ;;  %v11418_v16 = vld [vmem:[#allocation2 + $0x13e8] ss:$16 sps:$4 sm:$0xff]  }
 0x2f1   :  { %5539 = vmatprep.mubr.bf16.mxu1 %v12602_v1  ;;  %v11375_v1 = vld [vmem:[#allocation2 + $0x1288] ss:$16 sps:$4 sm:$0xff]  }
 0x2f2   :  { %5510 = vmatpush1.bf16.msra.mxu1 %v11357_v6  ;;  %v11535_v6 = vld [vmem:[#allocation4 + $0xe0] ss:$16 sps:$4 sm:$0xff]  }
 0x2f3   :  { %5100 = vmatpush1.bf16.msra.mxu0 %v11354_v20  ;;  %5511 = vmatprep.subr.bf16.mxu1 %v11365_v23  ;;  %v11423_v20 = vld [vmem:[#allocation2 + $0x140c] ss:$16 sps:$4 sm:$0xff]   ;;  %v11543_v23 = vld [vmem:[#allocation4 + $0x104] ss:$16 sps:$4 sm:$0xff]  }
 0x2f4   :  { %5101 = vmatprep.subr.bf16.mxu0 %v11362_v4  ;;  %v11421_v4 = vld [vmem:[#allocation2 + $0x1408] ss:$16 sps:$4 sm:$0xff]  }
 0x2f6   :  { %5512 = vmatpush1.bf16.msra.mxu1 %v11363_v26  ;;  %v11541_v26 = vld [vmem:[#allocation4 + $0x100] ss:$16 sps:$4 sm:$0xff]  }
 0x2f7   :  { %5102 = vmatpush1.bf16.msra.mxu0 %v11360_v25  ;;  %5513 = vmatprep.subr.bf16.mxu1 %v11371_v18  ;;  %v11426_v25 = vld [vmem:[#allocation2 + $0x142c] ss:$16 sps:$4 sm:$0xff]   ;;  %v11549_v18 = vld [vmem:[#allocation4 + $0x124] ss:$16 sps:$4 sm:$0xff]  }
 0x2f8   :  { %5103 = vmatprep.subr.bf16.mxu0 %v11368_v7  ;;  %v11424_v7 = vld [vmem:[#allocation2 + $0x1428] ss:$16 sps:$4 sm:$0xff]  }
 0x2fa   :  { %5514 = vmatpush1.bf16.msra.mxu1 %v11369_v28  ;;  %v11547_v28 = vld [vmem:[#allocation4 + $0x120] ss:$16 sps:$4 sm:$0xff]  }
 0x2fb   :  { %5104 = vmatpush1.bf16.msra.mxu0 %v11366_v58  ;;  %5515 = vmatprep.subr.bf16.mxu1 %v11377_v31  ;;  %v11429_v58 = vld [vmem:[#allocation2 + $0x144c] ss:$16 sps:$4 sm:$0xff]   ;;  %v11555_v31 = vld [vmem:[#allocation4 + $0x144] ss:$16 sps:$4 sm:$0xff]  }
 0x2fc   :  { %5105 = vmatprep.subr.bf16.mxu0 %v11374_v30  ;;  %v11427_v30 = vld [vmem:[#allocation2 + $0x1448] ss:$16 sps:$4 sm:$0xff]  }
 0x2fe   :  { %5516 = vmatpush1.bf16.msra.mxu1 %v11375_v1  ;;  %v11553_v1 = vld [vmem:[#allocation4 + $0x140] ss:$16 sps:$4 sm:$0xff]  }
 0x2ff   :  { %5106 = vmatpush1.bf16.msra.mxu0 %v11372_v32  ;;  %5517 = vmatprep.subr.bf16.mxu1 %v11383_v51  ;;  %v11432_v32 = vld [vmem:[#allocation2 + $0x146c] ss:$16 sps:$4 sm:$0xff]  }
 0x300   :  { %5107 = vmatprep.subr.bf16.mxu0 %v11380_v22  ;;  %v11561_v22 = vld [vmem:[#allocation4 + $0x164] ss:$16 sps:$4 sm:$0xff]   ;;  %v11435_v51 = vld [vmem:[#allocation2 + $0x148c] ss:$16 sps:$4 sm:$0xff]  }
 0x302   :  { %5518 = vmatpush1.bf16.msra.mxu1 %v11381_v35  ;;  %v11567_v35 = vld [vmem:[#allocation4 + $0x184] ss:$16 sps:$4 sm:$0xff]  }
 0x303   :  { %5108 = vmatpush1.bf16.msra.mxu0 %v11378_v33  ;;  %5519 = vmatprep.subr.bf16.mxu1 %v11389_v13  ;;  %v11433_v33 = vld [vmem:[#allocation2 + $0x1488] ss:$16 sps:$4 sm:$0xff]   ;;  %v11565_v13 = vld [vmem:[#allocation4 + $0x180] ss:$16 sps:$4 sm:$0xff]  }
 0x304   :  { %5109 = vmatprep.subr.bf16.mxu0 %v11386_v36  ;;  %v11438_v36 = vld [vmem:[#allocation2 + $0x14ac] ss:$16 sps:$4 sm:$0xff]  }
 0x306   :  { %5520 = vmatpush1.bf16.msra.mxu1 %v11387_v39  ;;  %v11573_v39 = vld [vmem:[#allocation4 + $0x1a4] ss:$16 sps:$4 sm:$0xff]  }
 0x307   :  { %5110 = vmatpush1.bf16.msra.mxu0 %v11384_v38  ;;  %5521 = vmatprep.subr.bf16.mxu1 %v11395_v29  ;;  %v11436_v38 = vld [vmem:[#allocation2 + $0x14a8] ss:$16 sps:$4 sm:$0xff]   ;;  %v11571_v29 = vld [vmem:[#allocation4 + $0x1a0] ss:$16 sps:$4 sm:$0xff]  }
 0x308   :  { %5111 = vmatprep.subr.bf16.mxu0 %v11392_v40  ;;  %v11441_v40 = vld [vmem:[#allocation2 + $0x14cc] ss:$16 sps:$4 sm:$0xff]  }
 0x30a   :  { %5522 = vmatpush1.bf16.msra.mxu1 %v11393_v19  ;;  %v11444_v19 = vld [vmem:[#allocation2 + $0x14ec] ss:$16 sps:$4 sm:$0xff]  }
 0x30b   :  { %5112 = vmatpush1.bf16.msra.mxu0 %v11390_v42  ;;  %5523 = vmatprep.subr.bf16.mxu1 %v11399_v45  ;;  %v11439_v42 = vld [vmem:[#allocation2 + $0x14c8] ss:$16 sps:$4 sm:$0xff]  }
 0x30c   :  { %6427 = vmatprep.subr.bf16.mxu0 %v11495_v52  ;;  %v11442_v45 = vld [vmem:[#allocation2 + $0x14e8] ss:$16 sps:$4 sm:$0xff]  }
 0x30d   :  { %v11448_v52 = vld [vmem:[#allocation2 + $0x1528] ss:$16 sps:$4 sm:$0xff]  }
 0x30e   :  { %5130 = vmatmul.mubr.bf16.vlgmr.msra.gmra.mrb[0].mxu0 %v12636_v46  ;;  %5524 = vmatpush1.bf16.msra.mxu1 %v11397_v21  ;;  %v11447_v21 = vld [vmem:[#allocation2 + $0x150c] ss:$16 sps:$4 sm:$0xff]  }
 0x30f   :  { %5525 = vmatprep.subr.bf16.mxu1 %v11402_v47  ;;  %6428 = vmatpush1.bf16.msra.mxu0 %v11493_v37  ;;  %v11445_v47 = vld [vmem:[#allocation2 + $0x1508] ss:$16 sps:$4 sm:$0xff]   ;;  %v11450_v37 = vld [vmem:[#allocation2 + $0x152c] ss:$16 sps:$4 sm:$0xff]  }
 0x310   :  { %6429 = vmatprep.subr.bf16.mxu0 %v11501_v55  ;;  %v11451_v55 = vld [vmem:[#allocation2 + $0x1548] ss:$16 sps:$4 sm:$0xff]  }
 0x312   :  { %5526 = vmatpush1.bf16.msra.mxu1 %v11400_v53  ;;  %v11453_v53 = vld [vmem:[#allocation2 + $0x154c] ss:$16 sps:$4 sm:$0xff]  }
 0x313   :  { %5527 = vmatprep.subr.bf16.mxu1 %v11405_v56  ;;  %6430 = vmatpush1.bf16.msra.mxu0 %v11499_v27  ;;  %v11456_v56 = vld [vmem:[#allocation2 + $0x156c] ss:$16 sps:$4 sm:$0xff]   ;;  %v11454_v27 = vld [vmem:[#allocation2 + $0x1568] ss:$16 sps:$4 sm:$0xff]  }
 0x314   :  { %6431 = vmatprep.subr.bf16.mxu0 %v11507_v43  ;;  %v11457_v43 = vld [vmem:[#allocation2 + $0x1588] ss:$16 sps:$4 sm:$0xff]  }
 0x316   :  { %5528 = vmatpush1.bf16.msra.mxu1 %v11403_v57  ;;  %v11459_v57 = vld [vmem:[#allocation2 + $0x158c] ss:$16 sps:$4 sm:$0xff]  }
 0x317   :  { %5529 = vmatprep.subr.bf16.mxu1 %v11408_v59  ;;  %6432 = vmatpush1.bf16.msra.mxu0 %v11505_v60  ;;  %v11462_v59 = vld [vmem:[#allocation2 + $0x15ac] ss:$16 sps:$4 sm:$0xff]   ;;  %v11460_v60 = vld [vmem:[#allocation2 + $0x15a8] ss:$16 sps:$4 sm:$0xff]  }
 0x318   :  { %6433 = vmatprep.subr.bf16.mxu0 %v11513_v63  ;;  %v11579_v63 = vld [vmem:[#allocation4 + $0x1c4] ss:$16 sps:$4 sm:$0xff]  }
 0x31a   :  { %5530 = vmatpush1.bf16.msra.mxu1 %v11406_v62  ;;  %v11465_v62 = vld [vmem:[#allocation2 + $0x15cc] ss:$16 sps:$4 sm:$0xff]  }
 0x31b   :  { %5531 = vmatprep.subr.bf16.mxu1 %v11411_v34  ;;  %6434 = vmatpush1.bf16.msra.mxu0 %v11511_v0  ;;  %v11577_v34 = vld [vmem:[#allocation4 + $0x1c0] ss:$16 sps:$4 sm:$0xff]   ;;  %v11463_v0 = vld [vmem:[#allocation2 + $0x15c8] ss:$16 sps:$4 sm:$0xff]  }
 0x31c   :  { %6435 = vmatprep.subr.bf16.mxu0 %v11519_v2  ;;  %v11585_v2 = vld [vmem:[#allocation4 + $0x1e4] ss:$16 sps:$4 sm:$0xff]  }
 0x31e   :  { %5532 = vmatpush1.bf16.msra.mxu1 %v11409_v54  ;;  %v11468_v54 = vld [vmem:[#allocation2 + $0x15ec] ss:$16 sps:$4 sm:$0xff]  }
 0x31f   :  { %5533 = vmatprep.subr.bf16.mxu1 %v11414_v3  ;;  %6436 = vmatpush1.bf16.msra.mxu0 %v11517_v41  ;;  %v11583_v3 = vld [vmem:[#allocation4 + $0x1e0] ss:$16 sps:$4 sm:$0xff]   ;;  %v11466_v41 = vld [vmem:[#allocation2 + $0x15e8] ss:$16 sps:$4 sm:$0xff]  }
 0x320   :  { %6437 = vmatprep.subr.bf16.mxu0 %v11525_v44  ;;  %v11591_v44 = vld [vmem:[#allocation4 + $0x204] ss:$16 sps:$4 sm:$0xff]  }
 0x322   :  { %5534 = vmatpush1.bf16.msra.mxu1 %v11412_v5  ;;  %v11471_v5 = vld [vmem:[#allocation2 + $0x160c] ss:$16 sps:$4 sm:$0xff]  }
 0x323   :  { %5535 = vmatprep.subr.bf16.mxu1 %v11417_v9  ;;  %6438 = vmatpush1.bf16.msra.mxu0 %v11523_v10  ;;  %v11469_v9 = vld [vmem:[#allocation2 + $0x1608] ss:$16 sps:$4 sm:$0xff]   ;;  %v11474_v10 = vld [vmem:[#allocation2 + $0x162c] ss:$16 sps:$4 sm:$0xff]  }
 0x324   :  { %6439 = vmatprep.subr.bf16.mxu0 %v11531_v61  ;;  %v11477_v61 = vld [vmem:[#allocation2 + $0x164c] ss:$16 sps:$4 sm:$0xff]  }
 0x326   :  { %5536 = vmatpush1.bf16.msra.mxu1 %v11415_v11  ;;  %v11472_v11 = vld [vmem:[#allocation2 + $0x1628] ss:$16 sps:$4 sm:$0xff]  }
 0x327   :  { %5537 = vmatprep.subr.bf16.mxu1 %v11420_v48  ;;  %6440 = vmatpush1.bf16.msra.mxu0 %v11529_v15  ;;  %v11475_v48 = vld [vmem:[#allocation2 + $0x1648] ss:$16 sps:$4 sm:$0xff]   ;;  %v11480_v15 = vld [vmem:[#allocation2 + $0x166c] ss:$16 sps:$4 sm:$0xff]  }
 0x328   :  { %6441 = vmatprep.subr.bf16.mxu0 %v11537_v17  ;;  %v11483_v17 = vld [vmem:[#allocation2 + $0x168c] ss:$16 sps:$4 sm:$0xff]  }
 0x32a   :  { %5538 = vmatpush1.bf16.msra.mxu1 %v11418_v16  ;;  %v11478_v16 = vld [vmem:[#allocation2 + $0x1668] ss:$16 sps:$4 sm:$0xff]  }
 0x32b   :  { %5548 = vmatprep.subr.bf16.mxu1 %v11423_v20  ;;  %6442 = vmatpush1.bf16.msra.mxu0 %v11535_v6  ;;  %v11481_v20 = vld [vmem:[#allocation2 + $0x1688] ss:$16 sps:$4 sm:$0xff]   ;;  %v11486_v6 = vld [vmem:[#allocation2 + $0x16ac] ss:$16 sps:$4 sm:$0xff]  }
 0x32c   :  { %6443 = vmatprep.subr.bf16.mxu0 %v11543_v23  ;;  %v11492_v23 = vld [vmem:[#allocation2 + $0x16ec] ss:$16 sps:$4 sm:$0xff]  }
 0x32d   :  { %5540 = vmatmul.mubr.bf16.vlgmr.msra.gmra.mrb[4].mxu1 %v12615_v8  ;;  %v11430_v8 = vld [vmem:[#allocation2 + $0x1468] ss:$16 sps:$4 sm:$0xff]  }
 0x32e   :  { %5549 = vmatpush1.bf16.msra.mxu1 %v11421_v4  ;;  %5580 = vmatprep.mubr.bf16.mxu1 %v12619_v12  ;;  %v11559_v12 = vld [vmem:[#allocation4 + $0x160] ss:$16 sps:$4 sm:$0xff]   ;;  %v11489_v4 = vld [vmem:[#allocation2 + $0x16cc] ss:$16 sps:$4 sm:$0xff]  }
 0x32f   :  { %5550 = vmatprep.subr.bf16.mxu1 %v11426_v25  ;;  %6444 = vmatpush1.bf16.msra.mxu0 %v11541_v26  ;;  %v11490_v25 = vld [vmem:[#allocation2 + $0x16e8] ss:$16 sps:$4 sm:$0xff]   ;;  %v11498_v26 = vld [vmem:[#allocation4 + $0xc] ss:$16 sps:$4 sm:$0xff]  }
 0x330   :  { %6445 = vmatprep.subr.bf16.mxu0 %v11549_v18  ;;  %v11504_v18 = vld [vmem:[#allocation4 + $0x2c] ss:$16 sps:$4 sm:$0xff]  }
 0x332   :  { %5551 = vmatpush1.bf16.msra.mxu1 %v11424_v7  ;;  %v11496_v7 = vld [vmem:[#allocation4 + $0x8] ss:$16 sps:$4 sm:$0xff]  }
 0x333   :  { %5552 = vmatprep.subr.bf16.mxu1 %v11429_v58  ;;  %6446 = vmatpush1.bf16.msra.mxu0 %v11547_v28  ;;  %v11502_v58 = vld [vmem:[#allocation4 + $0x28] ss:$16 sps:$4 sm:$0xff]   ;;  %v11510_v28 = vld [vmem:[#allocation4 + $0x4c] ss:$16 sps:$4 sm:$0xff]  }
 0x334   :  { %6447 = vmatprep.subr.bf16.mxu0 %v11555_v31  ;;  %v11516_v31 = vld [vmem:[#allocation4 + $0x6c] ss:$16 sps:$4 sm:$0xff]  }
 0x336   :  { %5553 = vmatpush1.bf16.msra.mxu1 %v11427_v30  ;;  %v11508_v30 = vld [vmem:[#allocation4 + $0x48] ss:$16 sps:$4 sm:$0xff]  }
 0x337   :  { %5554 = vmatprep.subr.bf16.mxu1 %v11432_v32  ;;  %6448 = vmatpush1.bf16.msra.mxu0 %v11553_v1  ;;  %v11514_v32 = vld [vmem:[#allocation4 + $0x68] ss:$16 sps:$4 sm:$0xff]   ;;  %v11522_v1 = vld [vmem:[#allocation4 + $0x8c] ss:$16 sps:$4 sm:$0xff]  }
 0x338   :  { %6449 = vmatprep.subr.bf16.mxu0 %v11561_v22  ;;  %v11528_v22 = vld [vmem:[#allocation4 + $0xac] ss:$16 sps:$4 sm:$0xff]  }
 0x33a   :  { %5555 = vmatpush1.bf16.msra.mxu1 %v11430_v8  ;;  %v11520_v8 = vld [vmem:[#allocation4 + $0x88] ss:$16 sps:$4 sm:$0xff]  }
 0x33b   :  { %5556 = vmatprep.subr.bf16.mxu1 %v11435_v51  ;;  %6450 = vmatpush1.bf16.msra.mxu0 %v11559_v12  ;;  %v11526_v51 = vld [vmem:[#allocation4 + $0xa8] ss:$16 sps:$4 sm:$0xff]  }
 0x33c   :  { %6451 = vmatprep.subr.bf16.mxu0 %v11567_v35  ;;  %v11532_v12 = vld [vmem:[#allocation4 + $0xc8] ss:$16 sps:$4 sm:$0xff]  }
 0x33d   :  { %v11538_v35 = vld [vmem:[#allocation4 + $0xe8] ss:$16 sps:$4 sm:$0xff]  }
 0x33e   :  { %5557 = vmatpush1.bf16.msra.mxu1 %v11433_v33  ;;  %v11540_v33 = vld [vmem:[#allocation4 + $0xec] ss:$16 sps:$4 sm:$0xff]  }
 0x33f   :  { %5558 = vmatprep.subr.bf16.mxu1 %v11438_v36  ;;  %6452 = vmatpush1.bf16.msra.mxu0 %v11565_v13  ;;  %v11546_v36 = vld [vmem:[#allocation4 + $0x10c] ss:$16 sps:$4 sm:$0xff]   ;;  %v11544_v13 = vld [vmem:[#allocation4 + $0x108] ss:$16 sps:$4 sm:$0xff]  }
 0x340   :  { %6453 = vmatprep.subr.bf16.mxu0 %v11573_v39  ;;  %v11550_v39 = vld [vmem:[#allocation4 + $0x128] ss:$16 sps:$4 sm:$0xff]  }
 0x342   :  { %5559 = vmatpush1.bf16.msra.mxu1 %v11436_v38  ;;  %v11552_v38 = vld [vmem:[#allocation4 + $0x12c] ss:$16 sps:$4 sm:$0xff]  }
 0x343   :  { %5560 = vmatprep.subr.bf16.mxu1 %v11441_v40  ;;  %6454 = vmatpush1.bf16.msra.mxu0 %v11571_v29  ;;  %v11558_v40 = vld [vmem:[#allocation4 + $0x14c] ss:$16 sps:$4 sm:$0xff]   ;;  %v11556_v29 = vld [vmem:[#allocation4 + $0x148] ss:$16 sps:$4 sm:$0xff]  }
 0x344   :  { %6455 = vmatprep.subr.bf16.mxu0 %v11579_v63 }
 0x346   :  { %5561 = vmatpush1.bf16.msra.mxu1 %v11439_v42  ;;  %v11564_v42 = vld [vmem:[#allocation4 + $0x16c] ss:$16 sps:$4 sm:$0xff]  }
 0x347   :  { %5562 = vmatprep.subr.bf16.mxu1 %v11444_v19  ;;  %6456 = vmatpush1.bf16.msra.mxu0 %v11577_v34  ;;  %v11562_v19 = vld [vmem:[#allocation4 + $0x168] ss:$16 sps:$4 sm:$0xff]  }
 0x348   :  { %6457 = vmatprep.subr.bf16.mxu0 %v11585_v2 }
 0x34a   :  { %5563 = vmatpush1.bf16.msra.mxu1 %v11442_v45  ;;  %v11570_v45 = vld [vmem:[#allocation4 + $0x18c] ss:$16 sps:$4 sm:$0xff]  }
 0x34b   :  { %5564 = vmatprep.subr.bf16.mxu1 %v11447_v21  ;;  %6458 = vmatpush1.bf16.msra.mxu0 %v11583_v3  ;;  %v11568_v21 = vld [vmem:[#allocation4 + $0x188] ss:$16 sps:$4 sm:$0xff]  }
 0x34c   :  { %6468 = vmatprep.subr.bf16.mxu0 %v11591_v44 }
 0x34e   :  { %5565 = vmatpush1.bf16.msra.mxu1 %v11445_v47  ;;  %v11576_v47 = vld [vmem:[#allocation4 + $0x1ac] ss:$16 sps:$4 sm:$0xff]  }
 0x34f   :  { %5566 = vmatprep.subr.bf16.mxu1 %v11450_v37  ;;  %v11574_v37 = vld [vmem:[#allocation4 + $0x1a8] ss:$16 sps:$4 sm:$0xff]  }
 0x352   :  { %5567 = vmatpush1.bf16.msra.mxu1 %v11448_v52  ;;  %v11582_v52 = vld [vmem:[#allocation4 + $0x1cc] ss:$16 sps:$4 sm:$0xff]  }
 0x353   :  { %5568 = vmatprep.subr.bf16.mxu1 %v11453_v53  ;;  %v11580_v53 = vld [vmem:[#allocation4 + $0x1c8] ss:$16 sps:$4 sm:$0xff]  }
 0x356   :  { %5569 = vmatpush1.bf16.msra.mxu1 %v11451_v55  ;;  %v11588_v55 = vld [vmem:[#allocation4 + $0x1ec] ss:$16 sps:$4 sm:$0xff]  }
 0x357   :  { %5570 = vmatprep.subr.bf16.mxu1 %v11456_v56  ;;  %v11586_v56 = vld [vmem:[#allocation4 + $0x1e8] ss:$16 sps:$4 sm:$0xff]  }
 0x35a   :  { %5571 = vmatpush1.bf16.msra.mxu1 %v11454_v27  ;;  %v11594_v27 = vld [vmem:[#allocation4 + $0x20c] ss:$16 sps:$4 sm:$0xff]  }
 0x35b   :  { %5572 = vmatprep.subr.bf16.mxu1 %v11459_v57  ;;  %v865_v57 = vlaneseq }
 0x35e   :  { %5573 = vmatpush1.bf16.msra.mxu1 %v11457_v43  ;;  %v12644_v43 = vshrl.u32 %v865_v57, 7  ;;  %v11658_v57 = vld [vmem:[#allocation4 + $0x368] ss:$16 sps:$4 sm:$0xff]  }
 0x35f   :  { %5574 = vmatprep.subr.bf16.mxu1 %v11462_v59 }
 0x360   :  { %v12647_v59 = vsub.s32 0, %v12644_v43 }
 0x362   :  { %5575 = vmatpush1.bf16.msra.mxu1 %v11460_v60  ;;  %v12649_v60 = vld [vmem:[#allocation10] ss:$8 sm:$0xf] }
 0x363   :  { %5576 = vmatprep.subr.bf16.mxu1 %v11465_v62  ;;  %v12652_v62 = vsub.s32 1, %v12644_v43  ;;  %v868_v63 = vrot.slane %v12649_v60, %v12647_v59 }
 0x365   :  { %v872_v34 = vrot.slane %v12649_v60, %v12652_v62 }
 0x366   :  { %5577 = vmatpush1.bf16.msra.mxu1 %v11463_v0  ;;  %v4681_v0 = vadd.f32 %v12536_v49, %v868_v63  ;;  %v11595_v49 = vld [vmem:[#allocation4 + $0x220] ss:$16 sps:$4 sm:$0xff]   ;;  %v11663_v63 = vld [vmem:[#allocation4 + $0x384] ss:$16 sps:$4 sm:$0xff]  }
 0x367   :  { %5578 = vmatprep.subr.bf16.mxu1 %v11468_v54  ;;  %v4683_v54 = vadd.f32 %v12538_v50, %v872_v34  ;;  %v11598_v50 = vld [vmem:[#allocation4 + $0x228] ss:$16 sps:$4 sm:$0xff]   ;;  %v11666_v34 = vld [vmem:[#allocation4 + $0x38c] ss:$16 sps:$4 sm:$0xff]  }
 0x36a   :  { %5579 = vmatpush1.bf16.msra.mxu1 %v11466_v41 }
 0x36b   :  { %5589 = vmatprep.subr.bf16.mxu1 %v11471_v5 }
 0x36d   :  { %5581 = vmatmul.mubr.bf16.vlgmr.msra.gmra.mrb[4].mxu1 %v12627_v14  ;;  %v11484_v14 = vld [vmem:[#allocation2 + $0x16a8] ss:$16 sps:$4 sm:$0xff]  }
 0x36e   :  { %5590 = vmatpush1.bf16.msra.mxu1 %v11469_v9  ;;  %5621 = vmatprep.mubr.bf16.mxu1 %v12317_v24  ;;  %v11487_v24 = vld [vmem:[#allocation2 + $0x16c8] ss:$16 sps:$4 sm:$0xff]  }
 0x36f   :  { %5591 = vmatprep.subr.bf16.mxu1 %v11474_v10 }
 0x372   :  { %5592 = vmatpush1.bf16.msra.mxu1 %v11472_v11 }
 0x373   :  { %5593 = vmatprep.subr.bf16.mxu1 %v11477_v61 }
 0x376   :  { %5594 = vmatpush1.bf16.msra.mxu1 %v11475_v48  ;;  %v11589_v48 = vld [vmem:[#allocation4 + $0x200] ss:$16 sps:$4 sm:$0xff]  }
 0x377   :  { %5595 = vmatprep.subr.bf16.mxu1 %v11480_v15  ;;  %v11592_v15 = vld [vmem:[#allocation4 + $0x208] ss:$16 sps:$4 sm:$0xff]  }
 0x37a   :  { %5596 = vmatpush1.bf16.msra.mxu1 %v11478_v16 }
 0x37b   :  { %5597 = vmatprep.subr.bf16.mxu1 %v11483_v17  ;;  %v11597_v17 = vld [vmem:[#allocation4 + $0x224] ss:$16 sps:$4 sm:$0xff]  }
 0x37e   :  { %5598 = vmatpush1.bf16.msra.mxu1 %v11481_v20  ;;  %v11600_v20 = vld [vmem:[#allocation4 + $0x22c] ss:$16 sps:$4 sm:$0xff]  }
 0x37f   :  { %5599 = vmatprep.subr.bf16.mxu1 %v11486_v6  ;;  %v11603_v6 = vld [vmem:[#allocation4 + $0x244] ss:$16 sps:$4 sm:$0xff]  }
 0x382   :  { %5600 = vmatpush1.bf16.msra.mxu1 %v11484_v14  ;;  %v11606_v14 = vld [vmem:[#allocation4 + $0x24c] ss:$16 sps:$4 sm:$0xff]  }
 0x383   :  { %5601 = vmatprep.subr.bf16.mxu1 %v11489_v4  ;;  %v11601_v4 = vld [vmem:[#allocation4 + $0x240] ss:$16 sps:$4 sm:$0xff]  }
 0x386   :  { %5602 = vmatpush1.bf16.msra.mxu1 %v11487_v24  ;;  %v11604_v24 = vld [vmem:[#allocation4 + $0x248] ss:$16 sps:$4 sm:$0xff]  }
 0x387   :  { %5603 = vmatprep.subr.bf16.mxu1 %v11492_v23  ;;  %v11609_v23 = vld [vmem:[#allocation4 + $0x264] ss:$16 sps:$4 sm:$0xff]  }
 0x38a   :  { %5604 = vmatpush1.bf16.msra.mxu1 %v11490_v25  ;;  %v11612_v25 = vld [vmem:[#allocation4 + $0x26c] ss:$16 sps:$4 sm:$0xff]  }
 0x38b   :  { %6509 = vmatprep.subr.bf16.mxu1 %v11498_v26  ;;  %v11607_v26 = vld [vmem:[#allocation4 + $0x260] ss:$16 sps:$4 sm:$0xff]  }
 0x38d   :  { %5622 = vmatmul.mubr.bf16.vlgmr.msra.gmra.mrb[4].mxu1 %v12636_v46  ;;  %v11534_v46 = vld [vmem:[#allocation4 + $0xcc] ss:$16 sps:$4 sm:$0xff]  }
 0x38e   :  { %6510 = vmatpush1.bf16.msra.mxu1 %v11496_v7  ;;  %v11610_v7 = vld [vmem:[#allocation4 + $0x268] ss:$16 sps:$4 sm:$0xff]  }
 0x38f   :  { %6511 = vmatprep.subr.bf16.mxu1 %v11504_v18  ;;  %v11615_v18 = vld [vmem:[#allocation4 + $0x284] ss:$16 sps:$4 sm:$0xff]  }
 0x392   :  { %6512 = vmatpush1.bf16.msra.mxu1 %v11502_v58  ;;  %v11618_v58 = vld [vmem:[#allocation4 + $0x28c] ss:$16 sps:$4 sm:$0xff]  }
 0x393   :  { %6513 = vmatprep.subr.bf16.mxu1 %v11510_v28  ;;  %v11613_v28 = vld [vmem:[#allocation4 + $0x280] ss:$16 sps:$4 sm:$0xff]  }
 0x396   :  { %6514 = vmatpush1.bf16.msra.mxu1 %v11508_v30  ;;  %v11616_v30 = vld [vmem:[#allocation4 + $0x288] ss:$16 sps:$4 sm:$0xff]  }
 0x397   :  { %6515 = vmatprep.subr.bf16.mxu1 %v11516_v31  ;;  %v11621_v31 = vld [vmem:[#allocation4 + $0x2a4] ss:$16 sps:$4 sm:$0xff]  }
 0x39a   :  { %6516 = vmatpush1.bf16.msra.mxu1 %v11514_v32  ;;  %v11624_v32 = vld [vmem:[#allocation4 + $0x2ac] ss:$16 sps:$4 sm:$0xff]  }
 0x39b   :  { %6517 = vmatprep.subr.bf16.mxu1 %v11522_v1  ;;  %v11619_v1 = vld [vmem:[#allocation4 + $0x2a0] ss:$16 sps:$4 sm:$0xff]  }
 0x39e   :  { %6518 = vmatpush1.bf16.msra.mxu1 %v11520_v8  ;;  %v11622_v8 = vld [vmem:[#allocation4 + $0x2a8] ss:$16 sps:$4 sm:$0xff]  }
 0x39f   :  { %6519 = vmatprep.subr.bf16.mxu1 %v11528_v22  ;;  %v11627_v22 = vld [vmem:[#allocation4 + $0x2c4] ss:$16 sps:$4 sm:$0xff]  }
 0x3a2   :  { %6520 = vmatpush1.bf16.msra.mxu1 %v11526_v51  ;;  %v11630_v51 = vld [vmem:[#allocation4 + $0x2cc] ss:$16 sps:$4 sm:$0xff]  }
 0x3a3   :  { %6521 = vmatprep.subr.bf16.mxu1 %v11534_v46  ;;  %v11625_v46 = vld [vmem:[#allocation4 + $0x2c0] ss:$16 sps:$4 sm:$0xff]  }
 0x3a6   :  { %6522 = vmatpush1.bf16.msra.mxu1 %v11532_v12  ;;  %v11628_v12 = vld [vmem:[#allocation4 + $0x2c8] ss:$16 sps:$4 sm:$0xff]  }
 0x3a7   :  { %6523 = vmatprep.subr.bf16.mxu1 %v11540_v33  ;;  %v11633_v33 = vld [vmem:[#allocation4 + $0x2e4] ss:$16 sps:$4 sm:$0xff]  }
 0x3aa   :  { %6524 = vmatpush1.bf16.msra.mxu1 %v11538_v35  ;;  %v11636_v35 = vld [vmem:[#allocation4 + $0x2ec] ss:$16 sps:$4 sm:$0xff]  }
 0x3ab   :  { %6525 = vmatprep.subr.bf16.mxu1 %v11546_v36  ;;  %v11631_v36 = vld [vmem:[#allocation4 + $0x2e0] ss:$16 sps:$4 sm:$0xff]  }
 0x3ae   :  { %6526 = vmatpush1.bf16.msra.mxu1 %v11544_v13  ;;  %v11634_v13 = vld [vmem:[#allocation4 + $0x2e8] ss:$16 sps:$4 sm:$0xff]  }
 0x3af   :  { %6527 = vmatprep.subr.bf16.mxu1 %v11552_v38  ;;  %v11639_v38 = vld [vmem:[#allocation4 + $0x304] ss:$16 sps:$4 sm:$0xff]  }
 0x3b2   :  { %6528 = vmatpush1.bf16.msra.mxu1 %v11550_v39  ;;  %v11642_v39 = vld [vmem:[#allocation4 + $0x30c] ss:$16 sps:$4 sm:$0xff]  }
 0x3b3   :  { %6529 = vmatprep.subr.bf16.mxu1 %v11558_v40  ;;  %v11637_v40 = vld [vmem:[#allocation4 + $0x300] ss:$16 sps:$4 sm:$0xff]  }
 0x3b6   :  { %6530 = vmatpush1.bf16.msra.mxu1 %v11556_v29  ;;  %v11640_v29 = vld [vmem:[#allocation4 + $0x308] ss:$16 sps:$4 sm:$0xff]  }
 0x3b7   :  { %6531 = vmatprep.subr.bf16.mxu1 %v11564_v42  ;;  %v11645_v42 = vld [vmem:[#allocation4 + $0x324] ss:$16 sps:$4 sm:$0xff]  }
 0x3ba   :  { %6532 = vmatpush1.bf16.msra.mxu1 %v11562_v19  ;;  %v11648_v19 = vld [vmem:[#allocation4 + $0x32c] ss:$16 sps:$4 sm:$0xff]  }
 0x3bb   :  { %6533 = vmatprep.subr.bf16.mxu1 %v11570_v45  ;;  %v11643_v45 = vld [vmem:[#allocation4 + $0x320] ss:$16 sps:$4 sm:$0xff]  }
 0x3be   :  { %6534 = vmatpush1.bf16.msra.mxu1 %v11568_v21  ;;  %v11646_v21 = vld [vmem:[#allocation4 + $0x328] ss:$16 sps:$4 sm:$0xff]  }
 0x3bf   :  { %6535 = vmatprep.subr.bf16.mxu1 %v11576_v47  ;;  %v11651_v47 = vld [vmem:[#allocation4 + $0x344] ss:$16 sps:$4 sm:$0xff]  }
 0x3c2   :  { %6536 = vmatpush1.bf16.msra.mxu1 %v11574_v37  ;;  %v11654_v37 = vld [vmem:[#allocation4 + $0x34c] ss:$16 sps:$4 sm:$0xff]  }
 0x3c3   :  { %6537 = vmatprep.subr.bf16.mxu1 %v11582_v52  ;;  %v11649_v52 = vld [vmem:[#allocation4 + $0x340] ss:$16 sps:$4 sm:$0xff]  }
 0x3c6   :  { %6538 = vmatpush1.bf16.msra.mxu1 %v11580_v53  ;;  %v11652_v53 = vld [vmem:[#allocation4 + $0x348] ss:$16 sps:$4 sm:$0xff]  }
 0x3c7   :  { %6539 = vmatprep.subr.bf16.mxu1 %v11588_v55  ;;  %v11657_v55 = vld [vmem:[#allocation4 + $0x364] ss:$16 sps:$4 sm:$0xff]  }
 0x3ca   :  { %6540 = vmatpush1.bf16.msra.mxu1 %v11586_v56  ;;  %v11660_v56 = vld [vmem:[#allocation4 + $0x36c] ss:$16 sps:$4 sm:$0xff]  }
 0x3cb   :  { %6550 = vmatprep.subr.bf16.mxu1 %v11594_v27  ;;  %v11655_v27 = vld [vmem:[#allocation4 + $0x360] ss:$16 sps:$4 sm:$0xff]  }
 0x3e1   :  { %v5131_v2 = vpop.f32.mrb[0].mxu0 }
 0x3e2   :  { %v10224_v3 = vadd.f32 %v5131_v2, %v4681_v0  ;;  %v5133_v41 = vpop.f32.mrb[1].mxu0  ;;  %v11661_v0 = vld [vmem:[#allocation4 + $0x380] ss:$16 sps:$4 sm:$0xff]   ;;  %v11669_v2 = vld [vmem:[#allocation4 + $0x3a4] ss:$16 sps:$4 sm:$0xff]  }
 0x3e3   :  { %v10226_v5 = vadd.f32 %v5133_v41, %v4683_v54  ;;  %v5135_v44 = vpop.f32.mrb[2].mxu0  ;;  %v11664_v54 = vld [vmem:[#allocation4 + $0x388] ss:$16 sps:$4 sm:$0xff]   ;;  %v11667_v41 = vld [vmem:[#allocation4 + $0x3a0] ss:$16 sps:$4 sm:$0xff]  }
 0x3e4   :  { %v5630_v9 = vmax.f32 %v10224_v3, 0.0  ;;  %v5136_v10 = vpop.f32.mrb[3].mxu0  ;;  %v11672_v3 = vld [vmem:[#allocation4 + $0x3ac] ss:$16 sps:$4 sm:$0xff]   ;;  %v11675_v44 = vld [vmem:[#allocation4 + $0x3c4] ss:$16 sps:$4 sm:$0xff]  }
 0x3e5   :  { %v5631_v11 = vmax.f32 %v10226_v5, 0.0  ;;  %v11670_v5 = vld [vmem:[#allocation4 + $0x3a8] ss:$16 sps:$4 sm:$0xff]   ;;  %v11673_v10 = vld [vmem:[#allocation4 + $0x3c0] ss:$16 sps:$4 sm:$0xff]  }
 0x3e6   :  { %v5634_v16 = vpack.c.bf16 %v5630_v9, %v5630_v9  ;;  %v11678_v9 = vld [vmem:[#allocation4 + $0x3cc] ss:$16 sps:$4 sm:$0xff]  }
 0x3e7   :  { %v5635_v61 = vpack.c.bf16 %v5631_v11, %v5631_v11  ;;  %v11676_v11 = vld [vmem:[#allocation4 + $0x3c8] ss:$16 sps:$4 sm:$0xff]  }
 0x3e9   :  { %6459 = vmatprep.mubr.bf16.mxu0 %v5635_v61  ;;  %6541 = vmatprep.mubr.bf16.mxu1 %v5635_v61  ;;  %v11681_v61 = vld [vmem:[#allocation4 + $0x3e4] ss:$16 sps:$4 sm:$0xff]  }
 0x3ea   :  { %6460 = vmatmul.mubr.bf16.vlgmr.msra.gmra.mrb[4].mxu0 %v5634_v16  ;;  %6542 = vmatmul.mubr.bf16.vlgmr.msra.gmra.mrb[8].mxu1 %v5634_v16  ;;  %v11682_v16 = vld [vmem:[#allocation4 + $0x3e8] ss:$16 sps:$4 sm:$0xff]  }
 0x3eb   :  { %6469 = vmatpush1.bf16.msra.mxu0 %v11589_v48  ;;  %6551 = vmatpush1.bf16.msra.mxu1 %v11592_v15  ;;  %v11684_v48 = vld [vmem:[#allocation4 + $0x3ec] ss:$16 sps:$4 sm:$0xff]   ;;  %v11679_v15 = vld [vmem:[#allocation4 + $0x3e0] ss:$16 sps:$4 sm:$0xff]  }
 0x3ec   :  { %6470 = vmatprep.subr.bf16.mxu0 %v11597_v17  ;;  %6552 = vmatprep.subr.bf16.mxu1 %v11600_v20  ;;  %v11687_v17 = vld [vmem:[#allocation6 + $0x4] ss:$16 sps:$4 sm:$0xff]   ;;  %v11690_v20 = vld [vmem:[#allocation6 + $0xc] ss:$16 sps:$4 sm:$0xff]  }
 0x3ef   :  { %6471 = vmatpush1.bf16.msra.mxu0 %v11595_v49  ;;  %6553 = vmatpush1.bf16.msra.mxu1 %v11598_v50  ;;  %v12661_v49 = vsub.s32 2, %v12644_v43  ;;  %v12664_v50 = vsub.s32 3, %v12644_v43  ;;  %v11693_v43 = vld [vmem:[#allocation6 + $0x24] ss:$16 sps:$4 sm:$0xff]  }
 0x3f0   :  { %6472 = vmatprep.subr.bf16.mxu0 %v11603_v6  ;;  %6554 = vmatprep.subr.bf16.mxu1 %v11606_v14 }
 0x3f1   :  { %v876_v6 = vrot.slane %v12649_v60, %v12661_v49  ;;  %v880_v14 = vrot.slane %v12649_v60, %v12664_v50  ;;  %v11691_v60 = vld [vmem:[#allocation6 + $0x20] ss:$16 sps:$4 sm:$0xff]  }
 0x3f3   :  { %6473 = vmatpush1.bf16.msra.mxu0 %v11601_v4  ;;  %6555 = vmatpush1.bf16.msra.mxu1 %v11604_v24 }
 0x3f4   :  { %6474 = vmatprep.subr.bf16.mxu0 %v11609_v23  ;;  %6556 = vmatprep.subr.bf16.mxu1 %v11612_v25 }
 0x3f7   :  { %6475 = vmatpush1.bf16.msra.mxu0 %v11607_v26  ;;  %6557 = vmatpush1.bf16.msra.mxu1 %v11610_v7 }
 0x3f8   :  { %6476 = vmatprep.subr.bf16.mxu0 %v11615_v18  ;;  %6558 = vmatprep.subr.bf16.mxu1 %v11618_v58 }
 0x3fb   :  { %6477 = vmatpush1.bf16.msra.mxu0 %v11613_v28  ;;  %6559 = vmatpush1.bf16.msra.mxu1 %v11616_v30  ;;  %v11685_v30 = vld [vmem:[#allocation6] ss:$16 sps:$4 sm:$0xff]  }
 0x3fc   :  { %6478 = vmatprep.subr.bf16.mxu0 %v11621_v31  ;;  %6560 = vmatprep.subr.bf16.mxu1 %v11624_v32  ;;  %v11688_v31 = vld [vmem:[#allocation6 + $0x8] ss:$16 sps:$4 sm:$0xff]  }
 0x3ff   :  { %6479 = vmatpush1.bf16.msra.mxu0 %v11619_v1  ;;  %6561 = vmatpush1.bf16.msra.mxu1 %v11622_v8  ;;  %v11696_v1 = vld [vmem:[#allocation6 + $0x2c] ss:$16 sps:$4 sm:$0xff]   ;;  %v11694_v8 = vld [vmem:[#allocation6 + $0x28] ss:$16 sps:$4 sm:$0xff]  }
 0x400   :  { %6480 = vmatprep.subr.bf16.mxu0 %v11627_v22  ;;  %6562 = vmatprep.subr.bf16.mxu1 %v11630_v51  ;;  %v11699_v22 = vld [vmem:[#allocation6 + $0x44] ss:$16 sps:$4 sm:$0xff]   ;;  %v11702_v51 = vld [vmem:[#allocation6 + $0x4c] ss:$16 sps:$4 sm:$0xff]  }
 0x403   :  { %6481 = vmatpush1.bf16.msra.mxu0 %v11625_v46  ;;  %6563 = vmatpush1.bf16.msra.mxu1 %v11628_v12  ;;  %v11697_v46 = vld [vmem:[#allocation6 + $0x40] ss:$16 sps:$4 sm:$0xff]   ;;  %v11700_v12 = vld [vmem:[#allocation6 + $0x48] ss:$16 sps:$4 sm:$0xff]  }
 0x404   :  { %6482 = vmatprep.subr.bf16.mxu0 %v11633_v33  ;;  %6564 = vmatprep.subr.bf16.mxu1 %v11636_v35  ;;  %v11705_v33 = vld [vmem:[#allocation6 + $0x64] ss:$16 sps:$4 sm:$0xff]   ;;  %v11708_v35 = vld [vmem:[#allocation6 + $0x6c] ss:$16 sps:$4 sm:$0xff]  }
 0x407   :  { %6483 = vmatpush1.bf16.msra.mxu0 %v11631_v36  ;;  %6565 = vmatpush1.bf16.msra.mxu1 %v11634_v13  ;;  %v11703_v36 = vld [vmem:[#allocation6 + $0x60] ss:$16 sps:$4 sm:$0xff]   ;;  %v11706_v13 = vld [vmem:[#allocation6 + $0x68] ss:$16 sps:$4 sm:$0xff]  }
 0x408   :  { %6484 = vmatprep.subr.bf16.mxu0 %v11639_v38  ;;  %6566 = vmatprep.subr.bf16.mxu1 %v11642_v39  ;;  %v11711_v38 = vld [vmem:[#allocation6 + $0x84] ss:$16 sps:$4 sm:$0xff]   ;;  %v11714_v39 = vld [vmem:[#allocation6 + $0x8c] ss:$16 sps:$4 sm:$0xff]  }
 0x40b   :  { %6485 = vmatpush1.bf16.msra.mxu0 %v11637_v40  ;;  %6567 = vmatpush1.bf16.msra.mxu1 %v11640_v29  ;;  %v11709_v40 = vld [vmem:[#allocation6 + $0x80] ss:$16 sps:$4 sm:$0xff]   ;;  %v11712_v29 = vld [vmem:[#allocation6 + $0x88] ss:$16 sps:$4 sm:$0xff]  }
 0x40c   :  { %6486 = vmatprep.subr.bf16.mxu0 %v11645_v42  ;;  %6568 = vmatprep.subr.bf16.mxu1 %v11648_v19  ;;  %v11717_v42 = vld [vmem:[#allocation6 + $0xa4] ss:$16 sps:$4 sm:$0xff]   ;;  %v11720_v19 = vld [vmem:[#allocation6 + $0xac] ss:$16 sps:$4 sm:$0xff]  }
 0x40f   :  { %6487 = vmatpush1.bf16.msra.mxu0 %v11643_v45  ;;  %6569 = vmatpush1.bf16.msra.mxu1 %v11646_v21  ;;  %v11715_v45 = vld [vmem:[#allocation6 + $0xa0] ss:$16 sps:$4 sm:$0xff]   ;;  %v11718_v21 = vld [vmem:[#allocation6 + $0xa8] ss:$16 sps:$4 sm:$0xff]  }
 0x410   :  { %6488 = vmatprep.subr.bf16.mxu0 %v11651_v47  ;;  %6570 = vmatprep.subr.bf16.mxu1 %v11654_v37  ;;  %v11723_v47 = vld [vmem:[#allocation6 + $0xc4] ss:$16 sps:$4 sm:$0xff]   ;;  %v11726_v37 = vld [vmem:[#allocation6 + $0xcc] ss:$16 sps:$4 sm:$0xff]  }
 0x413   :  { %6489 = vmatpush1.bf16.msra.mxu0 %v11649_v52  ;;  %6571 = vmatpush1.bf16.msra.mxu1 %v11652_v53  ;;  %v11721_v52 = vld [vmem:[#allocation6 + $0xc0] ss:$16 sps:$4 sm:$0xff]   ;;  %v11724_v53 = vld [vmem:[#allocation6 + $0xc8] ss:$16 sps:$4 sm:$0xff]  }
 0x414   :  { %6490 = vmatprep.subr.bf16.mxu0 %v11657_v55  ;;  %6572 = vmatprep.subr.bf16.mxu1 %v11660_v56  ;;  %v11729_v55 = vld [vmem:[#allocation6 + $0xe4] ss:$16 sps:$4 sm:$0xff]   ;;  %v11732_v56 = vld [vmem:[#allocation6 + $0xec] ss:$16 sps:$4 sm:$0xff]  }
 0x417   :  { %6491 = vmatpush1.bf16.msra.mxu0 %v11655_v27  ;;  %6573 = vmatpush1.bf16.msra.mxu1 %v11658_v57  ;;  %v11727_v27 = vld [vmem:[#allocation6 + $0xe0] ss:$16 sps:$4 sm:$0xff]   ;;  %v11730_v57 = vld [vmem:[#allocation6 + $0xe8] ss:$16 sps:$4 sm:$0xff]  }
 0x418   :  { %6492 = vmatprep.subr.bf16.mxu0 %v11663_v63  ;;  %6574 = vmatprep.subr.bf16.mxu1 %v11666_v34  ;;  %v11735_v63 = vld [vmem:[#allocation6 + $0x104] ss:$16 sps:$4 sm:$0xff]   ;;  %v11738_v34 = vld [vmem:[#allocation6 + $0x10c] ss:$16 sps:$4 sm:$0xff]  }
 0x41b   :  { %6493 = vmatpush1.bf16.msra.mxu0 %v11661_v0  ;;  %6575 = vmatpush1.bf16.msra.mxu1 %v11664_v54  ;;  %v11733_v0 = vld [vmem:[#allocation6 + $0x100] ss:$16 sps:$4 sm:$0xff]   ;;  %v11736_v54 = vld [vmem:[#allocation6 + $0x108] ss:$16 sps:$4 sm:$0xff]  }
 0x41c   :  { %6494 = vmatprep.subr.bf16.mxu0 %v11669_v2  ;;  %6576 = vmatprep.subr.bf16.mxu1 %v11672_v3  ;;  %v11741_v2 = vld [vmem:[#allocation6 + $0x124] ss:$16 sps:$4 sm:$0xff]   ;;  %v11744_v3 = vld [vmem:[#allocation6 + $0x12c] ss:$16 sps:$4 sm:$0xff]  }
 0x41f   :  { %6495 = vmatpush1.bf16.msra.mxu0 %v11667_v41  ;;  %6577 = vmatpush1.bf16.msra.mxu1 %v11670_v5  ;;  %v11739_v41 = vld [vmem:[#allocation6 + $0x120] ss:$16 sps:$4 sm:$0xff]   ;;  %v11742_v5 = vld [vmem:[#allocation6 + $0x128] ss:$16 sps:$4 sm:$0xff]  }
 0x420   :  { %6496 = vmatprep.subr.bf16.mxu0 %v11675_v44  ;;  %6578 = vmatprep.subr.bf16.mxu1 %v11678_v9  ;;  %v11747_v44 = vld [vmem:[#allocation6 + $0x144] ss:$16 sps:$4 sm:$0xff]   ;;  %v11750_v9 = vld [vmem:[#allocation6 + $0x14c] ss:$16 sps:$4 sm:$0xff]  }
 0x423   :  { %6497 = vmatpush1.bf16.msra.mxu0 %v11673_v10  ;;  %6579 = vmatpush1.bf16.msra.mxu1 %v11676_v11  ;;  %v11745_v10 = vld [vmem:[#allocation6 + $0x140] ss:$16 sps:$4 sm:$0xff]   ;;  %v11748_v11 = vld [vmem:[#allocation6 + $0x148] ss:$16 sps:$4 sm:$0xff]  }
 0x424   :  { %6498 = vmatprep.subr.bf16.mxu0 %v11681_v61  ;;  %6580 = vmatprep.subr.bf16.mxu1 %v11684_v48  ;;  %v11753_v61 = vld [vmem:[#allocation6 + $0x164] ss:$16 sps:$4 sm:$0xff]   ;;  %v11756_v48 = vld [vmem:[#allocation6 + $0x16c] ss:$16 sps:$4 sm:$0xff]  }
 0x427   :  { %6499 = vmatpush1.bf16.msra.mxu0 %v11679_v15  ;;  %6581 = vmatpush1.bf16.msra.mxu1 %v11682_v16  ;;  %v11751_v15 = vld [vmem:[#allocation6 + $0x160] ss:$16 sps:$4 sm:$0xff]   ;;  %v11754_v16 = vld [vmem:[#allocation6 + $0x168] ss:$16 sps:$4 sm:$0xff]  }
 0x428   :  { %7388 = vmatprep.subr.bf16.mxu0 %v11687_v17  ;;  %7470 = vmatprep.subr.bf16.mxu1 %v11690_v20  ;;  %v11759_v17 = vld [vmem:[#allocation6 + $0x184] ss:$16 sps:$4 sm:$0xff]   ;;  %v11762_v20 = vld [vmem:[#allocation6 + $0x18c] ss:$16 sps:$4 sm:$0xff]  }
 0x460   :  { %v5623_v4 = vpop.f32.mrb[4].mxu1 }
 0x461   :  { %v10227_v24 = vadd.f32 %v5623_v4, %v876_v6  ;;  %v5625_v23 = vpop.f32.mrb[5].mxu1  ;;  %v11757_v6 = vld [vmem:[#allocation6 + $0x180] ss:$16 sps:$4 sm:$0xff]   ;;  %v11765_v4 = vld [vmem:[#allocation6 + $0x1a4] ss:$16 sps:$4 sm:$0xff]  }
 0x462   :  { %v10228_v25 = vadd.f32 %v5625_v23, %v880_v14  ;;  %v5627_v26 = vpop.f32.mrb[6].mxu1  ;;  %v11760_v14 = vld [vmem:[#allocation6 + $0x188] ss:$16 sps:$4 sm:$0xff]   ;;  %v11763_v23 = vld [vmem:[#allocation6 + $0x1a0] ss:$16 sps:$4 sm:$0xff]  }
 0x463   :  { %v5632_v7 = vmax.f32 %v10227_v24, 0.0  ;;  %v5628_v18 = vpop.f32.mrb[7].mxu1  ;;  %v11768_v24 = vld [vmem:[#allocation6 + $0x1ac] ss:$16 sps:$4 sm:$0xff]   ;;  %v11771_v26 = vld [vmem:[#allocation6 + $0x1c4] ss:$16 sps:$4 sm:$0xff]  }
 0x464   :  { %v5633_v58 = vmax.f32 %v10228_v25, 0.0  ;;  %v11766_v25 = vld [vmem:[#allocation6 + $0x1a8] ss:$16 sps:$4 sm:$0xff]   ;;  %v11769_v18 = vld [vmem:[#allocation6 + $0x1c0] ss:$16 sps:$4 sm:$0xff]  }
 0x465   :  { %v5636_v32 = vpack.c.bf16 %v5632_v7, %v5632_v7  ;;  %v11774_v7 = vld [vmem:[#allocation6 + $0x1cc] ss:$16 sps:$4 sm:$0xff]  }
 0x466   :  { %v5637_v28 = vpack.c.bf16 %v5633_v58, %v5633_v58  ;;  %v11772_v58 = vld [vmem:[#allocation6 + $0x1c8] ss:$16 sps:$4 sm:$0xff]  }
 0x468   :  { %6500 = vmatprep.mubr.bf16.mxu0 %v5637_v28  ;;  %6582 = vmatprep.mubr.bf16.mxu1 %v5637_v28  ;;  %v11777_v28 = vld [vmem:[#allocation6 + $0x1e4] ss:$16 sps:$4 sm:$0xff]  }
 0x469   :  { %6501 = vmatmul.mubr.bf16.vlgmr.msra.gmra.mrb[4].mxu0 %v5636_v32  ;;  %6583 = vmatmul.mubr.bf16.vlgmr.msra.gmra.mrb[8].mxu1 %v5636_v32  ;;  %v11778_v32 = vld [vmem:[#allocation6 + $0x1e8] ss:$16 sps:$4 sm:$0xff]  }
 0x46a   :  { %7389 = vmatpush1.bf16.msra.mxu0 %v11685_v30  ;;  %7471 = vmatpush1.bf16.msra.mxu1 %v11688_v31  ;;  %v11780_v30 = vld [vmem:[#allocation6 + $0x1ec] ss:$16 sps:$4 sm:$0xff]   ;;  %v11775_v31 = vld [vmem:[#allocation6 + $0x1e0] ss:$16 sps:$4 sm:$0xff]  }
 0x46b   :  { %7390 = vmatprep.subr.bf16.mxu0 %v11693_v43  ;;  %7472 = vmatprep.subr.bf16.mxu1 %v11696_v1  ;;  %v11783_v43 = vld [vmem:[#allocation6 + $0x204] ss:$16 sps:$4 sm:$0xff]   ;;  %v11786_v1 = vld [vmem:[#allocation6 + $0x20c] ss:$16 sps:$4 sm:$0xff]  }
 0x46e   :  { %7391 = vmatpush1.bf16.msra.mxu0 %v11691_v60  ;;  %7473 = vmatpush1.bf16.msra.mxu1 %v11694_v8  ;;  %v12670_v60 = vld [vmem:[#allocation10 + $0x1] ss:$8 sm:$0xf] }
 0x46f   :  { %7392 = vmatprep.subr.bf16.mxu0 %v11699_v22  ;;  %7474 = vmatprep.subr.bf16.mxu1 %v11702_v51  ;;  %v5770_v8 = vrot.slane %v12670_v60, %v12647_v59  ;;  %v5774_v22 = vrot.slane %v12670_v60, %v12652_v62  ;;  %v5782_v51 = vrot.slane %v12670_v60, %v12664_v50 }
 0x472   :  { %7393 = vmatpush1.bf16.msra.mxu0 %v11697_v46  ;;  %7475 = vmatpush1.bf16.msra.mxu1 %v11700_v12 }
 0x473   :  { %7394 = vmatprep.subr.bf16.mxu0 %v11705_v33  ;;  %7476 = vmatprep.subr.bf16.mxu1 %v11708_v35 }
 0x476   :  { %7395 = vmatpush1.bf16.msra.mxu0 %v11703_v36  ;;  %7477 = vmatpush1.bf16.msra.mxu1 %v11706_v13 }
 0x477   :  { %7396 = vmatprep.subr.bf16.mxu0 %v11711_v38  ;;  %7478 = vmatprep.subr.bf16.mxu1 %v11714_v39 }
 0x47a   :  { %7397 = vmatpush1.bf16.msra.mxu0 %v11709_v40  ;;  %7479 = vmatpush1.bf16.msra.mxu1 %v11712_v29 }
 0x47b   :  { %7398 = vmatprep.subr.bf16.mxu0 %v11717_v42  ;;  %7480 = vmatprep.subr.bf16.mxu1 %v11720_v19 }
 0x47e   :  { %7399 = vmatpush1.bf16.msra.mxu0 %v11715_v45  ;;  %7481 = vmatpush1.bf16.msra.mxu1 %v11718_v21 }
 0x47f   :  { %7400 = vmatprep.subr.bf16.mxu0 %v11723_v47  ;;  %7482 = vmatprep.subr.bf16.mxu1 %v11726_v37  ;;  %v11781_v37 = vld [vmem:[#allocation6 + $0x200] ss:$16 sps:$4 sm:$0xff]  }
 0x482   :  { %7401 = vmatpush1.bf16.msra.mxu0 %v11721_v52  ;;  %7483 = vmatpush1.bf16.msra.mxu1 %v11724_v53  ;;  %v11784_v52 = vld [vmem:[#allocation6 + $0x208] ss:$16 sps:$4 sm:$0xff]  }
 0x483   :  { %7402 = vmatprep.subr.bf16.mxu0 %v11729_v55  ;;  %7484 = vmatprep.subr.bf16.mxu1 %v11732_v56  ;;  %v11789_v55 = vld [vmem:[#allocation6 + $0x224] ss:$16 sps:$4 sm:$0xff]   ;;  %v11792_v56 = vld [vmem:[#allocation6 + $0x22c] ss:$16 sps:$4 sm:$0xff]  }
 0x486   :  { %7403 = vmatpush1.bf16.msra.mxu0 %v11727_v27  ;;  %7485 = vmatpush1.bf16.msra.mxu1 %v11730_v57  ;;  %v11787_v57 = vld [vmem:[#allocation6 + $0x220] ss:$16 sps:$4 sm:$0xff]  }
 0x487   :  { %7404 = vmatprep.subr.bf16.mxu0 %v11735_v63  ;;  %7486 = vmatprep.subr.bf16.mxu1 %v11738_v34  ;;  %v11790_v63 = vld [vmem:[#allocation6 + $0x228] ss:$16 sps:$4 sm:$0xff]   ;;  %v11795_v34 = vld [vmem:[#allocation6 + $0x244] ss:$16 sps:$4 sm:$0xff]  }
 0x48a   :  { %7405 = vmatpush1.bf16.msra.mxu0 %v11733_v0  ;;  %7487 = vmatpush1.bf16.msra.mxu1 %v11736_v54  ;;  %v11798_v0 = vld [vmem:[#allocation6 + $0x24c] ss:$16 sps:$4 sm:$0xff]   ;;  %v11793_v54 = vld [vmem:[#allocation6 + $0x240] ss:$16 sps:$4 sm:$0xff]  }
 0x48b   :  { %7406 = vmatprep.subr.bf16.mxu0 %v11741_v2  ;;  %7488 = vmatprep.subr.bf16.mxu1 %v11744_v3  ;;  %v11796_v2 = vld [vmem:[#allocation6 + $0x248] ss:$16 sps:$4 sm:$0xff]   ;;  %v11801_v3 = vld [vmem:[#allocation6 + $0x264] ss:$16 sps:$4 sm:$0xff]  }
 0x48e   :  { %7407 = vmatpush1.bf16.msra.mxu0 %v11739_v41  ;;  %7489 = vmatpush1.bf16.msra.mxu1 %v11742_v5  ;;  %v11804_v41 = vld [vmem:[#allocation6 + $0x26c] ss:$16 sps:$4 sm:$0xff]   ;;  %v11799_v5 = vld [vmem:[#allocation6 + $0x260] ss:$16 sps:$4 sm:$0xff]  }
 0x48f   :  { %7408 = vmatprep.subr.bf16.mxu0 %v11747_v44  ;;  %7490 = vmatprep.subr.bf16.mxu1 %v11750_v9  ;;  %v11802_v44 = vld [vmem:[#allocation6 + $0x268] ss:$16 sps:$4 sm:$0xff]   ;;  %v11807_v9 = vld [vmem:[#allocation6 + $0x284] ss:$16 sps:$4 sm:$0xff]  }
 0x492   :  { %7409 = vmatpush1.bf16.msra.mxu0 %v11745_v10  ;;  %7491 = vmatpush1.bf16.msra.mxu1 %v11748_v11  ;;  %v11810_v10 = vld [vmem:[#allocation6 + $0x28c] ss:$16 sps:$4 sm:$0xff]   ;;  %v11805_v11 = vld [vmem:[#allocation6 + $0x280] ss:$16 sps:$4 sm:$0xff]  }
 0x493   :  { %7410 = vmatprep.subr.bf16.mxu0 %v11753_v61  ;;  %7492 = vmatprep.subr.bf16.mxu1 %v11756_v48  ;;  %v11808_v61 = vld [vmem:[#allocation6 + $0x288] ss:$16 sps:$4 sm:$0xff]   ;;  %v11813_v48 = vld [vmem:[#allocation6 + $0x2a4] ss:$16 sps:$4 sm:$0xff]  }
 0x496   :  { %7411 = vmatpush1.bf16.msra.mxu0 %v11751_v15  ;;  %7493 = vmatpush1.bf16.msra.mxu1 %v11754_v16  ;;  %v11816_v15 = vld [vmem:[#allocation6 + $0x2ac] ss:$16 sps:$4 sm:$0xff]   ;;  %v11811_v16 = vld [vmem:[#allocation6 + $0x2a0] ss:$16 sps:$4 sm:$0xff]  }
 0x497   :  { %7412 = vmatprep.subr.bf16.mxu0 %v11759_v17  ;;  %7494 = vmatprep.subr.bf16.mxu1 %v11762_v20  ;;  %v11814_v17 = vld [vmem:[#allocation6 + $0x2a8] ss:$16 sps:$4 sm:$0xff]   ;;  %v11819_v20 = vld [vmem:[#allocation6 + $0x2c4] ss:$16 sps:$4 sm:$0xff]  }
 0x49a   :  { %7413 = vmatpush1.bf16.msra.mxu0 %v11757_v6  ;;  %7495 = vmatpush1.bf16.msra.mxu1 %v11760_v14  ;;  %v11822_v6 = vld [vmem:[#allocation6 + $0x2cc] ss:$16 sps:$4 sm:$0xff]   ;;  %v11817_v14 = vld [vmem:[#allocation6 + $0x2c0] ss:$16 sps:$4 sm:$0xff]  }
 0x49b   :  { %7414 = vmatprep.subr.bf16.mxu0 %v11765_v4  ;;  %7496 = vmatprep.subr.bf16.mxu1 %v11768_v24  ;;  %v11820_v4 = vld [vmem:[#allocation6 + $0x2c8] ss:$16 sps:$4 sm:$0xff]   ;;  %v11825_v24 = vld [vmem:[#allocation6 + $0x2e4] ss:$16 sps:$4 sm:$0xff]  }
 0x49e   :  { %7415 = vmatpush1.bf16.msra.mxu0 %v11763_v23  ;;  %7497 = vmatpush1.bf16.msra.mxu1 %v11766_v25  ;;  %v11828_v23 = vld [vmem:[#allocation6 + $0x2ec] ss:$16 sps:$4 sm:$0xff]   ;;  %v11823_v25 = vld [vmem:[#allocation6 + $0x2e0] ss:$16 sps:$4 sm:$0xff]  }
 0x49f   :  { %7416 = vmatprep.subr.bf16.mxu0 %v11771_v26  ;;  %7498 = vmatprep.subr.bf16.mxu1 %v11774_v7  ;;  %v11826_v26 = vld [vmem:[#allocation6 + $0x2e8] ss:$16 sps:$4 sm:$0xff]   ;;  %v11831_v7 = vld [vmem:[#allocation6 + $0x304] ss:$16 sps:$4 sm:$0xff]  }
 0x4a2   :  { %7417 = vmatpush1.bf16.msra.mxu0 %v11769_v18  ;;  %7499 = vmatpush1.bf16.msra.mxu1 %v11772_v58  ;;  %v11834_v18 = vld [vmem:[#allocation6 + $0x30c] ss:$16 sps:$4 sm:$0xff]   ;;  %v11829_v58 = vld [vmem:[#allocation6 + $0x300] ss:$16 sps:$4 sm:$0xff]  }
 0x4a3   :  { %7418 = vmatprep.subr.bf16.mxu0 %v11777_v28  ;;  %7500 = vmatprep.subr.bf16.mxu1 %v11780_v30  ;;  %v11832_v28 = vld [vmem:[#allocation6 + $0x308] ss:$16 sps:$4 sm:$0xff]   ;;  %v11837_v30 = vld [vmem:[#allocation6 + $0x324] ss:$16 sps:$4 sm:$0xff]  }
 0x4a6   :  { %7419 = vmatpush1.bf16.msra.mxu0 %v11775_v31  ;;  %7501 = vmatpush1.bf16.msra.mxu1 %v11778_v32  ;;  %v11840_v31 = vld [vmem:[#allocation6 + $0x32c] ss:$16 sps:$4 sm:$0xff]   ;;  %v11835_v32 = vld [vmem:[#allocation6 + $0x320] ss:$16 sps:$4 sm:$0xff]  }
 0x4a7   :  { %7429 = vmatprep.subr.bf16.mxu0 %v11783_v43  ;;  %7511 = vmatprep.subr.bf16.mxu1 %v11786_v1  ;;  %v11838_v43 = vld [vmem:[#allocation6 + $0x328] ss:$16 sps:$4 sm:$0xff]   ;;  %v11843_v1 = vld [vmem:[#allocation6 + $0x344] ss:$16 sps:$4 sm:$0xff]  }
 0x53c   :  { %v6502_v46 = vpop.f32.mrb[4].mxu0  ;;  %v12678_v12 = vpop.f32.mrb[8].mxu1 }
 0x53d   :  { %v10229_v33 = vadd.f32 %v6502_v46, %v5770_v8  ;;  %v6504_v35 = vpop.f32.mrb[5].mxu0  ;;  %v6586_v36 = vpop.f32.mrb[9].mxu1  ;;  %v11846_v8 = vld [vmem:[#allocation6 + $0x34c] ss:$16 sps:$4 sm:$0xff]   ;;  %v11849_v46 = vld [vmem:[#allocation6 + $0x364] ss:$16 sps:$4 sm:$0xff]  }
 0x53e   :  { %v10230_v13 = vadd.f32 %v6504_v35, %v5774_v22  ;;  %v10232_v38 = vadd.f32 %v6586_v36, %v5782_v51  ;;  %v6506_v39 = vpop.f32.mrb[6].mxu0  ;;  %v6588_v40 = vpop.f32.mrb[10].mxu1  ;;  %v11841_v22 = vld [vmem:[#allocation6 + $0x340] ss:$16 sps:$4 sm:$0xff]   ;;  %v11844_v51 = vld [vmem:[#allocation6 + $0x348] ss:$16 sps:$4 sm:$0xff]  }
 0x53f   :  { %v6591_v29 = vmax.f32 %v10229_v33, 0.0  ;;  %v6507_v42 = vpop.f32.mrb[7].mxu0  ;;  %v6589_v19 = vpop.f32.mrb[11].mxu1  ;;  %v11852_v33 = vld [vmem:[#allocation6 + $0x36c] ss:$16 sps:$4 sm:$0xff]  }
 0x540   :  { %v6592_v45 = vmax.f32 %v10230_v13, 0.0  ;;  %v6594_v21 = vmax.f32 %v10232_v38, 0.0  ;;  %v11847_v35 = vld [vmem:[#allocation6 + $0x360] ss:$16 sps:$4 sm:$0xff]   ;;  %v11850_v36 = vld [vmem:[#allocation6 + $0x368] ss:$16 sps:$4 sm:$0xff]  }
 0x541   :  { %v6595_v53 = vpack.c.bf16 %v6591_v29, %v6591_v29  ;;  %v11855_v13 = vld [vmem:[#allocation6 + $0x384] ss:$16 sps:$4 sm:$0xff]   ;;  %v11858_v38 = vld [vmem:[#allocation6 + $0x38c] ss:$16 sps:$4 sm:$0xff]   ;;  %v11853_v39 = vld [vmem:[#allocation6 + $0x380] ss:$16 sps:$4 sm:$0xff]  }
 0x542   :  { %v6596_v47 = vpack.c.bf16 %v6592_v45, %v6592_v45  ;;  %v6598_v27 = vpack.c.bf16 %v6594_v21, %v6594_v21  ;;  %v11856_v40 = vld [vmem:[#allocation6 + $0x388] ss:$16 sps:$4 sm:$0xff]   ;;  %v11861_v29 = vld [vmem:[#allocation6 + $0x3a4] ss:$16 sps:$4 sm:$0xff]   ;;  %v11864_v42 = vld [vmem:[#allocation6 + $0x3ac] ss:$16 sps:$4 sm:$0xff]   ;;  %v5778_v21 = vrot.slane %v12670_v60, %v12661_v49 }
 0x543   :  { %v11859_v19 = vld [vmem:[#allocation6 + $0x3a0] ss:$16 sps:$4 sm:$0xff]   ;;  %v11862_v45 = vld [vmem:[#allocation6 + $0x3a8] ss:$16 sps:$4 sm:$0xff]   ;;  %v11879_v60 = vld [vmem:[#allocation7 + $0x4] ss:$16 sps:$4 sm:$0xff]  }
 0x544   :  { %7420 = vmatprep.mubr.bf16.mxu0 %v6596_v47  ;;  %7502 = vmatprep.mubr.bf16.mxu1 %v6596_v47  ;;  %v11867_v47 = vld [vmem:[#allocation6 + $0x3c4] ss:$16 sps:$4 sm:$0xff]  }
 0x545   :  { %7421 = vmatmul.mubr.bf16.vlgmr.msra.gmra.mrb[8].mxu0 %v6595_v53  ;;  %7503 = vmatmul.mubr.bf16.vlgmr.msra.gmra.mrb[12].mxu1 %v6595_v53  ;;  %v11868_v53 = vld [vmem:[#allocation6 + $0x3c8] ss:$16 sps:$4 sm:$0xff]  }
 0x546   :  { %7430 = vmatpush1.bf16.msra.mxu0 %v11781_v37  ;;  %7512 = vmatpush1.bf16.msra.mxu1 %v11784_v52  ;;  %v11870_v37 = vld [vmem:[#allocation6 + $0x3cc] ss:$16 sps:$4 sm:$0xff]   ;;  %v11865_v52 = vld [vmem:[#allocation6 + $0x3c0] ss:$16 sps:$4 sm:$0xff]  }
 0x547   :  { %7461 = vmatprep.mubr.bf16.mxu0 %v6598_v27  ;;  %7543 = vmatprep.mubr.bf16.mxu1 %v6598_v27  ;;  %v11876_v27 = vld [vmem:[#allocation6 + $0x3ec] ss:$16 sps:$4 sm:$0xff]  }
 0x548   :  { %7431 = vmatprep.subr.bf16.mxu0 %v11789_v55  ;;  %7513 = vmatprep.subr.bf16.mxu1 %v11792_v56  ;;  %v10231_v55 = vadd.f32 %v12678_v12, %v5778_v21  ;;  %v11873_v56 = vld [vmem:[#allocation6 + $0x3e4] ss:$16 sps:$4 sm:$0xff]  }
 0x549   :  { %v11885_v12 = vld [vmem:[#allocation7 + $0x24] ss:$16 sps:$4 sm:$0xff]  }
 0x54a   :  { %7432 = vmatpush1.bf16.msra.mxu0 %v11787_v57  ;;  %7514 = vmatpush1.bf16.msra.mxu1 %v11790_v63  ;;  %v11871_v57 = vld [vmem:[#allocation6 + $0x3e0] ss:$16 sps:$4 sm:$0xff]   ;;  %v11874_v63 = vld [vmem:[#allocation6 + $0x3e8] ss:$16 sps:$4 sm:$0xff]   ;;  %v11951_v21 = vld [vmem:[#allocation7 + $0x184] ss:$16 sps:$4 sm:$0xff]  }
 0x54b   :  { %7433 = vmatprep.subr.bf16.mxu0 %v11795_v34  ;;  %7515 = vmatprep.subr.bf16.mxu1 %v11798_v0  ;;  %v6593_v34 = vmax.f32 %v10231_v55, 0.0  ;;  %v11882_v0 = vld [vmem:[#allocation7 + $0xc] ss:$16 sps:$4 sm:$0xff]  }
 0x54c   :  { %v11960_v55 = vld [vmem:[#allocation7 + $0x1ac] ss:$16 sps:$4 sm:$0xff]  }
 0x54e   :  { %7434 = vmatpush1.bf16.msra.mxu0 %v11793_v54  ;;  %7516 = vmatpush1.bf16.msra.mxu1 %v11796_v2  ;;  %v11877_v54 = vld [vmem:[#allocation7] ss:$16 sps:$4 sm:$0xff]   ;;  %v11880_v2 = vld [vmem:[#allocation7 + $0x8] ss:$16 sps:$4 sm:$0xff]  }
 0x54f   :  { %7435 = vmatprep.subr.bf16.mxu0 %v11801_v3  ;;  %7517 = vmatprep.subr.bf16.mxu1 %v11804_v41  ;;  %v6597_v3 = vpack.c.bf16 %v6593_v34, %v6593_v34  ;;  %v11888_v41 = vld [vmem:[#allocation7 + $0x2c] ss:$16 sps:$4 sm:$0xff]   ;;  %v11961_v34 = vld [vmem:[#allocation7 + $0x1c0] ss:$16 sps:$4 sm:$0xff]  }
 0x552   :  { %7436 = vmatpush1.bf16.msra.mxu0 %v11799_v5  ;;  %7518 = vmatpush1.bf16.msra.mxu1 %v11802_v44  ;;  %v11883_v5 = vld [vmem:[#allocation7 + $0x20] ss:$16 sps:$4 sm:$0xff]   ;;  %v11886_v44 = vld [vmem:[#allocation7 + $0x28] ss:$16 sps:$4 sm:$0xff]  }
 0x553   :  { %7437 = vmatprep.subr.bf16.mxu0 %v11807_v9  ;;  %7519 = vmatprep.subr.bf16.mxu1 %v11810_v10  ;;  %v11891_v9 = vld [vmem:[#allocation7 + $0x44] ss:$16 sps:$4 sm:$0xff]   ;;  %v11894_v10 = vld [vmem:[#allocation7 + $0x4c] ss:$16 sps:$4 sm:$0xff]  }
 0x556   :  { %7438 = vmatpush1.bf16.msra.mxu0 %v11805_v11  ;;  %7520 = vmatpush1.bf16.msra.mxu1 %v11808_v61  ;;  %v11889_v11 = vld [vmem:[#allocation7 + $0x40] ss:$16 sps:$4 sm:$0xff]   ;;  %v11892_v61 = vld [vmem:[#allocation7 + $0x48] ss:$16 sps:$4 sm:$0xff]  }
 0x557   :  { %7439 = vmatprep.subr.bf16.mxu0 %v11813_v48  ;;  %7521 = vmatprep.subr.bf16.mxu1 %v11816_v15  ;;  %v11897_v48 = vld [vmem:[#allocation7 + $0x64] ss:$16 sps:$4 sm:$0xff]   ;;  %v11900_v15 = vld [vmem:[#allocation7 + $0x6c] ss:$16 sps:$4 sm:$0xff]  }
 0x55a   :  { %7440 = vmatpush1.bf16.msra.mxu0 %v11811_v16  ;;  %7522 = vmatpush1.bf16.msra.mxu1 %v11814_v17  ;;  %v11895_v16 = vld [vmem:[#allocation7 + $0x60] ss:$16 sps:$4 sm:$0xff]   ;;  %v11898_v17 = vld [vmem:[#allocation7 + $0x68] ss:$16 sps:$4 sm:$0xff]  }
 0x55b   :  { %7441 = vmatprep.subr.bf16.mxu0 %v11819_v20  ;;  %7523 = vmatprep.subr.bf16.mxu1 %v11822_v6  ;;  %v11903_v20 = vld [vmem:[#allocation7 + $0x84] ss:$16 sps:$4 sm:$0xff]   ;;  %v11906_v6 = vld [vmem:[#allocation7 + $0x8c] ss:$16 sps:$4 sm:$0xff]  }
 0x55e   :  { %7442 = vmatpush1.bf16.msra.mxu0 %v11817_v14  ;;  %7524 = vmatpush1.bf16.msra.mxu1 %v11820_v4  ;;  %v11901_v14 = vld [vmem:[#allocation7 + $0x80] ss:$16 sps:$4 sm:$0xff]   ;;  %v11904_v4 = vld [vmem:[#allocation7 + $0x88] ss:$16 sps:$4 sm:$0xff]  }
 0x55f   :  { %7443 = vmatprep.subr.bf16.mxu0 %v11825_v24  ;;  %7525 = vmatprep.subr.bf16.mxu1 %v11828_v23  ;;  %v11909_v24 = vld [vmem:[#allocation7 + $0xa4] ss:$16 sps:$4 sm:$0xff]   ;;  %v11912_v23 = vld [vmem:[#allocation7 + $0xac] ss:$16 sps:$4 sm:$0xff]  }
 0x562   :  { %7444 = vmatpush1.bf16.msra.mxu0 %v11823_v25  ;;  %7526 = vmatpush1.bf16.msra.mxu1 %v11826_v26  ;;  %v11907_v25 = vld [vmem:[#allocation7 + $0xa0] ss:$16 sps:$4 sm:$0xff]   ;;  %v11910_v26 = vld [vmem:[#allocation7 + $0xa8] ss:$16 sps:$4 sm:$0xff]  }
 0x563   :  { %7445 = vmatprep.subr.bf16.mxu0 %v11831_v7  ;;  %7527 = vmatprep.subr.bf16.mxu1 %v11834_v18  ;;  %v11915_v7 = vld [vmem:[#allocation7 + $0xc4] ss:$16 sps:$4 sm:$0xff]   ;;  %v11918_v18 = vld [vmem:[#allocation7 + $0xcc] ss:$16 sps:$4 sm:$0xff]  }
 0x566   :  { %7446 = vmatpush1.bf16.msra.mxu0 %v11829_v58  ;;  %7528 = vmatpush1.bf16.msra.mxu1 %v11832_v28  ;;  %v11913_v58 = vld [vmem:[#allocation7 + $0xc0] ss:$16 sps:$4 sm:$0xff]   ;;  %v11916_v28 = vld [vmem:[#allocation7 + $0xc8] ss:$16 sps:$4 sm:$0xff]  }
 0x567   :  { %7447 = vmatprep.subr.bf16.mxu0 %v11837_v30  ;;  %7529 = vmatprep.subr.bf16.mxu1 %v11840_v31  ;;  %v11921_v30 = vld [vmem:[#allocation7 + $0xe4] ss:$16 sps:$4 sm:$0xff]   ;;  %v11924_v31 = vld [vmem:[#allocation7 + $0xec] ss:$16 sps:$4 sm:$0xff]  }
 0x56a   :  { %7448 = vmatpush1.bf16.msra.mxu0 %v11835_v32  ;;  %7530 = vmatpush1.bf16.msra.mxu1 %v11838_v43  ;;  %v11919_v32 = vld [vmem:[#allocation7 + $0xe0] ss:$16 sps:$4 sm:$0xff]   ;;  %v11922_v43 = vld [vmem:[#allocation7 + $0xe8] ss:$16 sps:$4 sm:$0xff]  }
 0x56b   :  { %7449 = vmatprep.subr.bf16.mxu0 %v11843_v1  ;;  %7531 = vmatprep.subr.bf16.mxu1 %v11846_v8  ;;  %v11927_v1 = vld [vmem:[#allocation7 + $0x104] ss:$16 sps:$4 sm:$0xff]   ;;  %v11930_v8 = vld [vmem:[#allocation7 + $0x10c] ss:$16 sps:$4 sm:$0xff]  }
 0x56e   :  { %7450 = vmatpush1.bf16.msra.mxu0 %v11841_v22  ;;  %7532 = vmatpush1.bf16.msra.mxu1 %v11844_v51  ;;  %v11925_v22 = vld [vmem:[#allocation7 + $0x100] ss:$16 sps:$4 sm:$0xff]   ;;  %v11928_v51 = vld [vmem:[#allocation7 + $0x108] ss:$16 sps:$4 sm:$0xff]  }
 0x56f   :  { %7451 = vmatprep.subr.bf16.mxu0 %v11849_v46  ;;  %7533 = vmatprep.subr.bf16.mxu1 %v11852_v33  ;;  %v11933_v46 = vld [vmem:[#allocation7 + $0x124] ss:$16 sps:$4 sm:$0xff]   ;;  %v11936_v33 = vld [vmem:[#allocation7 + $0x12c] ss:$16 sps:$4 sm:$0xff]  }
 0x572   :  { %7452 = vmatpush1.bf16.msra.mxu0 %v11847_v35  ;;  %7534 = vmatpush1.bf16.msra.mxu1 %v11850_v36  ;;  %v11931_v35 = vld [vmem:[#allocation7 + $0x120] ss:$16 sps:$4 sm:$0xff]   ;;  %v11934_v36 = vld [vmem:[#allocation7 + $0x128] ss:$16 sps:$4 sm:$0xff]  }
 0x573   :  { %7453 = vmatprep.subr.bf16.mxu0 %v11855_v13  ;;  %7535 = vmatprep.subr.bf16.mxu1 %v11858_v38  ;;  %v11939_v13 = vld [vmem:[#allocation7 + $0x144] ss:$16 sps:$4 sm:$0xff]   ;;  %v11942_v38 = vld [vmem:[#allocation7 + $0x14c] ss:$16 sps:$4 sm:$0xff]  }
 0x576   :  { %7454 = vmatpush1.bf16.msra.mxu0 %v11853_v39  ;;  %7536 = vmatpush1.bf16.msra.mxu1 %v11856_v40  ;;  %v11937_v39 = vld [vmem:[#allocation7 + $0x140] ss:$16 sps:$4 sm:$0xff]   ;;  %v11940_v40 = vld [vmem:[#allocation7 + $0x148] ss:$16 sps:$4 sm:$0xff]  }
 0x577   :  { %7455 = vmatprep.subr.bf16.mxu0 %v11861_v29  ;;  %7537 = vmatprep.subr.bf16.mxu1 %v11864_v42  ;;  %v11945_v29 = vld [vmem:[#allocation7 + $0x164] ss:$16 sps:$4 sm:$0xff]   ;;  %v11948_v42 = vld [vmem:[#allocation7 + $0x16c] ss:$16 sps:$4 sm:$0xff]  }
 0x57a   :  { %7456 = vmatpush1.bf16.msra.mxu0 %v11859_v19  ;;  %7538 = vmatpush1.bf16.msra.mxu1 %v11862_v45  ;;  %v11943_v19 = vld [vmem:[#allocation7 + $0x160] ss:$16 sps:$4 sm:$0xff]   ;;  %v11946_v45 = vld [vmem:[#allocation7 + $0x168] ss:$16 sps:$4 sm:$0xff]  }
 0x57b   :  { %7457 = vmatprep.subr.bf16.mxu0 %v11867_v47  ;;  %7539 = vmatprep.subr.bf16.mxu1 %v11870_v37  ;;  %v11954_v47 = vld [vmem:[#allocation7 + $0x18c] ss:$16 sps:$4 sm:$0xff]   ;;  %v11949_v37 = vld [vmem:[#allocation7 + $0x180] ss:$16 sps:$4 sm:$0xff]  }
 0x57e   :  { %7458 = vmatpush1.bf16.msra.mxu0 %v11865_v52  ;;  %7540 = vmatpush1.bf16.msra.mxu1 %v11868_v53  ;;  %v11952_v52 = vld [vmem:[#allocation7 + $0x188] ss:$16 sps:$4 sm:$0xff]   ;;  %v11957_v53 = vld [vmem:[#allocation7 + $0x1a4] ss:$16 sps:$4 sm:$0xff]  }
 0x57f   :  { %7459 = vmatprep.subr.bf16.mxu0 %v11873_v56  ;;  %7541 = vmatprep.subr.bf16.mxu1 %v11876_v27  ;;  %v11955_v56 = vld [vmem:[#allocation7 + $0x1a0] ss:$16 sps:$4 sm:$0xff]   ;;  %v11958_v27 = vld [vmem:[#allocation7 + $0x1a8] ss:$16 sps:$4 sm:$0xff]  }
 0x582   :  { %7460 = vmatpush1.bf16.msra.mxu0 %v11871_v57  ;;  %7542 = vmatpush1.bf16.msra.mxu1 %v11874_v63  ;;  %v11963_v57 = vld [vmem:[#allocation7 + $0x1c4] ss:$16 sps:$4 sm:$0xff]   ;;  %v11966_v63 = vld [vmem:[#allocation7 + $0x1cc] ss:$16 sps:$4 sm:$0xff]  }
 0x583   :  { %8349 = vmatprep.subr.bf16.mxu0 %v11879_v60  ;;  %8431 = vmatprep.subr.bf16.mxu1 %v11882_v0  ;;  %v11964_v60 = vld [vmem:[#allocation7 + $0x1c8] ss:$16 sps:$4 sm:$0xff]   ;;  %v11969_v0 = vld [vmem:[#allocation7 + $0x1e4] ss:$16 sps:$4 sm:$0xff]  }
 0x585   :  { %7462 = vmatmul.mubr.bf16.vlgmr.msra.gmra.mrb[8].mxu0 %v6597_v3  ;;  %7544 = vmatmul.mubr.bf16.vlgmr.msra.gmra.mrb[12].mxu1 %v6597_v3  ;;  %v11970_v3 = vld [vmem:[#allocation7 + $0x1e8] ss:$16 sps:$4 sm:$0xff]  }
 0x586   :  { %8350 = vmatpush1.bf16.msra.mxu0 %v11877_v54  ;;  %8432 = vmatpush1.bf16.msra.mxu1 %v11880_v2  ;;  %v11972_v54 = vld [vmem:[#allocation7 + $0x1ec] ss:$16 sps:$4 sm:$0xff]   ;;  %v11967_v2 = vld [vmem:[#allocation7 + $0x1e0] ss:$16 sps:$4 sm:$0xff]  }
 0x587   :  { %8351 = vmatprep.subr.bf16.mxu0 %v11885_v12  ;;  %8433 = vmatprep.subr.bf16.mxu1 %v11888_v41  ;;  %v11975_v12 = vld [vmem:[#allocation7 + $0x204] ss:$16 sps:$4 sm:$0xff]   ;;  %v11978_v41 = vld [vmem:[#allocation7 + $0x20c] ss:$16 sps:$4 sm:$0xff]  }
 0x58a   :  { %8352 = vmatpush1.bf16.msra.mxu0 %v11883_v5  ;;  %8434 = vmatpush1.bf16.msra.mxu1 %v11886_v44  ;;  %v12683_v5 = vld [vmem:[#allocation10 + $0x2] ss:$8 sm:$0xf] }
 0x58b   :  { %8353 = vmatprep.subr.bf16.mxu0 %v11891_v9  ;;  %8435 = vmatprep.subr.bf16.mxu1 %v11894_v10  ;;  %v6731_v44 = vrot.slane %v12683_v5, %v12647_v59  ;;  %v6735_v9 = vrot.slane %v12683_v5, %v12652_v62  ;;  %v6743_v10 = vrot.slane %v12683_v5, %v12664_v50 }
 0x58e   :  { %8354 = vmatpush1.bf16.msra.mxu0 %v11889_v11  ;;  %8436 = vmatpush1.bf16.msra.mxu1 %v11892_v61 }
 0x58f   :  { %8355 = vmatprep.subr.bf16.mxu0 %v11897_v48  ;;  %8437 = vmatprep.subr.bf16.mxu1 %v11900_v15 }
 0x592   :  { %8356 = vmatpush1.bf16.msra.mxu0 %v11895_v16  ;;  %8438 = vmatpush1.bf16.msra.mxu1 %v11898_v17 }
 0x593   :  { %8357 = vmatprep.subr.bf16.mxu0 %v11903_v20  ;;  %8439 = vmatprep.subr.bf16.mxu1 %v11906_v6 }
 0x596   :  { %8358 = vmatpush1.bf16.msra.mxu0 %v11901_v14  ;;  %8440 = vmatpush1.bf16.msra.mxu1 %v11904_v4 }
 0x597   :  { %8359 = vmatprep.subr.bf16.mxu0 %v11909_v24  ;;  %8441 = vmatprep.subr.bf16.mxu1 %v11912_v23 }
 0x59a   :  { %8360 = vmatpush1.bf16.msra.mxu0 %v11907_v25  ;;  %8442 = vmatpush1.bf16.msra.mxu1 %v11910_v26 }
 0x59b   :  { %8361 = vmatprep.subr.bf16.mxu0 %v11915_v7  ;;  %8443 = vmatprep.subr.bf16.mxu1 %v11918_v18  ;;  %v11973_v18 = vld [vmem:[#allocation7 + $0x200] ss:$16 sps:$4 sm:$0xff]  }
 0x59e   :  { %8362 = vmatpush1.bf16.msra.mxu0 %v11913_v58  ;;  %8444 = vmatpush1.bf16.msra.mxu1 %v11916_v28  ;;  %v11976_v58 = vld [vmem:[#allocation7 + $0x208] ss:$16 sps:$4 sm:$0xff]  }
 0x59f   :  { %8363 = vmatprep.subr.bf16.mxu0 %v11921_v30  ;;  %8445 = vmatprep.subr.bf16.mxu1 %v11924_v31  ;;  %v11981_v30 = vld [vmem:[#allocation7 + $0x224] ss:$16 sps:$4 sm:$0xff]   ;;  %v11984_v31 = vld [vmem:[#allocation7 + $0x22c] ss:$16 sps:$4 sm:$0xff]  }
 0x5a2   :  { %8364 = vmatpush1.bf16.msra.mxu0 %v11919_v32  ;;  %8446 = vmatpush1.bf16.msra.mxu1 %v11922_v43  ;;  %v11979_v43 = vld [vmem:[#allocation7 + $0x220] ss:$16 sps:$4 sm:$0xff]  }
 0x5a3   :  { %8365 = vmatprep.subr.bf16.mxu0 %v11927_v1  ;;  %8447 = vmatprep.subr.bf16.mxu1 %v11930_v8  ;;  %v11982_v1 = vld [vmem:[#allocation7 + $0x228] ss:$16 sps:$4 sm:$0xff]   ;;  %v11987_v8 = vld [vmem:[#allocation7 + $0x244] ss:$16 sps:$4 sm:$0xff]  }
 0x5a6   :  { %8366 = vmatpush1.bf16.msra.mxu0 %v11925_v22  ;;  %8448 = vmatpush1.bf16.msra.mxu1 %v11928_v51  ;;  %v11990_v22 = vld [vmem:[#allocation7 + $0x24c] ss:$16 sps:$4 sm:$0xff]   ;;  %v11985_v51 = vld [vmem:[#allocation7 + $0x240] ss:$16 sps:$4 sm:$0xff]  }
 0x5a7   :  { %8367 = vmatprep.subr.bf16.mxu0 %v11933_v46  ;;  %8449 = vmatprep.subr.bf16.mxu1 %v11936_v33  ;;  %v11988_v46 = vld [vmem:[#allocation7 + $0x248] ss:$16 sps:$4 sm:$0xff]   ;;  %v11993_v33 = vld [vmem:[#allocation7 + $0x264] ss:$16 sps:$4 sm:$0xff]  }
 0x5aa   :  { %8368 = vmatpush1.bf16.msra.mxu0 %v11931_v35  ;;  %8450 = vmatpush1.bf16.msra.mxu1 %v11934_v36  ;;  %v11996_v35 = vld [vmem:[#allocation7 + $0x26c] ss:$16 sps:$4 sm:$0xff]   ;;  %v11991_v36 = vld [vmem:[#allocation7 + $0x260] ss:$16 sps:$4 sm:$0xff]  }
 0x5ab   :  { %8369 = vmatprep.subr.bf16.mxu0 %v11939_v13  ;;  %8451 = vmatprep.subr.bf16.mxu1 %v11942_v38  ;;  %v11994_v13 = vld [vmem:[#allocation7 + $0x268] ss:$16 sps:$4 sm:$0xff]   ;;  %v11999_v38 = vld [vmem:[#allocation7 + $0x284] ss:$16 sps:$4 sm:$0xff]  }
 0x5ae   :  { %8370 = vmatpush1.bf16.msra.mxu0 %v11937_v39  ;;  %8452 = vmatpush1.bf16.msra.mxu1 %v11940_v40  ;;  %v12002_v39 = vld [vmem:[#allocation7 + $0x28c] ss:$16 sps:$4 sm:$0xff]   ;;  %v11997_v40 = vld [vmem:[#allocation7 + $0x280] ss:$16 sps:$4 sm:$0xff]  }
 0x5af   :  { %8371 = vmatprep.subr.bf16.mxu0 %v11945_v29  ;;  %8453 = vmatprep.subr.bf16.mxu1 %v11948_v42  ;;  %v12000_v29 = vld [vmem:[#allocation7 + $0x288] ss:$16 sps:$4 sm:$0xff]   ;;  %v12005_v42 = vld [vmem:[#allocation7 + $0x2a4] ss:$16 sps:$4 sm:$0xff]  }
 0x5b2   :  { %8372 = vmatpush1.bf16.msra.mxu0 %v11943_v19  ;;  %8454 = vmatpush1.bf16.msra.mxu1 %v11946_v45  ;;  %v12008_v19 = vld [vmem:[#allocation7 + $0x2ac] ss:$16 sps:$4 sm:$0xff]   ;;  %v12003_v45 = vld [vmem:[#allocation7 + $0x2a0] ss:$16 sps:$4 sm:$0xff]  }
 0x5b3   :  { %8373 = vmatprep.subr.bf16.mxu0 %v11951_v21  ;;  %8455 = vmatprep.subr.bf16.mxu1 %v11954_v47  ;;  %v12006_v21 = vld [vmem:[#allocation7 + $0x2a8] ss:$16 sps:$4 sm:$0xff]   ;;  %v12011_v47 = vld [vmem:[#allocation7 + $0x2c4] ss:$16 sps:$4 sm:$0xff]  }
 0x5b6   :  { %8374 = vmatpush1.bf16.msra.mxu0 %v11949_v37  ;;  %8456 = vmatpush1.bf16.msra.mxu1 %v11952_v52  ;;  %v12014_v37 = vld [vmem:[#allocation7 + $0x2cc] ss:$16 sps:$4 sm:$0xff]   ;;  %v12009_v52 = vld [vmem:[#allocation7 + $0x2c0] ss:$16 sps:$4 sm:$0xff]  }
 0x5b7   :  { %8375 = vmatprep.subr.bf16.mxu0 %v11957_v53  ;;  %8457 = vmatprep.subr.bf16.mxu1 %v11960_v55  ;;  %v12012_v53 = vld [vmem:[#allocation7 + $0x2c8] ss:$16 sps:$4 sm:$0xff]   ;;  %v12017_v55 = vld [vmem:[#allocation7 + $0x2e4] ss:$16 sps:$4 sm:$0xff]  }
 0x5ba   :  { %8376 = vmatpush1.bf16.msra.mxu0 %v11955_v56  ;;  %8458 = vmatpush1.bf16.msra.mxu1 %v11958_v27  ;;  %v12020_v56 = vld [vmem:[#allocation7 + $0x2ec] ss:$16 sps:$4 sm:$0xff]   ;;  %v12015_v27 = vld [vmem:[#allocation7 + $0x2e0] ss:$16 sps:$4 sm:$0xff]  }
 0x5bb   :  { %8377 = vmatprep.subr.bf16.mxu0 %v11963_v57  ;;  %8459 = vmatprep.subr.bf16.mxu1 %v11966_v63  ;;  %v12018_v57 = vld [vmem:[#allocation7 + $0x2e8] ss:$16 sps:$4 sm:$0xff]   ;;  %v12023_v63 = vld [vmem:[#allocation7 + $0x304] ss:$16 sps:$4 sm:$0xff]  }
 0x5be   :  { %8378 = vmatpush1.bf16.msra.mxu0 %v11961_v34  ;;  %8460 = vmatpush1.bf16.msra.mxu1 %v11964_v60  ;;  %v12026_v34 = vld [vmem:[#allocation7 + $0x30c] ss:$16 sps:$4 sm:$0xff]   ;;  %v12021_v60 = vld [vmem:[#allocation7 + $0x300] ss:$16 sps:$4 sm:$0xff]  }
 0x5bf   :  { %8379 = vmatprep.subr.bf16.mxu0 %v11969_v0  ;;  %8461 = vmatprep.subr.bf16.mxu1 %v11972_v54  ;;  %v12024_v0 = vld [vmem:[#allocation7 + $0x308] ss:$16 sps:$4 sm:$0xff]   ;;  %v12029_v54 = vld [vmem:[#allocation7 + $0x324] ss:$16 sps:$4 sm:$0xff]  }
 0x5c2   :  { %8380 = vmatpush1.bf16.msra.mxu0 %v11967_v2  ;;  %8462 = vmatpush1.bf16.msra.mxu1 %v11970_v3  ;;  %v12032_v2 = vld [vmem:[#allocation7 + $0x32c] ss:$16 sps:$4 sm:$0xff]   ;;  %v12027_v3 = vld [vmem:[#allocation7 + $0x320] ss:$16 sps:$4 sm:$0xff]  }
 0x5c3   :  { %8390 = vmatprep.subr.bf16.mxu0 %v11975_v12  ;;  %8472 = vmatprep.subr.bf16.mxu1 %v11978_v41  ;;  %v12030_v12 = vld [vmem:[#allocation7 + $0x328] ss:$16 sps:$4 sm:$0xff]   ;;  %v12035_v41 = vld [vmem:[#allocation7 + $0x344] ss:$16 sps:$4 sm:$0xff]  }
 0x658   :  { %v7463_v11 = vpop.f32.mrb[8].mxu0  ;;  %v12691_v61 = vpop.f32.mrb[12].mxu1 }
 0x659   :  { %v10233_v48 = vadd.f32 %v7463_v11, %v6731_v44  ;;  %v7465_v15 = vpop.f32.mrb[9].mxu0  ;;  %v7547_v16 = vpop.f32.mrb[13].mxu1  ;;  %v12038_v44 = vld [vmem:[#allocation7 + $0x34c] ss:$16 sps:$4 sm:$0xff]   ;;  %v12041_v11 = vld [vmem:[#allocation7 + $0x364] ss:$16 sps:$4 sm:$0xff]  }
 0x65a   :  { %v10234_v17 = vadd.f32 %v7465_v15, %v6735_v9  ;;  %v10236_v20 = vadd.f32 %v7547_v16, %v6743_v10  ;;  %v7467_v6 = vpop.f32.mrb[10].mxu0  ;;  %v7549_v14 = vpop.f32.mrb[14].mxu1  ;;  %v12033_v9 = vld [vmem:[#allocation7 + $0x340] ss:$16 sps:$4 sm:$0xff]   ;;  %v12036_v10 = vld [vmem:[#allocation7 + $0x348] ss:$16 sps:$4 sm:$0xff]  }
 0x65b   :  { %v7552_v4 = vmax.f32 %v10233_v48, 0.0  ;;  %v7468_v24 = vpop.f32.mrb[11].mxu0  ;;  %v7550_v23 = vpop.f32.mrb[15].mxu1  ;;  %v12044_v48 = vld [vmem:[#allocation7 + $0x36c] ss:$16 sps:$4 sm:$0xff]  }
 0x65c   :  { %v7553_v25 = vmax.f32 %v10234_v17, 0.0  ;;  %v7555_v26 = vmax.f32 %v10236_v20, 0.0  ;;  %v12039_v15 = vld [vmem:[#allocation7 + $0x360] ss:$16 sps:$4 sm:$0xff]   ;;  %v12042_v16 = vld [vmem:[#allocation7 + $0x368] ss:$16 sps:$4 sm:$0xff]  }
 0x65d   :  { %v7556_v28 = vpack.c.bf16 %v7552_v4, %v7552_v4  ;;  %v12047_v17 = vld [vmem:[#allocation7 + $0x384] ss:$16 sps:$4 sm:$0xff]   ;;  %v12050_v20 = vld [vmem:[#allocation7 + $0x38c] ss:$16 sps:$4 sm:$0xff]   ;;  %v12045_v6 = vld [vmem:[#allocation7 + $0x380] ss:$16 sps:$4 sm:$0xff]  }
 0x65e   :  { %v7557_v7 = vpack.c.bf16 %v7553_v25, %v7553_v25  ;;  %v7559_v32 = vpack.c.bf16 %v7555_v26, %v7555_v26  ;;  %v12048_v14 = vld [vmem:[#allocation7 + $0x388] ss:$16 sps:$4 sm:$0xff]   ;;  %v12053_v4 = vld [vmem:[#allocation7 + $0x3a4] ss:$16 sps:$4 sm:$0xff]   ;;  %v12056_v24 = vld [vmem:[#allocation7 + $0x3ac] ss:$16 sps:$4 sm:$0xff]   ;;  %v6739_v26 = vrot.slane %v12683_v5, %v12661_v49 }
 0x65f   :  { %v12051_v23 = vld [vmem:[#allocation7 + $0x3a0] ss:$16 sps:$4 sm:$0xff]   ;;  %v12054_v25 = vld [vmem:[#allocation7 + $0x3a8] ss:$16 sps:$4 sm:$0xff]   ;;  %v12071_v5 = vld [vmem:[#allocation9 + $0x4] ss:$8 sps:$4 sm:$0xff]  }
 0x660   :  { %8381 = vmatprep.mubr.bf16.mxu0 %v7557_v7  ;;  %8463 = vmatprep.mubr.bf16.mxu1 %v7557_v7  ;;  %v12059_v7 = vld [vmem:[#allocation7 + $0x3c4] ss:$16 sps:$4 sm:$0xff]  }
 0x661   :  { %8382 = vmatmul.mubr.bf16.vlgmr.msra.gmra.mrb[12].mxu0 %v7556_v28  ;;  %8464 = vmatmul.mubr.bf16.vlgmr.msra.gmra.mrb[16].mxu1 %v7556_v28  ;;  %v12060_v28 = vld [vmem:[#allocation7 + $0x3c8] ss:$16 sps:$4 sm:$0xff]  }
 0x662   :  { %8391 = vmatpush1.bf16.msra.mxu0 %v11973_v18  ;;  %8473 = vmatpush1.bf16.msra.mxu1 %v11976_v58  ;;  %v12062_v18 = vld [vmem:[#allocation7 + $0x3cc] ss:$16 sps:$4 sm:$0xff]   ;;  %v12057_v58 = vld [vmem:[#allocation7 + $0x3c0] ss:$16 sps:$4 sm:$0xff]  }
 0x663   :  { %8422 = vmatprep.mubr.bf16.mxu0 %v7559_v32  ;;  %8504 = vmatprep.mubr.bf16.mxu1 %v7559_v32  ;;  %v12068_v32 = vld [vmem:[#allocation7 + $0x3ec] ss:$16 sps:$4 sm:$0xff]  }
 0x664   :  { %8392 = vmatprep.subr.bf16.mxu0 %v11981_v30  ;;  %8474 = vmatprep.subr.bf16.mxu1 %v11984_v31  ;;  %v10235_v30 = vadd.f32 %v12691_v61, %v6739_v26  ;;  %v12065_v31 = vld [vmem:[#allocation7 + $0x3e4] ss:$16 sps:$4 sm:$0xff]   ;;  %v12072_v61 = vld [vmem:[#allocation9 + $0x10] ss:$8 sps:$4 sm:$0xff]  }
 0x666   :  { %8393 = vmatpush1.bf16.msra.mxu0 %v11979_v43  ;;  %8475 = vmatpush1.bf16.msra.mxu1 %v11982_v1  ;;  %v12063_v43 = vld [vmem:[#allocation7 + $0x3e0] ss:$16 sps:$4 sm:$0xff]   ;;  %v12066_v1 = vld [vmem:[#allocation7 + $0x3e8] ss:$16 sps:$4 sm:$0xff]  }
 0x667   :  { %8394 = vmatprep.subr.bf16.mxu0 %v11987_v8  ;;  %8476 = vmatprep.subr.bf16.mxu1 %v11990_v22  ;;  %v7554_v8 = vmax.f32 %v10235_v30, 0.0  ;;  %v12069_v22 = vld [vmem:[#allocation9] ss:$8 sps:$4 sm:$0xff]  }
 0x66a   :  { %8395 = vmatpush1.bf16.msra.mxu0 %v11985_v51  ;;  %8477 = vmatpush1.bf16.msra.mxu1 %v11988_v46  ;;  %v7558_v51 = vpack.c.bf16 %v7554_v8, %v7554_v8  ;;  %v12074_v46 = vld [vmem:[#allocation9 + $0x14] ss:$8 sps:$4 sm:$0xff]  }
 0x66b   :  { %8396 = vmatprep.subr.bf16.mxu0 %v11993_v33  ;;  %8478 = vmatprep.subr.bf16.mxu1 %v11996_v35  ;;  %v12077_v33 = vld [vmem:[#allocation9 + $0x24] ss:$8 sps:$4 sm:$0xff]   ;;  %v12075_v35 = vld [vmem:[#allocation9 + $0x20] ss:$8 sps:$4 sm:$0xff]   ;;  %v12128_v8 = vld [vmem:[#allocation9 + $0x134] ss:$8 sps:$4 sm:$0xff]  }
 0x66e   :  { %8397 = vmatpush1.bf16.msra.mxu0 %v11991_v36  ;;  %8479 = vmatpush1.bf16.msra.mxu1 %v11994_v13  ;;  %v12080_v36 = vld [vmem:[#allocation9 + $0x34] ss:$8 sps:$4 sm:$0xff]   ;;  %v12078_v13 = vld [vmem:[#allocation9 + $0x30] ss:$8 sps:$4 sm:$0xff]  }
 0x66f   :  { %8398 = vmatprep.subr.bf16.mxu0 %v11999_v38  ;;  %8480 = vmatprep.subr.bf16.mxu1 %v12002_v39  ;;  %v12083_v38 = vld [vmem:[#allocation9 + $0x44] ss:$8 sps:$4 sm:$0xff]   ;;  %v12081_v39 = vld [vmem:[#allocation9 + $0x40] ss:$8 sps:$4 sm:$0xff]  }
 0x672   :  { %8399 = vmatpush1.bf16.msra.mxu0 %v11997_v40  ;;  %8481 = vmatpush1.bf16.msra.mxu1 %v12000_v29  ;;  %v12086_v40 = vld [vmem:[#allocation9 + $0x54] ss:$8 sps:$4 sm:$0xff]   ;;  %v12084_v29 = vld [vmem:[#allocation9 + $0x50] ss:$8 sps:$4 sm:$0xff]  }
 0x673   :  { %8400 = vmatprep.subr.bf16.mxu0 %v12005_v42  ;;  %8482 = vmatprep.subr.bf16.mxu1 %v12008_v19  ;;  %v12089_v42 = vld [vmem:[#allocation9 + $0x64] ss:$8 sps:$4 sm:$0xff]   ;;  %v12087_v19 = vld [vmem:[#allocation9 + $0x60] ss:$8 sps:$4 sm:$0xff]  }
 0x676   :  { %8401 = vmatpush1.bf16.msra.mxu0 %v12003_v45  ;;  %8483 = vmatpush1.bf16.msra.mxu1 %v12006_v21  ;;  %v12092_v45 = vld [vmem:[#allocation9 + $0x74] ss:$8 sps:$4 sm:$0xff]   ;;  %v12090_v21 = vld [vmem:[#allocation9 + $0x70] ss:$8 sps:$4 sm:$0xff]  }
 0x677   :  { %8402 = vmatprep.subr.bf16.mxu0 %v12011_v47  ;;  %8484 = vmatprep.subr.bf16.mxu1 %v12014_v37  ;;  %v12095_v47 = vld [vmem:[#allocation9 + $0x84] ss:$8 sps:$4 sm:$0xff]   ;;  %v12093_v37 = vld [vmem:[#allocation9 + $0x80] ss:$8 sps:$4 sm:$0xff]  }
 0x67a   :  { %8403 = vmatpush1.bf16.msra.mxu0 %v12009_v52  ;;  %8485 = vmatpush1.bf16.msra.mxu1 %v12012_v53  ;;  %v12098_v52 = vld [vmem:[#allocation9 + $0x94] ss:$8 sps:$4 sm:$0xff]   ;;  %v12096_v53 = vld [vmem:[#allocation9 + $0x90] ss:$8 sps:$4 sm:$0xff]  }
 0x67b   :  { %8404 = vmatprep.subr.bf16.mxu0 %v12017_v55  ;;  %8486 = vmatprep.subr.bf16.mxu1 %v12020_v56  ;;  %v12101_v55 = vld [vmem:[#allocation9 + $0xa4] ss:$8 sps:$4 sm:$0xff]   ;;  %v12099_v56 = vld [vmem:[#allocation9 + $0xa0] ss:$8 sps:$4 sm:$0xff]  }
 0x67e   :  { %8405 = vmatpush1.bf16.msra.mxu0 %v12015_v27  ;;  %8487 = vmatpush1.bf16.msra.mxu1 %v12018_v57  ;;  %v12104_v27 = vld [vmem:[#allocation9 + $0xb4] ss:$8 sps:$4 sm:$0xff]   ;;  %v12102_v57 = vld [vmem:[#allocation9 + $0xb0] ss:$8 sps:$4 sm:$0xff]  }
 0x67f   :  { %8406 = vmatprep.subr.bf16.mxu0 %v12023_v63  ;;  %8488 = vmatprep.subr.bf16.mxu1 %v12026_v34  ;;  %v12107_v63 = vld [vmem:[#allocation9 + $0xc4] ss:$8 sps:$4 sm:$0xff]   ;;  %v12105_v34 = vld [vmem:[#allocation9 + $0xc0] ss:$8 sps:$4 sm:$0xff]  }
 0x682   :  { %8407 = vmatpush1.bf16.msra.mxu0 %v12021_v60  ;;  %8489 = vmatpush1.bf16.msra.mxu1 %v12024_v0  ;;  %v12110_v60 = vld [vmem:[#allocation9 + $0xd4] ss:$8 sps:$4 sm:$0xff]   ;;  %v12108_v0 = vld [vmem:[#allocation9 + $0xd0] ss:$8 sps:$4 sm:$0xff]  }
 0x683   :  { %8408 = vmatprep.subr.bf16.mxu0 %v12029_v54  ;;  %8490 = vmatprep.subr.bf16.mxu1 %v12032_v2  ;;  %v12113_v54 = vld [vmem:[#allocation9 + $0xe4] ss:$8 sps:$4 sm:$0xff]   ;;  %v12111_v2 = vld [vmem:[#allocation9 + $0xe0] ss:$8 sps:$4 sm:$0xff]  }
 0x686   :  { %8409 = vmatpush1.bf16.msra.mxu0 %v12027_v3  ;;  %8491 = vmatpush1.bf16.msra.mxu1 %v12030_v12  ;;  %v12116_v3 = vld [vmem:[#allocation9 + $0xf4] ss:$8 sps:$4 sm:$0xff]   ;;  %v12114_v12 = vld [vmem:[#allocation9 + $0xf0] ss:$8 sps:$4 sm:$0xff]  }
 0x687   :  { %8410 = vmatprep.subr.bf16.mxu0 %v12035_v41  ;;  %8492 = vmatprep.subr.bf16.mxu1 %v12038_v44  ;;  %v12119_v41 = vld [vmem:[#allocation9 + $0x104] ss:$8 sps:$4 sm:$0xff]   ;;  %v12696_v44 = vld [vmem:[#allocation10 + $0x3] ss:$8 sm:$0xf] }
 0x68a   :  { %8411 = vmatpush1.bf16.msra.mxu0 %v12033_v9  ;;  %8493 = vmatpush1.bf16.msra.mxu1 %v12036_v10  ;;  %v7692_v9 = vrot.slane %v12696_v44, %v12647_v59  ;;  %v7696_v10 = vrot.slane %v12696_v44, %v12652_v62 }
 0x68b   :  { %8412 = vmatprep.subr.bf16.mxu0 %v12041_v11  ;;  %8494 = vmatprep.subr.bf16.mxu1 %v12044_v48  ;;  %v7704_v11 = vrot.slane %v12696_v44, %v12664_v50 }
 0x68e   :  { %8413 = vmatpush1.bf16.msra.mxu0 %v12039_v15  ;;  %8495 = vmatpush1.bf16.msra.mxu1 %v12042_v16 }
 0x68f   :  { %8414 = vmatprep.subr.bf16.mxu0 %v12047_v17  ;;  %8496 = vmatprep.subr.bf16.mxu1 %v12050_v20 }
 0x692   :  { %8415 = vmatpush1.bf16.msra.mxu0 %v12045_v6  ;;  %8497 = vmatpush1.bf16.msra.mxu1 %v12048_v14 }
 0x693   :  { %8416 = vmatprep.subr.bf16.mxu0 %v12053_v4  ;;  %8498 = vmatprep.subr.bf16.mxu1 %v12056_v24 }
 0x696   :  { %8417 = vmatpush1.bf16.msra.mxu0 %v12051_v23  ;;  %8499 = vmatpush1.bf16.msra.mxu1 %v12054_v25 }
 0x697   :  { %8418 = vmatprep.subr.bf16.mxu0 %v12059_v7  ;;  %8500 = vmatprep.subr.bf16.mxu1 %v12062_v18 }
 0x69a   :  { %8419 = vmatpush1.bf16.msra.mxu0 %v12057_v58  ;;  %8501 = vmatpush1.bf16.msra.mxu1 %v12060_v28  ;;  %v12117_v28 = vld [vmem:[#allocation9 + $0x100] ss:$8 sps:$4 sm:$0xff]  }
 0x69b   :  { %8420 = vmatprep.subr.bf16.mxu0 %v12065_v31  ;;  %8502 = vmatprep.subr.bf16.mxu1 %v12068_v32  ;;  %v12122_v31 = vld [vmem:[#allocation9 + $0x114] ss:$8 sps:$4 sm:$0xff]   ;;  %v12120_v32 = vld [vmem:[#allocation9 + $0x110] ss:$8 sps:$4 sm:$0xff]  }
 0x69e   :  { %8421 = vmatpush1.bf16.msra.mxu0 %v12063_v43  ;;  %8503 = vmatpush1.bf16.msra.mxu1 %v12066_v1  ;;  %v12125_v43 = vld [vmem:[#allocation9 + $0x124] ss:$8 sps:$4 sm:$0xff]   ;;  %v12123_v1 = vld [vmem:[#allocation9 + $0x120] ss:$8 sps:$4 sm:$0xff]  }
 0x69f   :  { %8916 = vmatprep.subr.bf16.mxu0 %v12071_v5  ;;  %v12126_v5 = vld [vmem:[#allocation9 + $0x130] ss:$8 sps:$4 sm:$0xff]  }
 0x6a1   :  { %8423 = vmatmul.mubr.bf16.vlgmr.msra.gmra.mrb[12].mxu0 %v7558_v51  ;;  %8505 = vmatmul.mubr.bf16.vlgmr.msra.gmra.mrb[16].mxu1 %v7558_v51  ;;  %v12129_v51 = vld [vmem:[#allocation9 + $0x140] ss:$8 sps:$4 sm:$0xff]  }
 0x6a2   :  { %8917 = vmatpush1.bf16.msra.mxu0 %v12069_v22  ;;  %v12131_v22 = vld [vmem:[#allocation9 + $0x144] ss:$8 sps:$4 sm:$0xff]  }
 0x6a3   :  { %8918 = vmatprep.subr.bf16.mxu0 %v12074_v46  ;;  %v12134_v46 = vld [vmem:[#allocation9 + $0x154] ss:$8 sps:$4 sm:$0xff]  }
 0x6a6   :  { %8919 = vmatpush1.bf16.msra.mxu0 %v12072_v61  ;;  %v12132_v61 = vld [vmem:[#allocation9 + $0x150] ss:$8 sps:$4 sm:$0xff]  }
 0x6a7   :  { %8920 = vmatprep.subr.bf16.mxu0 %v12077_v33  ;;  %v12137_v33 = vld [vmem:[#allocation9 + $0x164] ss:$8 sps:$4 sm:$0xff]  }
 0x6aa   :  { %8921 = vmatpush1.bf16.msra.mxu0 %v12075_v35  ;;  %v12135_v35 = vld [vmem:[#allocation9 + $0x160] ss:$8 sps:$4 sm:$0xff]  }
 0x6ab   :  { %8922 = vmatprep.subr.bf16.mxu0 %v12080_v36  ;;  %v12140_v36 = vld [vmem:[#allocation9 + $0x174] ss:$8 sps:$4 sm:$0xff]  }
 0x6ae   :  { %8923 = vmatpush1.bf16.msra.mxu0 %v12078_v13  ;;  %v12138_v13 = vld [vmem:[#allocation9 + $0x170] ss:$8 sps:$4 sm:$0xff]  }
 0x6af   :  { %8924 = vmatprep.subr.bf16.mxu0 %v12083_v38  ;;  %v12143_v38 = vld [vmem:[#allocation9 + $0x184] ss:$8 sps:$4 sm:$0xff]  }
 0x6b2   :  { %8925 = vmatpush1.bf16.msra.mxu0 %v12081_v39  ;;  %v12141_v39 = vld [vmem:[#allocation9 + $0x180] ss:$8 sps:$4 sm:$0xff]  }
 0x6b3   :  { %8926 = vmatprep.subr.bf16.mxu0 %v12086_v40  ;;  %v12146_v40 = vld [vmem:[#allocation9 + $0x194] ss:$8 sps:$4 sm:$0xff]  }
 0x6b6   :  { %8927 = vmatpush1.bf16.msra.mxu0 %v12084_v29  ;;  %v12144_v29 = vld [vmem:[#allocation9 + $0x190] ss:$8 sps:$4 sm:$0xff]  }
 0x6b7   :  { %8928 = vmatprep.subr.bf16.mxu0 %v12089_v42  ;;  %v12149_v42 = vld [vmem:[#allocation9 + $0x1a4] ss:$8 sps:$4 sm:$0xff]  }
 0x6ba   :  { %8929 = vmatpush1.bf16.msra.mxu0 %v12087_v19  ;;  %v12147_v19 = vld [vmem:[#allocation9 + $0x1a0] ss:$8 sps:$4 sm:$0xff]  }
 0x6bb   :  { %8930 = vmatprep.subr.bf16.mxu0 %v12092_v45  ;;  %v12152_v45 = vld [vmem:[#allocation9 + $0x1b4] ss:$8 sps:$4 sm:$0xff]  }
 0x6be   :  { %8931 = vmatpush1.bf16.msra.mxu0 %v12090_v21  ;;  %v12150_v21 = vld [vmem:[#allocation9 + $0x1b0] ss:$8 sps:$4 sm:$0xff]  }
 0x6bf   :  { %8932 = vmatprep.subr.bf16.mxu0 %v12095_v47  ;;  %v12155_v47 = vld [vmem:[#allocation9 + $0x1c4] ss:$8 sps:$4 sm:$0xff]  }
 0x6c2   :  { %8933 = vmatpush1.bf16.msra.mxu0 %v12093_v37  ;;  %v12153_v37 = vld [vmem:[#allocation9 + $0x1c0] ss:$8 sps:$4 sm:$0xff]  }
 0x6c3   :  { %8934 = vmatprep.subr.bf16.mxu0 %v12098_v52  ;;  %v12158_v52 = vld [vmem:[#allocation9 + $0x1d4] ss:$8 sps:$4 sm:$0xff]  }
 0x6c6   :  { %8935 = vmatpush1.bf16.msra.mxu0 %v12096_v53  ;;  %v12156_v53 = vld [vmem:[#allocation9 + $0x1d0] ss:$8 sps:$4 sm:$0xff]  }
 0x6c7   :  { %8936 = vmatprep.subr.bf16.mxu0 %v12101_v55  ;;  %v7700_v55 = vrot.slane %v12696_v44, %v12661_v49 }
 0x6ca   :  { %8937 = vmatpush1.bf16.msra.mxu0 %v12099_v56  ;;  %v12161_v56 = vld [vmem:[#allocation9 + $0x1e4] ss:$8 sps:$4 sm:$0xff]  }
 0x6cb   :  { %8938 = vmatprep.subr.bf16.mxu0 %v12104_v27  ;;  %v12159_v27 = vld [vmem:[#allocation9 + $0x1e0] ss:$8 sps:$4 sm:$0xff]  }
 0x6ce   :  { %8939 = vmatpush1.bf16.msra.mxu0 %v12102_v57 }
 0x6cf   :  { %8940 = vmatprep.subr.bf16.mxu0 %v12107_v63  ;;  %v12164_v63 = vld [vmem:[#allocation9 + $0x1f4] ss:$8 sps:$4 sm:$0xff]  }
 0x6d2   :  { %8941 = vmatpush1.bf16.msra.mxu0 %v12105_v34  ;;  %v12162_v34 = vld [vmem:[#allocation9 + $0x1f0] ss:$8 sps:$4 sm:$0xff]  }
 0x6d3   :  { %8942 = vmatprep.subr.bf16.mxu0 %v12110_v60 }
 0x6d6   :  { %8943 = vmatpush1.bf16.msra.mxu0 %v12108_v0 }
 0x6d7   :  { %8944 = vmatprep.subr.bf16.mxu0 %v12113_v54  ;;  %v115_v54 = vld [vmem:[#allocation10 + $0x4] ss:$8 sm:$0x3] }
 0x6da   :  { %8945 = vmatpush1.bf16.msra.mxu0 %v12111_v2  ;;  %v8593_v2 = vrot.slane %v115_v54, %v12652_v62 }
 0x6db   :  { %8946 = vmatprep.subr.bf16.mxu0 %v12116_v3 }
 0x6de   :  { %8947 = vmatpush1.bf16.msra.mxu0 %v12114_v12 }
 0x6df   :  { %8957 = vmatprep.subr.bf16.mxu0 %v12119_v41 }
 0x774   :  { %v8424_v48 = vpop.f32.mrb[12].mxu0  ;;  %v12704_v15 = vpop.f32.mrb[16].mxu1 }
 0x775   :  { %v10237_v16 = vadd.f32 %v8424_v48, %v7692_v9  ;;  %v8426_v17 = vpop.f32.mrb[13].mxu0  ;;  %v8508_v20 = vpop.f32.mrb[17].mxu1  ;;  %v10239_v57 = vadd.f32 %v12704_v15, %v7700_v55  ;;  %v8589_v9 = vrot.slane %v115_v54, %v12647_v59 }
 0x776   :  { %v10238_v6 = vadd.f32 %v8426_v17, %v7696_v10  ;;  %v10240_v14 = vadd.f32 %v8508_v20, %v7704_v11  ;;  %v8428_v4 = vpop.f32.mrb[14].mxu0  ;;  %v8510_v24 = vpop.f32.mrb[18].mxu1 }
 0x777   :  { %v8513_v23 = vmax.f32 %v10237_v16, 0.0  ;;  %v8429_v25 = vpop.f32.mrb[15].mxu0  ;;  %v8511_v26 = vpop.f32.mrb[19].mxu1  ;;  %v8515_v60 = vmax.f32 %v10239_v57, 0.0 }
 0x778   :  { %v8514_v7 = vmax.f32 %v10238_v6, 0.0  ;;  %v8516_v18 = vmax.f32 %v10240_v14, 0.0 }
 0x779   :  { %v8517_v30 = vpack.c.bf16 %v8513_v23, %v8513_v23  ;;  %v8519_v0 = vpack.c.bf16 %v8515_v60, %v8515_v60 }
 0x77a   :  { %v8518_v58 = vpack.c.bf16 %v8514_v7, %v8514_v7  ;;  %v8520_v50 = vpack.c.bf16 %v8516_v18, %v8516_v18 }
 0x77c   :  { %8948 = vmatprep.mubr.bf16.mxu0 %v8518_v58 }
 0x77d   :  { %8949 = vmatmul.mubr.bf16.vlgmr.msra.gmra.mrb[16].mxu0 %v8517_v30 }
 0x77e   :  { %8958 = vmatpush1.bf16.msra.mxu0 %v12117_v28  ;;  %8989 = vmatprep.mubr.bf16.mxu0 %v8520_v50 }
 0x77f   :  { %8959 = vmatprep.subr.bf16.mxu0 %v12122_v31 }
 0x782   :  { %8960 = vmatpush1.bf16.msra.mxu0 %v12120_v32 }
 0x783   :  { %8961 = vmatprep.subr.bf16.mxu0 %v12125_v43 }
 0x786   :  { %8962 = vmatpush1.bf16.msra.mxu0 %v12123_v1 }
 0x787   :  { %8963 = vmatprep.subr.bf16.mxu0 %v12128_v8 }
 0x78a   :  { %8964 = vmatpush1.bf16.msra.mxu0 %v12126_v5 }
 0x78b   :  { %8965 = vmatprep.subr.bf16.mxu0 %v12131_v22 }
 0x78e   :  { %8966 = vmatpush1.bf16.msra.mxu0 %v12129_v51 }
 0x78f   :  { %8967 = vmatprep.subr.bf16.mxu0 %v12134_v46 }
 0x792   :  { %8968 = vmatpush1.bf16.msra.mxu0 %v12132_v61 }
 0x793   :  { %8969 = vmatprep.subr.bf16.mxu0 %v12137_v33 }
 0x796   :  { %8970 = vmatpush1.bf16.msra.mxu0 %v12135_v35 }
 0x797   :  { %8971 = vmatprep.subr.bf16.mxu0 %v12140_v36 }
 0x79a   :  { %8972 = vmatpush1.bf16.msra.mxu0 %v12138_v13 }
 0x79b   :  { %8973 = vmatprep.subr.bf16.mxu0 %v12143_v38 }
 0x79e   :  { %8974 = vmatpush1.bf16.msra.mxu0 %v12141_v39 }
 0x79f   :  { %8975 = vmatprep.subr.bf16.mxu0 %v12146_v40 }
 0x7a2   :  { %8976 = vmatpush1.bf16.msra.mxu0 %v12144_v29 }
 0x7a3   :  { %8977 = vmatprep.subr.bf16.mxu0 %v12149_v42 }
 0x7a6   :  { %8978 = vmatpush1.bf16.msra.mxu0 %v12147_v19 }
 0x7a7   :  { %8979 = vmatprep.subr.bf16.mxu0 %v12152_v45 }
 0x7aa   :  { %8980 = vmatpush1.bf16.msra.mxu0 %v12150_v21 }
 0x7ab   :  { %8981 = vmatprep.subr.bf16.mxu0 %v12155_v47 }
 0x7ae   :  { %8982 = vmatpush1.bf16.msra.mxu0 %v12153_v37 }
 0x7af   :  { %8983 = vmatprep.subr.bf16.mxu0 %v12158_v52 }
 0x7b2   :  { %8984 = vmatpush1.bf16.msra.mxu0 %v12156_v53 }
 0x7b3   :  { %8985 = vmatprep.subr.bf16.mxu0 %v12161_v56 }
 0x7b6   :  { %8986 = vmatpush1.bf16.msra.mxu0 %v12159_v27 }
 0x7b7   :  { %8987 = vmatprep.subr.bf16.mxu0 %v12164_v63 }
 0x7ba   :  { %8988 = vmatpush1.bf16.msra.mxu0 %v12162_v34 }
 0x7bd   :  { %8990 = vmatmul.mubr.bf16.vlgmr.msra.gmra.mrb[16].mxu0 %v8519_v0 }
 0x890   :  { %v8991_v3 = vpop.f32.mrb[16].mxu0 }
 0x891   :  { %v8993_v49 = vpop.f32.mrb[17].mxu0  ;;  %v10241_v10 = vadd.f32 %v8991_v3, %v8589_v9 }
 0x892   :  { %v10242_v12 = vadd.f32 %v8993_v49, %v8593_v2  ;;  %v8995_v41 = vpop.f32.mrb[18].mxu0 }
 0x893   :  { %v8996_v44 = vpop.f32.mrb[19].mxu0 }
 0x894   :  { %12165 = vtanh.f32 %v10242_v12 }
 0x89e   :  { %v12166_v11 = vpop.eup %12165 }
 0x89f   :  { %v10221_v48 = vpack.c.bf16 %v12166_v11, %v10241_v10 }
 0x8a1   :  { %10222 = vst [vmem:[%s12721_s7] sm:$0xff] %v10221_v48  }
 0x8a2   :  { %9007 = vsyncpa [#allocation3], 1 }
 0x8a3   :  { %9008 = vsyncpa [#allocation5], 1 }
 0x8a4   :  { %9009 = vsyncpa [#allocation8], 1 }
 0x8a5   :  { %9010 = vsyncpa [#allocation11], 1 }

</bundles_post_ra>
